<compile_context>
chip_gen: v7x
topology: tpu7x:2x2x1
jax: 0.10.0
libtpu: 0.0.40
codegen_flags: <defaults>
</compile_context>

<pallas_src>
import functools

import jax
import jax.numpy as jnp
from jax.experimental import pallas as pl
from jax.experimental.pallas import tpu as pltpu


CP = 128  # lane-dense channel padding for activations, weights and biases


# ----------------------------- Pallas kernels -------------------------------

def _conv3x3_kernel(x_ref, w_ref, b_ref, o_ref, *scratch, pool, h, w):
    """Fused 3x3 conv (stride 1, pad 1) + bias + ReLU [+ 2x2 max-pool].

    x_ref : (1, h+2, w+2, cin)   spatially padded NHWC input for one batch elem
    w_ref : (9, cin, CP)         taps ordered (dy, dx), Cout padded to CP
    b_ref : (1, CP)
    o_ref : (1, h, w, CP) or (1, h//2, w//2, CP) if pool
    scratch: (fr_ref,) = VMEM (h*w, CP) full-res buffer, only when pool=True
    """
    cin = x_ref.shape[-1]
    xv = x_ref[0]                                   # (h+2, w+2, cin)

    acc = None
    for dy in range(3):
        for dx in range(3):
            patch = xv[dy:dy + h, dx:dx + w, :]     # (h, w, cin) static slice
            a2d = patch.reshape(h * w, cin)         # w % 8 == 0 -> cheap reshape
            part = jnp.dot(a2d, w_ref[dy * 3 + dx],
                           preferred_element_type=jnp.float32)
            acc = part if acc is None else acc + part

    acc = acc + b_ref[...]                          # (h*w, CP) + (1, CP)
    acc = jnp.maximum(acc, 0.0)                     # ReLU

    if pool:
        fr_ref = scratch[0]
        fr_ref[...] = acc                           # full-res stays in VMEM
        hw2 = (h * w) // 2
        wo, ho = w // 2, h // 2
        # width-direction pairs are adjacent rows of the (h*w, CP) matrix
        even = fr_ref[pl.ds(0, hw2, stride=2), :]   # (y, x even)
        odd = fr_ref[pl.ds(1, hw2, stride=2), :]    # (y, x odd)
        wm = jnp.maximum(even, odd)                 # (h*wo, CP)
        # height-direction pairs: rows 2i / 2i+1 -> two aligned halves after reshape
        wm2 = wm.reshape(ho, 2 * wo, CP)
        out = jnp.maximum(wm2[:, :wo, :], wm2[:, wo:, :])   # (ho, wo, CP)
        o_ref[0] = out.astype(o_ref.dtype)
    else:
        o_ref[0] = acc.reshape(h, w, CP).astype(o_ref.dtype)


def _matmul_bias_act_kernel(a_ref, w_ref, b_ref, o_ref, *, act):
    """One (TM, K) x (K, CP) tile: fused matmul + bias + activation (lane-dense)."""
    acc = jnp.dot(a_ref[...], w_ref[...], preferred_element_type=jnp.float32)
    acc = acc + b_ref[...]
    if act == "relu":
        acc = jnp.maximum(acc, 0.0)
    elif act == "sigmoid":
        acc = jax.nn.sigmoid(acc)
    o_ref[...] = acc.astype(o_ref.dtype)


# ------------------------------ kernel wrappers ------------------------------

def _pad_w3x3(w, cin_store):
    """(3,3,cin,cout) -> (9, cin_store, CP), zero-padded on cin/cout."""
    _, _, cin, cout = w.shape
    wp = jnp.zeros((3, 3, cin_store, CP), w.dtype)
    wp = wp.at[:, :, :cin, :cout].set(w)
    return wp.reshape(9, cin_store, CP)


def _pad_b(b):
    return jnp.zeros((1, CP), b.dtype).at[0, :b.shape[0]].set(b)


def conv3x3_relu(x, w, b, *, pool=False):
    """x:(N,H,W,Cs) NHWC (Cs = stored channel width), w:(3,3,Cin,Cout), b:(Cout,)."""
    n, h, wd, cs = x.shape
    xp = jnp.pad(x, ((0, 0), (1, 1), (1, 1), (0, 0)))     # glue: 1-pixel halo
    wp = _pad_w3x3(w, cs)
    bp = _pad_b(b)
    ho, wo = (h // 2, wd // 2) if pool else (h, wd)
    scratch = [pltpu.VMEM((h * wd, CP), jnp.float32)] if pool else []
    kernel = functools.partial(_conv3x3_kernel, pool=pool, h=h, w=wd)
    return pl.pallas_call(
        kernel,
        out_shape=jax.ShapeDtypeStruct((n, ho, wo, CP), jnp.float32),
        grid=(n,),
        in_specs=[
            pl.BlockSpec((1, h + 2, wd + 2, cs), lambda i: (i, 0, 0, 0)),
            pl.BlockSpec((9, cs, CP), lambda i: (0, 0, 0)),      # resident weights
            pl.BlockSpec((1, CP), lambda i: (0, 0)),             # resident bias
        ],
        out_specs=pl.BlockSpec((1, ho, wo, CP), lambda i: (i, 0, 0, 0)),
        scratch_shapes=scratch,
        compiler_params=pltpu.CompilerParams(
            dimension_semantics=("parallel",)),                  # batch across TCs
    )(xp, wp, bp)


def conv1x1_sigmoid(x, w, b, tm=512):
    """x:(N,H,W,CP), w:(1,1,Cin,Cout) -> (N,H,W,CP) with sigmoid, lane-dense."""
    n, h, wd, cs = x.shape
    cin, cout = w.shape[2], w.shape[3]
    wp = jnp.zeros((cs, CP), w.dtype).at[:cin, :cout].set(w.reshape(cin, cout))
    bp = _pad_b(b)
    m = n * h * wd
    tm = min(tm, m)
    a = x.reshape(m, cs)
    out = pl.pallas_call(
        functools.partial(_matmul_bias_act_kernel, act="sigmoid"),
        out_shape=jax.ShapeDtypeStruct((m, CP), jnp.float32),
        grid=(pl.cdiv(m, tm),),                                  # no M padding copy
        in_specs=[
            pl.BlockSpec((tm, cs), lambda i: (i, 0)),
            pl.BlockSpec((cs, CP), lambda i: (0, 0)),
            pl.BlockSpec((1, CP), lambda i: (0, 0)),
        ],
        out_specs=pl.BlockSpec((tm, CP), lambda i: (i, 0)),
        compiler_params=pltpu.CompilerParams(
            dimension_semantics=("parallel",)),
    )(a, wp, bp)
    return out.reshape(n, h, wd, CP)


def upsample_nearest2x(x):
    # TODO(synk): pure data movement; could be fused into the next conv's read
    # pattern once the conv kernel is spatially tiled (replicated index_map).
    return jnp.repeat(jnp.repeat(x, 2, axis=1), 2, axis=2)


# ------------------------------- parameters ---------------------------------

def init_params(key, in_channels, out_channels):
    """Deterministic init matching PyTorch Conv2d default U(-1/sqrt(fan_in), +)."""
    f = [10, 20, 30, 20, 10, out_channels]
    shapes = [
        (3, 3, in_channels, f[0]),   # conv1
        (3, 3, f[0], f[1]),          # conv2
        (3, 3, f[1], f[2]),          # conv3 (a)
        (3, 3, f[2], f[2]),          # conv3 (b)
        (3, 3, f[2], f[3]),          # conv4
        (3, 3, f[3], f[4]),          # conv5
        (1, 1, f[4], f[5]),          # conv6 (1x1)
    ]
    params = []
    for s in shapes:
        key, kw, kb = jax.random.split(key, 3)
        fan_in = s[0] * s[1] * s[2]
        bound = 1.0 / (fan_in ** 0.5)
        w = jax.random.uniform(kw, s, jnp.float32, -bound, bound)
        b = jax.random.uniform(kb, (s[-1],), jnp.float32, -bound, bound)
        params.append((w, b))
    return params


# ------------------------------- forward pass --------------------------------

def cnn_forward(x_nchw, params):
    # layout: NCHW (PyTorch) -> NHWC for the kernels; intermediates carry CP=128
    # padded channels end-to-end (lane-dense stores/loads, no per-layer slicing).
    x = jnp.transpose(x_nchw, (0, 2, 3, 1))
    (w1, b1), (w2, b2), (w3a, b3a), (w3b, b3b), (w4, b4), (w5, b5), (w6, b6) = params
    x1 = conv3x3_relu(x, w1, b1, pool=True)                     # conv1 (+pool fused)
    x2 = conv3x3_relu(x1, w2, b2, pool=True)                    # conv2 (+pool fused)
    x3 = conv3x3_relu(conv3x3_relu(x2, w3a, b3a), w3b, b3b)     # conv3
    x4 = upsample_nearest2x(conv3x3_relu(x3, w4, b4))           # conv4
    x5 = upsample_nearest2x(conv3x3_relu(x4, w5, b5))           # conv5
    x6 = conv1x1_sigmoid(x5, w6, b6)                            # conv6
    cout = w6.shape[-1]
    return jnp.transpose(x6[..., :cout], (0, 3, 1, 2))          # slice pad, to NCHW


# ------------------------- pure-JAX reference (check) ------------------------

def _ref_conv(x, w, b, act):
    out = jax.lax.conv_general_dilated(
        x, w, (1, 1), "SAME", dimension_numbers=("NHWC", "HWIO", "NHWC"))
    out = out + b
    return jnp.maximum(out, 0.0) if act == "relu" else jax.nn.sigmoid(out)


def _ref_pool(x):
    return jax.lax.reduce_window(x, -jnp.inf, jax.lax.max,
                                 (1, 2, 2, 1), (1, 2, 2, 1), "VALID")


def cnn_reference(x_nchw, params):
    x = jnp.transpose(x_nchw, (0, 2, 3, 1))
    (w1, b1), (w2, b2), (w3a, b3a), (w3b, b3b), (w4, b4), (w5, b5), (w6, b6) = params
    x1 = _ref_pool(_ref_conv(x, w1, b1, "relu"))
    x2 = _ref_pool(_ref_conv(x1, w2, b2, "relu"))
    x3 = _ref_conv(_ref_conv(x2, w3a, b3a, "relu"), w3b, b3b, "relu")
    x4 = upsample_nearest2x(_ref_conv(x3, w4, b4, "relu"))
    x5 = upsample_nearest2x(_ref_conv(x4, w5, b5, "relu"))
    x6 = _ref_conv(x5, w6, b6, "sigmoid")
    return jnp.transpose(x6, (0, 3, 1, 2))


# ----------------------------------- main ------------------------------------

if __name__ == "__main__":
    key = jax.random.PRNGKey(0)
    kx, kp = jax.random.split(key)

    # spatial=32 so every per-layer width (32,16,8,8,16) stays a multiple of 8,
    # keeping all in-kernel reshapes layout-preserving; /4 needed for the 2 pools.
    N, CIN, H, W = 2, 3, 32, 32
    COUT = 3
    x = jax.random.normal(kx, (N, CIN, H, W), jnp.float32)
    params = init_params(kp, CIN, COUT)

    y = cnn_forward(x, params)
    y = jax.block_until_ready(y)

    assert y.shape == (N, COUT, H, W), y.shape
    y_ref = cnn_reference(x, params)
    err = float(jnp.max(jnp.abs(y - y_ref)))
    if err > 2e-4:
        raise AssertionError(f"Pallas CNN mismatch vs reference: max|diff|={err}")

    print("KERNEL_OK")
</pallas_src>

<mosaic_0001>
module attributes {stable_mosaic.version = 11 : i64} {
  func.func @_conv3x3_kernel(%arg0: i32, %arg1: memref<1x34x34x3xf32, #tpu.memory_space<vmem>>, %arg2: memref<9x3x128xf32, #tpu.memory_space<vmem>>, %arg3: memref<1x128xf32, #tpu.memory_space<vmem>>, %arg4: memref<1x16x16x128xf32, #tpu.memory_space<vmem>>, %arg5: memref<1024x128xf32, #tpu.memory_space<vmem>>) attributes {dimension_semantics = [#tpu.dimension_semantics<parallel>], iteration_bounds = array<i64: 2>, scalar_prefetch = 0 : i64, scratch_operands = 1 : i64, tpu.core_type = #tpu.core_type<tc>, window_params = [{transform_indices = @transform_0, window_bounds = array<i64: 1, 34, 34, 3>}, {pipeline_mode = #tpu.pipeline_mode<synchronous>, transform_indices = @transform_1, window_bounds = array<i64: 9, 3, 128>}, {pipeline_mode = #tpu.pipeline_mode<synchronous>, transform_indices = @transform_2, window_bounds = array<i64: 1, 128>}, {transform_indices = @transform_3, window_bounds = array<i64: 1, 16, 16, 128>}]} {
    %c0 = arith.constant 0 : index
    %c0_0 = arith.constant 0 : index
    %c0_1 = arith.constant 0 : index
    %c0_2 = arith.constant 0 : index
    %0 = vector.load %arg1[%c0, %c0_0, %c0_1, %c0_2] : memref<1x34x34x3xf32, #tpu.memory_space<vmem>>, vector<1x34x34x3xf32>
    %1 = vector.shape_cast %0 : vector<1x34x34x3xf32> to vector<34x34x3xf32>
    %2 = vector.extract_strided_slice %1 {offsets = [0, 0, 0], sizes = [32, 32, 3], strides = [1, 1, 1]} : vector<34x34x3xf32> to vector<32x32x3xf32>
    %3 = vector.shape_cast %2 : vector<32x32x3xf32> to vector<1024x3xf32>
    %c0_3 = arith.constant 0 : index
    %c0_4 = arith.constant 0 : index
    %c0_5 = arith.constant 0 : index
    %4 = vector.load %arg2[%c0_3, %c0_4, %c0_5] : memref<9x3x128xf32, #tpu.memory_space<vmem>>, vector<1x3x128xf32>
    %5 = vector.shape_cast %4 : vector<1x3x128xf32> to vector<3x128xf32>
    %cst = arith.constant dense<0.000000e+00> : vector<1024x128xf32>
    %6 = tpu.matmul %3, %5, %cst {dimension_numbers = #tpu.dot_dimension_numbers<[1], [0], [0], [1], [0, 0, 1, 1], [], []>} : vector<1024x3xf32>, vector<3x128xf32>, vector<1024x128xf32> -> vector<1024x128xf32>
    %7 = vector.extract_strided_slice %1 {offsets = [0, 1, 0], sizes = [32, 32, 3], strides = [1, 1, 1]} : vector<34x34x3xf32> to vector<32x32x3xf32>
    %8 = vector.shape_cast %7 : vector<32x32x3xf32> to vector<1024x3xf32>
    %c1 = arith.constant 1 : index
    %c0_6 = arith.constant 0 : index
    %c0_7 = arith.constant 0 : index
    %9 = vector.load %arg2[%c1, %c0_6, %c0_7] : memref<9x3x128xf32, #tpu.memory_space<vmem>>, vector<1x3x128xf32>
    %10 = vector.shape_cast %9 : vector<1x3x128xf32> to vector<3x128xf32>
    %cst_8 = arith.constant dense<0.000000e+00> : vector<1024x128xf32>
    %11 = tpu.matmul %8, %10, %cst_8 {dimension_numbers = #tpu.dot_dimension_numbers<[1], [0], [0], [1], [0, 0, 1, 1], [], []>} : vector<1024x3xf32>, vector<3x128xf32>, vector<1024x128xf32> -> vector<1024x128xf32>
    %12 = arith.addf %6, %11 : vector<1024x128xf32>
    %13 = vector.extract_strided_slice %1 {offsets = [0, 2, 0], sizes = [32, 32, 3], strides = [1, 1, 1]} : vector<34x34x3xf32> to vector<32x32x3xf32>
    %14 = vector.shape_cast %13 : vector<32x32x3xf32> to vector<1024x3xf32>
    %c2 = arith.constant 2 : index
    %c0_9 = arith.constant 0 : index
    %c0_10 = arith.constant 0 : index
    %15 = vector.load %arg2[%c2, %c0_9, %c0_10] : memref<9x3x128xf32, #tpu.memory_space<vmem>>, vector<1x3x128xf32>
    %16 = vector.shape_cast %15 : vector<1x3x128xf32> to vector<3x128xf32>
    %cst_11 = arith.constant dense<0.000000e+00> : vector<1024x128xf32>
    %17 = tpu.matmul %14, %16, %cst_11 {dimension_numbers = #tpu.dot_dimension_numbers<[1], [0], [0], [1], [0, 0, 1, 1], [], []>} : vector<1024x3xf32>, vector<3x128xf32>, vector<1024x128xf32> -> vector<1024x128xf32>
    %18 = arith.addf %12, %17 : vector<1024x128xf32>
    %19 = vector.extract_strided_slice %1 {offsets = [1, 0, 0], sizes = [32, 32, 3], strides = [1, 1, 1]} : vector<34x34x3xf32> to vector<32x32x3xf32>
    %20 = vector.shape_cast %19 : vector<32x32x3xf32> to vector<1024x3xf32>
    %c3 = arith.constant 3 : index
    %c0_12 = arith.constant 0 : index
    %c0_13 = arith.constant 0 : index
    %21 = vector.load %arg2[%c3, %c0_12, %c0_13] : memref<9x3x128xf32, #tpu.memory_space<vmem>>, vector<1x3x128xf32>
    %22 = vector.shape_cast %21 : vector<1x3x128xf32> to vector<3x128xf32>
    %cst_14 = arith.constant dense<0.000000e+00> : vector<1024x128xf32>
    %23 = tpu.matmul %20, %22, %cst_14 {dimension_numbers = #tpu.dot_dimension_numbers<[1], [0], [0], [1], [0, 0, 1, 1], [], []>} : vector<1024x3xf32>, vector<3x128xf32>, vector<1024x128xf32> -> vector<1024x128xf32>
    %24 = arith.addf %18, %23 : vector<1024x128xf32>
    %25 = vector.extract_strided_slice %1 {offsets = [1, 1, 0], sizes = [32, 32, 3], strides = [1, 1, 1]} : vector<34x34x3xf32> to vector<32x32x3xf32>
    %26 = vector.shape_cast %25 : vector<32x32x3xf32> to vector<1024x3xf32>
    %c4 = arith.constant 4 : index
    %c0_15 = arith.constant 0 : index
    %c0_16 = arith.constant 0 : index
    %27 = vector.load %arg2[%c4, %c0_15, %c0_16] : memref<9x3x128xf32, #tpu.memory_space<vmem>>, vector<1x3x128xf32>
    %28 = vector.shape_cast %27 : vector<1x3x128xf32> to vector<3x128xf32>
    %cst_17 = arith.constant dense<0.000000e+00> : vector<1024x128xf32>
    %29 = tpu.matmul %26, %28, %cst_17 {dimension_numbers = #tpu.dot_dimension_numbers<[1], [0], [0], [1], [0, 0, 1, 1], [], []>} : vector<1024x3xf32>, vector<3x128xf32>, vector<1024x128xf32> -> vector<1024x128xf32>
    %30 = arith.addf %24, %29 : vector<1024x128xf32>
    %31 = vector.extract_strided_slice %1 {offsets = [1, 2, 0], sizes = [32, 32, 3], strides = [1, 1, 1]} : vector<34x34x3xf32> to vector<32x32x3xf32>
    %32 = vector.shape_cast %31 : vector<32x32x3xf32> to vector<1024x3xf32>
    %c5 = arith.constant 5 : index
    %c0_18 = arith.constant 0 : index
    %c0_19 = arith.constant 0 : index
    %33 = vector.load %arg2[%c5, %c0_18, %c0_19] : memref<9x3x128xf32, #tpu.memory_space<vmem>>, vector<1x3x128xf32>
    %34 = vector.shape_cast %33 : vector<1x3x128xf32> to vector<3x128xf32>
    %cst_20 = arith.constant dense<0.000000e+00> : vector<1024x128xf32>
    %35 = tpu.matmul %32, %34, %cst_20 {dimension_numbers = #tpu.dot_dimension_numbers<[1], [0], [0], [1], [0, 0, 1, 1], [], []>} : vector<1024x3xf32>, vector<3x128xf32>, vector<1024x128xf32> -> vector<1024x128xf32>
    %36 = arith.addf %30, %35 : vector<1024x128xf32>
    %37 = vector.extract_strided_slice %1 {offsets = [2, 0, 0], sizes = [32, 32, 3], strides = [1, 1, 1]} : vector<34x34x3xf32> to vector<32x32x3xf32>
    %38 = vector.shape_cast %37 : vector<32x32x3xf32> to vector<1024x3xf32>
    %c6 = arith.constant 6 : index
    %c0_21 = arith.constant 0 : index
    %c0_22 = arith.constant 0 : index
    %39 = vector.load %arg2[%c6, %c0_21, %c0_22] : memref<9x3x128xf32, #tpu.memory_space<vmem>>, vector<1x3x128xf32>
    %40 = vector.shape_cast %39 : vector<1x3x128xf32> to vector<3x128xf32>
    %cst_23 = arith.constant dense<0.000000e+00> : vector<1024x128xf32>
    %41 = tpu.matmul %38, %40, %cst_23 {dimension_numbers = #tpu.dot_dimension_numbers<[1], [0], [0], [1], [0, 0, 1, 1], [], []>} : vector<1024x3xf32>, vector<3x128xf32>, vector<1024x128xf32> -> vector<1024x128xf32>
    %42 = arith.addf %36, %41 : vector<1024x128xf32>
    %43 = vector.extract_strided_slice %1 {offsets = [2, 1, 0], sizes = [32, 32, 3], strides = [1, 1, 1]} : vector<34x34x3xf32> to vector<32x32x3xf32>
    %44 = vector.shape_cast %43 : vector<32x32x3xf32> to vector<1024x3xf32>
    %c7 = arith.constant 7 : index
    %c0_24 = arith.constant 0 : index
    %c0_25 = arith.constant 0 : index
    %45 = vector.load %arg2[%c7, %c0_24, %c0_25] : memref<9x3x128xf32, #tpu.memory_space<vmem>>, vector<1x3x128xf32>
    %46 = vector.shape_cast %45 : vector<1x3x128xf32> to vector<3x128xf32>
    %cst_26 = arith.constant dense<0.000000e+00> : vector<1024x128xf32>
    %47 = tpu.matmul %44, %46, %cst_26 {dimension_numbers = #tpu.dot_dimension_numbers<[1], [0], [0], [1], [0, 0, 1, 1], [], []>} : vector<1024x3xf32>, vector<3x128xf32>, vector<1024x128xf32> -> vector<1024x128xf32>
    %48 = arith.addf %42, %47 : vector<1024x128xf32>
    %49 = vector.extract_strided_slice %1 {offsets = [2, 2, 0], sizes = [32, 32, 3], strides = [1, 1, 1]} : vector<34x34x3xf32> to vector<32x32x3xf32>
    %50 = vector.shape_cast %49 : vector<32x32x3xf32> to vector<1024x3xf32>
    %c8 = arith.constant 8 : index
    %c0_27 = arith.constant 0 : index
    %c0_28 = arith.constant 0 : index
    %51 = vector.load %arg2[%c8, %c0_27, %c0_28] : memref<9x3x128xf32, #tpu.memory_space<vmem>>, vector<1x3x128xf32>
    %52 = vector.shape_cast %51 : vector<1x3x128xf32> to vector<3x128xf32>
    %cst_29 = arith.constant dense<0.000000e+00> : vector<1024x128xf32>
    %53 = tpu.matmul %50, %52, %cst_29 {dimension_numbers = #tpu.dot_dimension_numbers<[1], [0], [0], [1], [0, 0, 1, 1], [], []>} : vector<1024x3xf32>, vector<3x128xf32>, vector<1024x128xf32> -> vector<1024x128xf32>
    %54 = arith.addf %48, %53 : vector<1024x128xf32>
    %c0_30 = arith.constant 0 : index
    %c0_31 = arith.constant 0 : index
    %55 = vector.load %arg3[%c0_30, %c0_31] : memref<1x128xf32, #tpu.memory_space<vmem>>, vector<1x128xf32>
    %56 = vector.broadcast %55 : vector<1x128xf32> to vector<1024x128xf32>
    %57 = arith.addf %54, %56 : vector<1024x128xf32>
    %cst_32 = arith.constant 0.000000e+00 : f32
    %58 = vector.broadcast %cst_32 : f32 to vector<1024x128xf32>
    %59 = arith.maximumf %57, %58 : vector<1024x128xf32>
    %c0_33 = arith.constant 0 : index
    %c0_34 = arith.constant 0 : index
    %60 = vector.load %arg5[%c0_33, %c0_34] : memref<1024x128xf32, #tpu.memory_space<vmem>>, vector<1024x128xf32>
    tpu.vector_store %arg5[%c0_33, %c0_34], %59 {strides = array<i32>} : memref<1024x128xf32, #tpu.memory_space<vmem>>, vector<1024x128xf32>,
    %c0_35 = arith.constant 0 : index
    %c0_36 = arith.constant 0 : index
    %61 = tpu.strided_load %arg5[%c0_35, %c0_36] {strides = array<i32: 2, 1>} : memref<1024x128xf32, #tpu.memory_space<vmem>>, vector<512x128xf32>
    %c1_37 = arith.constant 1 : index
    %c0_38 = arith.constant 0 : index
    %62 = tpu.strided_load %arg5[%c1_37, %c0_38] {strides = array<i32: 2, 1>} : memref<1024x128xf32, #tpu.memory_space<vmem>>, vector<512x128xf32>
    %63 = arith.maximumf %61, %62 : vector<512x128xf32>
    %64 = vector.shape_cast %63 : vector<512x128xf32> to vector<16x32x128xf32>
    %65 = vector.extract_strided_slice %64 {offsets = [0, 0, 0], sizes = [16, 16, 128], strides = [1, 1, 1]} : vector<16x32x128xf32> to vector<16x16x128xf32>
    %66 = vector.extract_strided_slice %64 {offsets = [0, 16, 0], sizes = [16, 16, 128], strides = [1, 1, 1]} : vector<16x32x128xf32> to vector<16x16x128xf32>
    %67 = arith.maximumf %65, %66 : vector<16x16x128xf32>
    %c0_39 = arith.constant 0 : index
    %c0_40 = arith.constant 0 : index
    %c0_41 = arith.constant 0 : index
    %c0_42 = arith.constant 0 : index
    %68 = vector.load %arg4[%c0_39, %c0_40, %c0_41, %c0_42] : memref<1x16x16x128xf32, #tpu.memory_space<vmem>>, vector<1x16x16x128xf32>
    %69 = vector.shape_cast %68 : vector<1x16x16x128xf32> to vector<16x16x128xf32>
    %70 = vector.shape_cast %67 : vector<16x16x128xf32> to vector<1x16x16x128xf32>
    tpu.vector_store %arg4[%c0_39, %c0_40, %c0_41, %c0_42], %70 {strides = array<i32>} : memref<1x16x16x128xf32, #tpu.memory_space<vmem>>, vector<1x16x16x128xf32>,
    return
  }
  func.func @transform_0(%arg0: i32) -> (i32, i32, i32, i32) {
    %c0_i32 = arith.constant 0 : i32
    %c0_i32_0 = arith.constant 0 : i32
    %c0_i32_1 = arith.constant 0 : i32
    %c0_i32_2 = arith.constant 0 : i32
    return %arg0, %c0_i32, %c0_i32_0, %c0_i32_1 : i32, i32, i32, i32
  }
  func.func @transform_1(%arg0: i32) -> (i32, i32, i32) {
    %c0_i32 = arith.constant 0 : i32
    %c0_i32_0 = arith.constant 0 : i32
    %c0_i32_1 = arith.constant 0 : i32
    %c0_i32_2 = arith.constant 0 : i32
    return %c0_i32, %c0_i32_0, %c0_i32_1 : i32, i32, i32
  }
  func.func @transform_2(%arg0: i32) -> (i32, i32) {
    %c0_i32 = arith.constant 0 : i32
    %c0_i32_0 = arith.constant 0 : i32
    %c0_i32_1 = arith.constant 0 : i32
    return %c0_i32, %c0_i32_0 : i32, i32
  }
  func.func @transform_3(%arg0: i32) -> (i32, i32, i32, i32) {
    %c0_i32 = arith.constant 0 : i32
    %c0_i32_0 = arith.constant 0 : i32
    %c0_i32_1 = arith.constant 0 : i32
    %c0_i32_2 = arith.constant 0 : i32
    return %arg0, %c0_i32, %c0_i32_0, %c0_i32_1 : i32, i32, i32, i32
  }
}

</mosaic_0001>

<bundles_post_ra>
// kernel: tpu_custom_call.1
= control target key start
LH: loop header
LB: loop body
LE: loop exit
PB: predicated region body
PF: predicated region fallthrough
CT: control target
= control target key end

     0   :  { %8 = vsyncpa [#allocation4], 0  ;;  %s20394_s0 = inlined_call_operand.vmem [shape: f32[2,34,34,3], index: 0, kind: input, shape index: {}]   ;;  %s20395_s1 = inlined_call_operand.vmem [shape: f32[9,3,128], index: 1, kind: input, shape index: {}]   ;;  %s20396_s2 = inlined_call_operand.vmem [shape: f32[1,128], index: 2, kind: input, shape index: {}]   ;;  %s20397_s3 = inlined_call_operand.hbm [shape: f32[2,16,16,128], index: 3, kind: output, shape index: {}]  }
   0x1   :  { %10 = vsyncpa [#allocation4 + $0x1], 0  ;;  %s15571_s12 = smov 0   ;;  %s15573_s13 = smov 0  }
   0x2   :  { %s15575_s14 = smov 0   ;;  %s15577_s15 = smov 0  }
   0x3 LB: > { %s15592_s16 = sadd.s32 4294967295, %s15546_s15   ;;  %s10076_s17 = sadd.s32 4294967294, %s15546_s15   ;;  %s15546_s15 = sphi %s15577_s15, %s21781_s15   ;;  %s15542_s14 = sphi %s15575_s14, %s21780_s14   ;;  %s15538_s13 = sphi %s15573_s13, %s21779_s13   ;;  %s15534_s12 = sphi %s15571_s12, %s21778_s12  }
   0x4   : > { %s15596_s18 = sadd.s32 1, %s15546_s15   ;;  %s91_s19 = sadd.s32 1, %s15542_s14 }
   0x5   : > { %s88_s20 = ssub.s32 %s15546_s15, %s15596_s18  ;;  %p101_p0 = scmp.ne.s32.totalorder %s15542_s14, %s15538_s13 }
   0x6   : > { %p89_p1 = scmp.eq.s32.totalorder %s88_s20, 0  ;;  %p102_p2 = scmp.eq.s32.totalorder %s15592_s16, 1 }
   0x7   : > { %p107_p3 = scmp.ne.s32.totalorder %s15538_s13, %s15534_s12  ;;  %p108_p4 = scmp.eq.s32.totalorder %s10076_s17, 1 }
   0x8   : > { %s15607_s21 = scalar_select %p89_p1, %s15542_s14, %s91_s19  }
   0x9   : > { %p15609_p5 = por %p102_p2, %p101_p0  ;;  %p15613_p6 = por %p108_p4, %p107_p3 }
   0xa   : > { %p10079_p7 = scmp.ge.s32.totalorder %s15546_s15, 1  ;;  %p140_p8 = scmp.lt.s32.totalorder %s15546_s15, 3 }
   0xc   : > { %p141_p9 = pnand %p10079_p7, %p140_p8 }
   0xe   : > { %144 = sbr.rel (%p141_p9) target bundleno = 1428 (0x594), region = 32 }
  0x15   : > { %v10082_v0 = vld [vmem:[%s20395_s1 + $0x4] sm:$0x7]  ;;  %vm1048_vm0 = vcmask 1042432   ;;  %v10601_v1 = vld [vmem:[%s20395_s1 + $0x10] sm:$0x7]  ;;  %p164_p10 = scmp.lt.s32.totalorder %s15592_s16, 1 }
  0x16   : > { %12419 = vmatprep.subr.msk.mxu1 %vm1048_vm0, %v10082_v0  ;;  %13195 = vmatprep.subr.msk.mxu0 %vm1048_vm0, %v10601_v1  ;;  %v339_v2 = vld [vmem:[%s20395_s1] sm:$0x7]  ;;  %v10731_v3 = vld [vmem:[%s20395_s1 + $0x14] sm:$0x7]  ;;  %vm500_vm1 = vcmask 1046528   ;;  %vm791_vm2 = vcmask 23552  }
  0x17   : > { %12420 = vmatpush3.msk.msra.mxu1 %vm1048_vm0, %v10082_v0  ;;  %13196 = vmatpush3.msk.msra.mxu0 %vm1048_vm0, %v10601_v1  ;;  %s165_s5 = scalar_select %p164_p10, %s15592_s16, 1  ;;  %vm2721_vm3 = vcmask 1045504  }
  0x18   : > { %12613 = vmatprep.subr.msk.mxu1 %vm1048_vm0, %v339_v2  ;;  %13389 = vmatprep.subr.msk.mxu0 %vm1048_vm0, %v10731_v3  ;;  %s11257_s11 = sshll.u32 %s15592_s16, 12  ;;  %s15548_s26 = smov [#allocation3]  }
  0x19   : > { %s15191_s6 = smul.u32 1360, %s165_s5  ;;  %s20346_s24 = scalar_lea.hbm %s20397_s3, %s11257_s11 }
  0x1a   : > { %s15488_s27 = sshll.u32 %s15548_s26, 4  ;;  %s15489_s27 = int_to_ptr.vmem [resolvable:$false] %s15488_s27 }
  0x1b   : > { %s15642_s9 = scalar_lea.vmem %s20394_s0, %s15191_s6  ;;  %s161_s6 = sand.u32 1, %s15538_s13  }
  0x1c   : > { %v169_v4 = vld [vmem:[%s15642_s9] sm:$0xff]  ;;  %v170_v5 = vld [vmem:[%s15642_s9 + $0x8] sm:$0xff]  ;;  %v15650_v9 = vld [vmem:[%s15642_s9 + $0x30] sm:$0xff]  ;;  %s20078_s7 = sshll.u32 %s161_s6, 8  ;;  %s20353_s16 = scalar_lea.sflag [#allocation4], %s161_s6 }
  0x1d   : > { %v15647_v6 = vld [vmem:[%s15642_s9 + $0x28] sm:$0xff]  ;;  %v501_v7 = vrot.slane %v169_v4, 1  ;;  %v502_v8 = vrot.slane %v170_v5, 1  ;;  %v171_v11 = vld [vmem:[%s15642_s9 + $0x10] sm:$0xff]  ;;  %v15655_v12 = vld [vmem:[%s15642_s9 + $0x38] sm:$0xff]  ;;  %v511_v13 = vrot.slane %v15650_v9, 1 }
  0x1e   : > { %v510_v10 = vrot.slane %v15647_v6, 1  ;;  %v504_v14 = vrot.slane %v171_v11, 1  ;;  %v513_v15 = vrot.slane %v15655_v12, 1  ;;  %v172_v16 = vld [vmem:[%s15642_s9 + $0x18] sm:$0xff]  ;;  %v15661_v17 = vld [vmem:[%s15642_s9 + $0x40] sm:$0xff]  ;;  %v15674_v27 = vld [vmem:[%s15642_s9 + $0x50] sm:$0xff] }
  0x1f   : > { %v503_v18 = vsel %vm500_vm1, %v501_v7, %v502_v8  ;;  %v506_v19 = vrot.slane %v172_v16, 1  ;;  %v515_v20 = vrot.slane %v15661_v17, 1  ;;  %v173_v21 = vld [vmem:[%s15642_s9 + $0x20] sm:$0x3]  ;;  %v15667_v22 = vld [vmem:[%s15642_s9 + $0x48] sm:$0x3] }
  0x20   : > { %12421 = vmatprep.mubr.msk.f32.mxu1 %vm791_vm2, %v503_v18  ;;  %v512_v23 = vsel %vm500_vm1, %v510_v10, %v511_v13  ;;  %v505_v24 = vsel %vm500_vm1, %v502_v8, %v504_v14  ;;  %v514_v25 = vsel %vm500_vm1, %v511_v13, %v513_v15  ;;  %v508_v26 = vrot.slane %v173_v21, 1  ;;  %v15677_v28 = vld [vmem:[%s15642_s9 + $0x58] sm:$0xff]  ;;  %v15680_v29 = vld [vmem:[%s15642_s9 + $0x60] sm:$0xff]  ;;  %v15689_v34 = vld [vmem:[%s15642_s9 + $0x68] sm:$0xff]  ;;  %s20107_s8 = scalar_lea.vmem [#allocation3], %s20078_s7  ;;  %s15490_s28 = scalar_lea.vmem %s15489_s27, 8192 }
  0x21   : > { %13197 = vmatprep.mubr.msk.f32.mxu0 %vm791_vm2, %v512_v23  ;;  %12422 = vmatmul.mubr.msk.f32.vlgmr.msra.gmra.mrb[0].mxu1 %vm791_vm2, %v505_v24  ;;  %v507_v30 = vsel %vm500_vm1, %v504_v14, %v506_v19  ;;  %v516_v31 = vsel %vm500_vm1, %v513_v15, %v515_v20  ;;  %v517_v32 = vrot.slane %v15667_v22, 1  ;;  %v519_v33 = vrot.slane %v15674_v27, 1  ;;  %v15705_v41 = vld [vmem:[%s15642_s9 + $0x70] sm:$0x3]  ;;  %v15709_v42 = vld [vmem:[%s15642_s9 + $0x78] sm:$0xff]  ;;  %v15712_v43 = vld [vmem:[%s15642_s9 + $0x80] sm:$0xff] }
  0x22   : > { %12614 = vmatpush3.msk.msra.mxu1 %vm1048_vm0, %v339_v2  ;;  %13198 = vmatmul.mubr.msk.f32.vlgmr.msra.gmra.mrb[0].mxu0 %vm791_vm2, %v514_v25  ;;  %v509_v35 = vsel %vm500_vm1, %v506_v19, %v508_v26  ;;  %v520_v36 = vrot.slane %v15677_v28, 1  ;;  %v522_v38 = vrot.slane %v15680_v29, 1  ;;  %v524_v40 = vrot.slane %v15689_v34, 1  ;;  %v15728_v49 = vld [vmem:[%s15642_s9 + $0x88] sm:$0xff]  ;;  %v15732_v50 = vld [vmem:[%s15642_s9 + $0x90] sm:$0xff]  ;;  %v15752_v56 = vld [vmem:[%s15642_s9 + $0xa0] sm:$0xff] }
  0x23   : > { %13390 = vmatpush3.msk.msra.mxu0 %vm1048_vm0, %v10731_v3  ;;  %12424 = vmatprep.mubr.msk.f32.mxu1 %vm791_vm2, %v507_v30  ;;  %v518_v37 = vsel %vm500_vm1, %v515_v20, %v517_v32  ;;  %v526_v45 = vrot.slane %v15705_v41, 1  ;;  %v528_v47 = vrot.slane %v15709_v42, 1  ;;  %v529_v48 = vrot.slane %v15712_v43, 1  ;;  %v15748_v55 = vld [vmem:[%s15642_s9 + $0x98] sm:$0x3]  ;;  %v15755_v57 = vld [vmem:[%s15642_s9 + $0xa8] sm:$0xff] }
  0x24   : > { %13200 = vmatprep.mubr.msk.f32.mxu0 %vm791_vm2, %v516_v31  ;;  %v15701_v39 = vsel %vm500_vm1, %v519_v33, %v520_v36  ;;  %v15719_v44 = vsel %vm500_vm1, %v520_v36, %v522_v38  ;;  %v15723_v46 = vsel %vm500_vm1, %v522_v38, %v524_v40  ;;  %v531_v52 = vrot.slane %v15728_v49, 1  ;;  %v15773_v63 = vld [vmem:[%s15642_s9 + $0xb0] sm:$0xff]  ;;  %v15778_v0 = vld [vmem:[%s15642_s9 + $0xb8] sm:$0xff]  ;;  %v15795_v5 = vld [vmem:[%s15642_s9 + $0xc0] sm:$0x3]  ;;  %s10014_s17 = sshll.u32 %s20107_s8, 4  ;;  %s20348_s17 = int_to_ptr.vmem [resolvable:$true] %s10014_s17 }
  0x25   : > { %20926 = vst [vmem:[#allocation6_spill] sm:$0xff] %v15701_v39  ;;  %12425 = vmatmul.mubr.msk.f32.gmra.mrb[2].mxu1 %vm791_vm2, %v509_v35  ;;  %20927 = vst [vmem:[#allocation7_spill] sm:$0xff] %v15719_v44  ;;  %v15740_v51 = vsel %vm500_vm1, %v524_v40, %v526_v45  ;;  %v15744_v53 = vsel %vm500_vm1, %v528_v47, %v529_v48  ;;  %v533_v54 = vrot.slane %v15732_v50, 1  ;;  %v535_v59 = vrot.slane %v15748_v55, 1  ;;  %v15800_v7 = vld [vmem:[%s15642_s9 + $0xc8] sm:$0xff]  ;;  %v15803_v8 = vld [vmem:[%s15642_s9 + $0xd0] sm:$0xff]  ;;  %p15491_p0 = scmp.lt.s32.totalorder %s20348_s17, %s15489_s27 }
  0x26   : > { %13201 = vmatmul.mubr.msk.f32.gmra.mrb[2].mxu0 %vm791_vm2, %v518_v37  ;;  %12427 = vmatprep.mubr.msk.f32.mxu1 %vm791_vm2, %v512_v23  ;;  %20928 = vst [vmem:[#allocation8_spill] sm:$0xff] %v15723_v46  ;;  %20929 = vst [vmem:[#allocation9_spill] sm:$0xff] %v15740_v51  ;;  %v15764_v58 = vsel %vm500_vm1, %v529_v48, %v531_v52  ;;  %v537_v61 = vrot.slane %v15752_v56, 1  ;;  %v538_v62 = vrot.slane %v15755_v57, 1  ;;  %v540_v2 = vrot.slane %v15773_v63, 1  ;;  %v15821_v16 = vld [vmem:[%s15642_s9 + $0xd8] sm:$0xff] }
  0x27   : > { %13203 = vmatprep.mubr.msk.f32.mxu0 %vm791_vm2, %v15701_v39  ;;  %20930 = vst [vmem:[#allocation10_spill] sm:$0xff] %v15744_v53  ;;  %20931 = vst [vmem:[#allocation11_spill] sm:$0xff] %v15764_v58  ;;  %v15768_v60 = vsel %vm500_vm1, %v531_v52, %v533_v54  ;;  %v15787_v1 = vsel %vm500_vm1, %v533_v54, %v535_v59  ;;  %v542_v4 = vrot.slane %v15778_v0, 1  ;;  %v544_v11 = vrot.slane %v15795_v5, 1  ;;  %v15826_v18 = vld [vmem:[%s15642_s9 + $0xe0] sm:$0xff]  ;;  %v15855_v26 = vld [vmem:[%s15642_s9 + $0xf0] sm:$0xff] }
  0x28   : > { %20932 = vst [vmem:[#allocation12_spill] sm:$0xff] %v15768_v60  ;;  %20933 = vst [vmem:[#allocation13_spill] sm:$0xff] %v15787_v1  ;;  %v15791_v3 = vsel %vm500_vm1, %v537_v61, %v538_v62  ;;  %v15812_v10 = vsel %vm500_vm1, %v538_v62, %v540_v2  ;;  %v546_v14 = vrot.slane %v15800_v7, 1  ;;  %v547_v15 = vrot.slane %v15803_v8, 1  ;;  %v15835_v19 = vld [vmem:[%s20395_s1 + $0x18] sm:$0x7] }
  0x29   : > { %12428 = vmatmul.mubr.msk.f32.gmra.mrb[4].mxu1 %vm791_vm2, %v514_v25  ;;  %20934 = vst [vmem:[#allocation14_spill] sm:$0xff] %v15791_v3  ;;  %20935 = vst [vmem:[#allocation15_spill] sm:$0xff] %v15812_v10  ;;  %v15816_v13 = vsel %vm500_vm1, %v540_v2, %v542_v4  ;;  %v15840_v20 = vsel %vm500_vm1, %v542_v4, %v544_v11  ;;  %v549_v21 = vrot.slane %v15821_v16, 1  ;;  %13583 = vmatprep.subr.msk.mxu0 %vm1048_vm0, %v15835_v19  ;;  %v15850_v25 = vld [vmem:[%s15642_s9 + $0xe8] sm:$0x3]  ;;  %v15858_v30 = vld [vmem:[%s15642_s9 + $0xf8] sm:$0xff] }
  0x2a   : > { %13204 = vmatmul.mubr.msk.f32.gmra.mrb[4].mxu0 %vm791_vm2, %v15719_v44  ;;  %12430 = vmatprep.mubr.msk.f32.mxu1 %vm791_vm2, %v516_v31  ;;  %20936 = vst [vmem:[#allocation16_spill] sm:$0xff] %v15816_v13  ;;  %20937 = vst [vmem:[#allocation17_spill] sm:$0xff] %v15840_v20  ;;  %v15846_v23 = vsel %vm500_vm1, %v546_v14, %v547_v15  ;;  %v551_v24 = vrot.slane %v15826_v18, 1  ;;  %v553_v32 = vrot.slane %v15850_v25, 1  ;;  %v555_v35 = vrot.slane %v15855_v26, 1  ;;  %v15881_v38 = vld [vmem:[%s15642_s9 + $0x108] sm:$0xff] }
  0x2b   : > { %13206 = vmatprep.mubr.msk.f32.mxu0 %vm791_vm2, %v15723_v46  ;;  %20938 = vst [vmem:[#allocation18_spill] sm:$0xff] %v15846_v23  ;;  %v15867_v31 = vsel %vm500_vm1, %v547_v15, %v549_v21  ;;  %v556_v36 = vrot.slane %v15858_v30, 1  ;;  %v560_v48 = vrot.slane %v15881_v38, 1  ;;  %v15898_v52 = vld [vmem:[%s15642_s9 + $0x110] sm:$0x3]  ;;  %v15903_v54 = vld [vmem:[%s15642_s9 + $0x118] sm:$0xff] }
  0x2c   : > { %20939 = vst [vmem:[#allocation19_spill] sm:$0xff] %v15867_v31  ;;  %v15871_v33 = vsel %vm500_vm1, %v549_v21, %v551_v24  ;;  %v15890_v40 = vsel %vm500_vm1, %v551_v24, %v553_v32  ;;  %v15906_v59 = vld [vmem:[%s15642_s9 + $0x120] sm:$0xff]  ;;  %v562_v62 = vrot.slane %v15898_v52, 1  ;;  %v564_v4 = vrot.slane %v15903_v54, 1  ;;  %v15924_v14 = vld [vmem:[%s15642_s9 + $0x128] sm:$0xff]  ;;  %v15929_v15 = vld [vmem:[%s15642_s9 + $0x130] sm:$0xff] }
  0x2d   : > { %12431 = vmatmul.mubr.msk.f32.gmra.mrb[6].mxu1 %vm791_vm2, %v518_v37  ;;  %20940 = vst [vmem:[#allocation20_spill] sm:$0xff] %v15871_v33  ;;  %v15876_v37 = vld [vmem:[%s15642_s9 + $0x100] sm:$0xff]  ;;  %20941 = vst [vmem:[#allocation21_spill] sm:$0xff] %v15890_v40  ;;  %v15894_v47 = vsel %vm500_vm1, %v555_v35, %v556_v36  ;;  %v565_v11 = vrot.slane %v15906_v59, 1  ;;  %v567_v24 = vrot.slane %v15924_v14, 1  ;;  %v569_v35 = vrot.slane %v15929_v15, 1 }
  0x2e   : > { %13207 = vmatmul.mubr.msk.f32.gmra.mrb[6].mxu0 %vm791_vm2, %v15740_v51  ;;  %12433 = vmatprep.mubr.msk.f32.mxu1 %vm791_vm2, %v15701_v39  ;;  %v558_v45 = vrot.slane %v15876_v37, 1  ;;  %20942 = vst [vmem:[#allocation22_spill] sm:$0xff] %v15894_v47  ;;  %v15938_v21 = vsel %vm500_vm1, %v560_v48, %v562_v62  ;;  %v16090_v39 = vld [vmem:[%s15642_s9 + $0x1b0] sm:$0x3]  ;;  %s15484_s25 = scalar_lea.vmem %s20348_s17, 4096 }
  0x2f   : > { %13209 = vmatprep.mubr.msk.f32.mxu0 %vm791_vm2, %v15744_v53  ;;  %20945 = vst [vmem:[#allocation25_spill] sm:$0xff] %v15938_v21  ;;  %v15942_v32 = vsel %vm500_vm1, %v564_v4, %v565_v11  ;;  %v15967_v4 = vsel %vm500_vm1, %v567_v24, %v569_v35  ;;  %20962 = vst [vmem:[#allocation42_spill] sm:$0xff] %v16090_v39  ;;  %p15485_p11 = scmp.ne.s32.totalorder %s20348_s17, %s15484_s25  ;;  %p15492_p1 = scmp.lt.s32.totalorder %s15490_s28, %s15484_s25 }
  0x30   : > { %v15915_v61 = vsel %vm500_vm1, %v556_v36, %v558_v45  ;;  %v15919_v2 = vsel %vm500_vm1, %v558_v45, %v560_v48  ;;  %20946 = vst [vmem:[#allocation26_spill] sm:$0xff] %v15942_v32  ;;  %v15946_v36 = vld [vmem:[%s15642_s9 + $0x138] sm:$0x3]  ;;  %v15951_v45 = vld [vmem:[%s15642_s9 + $0x140] sm:$0xff]  ;;  %v15963_v48 = vsel %vm500_vm1, %v565_v11, %v567_v24  ;;  %20948 = vst [vmem:[#allocation28_spill] sm:$0xff] %v15967_v4 }
  0x31   : > { %12434 = vmatmul.mubr.msk.f32.gmra.mrb[8].mxu1 %vm791_vm2, %v15719_v44  ;;  %20943 = vst [vmem:[#allocation23_spill] sm:$0xff] %v15915_v61  ;;  %20944 = vst [vmem:[#allocation24_spill] sm:$0xff] %v15919_v2  ;;  %v571_v62 = vrot.slane %v15946_v36, 1  ;;  %p15486_p12 = pnand %p15485_p11, %p15609_p5  ;;  %p15493_p2 = por %p15492_p1, %p15491_p0 }
  0x32   : > { %13210 = vmatmul.mubr.msk.f32.gmra.mrb[8].mxu0 %vm791_vm2, %v15764_v58  ;;  %12436 = vmatprep.mubr.msk.f32.mxu1 %vm791_vm2, %v15723_v46  ;;  %20947 = vst [vmem:[#allocation27_spill] sm:$0xff] %v15963_v48  ;;  %v16068_v46 = vld [vmem:[%s15642_s9 + $0x1a0] sm:$0xff] }
  0x33   : > { %13212 = vmatprep.mubr.msk.f32.mxu0 %vm791_vm2, %v15768_v60  ;;  %v15986_v11 = vsel %vm500_vm1, %v569_v35, %v571_v62  ;;  %20958 = vst [vmem:[#allocation38_spill] sm:$0xff] %v16068_v46  ;;  %p15487_p13 = pneg %p15486_p12 }
  0x34   : > { %20949 = vst [vmem:[#allocation29_spill] sm:$0xff] %v15986_v11 }
  0x35   : > { %12437 = vmatmul.mubr.msk.f32.gmra.mrb[10].mxu1 %vm791_vm2, %v15740_v51  ;;  %p15494_p3 = pnand %p15493_p2, %p15487_p13 }
  0x36   : > { %13213 = vmatmul.mubr.msk.f32.gmra.mrb[10].mxu0 %vm791_vm2, %v15787_v1  ;;  %12439 = vmatprep.mubr.msk.f32.mxu1 %vm791_vm2, %v15744_v53  ;;  %v16050_v53 = vld [vmem:[%s15642_s9 + $0x198] sm:$0xff] }
  0x37   : > { %13215 = vmatprep.mubr.msk.f32.mxu0 %vm791_vm2, %v15791_v3  ;;  %20955 = vst [vmem:[#allocation35_spill] sm:$0xff] %v16050_v53  ;;  %v592_v51 = vrot.slane %v16050_v53, 1  ;;  %v16098_v53 = vld [vmem:[%s15642_s9 + $0x1c0] sm:$0xff] }
  0x38   : > { %20964 = vst [vmem:[#allocation44_spill] sm:$0xff] %v16098_v53 }
  0x39   : > { %12440 = vmatmul.mubr.msk.f32.gmra.mrb[12].mxu1 %vm791_vm2, %v15764_v58  ;;  %v16042_v58 = vld [vmem:[%s15642_s9 + $0x188] sm:$0x3] }
  0x3a   : > { %13216 = vmatmul.mubr.msk.f32.gmra.mrb[12].mxu0 %vm791_vm2, %v15812_v10  ;;  %12442 = vmatprep.mubr.msk.f32.mxu1 %vm791_vm2, %v15768_v60 }
  0x3b   : > { %13218 = vmatprep.mubr.msk.f32.mxu0 %vm791_vm2, %v15816_v13 }
  0x3d   : > { %12443 = vmatmul.mubr.msk.f32.gmra.mrb[14].mxu1 %vm791_vm2, %v15787_v1  ;;  %v16020_v1 = vld [vmem:[%s15642_s9 + $0x178] sm:$0xff] }
  0x3e   : > { %13219 = vmatmul.mubr.msk.f32.gmra.mrb[14].mxu0 %vm791_vm2, %v15840_v20  ;;  %12445 = vmatprep.mubr.msk.f32.mxu1 %vm791_vm2, %v15791_v3 }
  0x3f   : > { %13221 = vmatprep.mubr.msk.f32.mxu0 %vm791_vm2, %v15846_v23 }
  0x41   : > { %12446 = vmatmul.mubr.msk.f32.gmra.mrb[16].mxu1 %vm791_vm2, %v15812_v10  ;;  %v16002_v10 = vld [vmem:[%s15642_s9 + $0x170] sm:$0xff] }
  0x42   : > { %13222 = vmatmul.mubr.msk.f32.gmra.mrb[16].mxu0 %vm791_vm2, %v15867_v31  ;;  %12448 = vmatprep.mubr.msk.f32.mxu1 %vm791_vm2, %v15816_v13  ;;  %v15994_v13 = vld [vmem:[%s15642_s9 + $0x160] sm:$0x3]  ;;  %v583_v3 = vrot.slane %v16002_v10, 1 }
  0x43   : > { %13224 = vmatprep.mubr.msk.f32.mxu0 %vm791_vm2, %v15871_v33  ;;  %v580_v35 = vrot.slane %v15994_v13, 1 }
  0x45   : > { %12449 = vmatmul.mubr.msk.f32.gmra.mrb[18].mxu1 %vm791_vm2, %v15840_v20 }
  0x46   : > { %13225 = vmatmul.mubr.msk.f32.gmra.mrb[18].mxu0 %vm791_vm2, %v15890_v40  ;;  %12451 = vmatprep.mubr.msk.f32.mxu1 %vm791_vm2, %v15846_v23  ;;  %v15972_v23 = vld [vmem:[%s15642_s9 + $0x150] sm:$0xff] }
  0x47   : > { %13227 = vmatprep.mubr.msk.f32.mxu0 %vm791_vm2, %v15894_v47  ;;  %v576_v24 = vrot.slane %v15972_v23, 1 }
  0x49   : > { %12452 = vmatmul.mubr.msk.f32.gmra.mrb[20].mxu1 %vm791_vm2, %v15867_v31 }
  0x4a   : > { %13228 = vmatmul.mubr.msk.f32.gmra.mrb[20].mxu0 %vm791_vm2, %v15915_v61  ;;  %12454 = vmatprep.mubr.msk.f32.mxu1 %vm791_vm2, %v15871_v33  ;;  %v15954_v33 = vld [vmem:[%s15642_s9 + $0x148] sm:$0xff] }
  0x4b   : > { %13230 = vmatprep.mubr.msk.f32.mxu0 %vm791_vm2, %v15919_v2  ;;  %v574_v31 = vrot.slane %v15954_v33, 1 }
  0x4d   : > { %12455 = vmatmul.mubr.msk.f32.gmra.mrb[22].mxu1 %vm791_vm2, %v15890_v40  ;;  %v573_v40 = vrot.slane %v15951_v45, 1 }
  0x4e   : > { %13231 = vmatmul.mubr.msk.f32.gmra.mrb[22].mxu0 %vm791_vm2, %v15938_v21  ;;  %12457 = vmatprep.mubr.msk.f32.mxu1 %vm791_vm2, %v15894_v47  ;;  %v15977_v47 = vld [vmem:[%s15642_s9 + $0x158] sm:$0xff] }
  0x4f   : > { %13233 = vmatprep.mubr.msk.f32.mxu0 %vm791_vm2, %v15942_v32  ;;  %v15990_v20 = vsel %vm500_vm1, %v573_v40, %v574_v31  ;;  %v16011_v40 = vsel %vm500_vm1, %v574_v31, %v576_v24 }
  0x50   : > { %20950 = vst [vmem:[#allocation30_spill] sm:$0xff] %v15990_v20  ;;  %20951 = vst [vmem:[#allocation31_spill] sm:$0xff] %v16011_v40 }
  0x51   : > { %12458 = vmatmul.mubr.msk.f32.gmra.mrb[24].mxu1 %vm791_vm2, %v15915_v61  ;;  %v578_v61 = vrot.slane %v15977_v47, 1 }
  0x52   : > { %13234 = vmatmul.mubr.msk.f32.gmra.mrb[24].mxu0 %vm791_vm2, %v15963_v48  ;;  %12460 = vmatprep.mubr.msk.f32.mxu1 %vm791_vm2, %v15919_v2  ;;  %v15999_v2 = vld [vmem:[%s15642_s9 + $0x168] sm:$0xff] }
  0x53   : > { %13236 = vmatprep.mubr.msk.f32.mxu0 %vm791_vm2, %v15967_v4  ;;  %v16015_v62 = vsel %vm500_vm1, %v576_v24, %v578_v61  ;;  %v16034_v31 = vsel %vm500_vm1, %v578_v61, %v580_v35  ;;  %v585_v24 = vrot.slane %v16020_v1, 1 }
  0x54   : > { %20952 = vst [vmem:[#allocation32_spill] sm:$0xff] %v16015_v62  ;;  %20953 = vst [vmem:[#allocation33_spill] sm:$0xff] %v16034_v31 }
  0x55   : > { %12461 = vmatmul.mubr.msk.f32.gmra.mrb[26].mxu1 %vm791_vm2, %v15938_v21  ;;  %v582_v21 = vrot.slane %v15999_v2, 1  ;;  %v16059_v61 = vsel %vm500_vm1, %v583_v3, %v585_v24 }
  0x56   : > { %13237 = vmatmul.mubr.msk.f32.gmra.mrb[26].mxu0 %vm791_vm2, %v15986_v11  ;;  %12463 = vmatprep.mubr.msk.f32.mxu1 %vm791_vm2, %v15942_v32  ;;  %v16025_v32 = vld [vmem:[%s15642_s9 + $0x180] sm:$0xff]  ;;  %20956 = vst [vmem:[#allocation36_spill] sm:$0xff] %v16059_v61 }
  0x57   : > { %13239 = vmatprep.mubr.msk.f32.mxu0 %vm791_vm2, %v15990_v20  ;;  %v16038_v60 = vsel %vm500_vm1, %v582_v21, %v583_v3  ;;  %v589_v21 = vrot.slane %v16042_v58, 1 }
  0x58   : > { %20954 = vst [vmem:[#allocation34_spill] sm:$0xff] %v16038_v60 }
  0x59   : > { %12464 = vmatmul.mubr.msk.f32.gmra.mrb[28].mxu1 %vm791_vm2, %v15963_v48  ;;  %v587_v48 = vrot.slane %v16025_v32, 1 }
  0x5a   : > { %13240 = vmatmul.mubr.msk.f32.gmra.mrb[28].mxu0 %vm791_vm2, %v16011_v40  ;;  %12466 = vmatprep.mubr.msk.f32.mxu1 %vm791_vm2, %v15967_v4  ;;  %v16047_v4 = vld [vmem:[%s15642_s9 + $0x190] sm:$0xff] }
  0x5b   : > { %13242 = vmatprep.mubr.msk.f32.mxu0 %vm791_vm2, %v16015_v62  ;;  %v16063_v35 = vsel %vm500_vm1, %v585_v24, %v587_v48  ;;  %v16082_v3 = vsel %vm500_vm1, %v587_v48, %v589_v21  ;;  %v594_v24 = vrot.slane %v16068_v46, 1  ;;  %v16116_v46 = vld [vmem:[%s15642_s9 + $0x1c8] sm:$0xff] }
  0x5c   : > { %20957 = vst [vmem:[#allocation37_spill] sm:$0xff] %v16063_v35  ;;  %20960 = vst [vmem:[#allocation40_spill] sm:$0xff] %v16082_v3 }
  0x5d   : > { %12467 = vmatmul.mubr.msk.f32.gmra.mrb[30].mxu1 %vm791_vm2, %v15986_v11  ;;  %v591_v11 = vrot.slane %v16047_v4, 1  ;;  %v16107_v48 = vsel %vm500_vm1, %v592_v51, %v594_v24  ;;  %20967 = vst [vmem:[#allocation47_spill] sm:$0xff] %v16116_v46 }
  0x5e   : > { %13243 = vmatmul.mubr.msk.f32.gmra.mrb[30].mxu0 %vm791_vm2, %v16034_v31  ;;  %12469 = vmatprep.mubr.msk.f32.mxu1 %vm791_vm2, %v15990_v20  ;;  %v16073_v20 = vld [vmem:[%s15642_s9 + $0x1a8] sm:$0xff]  ;;  %20965 = vst [vmem:[#allocation45_spill] sm:$0xff] %v16107_v48 }
  0x5f   : > { %13245 = vmatprep.mubr.msk.f32.mxu0 %vm791_vm2, %v16038_v60  ;;  %20959 = vst [vmem:[#allocation39_spill] sm:$0xff] %v16073_v20  ;;  %v16086_v44 = vsel %vm500_vm1, %v591_v11, %v592_v51  ;;  %v598_v11 = vrot.slane %v16090_v39, 1  ;;  %v16146_v39 = vld [vmem:[%s15642_s9 + $0x1e8] sm:$0xff] }
  0x60   : > { %20961 = vst [vmem:[#allocation41_spill] sm:$0xff] %v16086_v44  ;;  %20973 = vst [vmem:[#allocation53_spill] sm:$0xff] %v16146_v39 }
  0x61   : > { %12470 = vmatmul.mubr.msk.f32.gmra.mrb[32].mxu1 %vm791_vm2, %v16011_v40  ;;  %v596_v40 = vrot.slane %v16073_v20, 1  ;;  %v601_v20 = vrot.slane %v16098_v53, 1 }
  0x62   : > { %13246 = vmatmul.mubr.msk.f32.gmra.mrb[32].mxu0 %vm791_vm2, %v16059_v61  ;;  %12472 = vmatprep.mubr.msk.f32.mxu1 %vm791_vm2, %v16015_v62  ;;  %v16095_v62 = vld [vmem:[%s15642_s9 + $0x1b8] sm:$0xff] }
  0x63   : > { %13248 = vmatprep.mubr.msk.f32.mxu0 %vm791_vm2, %v16063_v35  ;;  %20963 = vst [vmem:[#allocation43_spill] sm:$0xff] %v16095_v62  ;;  %v16111_v21 = vsel %vm500_vm1, %v594_v24, %v596_v40  ;;  %v16130_v51 = vsel %vm500_vm1, %v596_v40, %v598_v11  ;;  %v603_v24 = vrot.slane %v16116_v46, 1  ;;  %v16164_v46 = vld [vmem:[%s15642_s9 + $0x1f0] sm:$0xff] }
  0x64   : > { %20966 = vst [vmem:[#allocation46_spill] sm:$0xff] %v16111_v21  ;;  %20969 = vst [vmem:[#allocation49_spill] sm:$0xff] %v16130_v51 }
  0x65   : > { %12473 = vmatmul.mubr.msk.f32.gmra.mrb[34].mxu1 %vm791_vm2, %v16034_v31  ;;  %v600_v31 = vrot.slane %v16095_v62, 1  ;;  %v16138_v62 = vld [vmem:[%s15642_s9 + $0x1d8] sm:$0x3]  ;;  %v16155_v40 = vsel %vm500_vm1, %v601_v20, %v603_v24  ;;  %20976 = vst [vmem:[#allocation56_spill] sm:$0xff] %v16164_v46 }
  0x66   : > { %13249 = vmatmul.mubr.msk.f32.gmra.mrb[34].mxu0 %vm791_vm2, %v16082_v3  ;;  %12475 = vmatprep.mubr.msk.f32.mxu1 %vm791_vm2, %v16038_v60  ;;  %v16121_v60 = vld [vmem:[%s15642_s9 + $0x1d0] sm:$0xff]  ;;  %20971 = vst [vmem:[#allocation51_spill] sm:$0xff] %v16138_v62  ;;  %20974 = vst [vmem:[#allocation54_spill] sm:$0xff] %v16155_v40 }
  0x67   : > { %13251 = vmatprep.mubr.msk.f32.mxu0 %vm791_vm2, %v16086_v44  ;;  %20968 = vst [vmem:[#allocation48_spill] sm:$0xff] %v16121_v60  ;;  %v16134_v53 = vsel %vm500_vm1, %v600_v31, %v601_v20  ;;  %v607_v31 = vrot.slane %v16138_v62, 1  ;;  %v16194_v62 = vld [vmem:[%s15642_s9 + $0x210] sm:$0xff] }
  0x68   : > { %20970 = vst [vmem:[#allocation50_spill] sm:$0xff] %v16134_v53  ;;  %20982 = vst [vmem:[#allocation62_spill] sm:$0xff] %v16194_v62 }
  0x69   : > { %12476 = vmatmul.mubr.msk.f32.gmra.mrb[36].mxu1 %vm791_vm2, %v16059_v61  ;;  %v605_v61 = vrot.slane %v16121_v60, 1  ;;  %v610_v60 = vrot.slane %v16146_v39, 1 }
  0x6a   : > { %13252 = vmatmul.mubr.msk.f32.gmra.mrb[36].mxu0 %vm791_vm2, %v16107_v48  ;;  %12478 = vmatprep.mubr.msk.f32.mxu1 %vm791_vm2, %v16063_v35  ;;  %v16143_v35 = vld [vmem:[%s15642_s9 + $0x1e0] sm:$0xff] }
  0x6b   : > { %13254 = vmatprep.mubr.msk.f32.mxu0 %vm791_vm2, %v16111_v21  ;;  %20972 = vst [vmem:[#allocation52_spill] sm:$0xff] %v16143_v35  ;;  %v16159_v11 = vsel %vm500_vm1, %v603_v24, %v605_v61  ;;  %v16178_v20 = vsel %vm500_vm1, %v605_v61, %v607_v31  ;;  %v612_v24 = vrot.slane %v16164_v46, 1  ;;  %v16212_v46 = vld [vmem:[%s15642_s9 + $0x218] sm:$0xff] }
  0x6c   : > { %20975 = vst [vmem:[#allocation55_spill] sm:$0xff] %v16159_v11  ;;  %20978 = vst [vmem:[#allocation58_spill] sm:$0xff] %v16178_v20 }
  0x6d   : > { %12479 = vmatmul.mubr.msk.f32.gmra.mrb[38].mxu1 %vm791_vm2, %v16082_v3  ;;  %v609_v3 = vrot.slane %v16143_v35, 1  ;;  %v16186_v35 = vld [vmem:[%s15642_s9 + $0x200] sm:$0x3]  ;;  %v16203_v61 = vsel %vm500_vm1, %v610_v60, %v612_v24  ;;  %20985 = vst [vmem:[#allocation65_spill] sm:$0xff] %v16212_v46 }
  0x6e   : > { %13255 = vmatmul.mubr.msk.f32.gmra.mrb[38].mxu0 %vm791_vm2, %v16130_v51  ;;  %12481 = vmatprep.mubr.msk.f32.mxu1 %vm791_vm2, %v16086_v44  ;;  %v16169_v44 = vld [vmem:[%s15642_s9 + $0x1f8] sm:$0xff]  ;;  %20980 = vst [vmem:[#allocation60_spill] sm:$0xff] %v16186_v35  ;;  %20983 = vst [vmem:[#allocation63_spill] sm:$0xff] %v16203_v61 }
  0x6f   : > { %13257 = vmatprep.mubr.msk.f32.mxu0 %vm791_vm2, %v16134_v53  ;;  %20977 = vst [vmem:[#allocation57_spill] sm:$0xff] %v16169_v44  ;;  %v16182_v39 = vsel %vm500_vm1, %v609_v3, %v610_v60  ;;  %v616_v3 = vrot.slane %v16186_v35, 1  ;;  %v16242_v35 = vld [vmem:[%s15642_s9 + $0x238] sm:$0xff] }
  0x70   : > { %20979 = vst [vmem:[#allocation59_spill] sm:$0xff] %v16182_v39  ;;  %20991 = vst [vmem:[#allocation71_spill] sm:$0xff] %v16242_v35 }
  0x71   : > { %12482 = vmatmul.mubr.msk.f32.gmra.mrb[40].mxu1 %vm791_vm2, %v16107_v48  ;;  %v614_v48 = vrot.slane %v16169_v44, 1  ;;  %v619_v44 = vrot.slane %v16194_v62, 1 }
  0x72   : > { %13258 = vmatmul.mubr.msk.f32.gmra.mrb[40].mxu0 %vm791_vm2, %v16155_v40  ;;  %12484 = vmatprep.mubr.msk.f32.mxu1 %vm791_vm2, %v16111_v21  ;;  %v16191_v21 = vld [vmem:[%s15642_s9 + $0x208] sm:$0xff] }
  0x73   : > { %13260 = vmatprep.mubr.msk.f32.mxu0 %vm791_vm2, %v16159_v11  ;;  %20981 = vst [vmem:[#allocation61_spill] sm:$0xff] %v16191_v21  ;;  %v16207_v31 = vsel %vm500_vm1, %v612_v24, %v614_v48  ;;  %v16226_v60 = vsel %vm500_vm1, %v614_v48, %v616_v3  ;;  %v621_v24 = vrot.slane %v16212_v46, 1  ;;  %v16260_v46 = vld [vmem:[%s15642_s9 + $0x240] sm:$0xff] }
  0x74   : > { %20984 = vst [vmem:[#allocation64_spill] sm:$0xff] %v16207_v31  ;;  %20987 = vst [vmem:[#allocation67_spill] sm:$0xff] %v16226_v60 }
  0x75   : > { %12485 = vmatmul.mubr.msk.f32.gmra.mrb[42].mxu1 %vm791_vm2, %v16130_v51  ;;  %v618_v51 = vrot.slane %v16191_v21, 1  ;;  %v16234_v21 = vld [vmem:[%s15642_s9 + $0x228] sm:$0x3]  ;;  %v16251_v48 = vsel %vm500_vm1, %v619_v44, %v621_v24  ;;  %20994 = vst [vmem:[#allocation74_spill] sm:$0xff] %v16260_v46 }
  0x76   : > { %13261 = vmatmul.mubr.msk.f32.gmra.mrb[42].mxu0 %vm791_vm2, %v16178_v20  ;;  %12487 = vmatprep.mubr.msk.f32.mxu1 %vm791_vm2, %v16134_v53  ;;  %v16217_v53 = vld [vmem:[%s15642_s9 + $0x220] sm:$0xff]  ;;  %20989 = vst [vmem:[#allocation69_spill] sm:$0xff] %v16234_v21  ;;  %20992 = vst [vmem:[#allocation72_spill] sm:$0xff] %v16251_v48 }
  0x77   : > { %13263 = vmatprep.mubr.msk.f32.mxu0 %vm791_vm2, %v16182_v39  ;;  %20986 = vst [vmem:[#allocation66_spill] sm:$0xff] %v16217_v53  ;;  %v16230_v62 = vsel %vm500_vm1, %v618_v51, %v619_v44  ;;  %v625_v51 = vrot.slane %v16234_v21, 1  ;;  %v16290_v21 = vld [vmem:[%s15642_s9 + $0x260] sm:$0xff] }
  0x78   : > { %20988 = vst [vmem:[#allocation68_spill] sm:$0xff] %v16230_v62  ;;  %21000 = vst [vmem:[#allocation80_spill] sm:$0xff] %v16290_v21 }
  0x79   : > { %12488 = vmatmul.mubr.msk.f32.gmra.mrb[44].mxu1 %vm791_vm2, %v16155_v40  ;;  %v623_v40 = vrot.slane %v16217_v53, 1  ;;  %v628_v53 = vrot.slane %v16242_v35, 1 }
  0x7a   : > { %13264 = vmatmul.mubr.msk.f32.gmra.mrb[44].mxu0 %vm791_vm2, %v16203_v61  ;;  %12490 = vmatprep.mubr.msk.f32.mxu1 %vm791_vm2, %v16159_v11  ;;  %v16239_v11 = vld [vmem:[%s15642_s9 + $0x230] sm:$0xff] }
  0x7b   : > { %13266 = vmatprep.mubr.msk.f32.mxu0 %vm791_vm2, %v16207_v31  ;;  %20990 = vst [vmem:[#allocation70_spill] sm:$0xff] %v16239_v11  ;;  %v16255_v3 = vsel %vm500_vm1, %v621_v24, %v623_v40  ;;  %v16274_v44 = vsel %vm500_vm1, %v623_v40, %v625_v51  ;;  %v630_v24 = vrot.slane %v16260_v46, 1  ;;  %v16308_v46 = vld [vmem:[%s15642_s9 + $0x268] sm:$0xff] }
  0x7c   : > { %20993 = vst [vmem:[#allocation73_spill] sm:$0xff] %v16255_v3  ;;  %20996 = vst [vmem:[#allocation76_spill] sm:$0xff] %v16274_v44 }
  0x7d   : > { %12491 = vmatmul.mubr.msk.f32.gmra.mrb[46].mxu1 %vm791_vm2, %v16178_v20  ;;  %v627_v20 = vrot.slane %v16239_v11, 1  ;;  %v16282_v11 = vld [vmem:[%s15642_s9 + $0x250] sm:$0x3]  ;;  %v16299_v40 = vsel %vm500_vm1, %v628_v53, %v630_v24  ;;  %21003 = vst [vmem:[#allocation83_spill] sm:$0xff] %v16308_v46 }
  0x7e   : > { %13267 = vmatmul.mubr.msk.f32.gmra.mrb[46].mxu0 %vm791_vm2, %v16226_v60  ;;  %12493 = vmatprep.mubr.msk.f32.mxu1 %vm791_vm2, %v16182_v39  ;;  %v16265_v39 = vld [vmem:[%s15642_s9 + $0x248] sm:$0xff]  ;;  %20998 = vst [vmem:[#allocation78_spill] sm:$0xff] %v16282_v11  ;;  %21001 = vst [vmem:[#allocation81_spill] sm:$0xff] %v16299_v40 }
  0x7f   : > { %13269 = vmatprep.mubr.msk.f32.mxu0 %vm791_vm2, %v16230_v62  ;;  %20995 = vst [vmem:[#allocation75_spill] sm:$0xff] %v16265_v39  ;;  %v16278_v35 = vsel %vm500_vm1, %v627_v20, %v628_v53  ;;  %v634_v20 = vrot.slane %v16282_v11, 1  ;;  %v16338_v11 = vld [vmem:[%s15642_s9 + $0x288] sm:$0xff] }
  0x80   : > { %20997 = vst [vmem:[#allocation77_spill] sm:$0xff] %v16278_v35  ;;  %21008 = vst [vmem:[#allocation88_spill] sm:$0xff] %v16338_v11 }
  0x81   : > { %12494 = vmatmul.mubr.msk.f32.gmra.mrb[48].mxu1 %vm791_vm2, %v16203_v61  ;;  %v632_v61 = vrot.slane %v16265_v39, 1  ;;  %v637_v39 = vrot.slane %v16290_v21, 1 }
  0x82   : > { %13270 = vmatmul.mubr.msk.f32.gmra.mrb[48].mxu0 %vm791_vm2, %v16251_v48  ;;  %12496 = vmatprep.mubr.msk.f32.mxu1 %vm791_vm2, %v16207_v31  ;;  %v16287_v31 = vld [vmem:[%s15642_s9 + $0x258] sm:$0xff] }
  0x83   : > { %13272 = vmatprep.mubr.msk.f32.mxu0 %vm791_vm2, %v16255_v3  ;;  %20999 = vst [vmem:[#allocation79_spill] sm:$0xff] %v16287_v31  ;;  %v16303_v51 = vsel %vm500_vm1, %v630_v24, %v632_v61  ;;  %v16322_v53 = vsel %vm500_vm1, %v632_v61, %v634_v20  ;;  %v639_v24 = vrot.slane %v16308_v46, 1  ;;  %v16356_v46 = vld [vmem:[%s15642_s9 + $0x290] sm:$0xff] }
  0x84   : > { %21002 = vst [vmem:[#allocation82_spill] sm:$0xff] %v16303_v51  ;;  %21005 = vst [vmem:[#allocation85_spill] sm:$0xff] %v16322_v53 }
  0x85   : > { %12497 = vmatmul.mubr.msk.f32.gmra.mrb[50].mxu1 %vm791_vm2, %v16226_v60  ;;  %v636_v60 = vrot.slane %v16287_v31, 1  ;;  %v16330_v31 = vld [vmem:[%s15642_s9 + $0x278] sm:$0x3]  ;;  %v16347_v61 = vsel %vm500_vm1, %v637_v39, %v639_v24 }
  0x86   : > { %13273 = vmatmul.mubr.msk.f32.gmra.mrb[50].mxu0 %vm791_vm2, %v16274_v44  ;;  %12499 = vmatprep.mubr.msk.f32.mxu1 %vm791_vm2, %v16230_v62  ;;  %v16313_v62 = vld [vmem:[%s15642_s9 + $0x270] sm:$0xff]  ;;  %21009 = vst [vmem:[#allocation89_spill] sm:$0xff] %v16347_v61 }
  0x87   : > { %13275 = vmatprep.mubr.msk.f32.mxu0 %vm791_vm2, %v16278_v35  ;;  %21004 = vst [vmem:[#allocation84_spill] sm:$0xff] %v16313_v62  ;;  %v16326_v21 = vsel %vm500_vm1, %v636_v60, %v637_v39  ;;  %v643_v60 = vrot.slane %v16330_v31, 1 }
  0x88   : > { %21006 = vst [vmem:[#allocation86_spill] sm:$0xff] %v16326_v21 }
  0x89   : > { %12500 = vmatmul.mubr.msk.f32.gmra.mrb[52].mxu1 %vm791_vm2, %v16251_v48  ;;  %v641_v48 = vrot.slane %v16313_v62, 1  ;;  %v646_v62 = vrot.slane %v16338_v11, 1 }
  0x8a   : > { %13276 = vmatmul.mubr.msk.f32.gmra.mrb[52].mxu0 %vm791_vm2, %v16299_v40  ;;  %12502 = vmatprep.mubr.msk.f32.mxu1 %vm791_vm2, %v16255_v3  ;;  %v16335_v3 = vld [vmem:[%s15642_s9 + $0x280] sm:$0xff] }
  0x8b   : > { %13278 = vmatprep.mubr.msk.f32.mxu0 %vm791_vm2, %v16303_v51  ;;  %21007 = vst [vmem:[#allocation87_spill] sm:$0xff] %v16335_v3  ;;  %v16351_v20 = vsel %vm500_vm1, %v639_v24, %v641_v48  ;;  %v16370_v39 = vsel %vm500_vm1, %v641_v48, %v643_v60  ;;  %v648_v24 = vrot.slane %v16356_v46, 1 }
  0x8c   : > { %21010 = vst [vmem:[#allocation90_spill] sm:$0xff] %v16351_v20  ;;  %21011 = vst [vmem:[#allocation91_spill] sm:$0xff] %v16370_v39 }
  0x8d   : > { %12503 = vmatmul.mubr.msk.f32.gmra.mrb[54].mxu1 %vm791_vm2, %v16274_v44  ;;  %v645_v44 = vrot.slane %v16335_v3, 1  ;;  %v16378_v3 = vld [vmem:[%s15642_s9 + $0x2a0] sm:$0x3]  ;;  %v16389_v48 = vsel %vm500_vm1, %v646_v62, %v648_v24 }
  0x8e   : > { %13279 = vmatmul.mubr.msk.f32.gmra.mrb[54].mxu0 %vm791_vm2, %v16322_v53  ;;  %12505 = vmatprep.mubr.msk.f32.mxu1 %vm791_vm2, %v16278_v35  ;;  %v16361_v35 = vld [vmem:[%s15642_s9 + $0x298] sm:$0xff]  ;;  %21013 = vst [vmem:[#allocation93_spill] sm:$0xff] %v16389_v48 }
  0x8f   : > { %13281 = vmatprep.mubr.msk.f32.mxu0 %vm791_vm2, %v16326_v21  ;;  %v16374_v11 = vsel %vm500_vm1, %v645_v44, %v646_v62  ;;  %v652_v44 = vrot.slane %v16378_v3, 1 }
  0x90   : > { %21012 = vst [vmem:[#allocation92_spill] sm:$0xff] %v16374_v11 }
  0x91   : > { %12506 = vmatmul.mubr.msk.f32.gmra.mrb[56].mxu1 %vm791_vm2, %v16299_v40  ;;  %v650_v40 = vrot.slane %v16361_v35, 1 }
  0x92   : > { %13282 = vmatmul.mubr.msk.f32.gmra.mrb[56].mxu0 %vm791_vm2, %v16347_v61  ;;  %12508 = vmatprep.mubr.msk.f32.mxu1 %vm791_vm2, %v16303_v51  ;;  %v2732_v51 = vrot.slane %v15650_v9, 2 }
  0x93   : > { %13284 = vmatprep.mubr.msk.f32.mxu0 %vm791_vm2, %v16351_v20  ;;  %v16393_v60 = vsel %vm500_vm1, %v648_v24, %v650_v40  ;;  %v16406_v62 = vsel %vm500_vm1, %v650_v40, %v652_v44  ;;  %v2736_v24 = vrot.slane %v15661_v17, 2  ;;  %v2738_v40 = vrot.slane %v15667_v22, 2  ;;  %v16449_v22 = vld [vmem:[%s15642_s9 + $0x2c0] sm:$0xff] }
  0x94   : > { %21014 = vst [vmem:[#allocation94_spill] sm:$0xff] %v16393_v60  ;;  %21015 = vst [vmem:[#allocation95_spill] sm:$0xff] %v16406_v62 }
  0x95   : > { %12509 = vmatmul.mubr.msk.f32.gmra.mrb[58].mxu1 %vm791_vm2, %v16322_v53  ;;  %v2731_v53 = vrot.slane %v15647_v6, 2  ;;  %v2734_v6 = vrot.slane %v15655_v12, 2  ;;  %v16428_v12 = vld [vmem:[%s20395_s1 + $0x8] sm:$0x7] }
  0x96   : > { %13285 = vmatmul.mubr.msk.f32.gmra.mrb[58].mxu0 %vm791_vm2, %v16370_v39  ;;  %12511 = vmatprep.mubr.msk.f32.mxu1 %vm791_vm2, %v16326_v21  ;;  %v16417_v21 = vld [vmem:[%s15642_s9 + $0x2b0] sm:$0xff]  ;;  %21017 = vst [vmem:[#allocation97_spill] sm:$0xff] %v16428_v12 }
  0x97   : > { %13287 = vmatprep.mubr.msk.f32.mxu0 %vm791_vm2, %v16374_v11  ;;  %v16410_v9 = vsel %vm2721_vm3, %v2731_v53, %v2732_v51  ;;  %v16433_v17 = vsel %vm2721_vm3, %v2732_v51, %v2734_v6  ;;  %v655_v44 = vrot.slane %v16417_v21, 1  ;;  %12807 = vmatprep.subr.msk.mxu1 %vm1048_vm0, %v16428_v12  ;;  %v2741_v51 = vrot.slane %v15677_v28, 2  ;;  %v16478_v12 = vld [vmem:[%s15642_s9 + $0x2d0] sm:$0xff] }
  0x98   : > { %21016 = vst [vmem:[#allocation96_spill] sm:$0xff] %v16410_v9  ;;  %21018 = vst [vmem:[#allocation98_spill] sm:$0xff] %v16433_v17 }
  0x99   : > { %12512 = vmatmul.mubr.msk.f32.gmra.mrb[60].mxu1 %vm791_vm2, %v16347_v61  ;;  %v16414_v61 = vld [vmem:[%s15642_s9 + $0x2a8] sm:$0xff] }
  0x9a   : > { %13288 = vmatmul.mubr.msk.f32.gmra.mrb[60].mxu0 %vm791_vm2, %v16389_v48  ;;  %12514 = vmatprep.mubr.msk.f32.mxu1 %vm791_vm2, %v16351_v20  ;;  %v654_v53 = vrot.slane %v16414_v61, 1  ;;  %v2740_v20 = vrot.slane %v15674_v27, 2  ;;  %v16463_v27 = vsel %vm2721_vm3, %v2736_v24, %v2738_v40 }
  0x9b   : > { %13290 = vmatprep.mubr.msk.f32.mxu0 %vm791_vm2, %v16393_v60  ;;  %21020 = vst [vmem:[#allocation100_spill] sm:$0xff] %v16463_v27 }
  0x9c   : > { %v16466_v28 = vsel %vm500_vm1, %v654_v53, %v655_v44  ;;  %v663_v53 = vrot.slane %v16478_v12, 1 }
  0x9d   : > { %12515 = vmatmul.mubr.msk.f32.gmra.mrb[62].mxu1 %vm791_vm2, %v16370_v39  ;;  %v16439_v39 = vld [vmem:[%s15642_s9 + $0x2b8] sm:$0xff]  ;;  %21021 = vst [vmem:[#allocation101_spill] sm:$0xff] %v16466_v28 }
  0x9e   : > { %13291 = vmatmul.mubr.msk.f32.gmra.mrb[62].mxu0 %vm791_vm2, %v16406_v62  ;;  %12517 = vmatprep.mubr.msk.f32.mxu1 %vm791_vm2, %v16374_v11  ;;  %v16444_v11 = vsel %vm2721_vm3, %v2734_v6, %v2736_v24  ;;  %v657_v6 = vrot.slane %v16439_v39, 1 }
  0x9f   : > { %13391 = vmatprep.mubr.msk.f32.mxu0 %vm791_vm2, %v16410_v9  ;;  %21019 = vst [vmem:[#allocation99_spill] sm:$0xff] %v16444_v11  ;;  %v16471_v9 = vld [vmem:[%s15642_s9 + $0x2c8] sm:$0x3] }
  0xa1   : > { %12518 = vmatmul.mubr.msk.f32.gmra.mrb[64].mxu1 %vm791_vm2, %v16389_v48  ;;  %v2743_v48 = vrot.slane %v15680_v29, 2  ;;  %v16490_v29 = vsel %vm500_vm1, %v655_v44, %v657_v6  ;;  %v16505_v44 = vld [vmem:[%s15642_s9 + $0x2e0] sm:$0xff] }
  0xa2   : > { %13392 = vmatmul.mubr.msk.f32.vlgmr.msra.gmra.mrb[0].mxu0 %vm791_vm2, %v16433_v17  ;;  %12520 = vmatprep.mubr.msk.f32.mxu1 %vm791_vm2, %v16393_v60  ;;  %v659_v17 = vrot.slane %v16449_v22, 1  ;;  %v16474_v60 = vsel %vm2721_vm3, %v2740_v20, %v2741_v51  ;;  %21023 = vst [vmem:[#allocation103_spill] sm:$0xff] %v16490_v29  ;;  %v661_v20 = vrot.slane %v16471_v9, 1 }
  0xa3   : > { %13584 = vmatpush3.msk.msra.mxu0 %vm1048_vm0, %v15835_v19  ;;  %13394 = vmatprep.mubr.msk.f32.mxu0 %vm791_vm2, %v16444_v11  ;;  %21022 = vst [vmem:[#allocation102_spill] sm:$0xff] %v16474_v60  ;;  %v2745_v19 = vrot.slane %v15689_v34, 2  ;;  %v16481_v11 = vld [vmem:[%s15642_s9 + $0x2d8] sm:$0xff]  ;;  %v2747_v34 = vrot.slane %v15705_v41, 2  ;;  %v16497_v24 = vsel %vm2721_vm3, %v2741_v51, %v2743_v48  ;;  %v2749_v41 = vrot.slane %v15709_v42, 2  ;;  %v16513_v51 = vld [vmem:[%s15642_s9 + $0x2e8] sm:$0xff] }
  0xa4   : > { %21024 = vst [vmem:[#allocation104_spill] sm:$0xff] %v16497_v24  ;;  %v16500_v40 = vsel %vm500_vm1, %v657_v6, %v659_v17  ;;  %v666_v42 = vrot.slane %v16505_v44, 1 }
  0xa5   : > { %12521 = vmatmul.mubr.msk.f32.gmra.mrb[66].mxu1 %vm791_vm2, %v16406_v62  ;;  %21025 = vst [vmem:[#allocation105_spill] sm:$0xff] %v16500_v40  ;;  %v16508_v62 = vsel %vm2721_vm3, %v2743_v48, %v2745_v19  ;;  %v16522_v48 = vsel %vm500_vm1, %v659_v17, %v661_v20  ;;  %v2754_v20 = vrot.slane %v15732_v50, 2  ;;  %v2756_v50 = vrot.slane %v15748_v55, 2 }
  0xa6   : > { %13395 = vmatmul.mubr.msk.f32.gmra.mrb[2].mxu0 %vm791_vm2, %v16463_v27  ;;  %12523 = vmatprep.mubr.msk.f32.mxu1 %vm791_vm2, %v16466_v28  ;;  %v664_v28 = vrot.slane %v16481_v11, 1  ;;  %21026 = vst [vmem:[#allocation106_spill] sm:$0xff] %v16508_v62  ;;  %21027 = vst [vmem:[#allocation107_spill] sm:$0xff] %v16522_v48  ;;  %v16536_v27 = vld [vmem:[%s15642_s9 + $0x2f0] sm:$0x3]  ;;  %v2758_v55 = vrot.slane %v15752_v56, 2 }
  0xa7   : > { %13397 = vmatprep.mubr.msk.f32.mxu0 %vm791_vm2, %v16474_v60  ;;  %v2750_v60 = vrot.slane %v15712_v43, 2  ;;  %v16528_v43 = vsel %vm2721_vm3, %v2745_v19, %v2747_v34  ;;  %v670_v19 = vrot.slane %v16536_v27, 1 }
  0xa8   : > { %21028 = vst [vmem:[#allocation108_spill] sm:$0xff] %v16528_v43  ;;  %v16531_v6 = vsel %vm500_vm1, %v663_v53, %v664_v28 }
  0xa9   : > { %12524 = vmatmul.mubr.msk.f32.gmra.mrb[68].mxu1 %vm791_vm2, %v16490_v29  ;;  %21029 = vst [vmem:[#allocation109_spill] sm:$0xff] %v16531_v6  ;;  %v2752_v29 = vrot.slane %v15728_v49, 2  ;;  %v16539_v17 = vsel %vm2721_vm3, %v2749_v41, %v2750_v60  ;;  %v16555_v49 = vsel %vm500_vm1, %v664_v28, %v666_v42  ;;  %v16570_v28 = vld [vmem:[%s15642_s9 + $0x308] sm:$0xff] }
  0xaa   : > { %13398 = vmatmul.mubr.msk.f32.gmra.mrb[4].mxu0 %vm791_vm2, %v16497_v24  ;;  %12526 = vmatprep.mubr.msk.f32.mxu1 %vm791_vm2, %v16500_v40  ;;  %v668_v24 = vrot.slane %v16513_v51, 1  ;;  %21030 = vst [vmem:[#allocation110_spill] sm:$0xff] %v16539_v17  ;;  %v16543_v40 = vld [vmem:[%s15642_s9 + $0x2f8] sm:$0xff]  ;;  %21031 = vst [vmem:[#allocation111_spill] sm:$0xff] %v16555_v49  ;;  %v675_v56 = vrot.slane %v16570_v28, 1 }
  0xab   : > { %13400 = vmatprep.mubr.msk.f32.mxu0 %vm791_vm2, %v16508_v62  ;;  %v16546_v62 = vld [vmem:[%s15642_s9 + $0x300] sm:$0xff]  ;;  %v16562_v34 = vsel %vm2721_vm3, %v2750_v60, %v2752_v29  ;;  %v672_v41 = vrot.slane %v16543_v40, 1  ;;  %v16578_v60 = vld [vmem:[%s15642_s9 + $0x310] sm:$0xff] }
  0xac   : > { %21032 = vst [vmem:[#allocation112_spill] sm:$0xff] %v16562_v34  ;;  %v16565_v53 = vsel %vm500_vm1, %v666_v42, %v668_v24  ;;  %v2761_v42 = vrot.slane %v15773_v63, 2  ;;  %v16608_v63 = vld [vmem:[%s15642_s9 + $0x320] sm:$0xff] }
  0xad   : > { %12527 = vmatmul.mubr.msk.f32.gmra.mrb[70].mxu1 %vm791_vm2, %v16522_v48  ;;  %21033 = vst [vmem:[#allocation113_spill] sm:$0xff] %v16565_v53  ;;  %v16573_v48 = vsel %vm2721_vm3, %v2752_v29, %v2754_v20  ;;  %v16587_v29 = vsel %vm500_vm1, %v668_v24, %v670_v19  ;;  %v2763_v19 = vrot.slane %v15778_v0, 2 }
  0xae   : > { %13401 = vmatmul.mubr.msk.f32.gmra.mrb[6].mxu0 %vm791_vm2, %v16528_v43  ;;  %12529 = vmatprep.mubr.msk.f32.mxu1 %vm791_vm2, %v16531_v6  ;;  %v673_v6 = vrot.slane %v16546_v62, 1  ;;  %21034 = vst [vmem:[#allocation114_spill] sm:$0xff] %v16573_v48  ;;  %21035 = vst [vmem:[#allocation115_spill] sm:$0xff] %v16587_v29  ;;  %v16601_v43 = vld [vmem:[%s15642_s9 + $0x318] sm:$0x3] }
  0xaf   : > { %13403 = vmatprep.mubr.msk.f32.mxu0 %vm791_vm2, %v16539_v17  ;;  %v2759_v17 = vrot.slane %v15755_v57, 2  ;;  %v16594_v57 = vsel %vm2721_vm3, %v2754_v20, %v2756_v50  ;;  %v679_v0 = vrot.slane %v16601_v43, 1 }
  0xb0   : > { %21036 = vst [vmem:[#allocation116_spill] sm:$0xff] %v16594_v57  ;;  %v16620_v20 = vsel %vm500_vm1, %v673_v6, %v675_v56 }
  0xb1   : > { %12530 = vmatmul.mubr.msk.f32.gmra.mrb[72].mxu1 %vm791_vm2, %v16555_v49  ;;  %v16597_v49 = vsel %vm500_vm1, %v672_v41, %v673_v6  ;;  %v16604_v24 = vsel %vm2721_vm3, %v2758_v55, %v2759_v17  ;;  %21039 = vst [vmem:[#allocation119_spill] sm:$0xff] %v16620_v20  ;;  %v16623_v50 = vsel %vm2721_vm3, %v2759_v17, %v2761_v42  ;;  %v2765_v55 = vrot.slane %v15795_v5, 2  ;;  %v16635_v6 = vld [vmem:[%s15642_s9 + $0x330] sm:$0xff] }
  0xb2   : > { %13404 = vmatmul.mubr.msk.f32.gmra.mrb[8].mxu0 %vm791_vm2, %v16562_v34  ;;  %12532 = vmatprep.mubr.msk.f32.mxu1 %vm791_vm2, %v16565_v53  ;;  %21037 = vst [vmem:[#allocation117_spill] sm:$0xff] %v16597_v49  ;;  %v677_v34 = vrot.slane %v16578_v60, 1  ;;  %21038 = vst [vmem:[#allocation118_spill] sm:$0xff] %v16604_v24  ;;  %v16611_v53 = vld [vmem:[%s15642_s9 + $0x328] sm:$0xff]  ;;  %v16638_v17 = vsel %vm2721_vm3, %v2761_v42, %v2763_v19 }
  0xb3   : > { %13406 = vmatprep.mubr.msk.f32.mxu0 %vm791_vm2, %v16573_v48  ;;  %21040 = vst [vmem:[#allocation120_spill] sm:$0xff] %v16623_v50  ;;  %21042 = vst [vmem:[#allocation122_spill] sm:$0xff] %v16638_v17  ;;  %v16666_v48 = vld [vmem:[%s15642_s9 + $0x340] sm:$0x3] }
  0xb4   : > { %v16629_v41 = vsel %vm500_vm1, %v675_v56, %v677_v34  ;;  %v16643_v56 = vld [vmem:[%s15642_s9 + $0x338] sm:$0xff]  ;;  %v16652_v5 = vsel %vm500_vm1, %v677_v34, %v679_v0  ;;  %v2772_v0 = vrot.slane %v15826_v18, 2  ;;  %v2774_v18 = vrot.slane %v15850_v25, 2 }
  0xb5   : > { %12533 = vmatmul.mubr.msk.f32.gmra.mrb[74].mxu1 %vm791_vm2, %v16587_v29  ;;  %21041 = vst [vmem:[#allocation121_spill] sm:$0xff] %v16629_v41  ;;  %v681_v29 = vrot.slane %v16608_v63, 1  ;;  %21043 = vst [vmem:[#allocation123_spill] sm:$0xff] %v16652_v5  ;;  %v2776_v25 = vrot.slane %v15855_v26, 2 }
  0xb6   : > { %13407 = vmatmul.mubr.msk.f32.gmra.mrb[10].mxu0 %vm791_vm2, %v16594_v57  ;;  %12535 = vmatprep.mubr.msk.f32.mxu1 %vm791_vm2, %v16597_v49  ;;  %v682_v49 = vrot.slane %v16611_v53, 1  ;;  %v2767_v57 = vrot.slane %v15800_v7, 2  ;;  %v684_v7 = vrot.slane %v16635_v6, 1 }
  0xb7   : > { %13409 = vmatprep.mubr.msk.f32.mxu0 %vm791_vm2, %v16604_v24  ;;  %v2768_v24 = vrot.slane %v15803_v8, 2  ;;  %v16658_v8 = vsel %vm2721_vm3, %v2763_v19, %v2765_v55 }
  0xb8   : > { %21044 = vst [vmem:[#allocation124_spill] sm:$0xff] %v16658_v8  ;;  %v16661_v42 = vsel %vm500_vm1, %v681_v29, %v682_v49  ;;  %v688_v29 = vrot.slane %v16666_v48, 1 }
  0xb9   : > { %12536 = vmatmul.mubr.msk.f32.gmra.mrb[76].mxu1 %vm791_vm2, %v16620_v20  ;;  %21045 = vst [vmem:[#allocation125_spill] sm:$0xff] %v16661_v42  ;;  %v2770_v20 = vrot.slane %v15821_v16, 2  ;;  %v16669_v34 = vsel %vm2721_vm3, %v2767_v57, %v2768_v24  ;;  %v16685_v16 = vsel %vm500_vm1, %v682_v49, %v684_v7  ;;  %v16700_v49 = vld [vmem:[%s15642_s9 + $0x358] sm:$0xff] }
  0xba   : > { %13410 = vmatmul.mubr.msk.f32.gmra.mrb[12].mxu0 %vm791_vm2, %v16623_v50  ;;  %12538 = vmatprep.mubr.msk.f32.mxu1 %vm791_vm2, %v16629_v41  ;;  %v686_v50 = vrot.slane %v16643_v56, 1  ;;  %21046 = vst [vmem:[#allocation126_spill] sm:$0xff] %v16669_v34  ;;  %v16673_v41 = vld [vmem:[%s15642_s9 + $0x348] sm:$0xff]  ;;  %21047 = vst [vmem:[#allocation127_spill] sm:$0xff] %v16685_v16  ;;  %v693_v26 = vrot.slane %v16700_v49, 1 }
  0xbb   : > { %13412 = vmatprep.mubr.msk.f32.mxu0 %vm791_vm2, %v16638_v17  ;;  %v16676_v17 = vld [vmem:[%s15642_s9 + $0x350] sm:$0xff]  ;;  %v16692_v57 = vsel %vm2721_vm3, %v2768_v24, %v2770_v20  ;;  %v690_v55 = vrot.slane %v16673_v41, 1  ;;  %v16708_v24 = vld [vmem:[%s15642_s9 + $0x360] sm:$0xff] }
  0xbc   : > { %21048 = vst [vmem:[#allocation128_spill] sm:$0xff] %v16692_v57  ;;  %v16695_v19 = vsel %vm500_vm1, %v684_v7, %v686_v50  ;;  %v2779_v7 = vrot.slane %v15876_v37, 2  ;;  %v16738_v37 = vld [vmem:[%s15642_s9 + $0x370] sm:$0xff] }
  0xbd   : > { %12539 = vmatmul.mubr.msk.f32.gmra.mrb[78].mxu1 %vm791_vm2, %v16652_v5  ;;  %21049 = vst [vmem:[#allocation129_spill] sm:$0xff] %v16695_v19  ;;  %v16703_v5 = vsel %vm2721_vm3, %v2770_v20, %v2772_v0  ;;  %v16717_v20 = vsel %vm500_vm1, %v686_v50, %v688_v29  ;;  %v2781_v29 = vrot.slane %v15881_v38, 2 }
  0xbe   : > { %13413 = vmatmul.mubr.msk.f32.gmra.mrb[14].mxu0 %vm791_vm2, %v16658_v8  ;;  %12541 = vmatprep.mubr.msk.f32.mxu1 %vm791_vm2, %v16661_v42  ;;  %v691_v42 = vrot.slane %v16676_v17, 1  ;;  %21050 = vst [vmem:[#allocation130_spill] sm:$0xff] %v16703_v5  ;;  %21051 = vst [vmem:[#allocation131_spill] sm:$0xff] %v16717_v20  ;;  %v16731_v8 = vld [vmem:[%s15642_s9 + $0x368] sm:$0x3] }
  0xbf   : > { %13415 = vmatprep.mubr.msk.f32.mxu0 %vm791_vm2, %v16669_v34  ;;  %v2777_v34 = vrot.slane %v15858_v30, 2  ;;  %v16724_v30 = vsel %vm2721_vm3, %v2772_v0, %v2774_v18  ;;  %v697_v38 = vrot.slane %v16731_v8, 1 }
  0xc0   : > { %21052 = vst [vmem:[#allocation132_spill] sm:$0xff] %v16724_v30  ;;  %v16750_v0 = vsel %vm500_vm1, %v691_v42, %v693_v26 }
  0xc1   : > { %12542 = vmatmul.mubr.msk.f32.gmra.mrb[80].mxu1 %vm791_vm2, %v16685_v16  ;;  %v16727_v16 = vsel %vm500_vm1, %v690_v55, %v691_v42  ;;  %v16734_v50 = vsel %vm2721_vm3, %v2776_v25, %v2777_v34  ;;  %21055 = vst [vmem:[#allocation135_spill] sm:$0xff] %v16750_v0  ;;  %v16753_v18 = vsel %vm2721_vm3, %v2777_v34, %v2779_v7  ;;  %v2783_v25 = vrot.slane %v15898_v52, 2  ;;  %v16765_v42 = vld [vmem:[%s15642_s9 + $0x380] sm:$0xff] }
  0xc2   : > { %13416 = vmatmul.mubr.msk.f32.gmra.mrb[16].mxu0 %vm791_vm2, %v16692_v57  ;;  %12544 = vmatprep.mubr.msk.f32.mxu1 %vm791_vm2, %v16695_v19  ;;  %21053 = vst [vmem:[#allocation133_spill] sm:$0xff] %v16727_v16  ;;  %v695_v57 = vrot.slane %v16708_v24, 1  ;;  %21054 = vst [vmem:[#allocation134_spill] sm:$0xff] %v16734_v50  ;;  %v16741_v19 = vld [vmem:[%s15642_s9 + $0x378] sm:$0xff]  ;;  %v16768_v34 = vsel %vm2721_vm3, %v2779_v7, %v2781_v29 }
  0xc3   : > { %13418 = vmatprep.mubr.msk.f32.mxu0 %vm791_vm2, %v16703_v5  ;;  %21056 = vst [vmem:[#allocation136_spill] sm:$0xff] %v16753_v18  ;;  %21058 = vst [vmem:[#allocation138_spill] sm:$0xff] %v16768_v34  ;;  %v16796_v5 = vld [vmem:[%s15642_s9 + $0x390] sm:$0x3] }
  0xc4   : > { %v16759_v55 = vsel %vm500_vm1, %v693_v26, %v695_v57  ;;  %v16773_v26 = vld [vmem:[%s15642_s9 + $0x388] sm:$0xff]  ;;  %v16782_v52 = vsel %vm500_vm1, %v695_v57, %v697_v38  ;;  %v2790_v38 = vrot.slane %v15929_v15, 2  ;;  %v2792_v15 = vrot.slane %v15946_v36, 2 }
  0xc5   : > { %12545 = vmatmul.mubr.msk.f32.gmra.mrb[82].mxu1 %vm791_vm2, %v16717_v20  ;;  %21057 = vst [vmem:[#allocation137_spill] sm:$0xff] %v16759_v55  ;;  %v699_v20 = vrot.slane %v16738_v37, 1  ;;  %21059 = vst [vmem:[#allocation139_spill] sm:$0xff] %v16782_v52  ;;  %v2794_v36 = vrot.slane %v15951_v45, 2 }
  0xc6   : > { %13419 = vmatmul.mubr.msk.f32.gmra.mrb[18].mxu0 %vm791_vm2, %v16724_v30  ;;  %12547 = vmatprep.mubr.msk.f32.mxu1 %vm791_vm2, %v16727_v16  ;;  %v700_v16 = vrot.slane %v16741_v19, 1  ;;  %v2785_v30 = vrot.slane %v15903_v54, 2  ;;  %v702_v54 = vrot.slane %v16765_v42, 1 }
  0xc7   : > { %13421 = vmatprep.mubr.msk.f32.mxu0 %vm791_vm2, %v16734_v50  ;;  %v2786_v50 = vrot.slane %v15906_v59, 2  ;;  %v16788_v59 = vsel %vm2721_vm3, %v2781_v29, %v2783_v25 }
  0xc8   : > { %21060 = vst [vmem:[#allocation140_spill] sm:$0xff] %v16788_v59  ;;  %v16791_v7 = vsel %vm500_vm1, %v699_v20, %v700_v16  ;;  %v706_v20 = vrot.slane %v16796_v5, 1 }
  0xc9   : > { %12548 = vmatmul.mubr.msk.f32.gmra.mrb[84].mxu1 %vm791_vm2, %v16750_v0  ;;  %21061 = vst [vmem:[#allocation141_spill] sm:$0xff] %v16791_v7  ;;  %v2788_v0 = vrot.slane %v15924_v14, 2  ;;  %v16799_v57 = vsel %vm2721_vm3, %v2785_v30, %v2786_v50  ;;  %v16815_v14 = vsel %vm500_vm1, %v700_v16, %v702_v54  ;;  %v16830_v16 = vld [vmem:[%s15642_s9 + $0x3a8] sm:$0xff] }
  0xca   : > { %13422 = vmatmul.mubr.msk.f32.gmra.mrb[20].mxu0 %vm791_vm2, %v16753_v18  ;;  %12550 = vmatprep.mubr.msk.f32.mxu1 %vm791_vm2, %v16759_v55  ;;  %v704_v18 = vrot.slane %v16773_v26, 1  ;;  %21062 = vst [vmem:[#allocation142_spill] sm:$0xff] %v16799_v57  ;;  %v16803_v55 = vld [vmem:[%s15642_s9 + $0x398] sm:$0xff]  ;;  %21063 = vst [vmem:[#allocation143_spill] sm:$0xff] %v16815_v14  ;;  %v711_v45 = vrot.slane %v16830_v16, 1 }
  0xcb   : > { %13424 = vmatprep.mubr.msk.f32.mxu0 %vm791_vm2, %v16768_v34  ;;  %v16806_v34 = vld [vmem:[%s15642_s9 + $0x3a0] sm:$0xff]  ;;  %v16822_v30 = vsel %vm2721_vm3, %v2786_v50, %v2788_v0  ;;  %v708_v25 = vrot.slane %v16803_v55, 1  ;;  %v16838_v50 = vld [vmem:[%s15642_s9 + $0x3b0] sm:$0xff] }
  0xcc   : > { %21064 = vst [vmem:[#allocation144_spill] sm:$0xff] %v16822_v30  ;;  %v16825_v29 = vsel %vm500_vm1, %v702_v54, %v704_v18  ;;  %v2797_v54 = vrot.slane %v15972_v23, 2  ;;  %v16868_v23 = vld [vmem:[%s15642_s9 + $0x3c0] sm:$0xff] }
  0xcd   : > { %12551 = vmatmul.mubr.msk.f32.gmra.mrb[86].mxu1 %vm791_vm2, %v16782_v52  ;;  %21065 = vst [vmem:[#allocation145_spill] sm:$0xff] %v16825_v29  ;;  %v16833_v52 = vsel %vm2721_vm3, %v2788_v0, %v2790_v38  ;;  %v16847_v0 = vsel %vm500_vm1, %v704_v18, %v706_v20  ;;  %v2799_v20 = vrot.slane %v15977_v47, 2 }
  0xce   : > { %13425 = vmatmul.mubr.msk.f32.gmra.mrb[22].mxu0 %vm791_vm2, %v16788_v59  ;;  %12553 = vmatprep.mubr.msk.f32.mxu1 %vm791_vm2, %v16791_v7  ;;  %v709_v7 = vrot.slane %v16806_v34, 1  ;;  %21066 = vst [vmem:[#allocation146_spill] sm:$0xff] %v16833_v52  ;;  %21067 = vst [vmem:[#allocation147_spill] sm:$0xff] %v16847_v0  ;;  %v16861_v59 = vld [vmem:[%s15642_s9 + $0x3b8] sm:$0x3] }
  0xcf   : > { %13427 = vmatprep.mubr.msk.f32.mxu0 %vm791_vm2, %v16799_v57  ;;  %v2795_v57 = vrot.slane %v15954_v33, 2  ;;  %v16854_v33 = vsel %vm2721_vm3, %v2790_v38, %v2792_v15  ;;  %v715_v47 = vrot.slane %v16861_v59, 1 }
  0xd0   : > { %21068 = vst [vmem:[#allocation148_spill] sm:$0xff] %v16854_v33  ;;  %v16880_v38 = vsel %vm500_vm1, %v709_v7, %v711_v45 }
  0xd1   : > { %12554 = vmatmul.mubr.msk.f32.gmra.mrb[88].mxu1 %vm791_vm2, %v16815_v14  ;;  %v16857_v14 = vsel %vm500_vm1, %v708_v25, %v709_v7  ;;  %v16864_v18 = vsel %vm2721_vm3, %v2794_v36, %v2795_v57  ;;  %21071 = vst [vmem:[#allocation151_spill] sm:$0xff] %v16880_v38  ;;  %v16883_v15 = vsel %vm2721_vm3, %v2795_v57, %v2797_v54  ;;  %v2801_v36 = vrot.slane %v15994_v13, 2  ;;  %v16895_v7 = vld [vmem:[%s15642_s9 + $0x3d0] sm:$0xff] }
  0xd2   : > { %13428 = vmatmul.mubr.msk.f32.gmra.mrb[24].mxu0 %vm791_vm2, %v16822_v30  ;;  %12556 = vmatprep.mubr.msk.f32.mxu1 %vm791_vm2, %v16825_v29  ;;  %21069 = vst [vmem:[#allocation149_spill] sm:$0xff] %v16857_v14  ;;  %v713_v30 = vrot.slane %v16838_v50, 1  ;;  %21070 = vst [vmem:[#allocation150_spill] sm:$0xff] %v16864_v18  ;;  %v16871_v29 = vld [vmem:[%s15642_s9 + $0x3c8] sm:$0xff]  ;;  %v16898_v57 = vsel %vm2721_vm3, %v2797_v54, %v2799_v20 }
  0xd3   : > { %13430 = vmatprep.mubr.msk.f32.mxu0 %vm791_vm2, %v16833_v52  ;;  %21072 = vst [vmem:[#allocation152_spill] sm:$0xff] %v16883_v15  ;;  %21074 = vst [vmem:[#allocation154_spill] sm:$0xff] %v16898_v57  ;;  %v16926_v52 = vld [vmem:[%s15642_s9 + $0x3e0] sm:$0x3] }
  0xd4   : > { %v16889_v25 = vsel %vm500_vm1, %v711_v45, %v713_v30  ;;  %v16903_v45 = vld [vmem:[%s15642_s9 + $0x3d8] sm:$0xff]  ;;  %v16912_v13 = vsel %vm500_vm1, %v713_v30, %v715_v47  ;;  %v2808_v47 = vrot.slane %v16025_v32, 2  ;;  %v2810_v32 = vrot.slane %v16042_v58, 2 }
  0xd5   : > { %12557 = vmatmul.mubr.msk.f32.gmra.mrb[90].mxu1 %vm791_vm2, %v16847_v0  ;;  %21073 = vst [vmem:[#allocation153_spill] sm:$0xff] %v16889_v25  ;;  %v717_v0 = vrot.slane %v16868_v23, 1  ;;  %21075 = vst [vmem:[#allocation155_spill] sm:$0xff] %v16912_v13  ;;  %v2812_v58 = vrot.slane %v16047_v4, 2 }
  0xd6   : > { %13431 = vmatmul.mubr.msk.f32.gmra.mrb[26].mxu0 %vm791_vm2, %v16854_v33  ;;  %12559 = vmatprep.mubr.msk.f32.mxu1 %vm791_vm2, %v16857_v14  ;;  %v718_v14 = vrot.slane %v16871_v29, 1  ;;  %v2803_v33 = vrot.slane %v15999_v2, 2  ;;  %v720_v2 = vrot.slane %v16895_v7, 1 }
  0xd7   : > { %13433 = vmatprep.mubr.msk.f32.mxu0 %vm791_vm2, %v16864_v18  ;;  %v2804_v18 = vrot.slane %v16002_v10, 2  ;;  %v16918_v10 = vsel %vm2721_vm3, %v2799_v20, %v2801_v36 }
  0xd8   : > { %21076 = vst [vmem:[#allocation156_spill] sm:$0xff] %v16918_v10  ;;  %v16921_v54 = vsel %vm500_vm1, %v717_v0, %v718_v14  ;;  %v724_v0 = vrot.slane %v16926_v52, 1 }
  0xd9   : > { %12560 = vmatmul.mubr.msk.f32.gmra.mrb[92].mxu1 %vm791_vm2, %v16880_v38  ;;  %21077 = vst [vmem:[#allocation157_spill] sm:$0xff] %v16921_v54  ;;  %v2806_v38 = vrot.slane %v16020_v1, 2  ;;  %v16929_v30 = vsel %vm2721_vm3, %v2803_v33, %v2804_v18  ;;  %v16945_v1 = vsel %vm500_vm1, %v718_v14, %v720_v2  ;;  %v16960_v14 = vld [vmem:[%s15642_s9 + $0x3f8] sm:$0xff] }
  0xda   : > { %13434 = vmatmul.mubr.msk.f32.gmra.mrb[28].mxu0 %vm791_vm2, %v16883_v15  ;;  %12562 = vmatprep.mubr.msk.f32.mxu1 %vm791_vm2, %v16889_v25  ;;  %v722_v15 = vrot.slane %v16903_v45, 1  ;;  %21078 = vst [vmem:[#allocation158_spill] sm:$0xff] %v16929_v30  ;;  %v16933_v25 = vld [vmem:[%s15642_s9 + $0x3e8] sm:$0xff]  ;;  %21081 = vst [vmem:[#allocation161_spill] sm:$0xff] %v16945_v1  ;;  %v729_v4 = vrot.slane %v16960_v14, 1 }
  0xdb   : > { %13436 = vmatprep.mubr.msk.f32.mxu0 %vm791_vm2, %v16898_v57  ;;  %21079 = vst [vmem:[#allocation159_spill] sm:$0xff] %v16933_v25  ;;  %v16936_v57 = vld [vmem:[%s15642_s9 + $0x3f0] sm:$0xff]  ;;  %v16952_v33 = vsel %vm2721_vm3, %v2804_v18, %v2806_v38  ;;  %v726_v36 = vrot.slane %v16933_v25, 1  ;;  %21084 = vst [vmem:[#allocation164_spill] sm:$0xff] %v16960_v14  ;;  %v16968_v18 = vld [vmem:[%s15642_s9 + $0x400] sm:$0xff] }
  0xdc   : > { %21080 = vst [vmem:[#allocation160_spill] sm:$0xff] %v16936_v57  ;;  %21082 = vst [vmem:[#allocation162_spill] sm:$0xff] %v16952_v33  ;;  %v16955_v20 = vsel %vm500_vm1, %v720_v2, %v722_v15  ;;  %v21089_v2 = vld [vmem:[#allocation38_spill] sm:$0xff]  ;;  %v16991_v25 = vld [vmem:[%s15642_s9 + $0x408] sm:$0x3] }
  0xdd   : > { %12563 = vmatmul.mubr.msk.f32.gmra.mrb[94].mxu1 %vm791_vm2, %v16912_v13  ;;  %21083 = vst [vmem:[#allocation163_spill] sm:$0xff] %v16955_v20  ;;  %v16963_v13 = vsel %vm2721_vm3, %v2806_v38, %v2808_v47  ;;  %v16977_v38 = vsel %vm500_vm1, %v722_v15, %v724_v0  ;;  %21092 = vst [vmem:[#allocation168_spill] sm:$0xff] %v16991_v25  ;;  %v21094_v0 = vld [vmem:[#allocation39_spill] sm:$0xff]  ;;  %v17001_v14 = vld [vmem:[%s15642_s9 + $0x418] sm:$0xff] }
  0xde   : > { %13437 = vmatmul.mubr.msk.f32.gmra.mrb[30].mxu0 %vm791_vm2, %v16918_v10  ;;  %12565 = vmatprep.mubr.msk.f32.mxu1 %vm791_vm2, %v16921_v54  ;;  %v727_v54 = vrot.slane %v16936_v57, 1  ;;  %21085 = vst [vmem:[#allocation165_spill] sm:$0xff] %v16963_v13  ;;  %v21086_v10 = vld [vmem:[#allocation35_spill] sm:$0xff]  ;;  %21088 = vst [vmem:[#allocation166_spill] sm:$0xff] %v16977_v38  ;;  %v2815_v57 = vrot.slane %v21089_v2, 2  ;;  %v16998_v2 = vld [vmem:[%s15642_s9 + $0x410] sm:$0xff] }
  0xdf   : > { %13439 = vmatprep.mubr.msk.f32.mxu0 %vm791_vm2, %v16929_v30  ;;  %v2813_v30 = vrot.slane %v21086_v10, 2  ;;  %21087 = vst [vmem:[#allocation35_spill] sm:$0xff] %v16968_v18  ;;  %v16984_v10 = vsel %vm2721_vm3, %v2808_v47, %v2810_v32  ;;  %21095 = vst [vmem:[#allocation39_spill] sm:$0xff] %v16998_v2 }
  0xe0   : > { %21090 = vst [vmem:[#allocation38_spill] sm:$0xff] %v16984_v10  ;;  %21096 = vst [vmem:[#allocation170_spill] sm:$0xff] %v17001_v14  ;;  %v17010_v47 = vsel %vm500_vm1, %v727_v54, %v729_v4 }
  0xe1   : > { %12566 = vmatmul.mubr.msk.f32.gmra.mrb[96].mxu1 %vm791_vm2, %v16945_v1  ;;  %v16987_v1 = vsel %vm500_vm1, %v726_v36, %v727_v54  ;;  %v16994_v15 = vsel %vm2721_vm3, %v2812_v58, %v2813_v30  ;;  %21097 = vst [vmem:[#allocation171_spill] sm:$0xff] %v17010_v47  ;;  %v17013_v32 = vsel %vm2721_vm3, %v2813_v30, %v2815_v57  ;;  %v733_v36 = vrot.slane %v16991_v25, 1  ;;  %v17025_v54 = vld [vmem:[%s15642_s9 + $0x420] sm:$0xff] }
  0xe2   : > { %13440 = vmatmul.mubr.msk.f32.gmra.mrb[32].mxu0 %vm791_vm2, %v16952_v33  ;;  %12568 = vmatprep.mubr.msk.f32.mxu1 %vm791_vm2, %v16955_v20  ;;  %21091 = vst [vmem:[#allocation167_spill] sm:$0xff] %v16987_v1  ;;  %v731_v33 = vrot.slane %v16968_v18, 1  ;;  %21093 = vst [vmem:[#allocation169_spill] sm:$0xff] %v16994_v15  ;;  %v2817_v20 = vrot.slane %v21094_v0, 2  ;;  %v21100_v0 = vld [vmem:[#allocation42_spill] sm:$0xff]  ;;  %v21104_v18 = vld [vmem:[#allocation44_spill] sm:$0xff] }
  0xe3   : > { %13442 = vmatprep.mubr.msk.f32.mxu0 %vm791_vm2, %v16963_v13  ;;  %21098 = vst [vmem:[#allocation172_spill] sm:$0xff] %v17013_v32  ;;  %21101 = vst [vmem:[#allocation42_spill] sm:$0xff] %v17025_v54  ;;  %v21103_v13 = vld [vmem:[#allocation43_spill] sm:$0xff] }
  0xe4   : > { %v17019_v58 = vsel %vm500_vm1, %v729_v4, %v731_v33  ;;  %v17028_v30 = vsel %vm2721_vm3, %v2815_v57, %v2817_v20  ;;  %v2821_v25 = vrot.slane %v21103_v13, 2  ;;  %v17033_v4 = vld [vmem:[%s15642_s9 + $0x428] sm:$0xff]  ;;  %v17042_v57 = vsel %vm500_vm1, %v731_v33, %v733_v36  ;;  %v21112_v36 = vld [vmem:[#allocation48_spill] sm:$0xff] }
  0xe5   : > { %12569 = vmatmul.mubr.msk.f32.gmra.mrb[98].mxu1 %vm791_vm2, %v16977_v38  ;;  %21099 = vst [vmem:[#allocation173_spill] sm:$0xff] %v17019_v58  ;;  %v2819_v38 = vrot.slane %v21100_v0, 2  ;;  %21102 = vst [vmem:[#allocation174_spill] sm:$0xff] %v17028_v30  ;;  %v738_v13 = vrot.slane %v17025_v54, 1  ;;  %v21107_v0 = vld [vmem:[#allocation47_spill] sm:$0xff]  ;;  %v17066_v54 = vld [vmem:[%s15642_s9 + $0x440] sm:$0xff] }
  0xe6   : > { %13443 = vmatmul.mubr.msk.f32.gmra.mrb[34].mxu0 %vm791_vm2, %v16984_v10  ;;  %12571 = vmatprep.mubr.msk.f32.mxu1 %vm791_vm2, %v16987_v1  ;;  %v735_v10 = vrot.slane %v16998_v2, 1  ;;  %v736_v1 = vrot.slane %v17001_v14, 1  ;;  %21105 = vst [vmem:[#allocation43_spill] sm:$0xff] %v17033_v4  ;;  %21106 = vst [vmem:[#allocation44_spill] sm:$0xff] %v17042_v57  ;;  %v2824_v14 = vrot.slane %v21107_v0, 2  ;;  %v17063_v0 = vld [vmem:[%s15642_s9 + $0x438] sm:$0xff] }
  0xe7   : > { %13445 = vmatprep.mubr.msk.f32.mxu0 %vm791_vm2, %v16994_v15  ;;  %v2822_v15 = vrot.slane %v21104_v18, 2  ;;  %v17049_v18 = vsel %vm2721_vm3, %v2817_v20, %v2819_v38  ;;  %v17056_v2 = vld [vmem:[%s15642_s9 + $0x430] sm:$0x3]  ;;  %21113 = vst [vmem:[#allocation48_spill] sm:$0xff] %v17063_v0  ;;  %21114 = vst [vmem:[#allocation178_spill] sm:$0xff] %v17066_v54 }
  0xe8   : > { %21108 = vst [vmem:[#allocation47_spill] sm:$0xff] %v17049_v18  ;;  %21110 = vst [vmem:[#allocation176_spill] sm:$0xff] %v17056_v2  ;;  %v17075_v20 = vsel %vm500_vm1, %v736_v1, %v738_v13  ;;  %v742_v38 = vrot.slane %v17056_v2, 1 }
  0xe9   : > { %12572 = vmatmul.mubr.msk.f32.gmra.mrb[100].mxu1 %vm791_vm2, %v17010_v47  ;;  %v17052_v47 = vsel %vm500_vm1, %v735_v10, %v736_v1  ;;  %v17059_v33 = vsel %vm2721_vm3, %v2821_v25, %v2822_v15  ;;  %21115 = vst [vmem:[#allocation179_spill] sm:$0xff] %v17075_v20  ;;  %v17078_v25 = vsel %vm2721_vm3, %v2822_v15, %v2824_v14  ;;  %v17090_v1 = vld [vmem:[%s15642_s9 + $0x448] sm:$0xff] }
  0xea   : > { %13446 = vmatmul.mubr.msk.f32.gmra.mrb[36].mxu0 %vm791_vm2, %v17013_v32  ;;  %12574 = vmatprep.mubr.msk.f32.mxu1 %vm791_vm2, %v17019_v58  ;;  %21109 = vst [vmem:[#allocation175_spill] sm:$0xff] %v17052_v47  ;;  %v740_v32 = vrot.slane %v17033_v4, 1  ;;  %21111 = vst [vmem:[#allocation177_spill] sm:$0xff] %v17059_v33  ;;  %v2826_v58 = vrot.slane %v21112_v36, 2  ;;  %v21118_v36 = vld [vmem:[#allocation51_spill] sm:$0xff]  ;;  %v21122_v4 = vld [vmem:[#allocation53_spill] sm:$0xff] }
  0xeb   : > { %13448 = vmatprep.mubr.msk.f32.mxu0 %vm791_vm2, %v17028_v30  ;;  %21116 = vst [vmem:[#allocation180_spill] sm:$0xff] %v17078_v25  ;;  %21119 = vst [vmem:[#allocation51_spill] sm:$0xff] %v17090_v1  ;;  %v21121_v30 = vld [vmem:[#allocation52_spill] sm:$0xff] }
  0xec   : > { %v17084_v10 = vsel %vm500_vm1, %v738_v13, %v740_v32  ;;  %v17093_v15 = vsel %vm2721_vm3, %v2824_v14, %v2826_v58  ;;  %v2830_v2 = vrot.slane %v21121_v30, 2  ;;  %v17098_v13 = vld [vmem:[%s15642_s9 + $0x450] sm:$0xff]  ;;  %v17107_v14 = vsel %vm500_vm1, %v740_v32, %v742_v38  ;;  %v21130_v38 = vld [vmem:[#allocation57_spill] sm:$0xff] }
  0xed   : > { %12575 = vmatmul.mubr.msk.f32.gmra.mrb[102].mxu1 %vm791_vm2, %v17042_v57  ;;  %21117 = vst [vmem:[#allocation181_spill] sm:$0xff] %v17084_v10  ;;  %v2828_v57 = vrot.slane %v21118_v36, 2  ;;  %21120 = vst [vmem:[#allocation182_spill] sm:$0xff] %v17093_v15  ;;  %v747_v30 = vrot.slane %v17090_v1, 1  ;;  %v21125_v36 = vld [vmem:[#allocation56_spill] sm:$0xff]  ;;  %v17131_v1 = vld [vmem:[%s15642_s9 + $0x468] sm:$0xff] }
  0xee   : > { %13449 = vmatmul.mubr.msk.f32.gmra.mrb[38].mxu0 %vm791_vm2, %v17049_v18  ;;  %12577 = vmatprep.mubr.msk.f32.mxu1 %vm791_vm2, %v17052_v47  ;;  %v744_v18 = vrot.slane %v17063_v0, 1  ;;  %v745_v47 = vrot.slane %v17066_v54, 1  ;;  %21123 = vst [vmem:[#allocation52_spill] sm:$0xff] %v17098_v13  ;;  %21124 = vst [vmem:[#allocation53_spill] sm:$0xff] %v17107_v14  ;;  %v2833_v54 = vrot.slane %v21125_v36, 2  ;;  %v17128_v36 = vld [vmem:[%s15642_s9 + $0x460] sm:$0xff] }
  0xef   : > { %13451 = vmatprep.mubr.msk.f32.mxu0 %vm791_vm2, %v17059_v33  ;;  %v2831_v33 = vrot.slane %v21122_v4, 2  ;;  %v17114_v4 = vsel %vm2721_vm3, %v2826_v58, %v2828_v57  ;;  %v17121_v0 = vld [vmem:[%s15642_s9 + $0x458] sm:$0x3]  ;;  %21131 = vst [vmem:[#allocation57_spill] sm:$0xff] %v17128_v36  ;;  %21132 = vst [vmem:[#allocation186_spill] sm:$0xff] %v17131_v1 }
  0xf0   : > { %21126 = vst [vmem:[#allocation56_spill] sm:$0xff] %v17114_v4  ;;  %21128 = vst [vmem:[#allocation184_spill] sm:$0xff] %v17121_v0  ;;  %v17140_v58 = vsel %vm500_vm1, %v745_v47, %v747_v30  ;;  %v751_v57 = vrot.slane %v17121_v0, 1 }
  0xf1   : > { %12578 = vmatmul.mubr.msk.f32.gmra.mrb[104].mxu1 %vm791_vm2, %v17075_v20  ;;  %v17117_v20 = vsel %vm500_vm1, %v744_v18, %v745_v47  ;;  %v17124_v32 = vsel %vm2721_vm3, %v2830_v2, %v2831_v33  ;;  %21133 = vst [vmem:[#allocation187_spill] sm:$0xff] %v17140_v58  ;;  %v17143_v2 = vsel %vm2721_vm3, %v2831_v33, %v2833_v54  ;;  %v17155_v47 = vld [vmem:[%s15642_s9 + $0x470] sm:$0xff] }
  0xf2   : > { %13452 = vmatmul.mubr.msk.f32.gmra.mrb[40].mxu0 %vm791_vm2, %v17078_v25  ;;  %12580 = vmatprep.mubr.msk.f32.mxu1 %vm791_vm2, %v17084_v10  ;;  %21127 = vst [vmem:[#allocation183_spill] sm:$0xff] %v17117_v20  ;;  %v749_v25 = vrot.slane %v17098_v13, 1  ;;  %21129 = vst [vmem:[#allocation185_spill] sm:$0xff] %v17124_v32  ;;  %v2835_v10 = vrot.slane %v21130_v38, 2  ;;  %v21136_v38 = vld [vmem:[#allocation60_spill] sm:$0xff]  ;;  %v21140_v13 = vld [vmem:[#allocation62_spill] sm:$0xff] }
  0xf3   : > { %13454 = vmatprep.mubr.msk.f32.mxu0 %vm791_vm2, %v17093_v15  ;;  %21134 = vst [vmem:[#allocation188_spill] sm:$0xff] %v17143_v2  ;;  %21137 = vst [vmem:[#allocation60_spill] sm:$0xff] %v17155_v47  ;;  %v21139_v15 = vld [vmem:[#allocation61_spill] sm:$0xff] }
  0xf4   : > { %v17149_v18 = vsel %vm500_vm1, %v747_v30, %v749_v25  ;;  %v17158_v33 = vsel %vm2721_vm3, %v2833_v54, %v2835_v10  ;;  %v2839_v0 = vrot.slane %v21139_v15, 2  ;;  %v17163_v30 = vld [vmem:[%s15642_s9 + $0x478] sm:$0xff]  ;;  %v17172_v54 = vsel %vm500_vm1, %v749_v25, %v751_v57  ;;  %v21148_v57 = vld [vmem:[#allocation66_spill] sm:$0xff] }
  0xf5   : > { %12581 = vmatmul.mubr.msk.f32.gmra.mrb[106].mxu1 %vm791_vm2, %v17107_v14  ;;  %21135 = vst [vmem:[#allocation189_spill] sm:$0xff] %v17149_v18  ;;  %v2837_v14 = vrot.slane %v21136_v38, 2  ;;  %21138 = vst [vmem:[#allocation190_spill] sm:$0xff] %v17158_v33  ;;  %v756_v15 = vrot.slane %v17155_v47, 1  ;;  %v21143_v38 = vld [vmem:[#allocation65_spill] sm:$0xff]  ;;  %v17196_v47 = vld [vmem:[%s15642_s9 + $0x490] sm:$0xff] }
  0xf6   : > { %13455 = vmatmul.mubr.msk.f32.gmra.mrb[42].mxu0 %vm791_vm2, %v17114_v4  ;;  %12583 = vmatprep.mubr.msk.f32.mxu1 %vm791_vm2, %v17117_v20  ;;  %v753_v4 = vrot.slane %v17128_v36, 1  ;;  %v754_v20 = vrot.slane %v17131_v1, 1  ;;  %21141 = vst [vmem:[#allocation61_spill] sm:$0xff] %v17163_v30  ;;  %21142 = vst [vmem:[#allocation62_spill] sm:$0xff] %v17172_v54  ;;  %v2842_v1 = vrot.slane %v21143_v38, 2  ;;  %v17193_v38 = vld [vmem:[%s15642_s9 + $0x488] sm:$0xff] }
  0xf7   : > { %13457 = vmatprep.mubr.msk.f32.mxu0 %vm791_vm2, %v17124_v32  ;;  %v2840_v32 = vrot.slane %v21140_v13, 2  ;;  %v17179_v13 = vsel %vm2721_vm3, %v2835_v10, %v2837_v14  ;;  %v17186_v36 = vld [vmem:[%s15642_s9 + $0x480] sm:$0x3]  ;;  %21149 = vst [vmem:[#allocation66_spill] sm:$0xff] %v17193_v38  ;;  %21150 = vst [vmem:[#allocation194_spill] sm:$0xff] %v17196_v47 }
  0xf8   : > { %21144 = vst [vmem:[#allocation65_spill] sm:$0xff] %v17179_v13  ;;  %21146 = vst [vmem:[#allocation192_spill] sm:$0xff] %v17186_v36  ;;  %v17205_v10 = vsel %vm500_vm1, %v754_v20, %v756_v15  ;;  %v760_v14 = vrot.slane %v17186_v36, 1 }
  0xf9   : > { %12584 = vmatmul.mubr.msk.f32.gmra.mrb[108].mxu1 %vm791_vm2, %v17140_v58  ;;  %v17182_v58 = vsel %vm500_vm1, %v753_v4, %v754_v20  ;;  %v17189_v25 = vsel %vm2721_vm3, %v2839_v0, %v2840_v32  ;;  %21151 = vst [vmem:[#allocation195_spill] sm:$0xff] %v17205_v10  ;;  %v17208_v0 = vsel %vm2721_vm3, %v2840_v32, %v2842_v1  ;;  %v17220_v20 = vld [vmem:[%s15642_s9 + $0x498] sm:$0xff] }
  0xfa   : > { %13458 = vmatmul.mubr.msk.f32.gmra.mrb[44].mxu0 %vm791_vm2, %v17143_v2  ;;  %12586 = vmatprep.mubr.msk.f32.mxu1 %vm791_vm2, %v17149_v18  ;;  %21145 = vst [vmem:[#allocation191_spill] sm:$0xff] %v17182_v58  ;;  %v758_v2 = vrot.slane %v17163_v30, 1  ;;  %21147 = vst [vmem:[#allocation193_spill] sm:$0xff] %v17189_v25  ;;  %v2844_v18 = vrot.slane %v21148_v57, 2  ;;  %v21154_v57 = vld [vmem:[#allocation69_spill] sm:$0xff]  ;;  %v21158_v30 = vld [vmem:[#allocation71_spill] sm:$0xff] }
  0xfb   : > { %13460 = vmatprep.mubr.msk.f32.mxu0 %vm791_vm2, %v17158_v33  ;;  %21152 = vst [vmem:[#allocation196_spill] sm:$0xff] %v17208_v0  ;;  %21155 = vst [vmem:[#allocation69_spill] sm:$0xff] %v17220_v20  ;;  %v21157_v33 = vld [vmem:[#allocation70_spill] sm:$0xff] }
  0xfc   : > { %v17214_v4 = vsel %vm500_vm1, %v756_v15, %v758_v2  ;;  %v17223_v32 = vsel %vm2721_vm3, %v2842_v1, %v2844_v18  ;;  %v2848_v36 = vrot.slane %v21157_v33, 2  ;;  %v17228_v15 = vld [vmem:[%s15642_s9 + $0x4a0] sm:$0xff]  ;;  %v17237_v1 = vsel %vm500_vm1, %v758_v2, %v760_v14  ;;  %v21166_v14 = vld [vmem:[#allocation75_spill] sm:$0xff] }
  0xfd   : > { %12587 = vmatmul.mubr.msk.f32.gmra.mrb[110].mxu1 %vm791_vm2, %v17172_v54  ;;  %21153 = vst [vmem:[#allocation197_spill] sm:$0xff] %v17214_v4  ;;  %v2846_v54 = vrot.slane %v21154_v57, 2  ;;  %21156 = vst [vmem:[#allocation198_spill] sm:$0xff] %v17223_v32  ;;  %v765_v33 = vrot.slane %v17220_v20, 1  ;;  %v21161_v57 = vld [vmem:[#allocation74_spill] sm:$0xff]  ;;  %v17261_v20 = vld [vmem:[%s15642_s9 + $0x4b8] sm:$0xff] }
  0xfe   : > { %13461 = vmatmul.mubr.msk.f32.gmra.mrb[46].mxu0 %vm791_vm2, %v17179_v13  ;;  %12589 = vmatprep.mubr.msk.f32.mxu1 %vm791_vm2, %v17182_v58  ;;  %v762_v13 = vrot.slane %v17193_v38, 1  ;;  %v763_v58 = vrot.slane %v17196_v47, 1  ;;  %21159 = vst [vmem:[#allocation70_spill] sm:$0xff] %v17228_v15  ;;  %21160 = vst [vmem:[#allocation71_spill] sm:$0xff] %v17237_v1  ;;  %v2851_v47 = vrot.slane %v21161_v57, 2  ;;  %v17258_v57 = vld [vmem:[%s15642_s9 + $0x4b0] sm:$0xff] }
  0xff   : > { %13463 = vmatprep.mubr.msk.f32.mxu0 %vm791_vm2, %v17189_v25  ;;  %v2849_v25 = vrot.slane %v21158_v30, 2  ;;  %v17244_v30 = vsel %vm2721_vm3, %v2844_v18, %v2846_v54  ;;  %v17251_v38 = vld [vmem:[%s15642_s9 + $0x4a8] sm:$0x3]  ;;  %21167 = vst [vmem:[#allocation75_spill] sm:$0xff] %v17258_v57  ;;  %21168 = vst [vmem:[#allocation202_spill] sm:$0xff] %v17261_v20 }
 0x100   : > { %21162 = vst [vmem:[#allocation74_spill] sm:$0xff] %v17244_v30  ;;  %21164 = vst [vmem:[#allocation200_spill] sm:$0xff] %v17251_v38  ;;  %v17270_v18 = vsel %vm500_vm1, %v763_v58, %v765_v33  ;;  %v769_v54 = vrot.slane %v17251_v38, 1 }
 0x101   : > { %12590 = vmatmul.mubr.msk.f32.gmra.mrb[112].mxu1 %vm791_vm2, %v17205_v10  ;;  %v17247_v10 = vsel %vm500_vm1, %v762_v13, %v763_v58  ;;  %v17254_v2 = vsel %vm2721_vm3, %v2848_v36, %v2849_v25  ;;  %21169 = vst [vmem:[#allocation203_spill] sm:$0xff] %v17270_v18  ;;  %v17273_v36 = vsel %vm2721_vm3, %v2849_v25, %v2851_v47  ;;  %v17285_v58 = vld [vmem:[%s15642_s9 + $0x4c0] sm:$0xff] }
 0x102   : > { %13464 = vmatmul.mubr.msk.f32.gmra.mrb[48].mxu0 %vm791_vm2, %v17208_v0  ;;  %12592 = vmatprep.mubr.msk.f32.mxu1 %vm791_vm2, %v17214_v4  ;;  %21163 = vst [vmem:[#allocation199_spill] sm:$0xff] %v17247_v10  ;;  %v767_v0 = vrot.slane %v17228_v15, 1  ;;  %21165 = vst [vmem:[#allocation201_spill] sm:$0xff] %v17254_v2  ;;  %v2853_v4 = vrot.slane %v21166_v14, 2  ;;  %v21172_v14 = vld [vmem:[#allocation78_spill] sm:$0xff]  ;;  %v21176_v15 = vld [vmem:[#allocation80_spill] sm:$0xff] }
 0x103   : > { %13466 = vmatprep.mubr.msk.f32.mxu0 %vm791_vm2, %v17223_v32  ;;  %21170 = vst [vmem:[#allocation204_spill] sm:$0xff] %v17273_v36  ;;  %21173 = vst [vmem:[#allocation78_spill] sm:$0xff] %v17285_v58  ;;  %v21175_v32 = vld [vmem:[#allocation79_spill] sm:$0xff] }
 0x104   : > { %v17279_v13 = vsel %vm500_vm1, %v765_v33, %v767_v0  ;;  %v17288_v25 = vsel %vm2721_vm3, %v2851_v47, %v2853_v4  ;;  %v2857_v38 = vrot.slane %v21175_v32, 2  ;;  %v17293_v33 = vld [vmem:[%s15642_s9 + $0x4c8] sm:$0xff]  ;;  %v17302_v47 = vsel %vm500_vm1, %v767_v0, %v769_v54  ;;  %v21184_v54 = vld [vmem:[#allocation84_spill] sm:$0xff] }
 0x105   : > { %12593 = vmatmul.mubr.msk.f32.gmra.mrb[114].mxu1 %vm791_vm2, %v17237_v1  ;;  %21171 = vst [vmem:[#allocation205_spill] sm:$0xff] %v17279_v13  ;;  %v2855_v1 = vrot.slane %v21172_v14, 2  ;;  %21174 = vst [vmem:[#allocation206_spill] sm:$0xff] %v17288_v25  ;;  %v774_v32 = vrot.slane %v17285_v58, 1  ;;  %v21179_v14 = vld [vmem:[#allocation83_spill] sm:$0xff]  ;;  %v17326_v58 = vld [vmem:[%s15642_s9 + $0x4e0] sm:$0xff] }
 0x106   : > { %13467 = vmatmul.mubr.msk.f32.gmra.mrb[50].mxu0 %vm791_vm2, %v17244_v30  ;;  %12595 = vmatprep.mubr.msk.f32.mxu1 %vm791_vm2, %v17247_v10  ;;  %v771_v30 = vrot.slane %v17258_v57, 1  ;;  %v772_v10 = vrot.slane %v17261_v20, 1  ;;  %21177 = vst [vmem:[#allocation79_spill] sm:$0xff] %v17293_v33  ;;  %21178 = vst [vmem:[#allocation80_spill] sm:$0xff] %v17302_v47  ;;  %v2860_v20 = vrot.slane %v21179_v14, 2  ;;  %v17323_v14 = vld [vmem:[%s15642_s9 + $0x4d8] sm:$0xff] }
 0x107   : > { %13469 = vmatprep.mubr.msk.f32.mxu0 %vm791_vm2, %v17254_v2  ;;  %v2858_v2 = vrot.slane %v21176_v15, 2  ;;  %v17309_v15 = vsel %vm2721_vm3, %v2853_v4, %v2855_v1  ;;  %v17316_v57 = vld [vmem:[%s15642_s9 + $0x4d0] sm:$0x3]  ;;  %21185 = vst [vmem:[#allocation84_spill] sm:$0xff] %v17323_v14  ;;  %21186 = vst [vmem:[#allocation210_spill] sm:$0xff] %v17326_v58 }
 0x108   : > { %21180 = vst [vmem:[#allocation83_spill] sm:$0xff] %v17309_v15  ;;  %21182 = vst [vmem:[#allocation208_spill] sm:$0xff] %v17316_v57  ;;  %v17335_v4 = vsel %vm500_vm1, %v772_v10, %v774_v32  ;;  %v778_v1 = vrot.slane %v17316_v57, 1  ;;  %v21193_v57 = vld [vmem:[#allocation88_spill] sm:$0xff] }
 0x109   : > { %12596 = vmatmul.mubr.msk.f32.gmra.mrb[116].mxu1 %vm791_vm2, %v17270_v18  ;;  %v17312_v18 = vsel %vm500_vm1, %v771_v30, %v772_v10  ;;  %v17319_v0 = vsel %vm2721_vm3, %v2857_v38, %v2858_v2  ;;  %21187 = vst [vmem:[#allocation211_spill] sm:$0xff] %v17335_v4  ;;  %v17338_v38 = vsel %vm2721_vm3, %v2858_v2, %v2860_v20  ;;  %v17350_v10 = vld [vmem:[%s15642_s9 + $0x4e8] sm:$0xff] }
 0x10a   : > { %13470 = vmatmul.mubr.msk.f32.gmra.mrb[52].mxu0 %vm791_vm2, %v17273_v36  ;;  %12598 = vmatprep.mubr.msk.f32.mxu1 %vm791_vm2, %v17279_v13  ;;  %21181 = vst [vmem:[#allocation207_spill] sm:$0xff] %v17312_v18  ;;  %v776_v36 = vrot.slane %v17293_v33, 1  ;;  %21183 = vst [vmem:[#allocation209_spill] sm:$0xff] %v17319_v0  ;;  %v2862_v13 = vrot.slane %v21184_v54, 2  ;;  %v2864_v54 = vrot.slane %v16330_v31, 2  ;;  %v2867_v33 = vrot.slane %v21193_v57, 2 }
 0x10b   : > { %13472 = vmatprep.mubr.msk.f32.mxu0 %vm791_vm2, %v17288_v25  ;;  %21188 = vst [vmem:[#allocation212_spill] sm:$0xff] %v17338_v38  ;;  %21190 = vst [vmem:[#allocation214_spill] sm:$0xff] %v17350_v10 }
 0x10c   : > { %v17344_v30 = vsel %vm500_vm1, %v774_v32, %v776_v36  ;;  %v17353_v2 = vsel %vm2721_vm3, %v2860_v20, %v2862_v13  ;;  %v17367_v31 = vsel %vm500_vm1, %v776_v36, %v778_v1  ;;  %v783_v20 = vrot.slane %v17350_v10, 1 }
 0x10d   : > { %12599 = vmatmul.mubr.msk.f32.gmra.mrb[118].mxu1 %vm791_vm2, %v17302_v47  ;;  %21189 = vst [vmem:[#allocation213_spill] sm:$0xff] %v17344_v30  ;;  %v780_v47 = vrot.slane %v17323_v14, 1  ;;  %21191 = vst [vmem:[#allocation215_spill] sm:$0xff] %v17353_v2  ;;  %v17373_v57 = vsel %vm2721_vm3, %v2862_v13, %v2864_v54  ;;  %v2871_v1 = vrot.slane %v16361_v35, 2 }
 0x10e   : > { %13473 = vmatmul.mubr.msk.f32.gmra.mrb[54].mxu0 %vm791_vm2, %v17309_v15  ;;  %12601 = vmatprep.mubr.msk.f32.mxu1 %vm791_vm2, %v17312_v18  ;;  %v781_v18 = vrot.slane %v17326_v58, 1  ;;  %v21192_v15 = vld [vmem:[#allocation87_spill] sm:$0xff]  ;;  %21195 = vst [vmem:[#allocation88_spill] sm:$0xff] %v17367_v31  ;;  %21196 = vst [vmem:[#allocation216_spill] sm:$0xff] %v17373_v57 }
 0x10f   : > { %13475 = vmatprep.mubr.msk.f32.mxu0 %vm791_vm2, %v17319_v0  ;;  %v2866_v25 = vrot.slane %v21192_v15, 2  ;;  %v17358_v0 = vld [vmem:[%s15642_s9 + $0x4f0] sm:$0xff]  ;;  %v2869_v15 = vrot.slane %v16356_v46, 2 }
 0x110   : > { %21194 = vst [vmem:[#allocation87_spill] sm:$0xff] %v17358_v0  ;;  %v17376_v32 = vsel %vm500_vm1, %v780_v47, %v781_v18  ;;  %v17394_v46 = vsel %vm500_vm1, %v781_v18, %v783_v20  ;;  %v2873_v47 = vrot.slane %v16378_v3, 2  ;;  %v2875_v18 = vrot.slane %v16414_v61, 2 }
 0x111   : > { %12602 = vmatmul.mubr.msk.f32.gmra.mrb[120].mxu1 %vm791_vm2, %v17335_v4  ;;  %21197 = vst [vmem:[#allocation217_spill] sm:$0xff] %v17376_v32  ;;  %v785_v4 = vrot.slane %v17358_v0, 1  ;;  %v17384_v36 = vsel %vm2721_vm3, %v2866_v25, %v2867_v33  ;;  %21199 = vst [vmem:[#allocation219_spill] sm:$0xff] %v17394_v46  ;;  %v17400_v25 = vsel %vm2721_vm3, %v2867_v33, %v2869_v15 }
 0x112   : > { %13476 = vmatmul.mubr.msk.f32.gmra.mrb[56].mxu0 %vm791_vm2, %v17338_v38  ;;  %12604 = vmatprep.mubr.msk.f32.mxu1 %vm791_vm2, %v17344_v30  ;;  %v17381_v38 = vld [vmem:[%s15642_s9 + $0x4f8] sm:$0x3]  ;;  %21198 = vst [vmem:[#allocation218_spill] sm:$0xff] %v17384_v36  ;;  %21200 = vst [vmem:[#allocation220_spill] sm:$0xff] %v17400_v25  ;;  %v17407_v54 = vsel %vm2721_vm3, %v2869_v15, %v2871_v1  ;;  %v17423_v3 = vsel %vm2721_vm3, %v2871_v1, %v2873_v47  ;;  %v17448_v15 = vld [vmem:[%s20395_s1 + $0x1c] sm:$0x7] }
 0x113   : > { %13478 = vmatprep.mubr.msk.f32.mxu0 %vm791_vm2, %v17353_v2  ;;  %v787_v13 = vrot.slane %v17381_v38, 1  ;;  %v17403_v35 = vsel %vm500_vm1, %v783_v20, %v785_v4  ;;  %21202 = vst [vmem:[#allocation222_spill] sm:$0xff] %v17407_v54  ;;  %21204 = vst [vmem:[#allocation224_spill] sm:$0xff] %v17423_v3  ;;  %v2880_v20 = vrot.slane %v16449_v22, 2  ;;  %v2882_v22 = vrot.slane %v16471_v9, 2  ;;  %13777 = vmatprep.subr.msk.mxu0 %vm1048_vm0, %v17448_v15  ;;  %v21210_v9 = vld [vmem:[#allocation97_spill] sm:$0xff] }
 0x114   : > { %21201 = vst [vmem:[#allocation221_spill] sm:$0xff] %v17403_v35  ;;  %v2885_v47 = vrot.slane %v16481_v11, 2  ;;  %v17583_v30 = vld [vmem:[%s15642_s9 + $0x80] sm:$0xff]  ;;  %v17965_v2 = vld [vmem:[%s15642_s9 + $0x1d0] sm:$0xff] }
 0x115   : > { %12605 = vmatmul.mubr.msk.f32.gmra.mrb[122].mxu1 %vm791_vm2, %v17367_v31  ;;  %v17418_v33 = vsel %vm500_vm1, %v785_v4, %v787_v13  ;;  %v17435_v4 = vld [vmem:[%s15642_s9] sm:$0xff]  ;;  %v2884_v13 = vrot.slane %v16478_v12, 2  ;;  %v17474_v11 = vsel %vm2721_vm3, %v2880_v20, %v2882_v22  ;;  %v2887_v12 = vrot.slane %v16505_v44, 2  ;;  %v17567_v31 = vld [vmem:[%s15642_s9 + $0x78] sm:$0xff] }
 0x116   : > { %13479 = vmatmul.mubr.msk.f32.gmra.mrb[58].mxu0 %vm791_vm2, %v17373_v57  ;;  %12607 = vmatprep.mubr.msk.f32.mxu1 %vm791_vm2, %v17376_v32  ;;  %v2876_v32 = vrot.slane %v16417_v21, 2  ;;  %21203 = vst [vmem:[#allocation223_spill] sm:$0xff] %v17418_v33  ;;  %v2878_v21 = vrot.slane %v16439_v39, 2  ;;  %21206 = vst [vmem:[#allocation226_spill] sm:$0xff] %v17435_v4  ;;  %v2893_v22 = vrot.slane %v16543_v40, 2  ;;  %v2896_v40 = vrot.slane %v16570_v28, 2 }
 0x117   : > { %13481 = vmatprep.mubr.msk.f32.mxu0 %vm791_vm2, %v17384_v36  ;;  %21212 = vst [vmem:[#allocation230_spill] sm:$0xff] %v17474_v11  ;;  %v17493_v44 = vsel %vm2721_vm3, %v2885_v47, %v2887_v12  ;;  %v21282_v57 = vld [vmem:[#allocation70_spill] sm:$0xff] }
 0x118   : > { %v17427_v61 = vsel %vm2721_vm3, %v2875_v18, %v2876_v32  ;;  %v17442_v39 = vsel %vm2721_vm3, %v2876_v32, %v2878_v21  ;;  %v17451_v1 = vsel %vm2721_vm3, %v2878_v21, %v2880_v20  ;;  %v17458_v32 = vld [vmem:[%s15642_s9 + $0x8] sm:$0xff]  ;;  %v17467_v18 = vld [vmem:[%s15642_s9 + $0x10] sm:$0xff]  ;;  %v17478_v21 = vsel %vm2721_vm3, %v2884_v13, %v2885_v47  ;;  %21215 = vst [vmem:[#allocation233_spill] sm:$0xff] %v17493_v44  ;;  %v15240_v47 = vld [vmem:[%s15642_s9 + $0x40] sm:$0xff] }
 0x119   : > { %12608 = vmatmul.mubr.msk.f32.gmra.mrb[124].mxu1 %vm791_vm2, %v17394_v46  ;;  %21205 = vst [vmem:[#allocation225_spill] sm:$0xff] %v17427_v61  ;;  %21207 = vst [vmem:[#allocation227_spill] sm:$0xff] %v17442_v39  ;;  %v2894_v13 = vrot.slane %v16546_v62, 2  ;;  %v15238_v46 = vld [vmem:[%s15642_s9 + $0x30] sm:$0xff] }
 0x11a   : > { %13482 = vmatmul.mubr.msk.f32.gmra.mrb[60].mxu0 %vm791_vm2, %v17400_v25  ;;  %12610 = vmatprep.mubr.msk.f32.mxu1 %vm791_vm2, %v17403_v35  ;;  %21208 = vst [vmem:[#allocation228_spill] sm:$0xff] %v17451_v1  ;;  %21209 = vst [vmem:[#allocation229_spill] sm:$0xff] %v17458_v32  ;;  %v15237_v35 = vld [vmem:[%s15642_s9 + $0x28] sm:$0xff]  ;;  %v17943_v25 = vld [vmem:[%s15642_s9 + $0x1c0] sm:$0xff] }
 0x11b   : > { %13484 = vmatprep.mubr.msk.f32.mxu0 %vm791_vm2, %v17407_v54  ;;  %21211 = vst [vmem:[#allocation97_spill] sm:$0xff] %v17467_v18  ;;  %21213 = vst [vmem:[#allocation231_spill] sm:$0xff] %v17478_v21  ;;  %v17514_v62 = vsel %vm2721_vm3, %v2893_v22, %v2894_v13  ;;  %v17529_v28 = vsel %vm2721_vm3, %v2894_v13, %v2896_v40  ;;  %v2903_v22 = vrot.slane %v16611_v53, 2  ;;  %v17545_v13 = vld [vmem:[%s15642_s9 + $0x60] sm:$0xff]  ;;  %v2905_v53 = vrot.slane %v16635_v6, 2 }
 0x11c   : > { %21218 = vst [vmem:[#allocation236_spill] sm:$0xff] %v17514_v62  ;;  %21219 = vst [vmem:[#allocation237_spill] sm:$0xff] %v17529_v28 }
 0x11d   : > { %12611 = vmatmul.mubr.msk.f32.gmra.mrb[126].mxu1 %vm791_vm2, %v17418_v33  ;;  %v17482_v33 = vld [vmem:[%s15642_s9 + $0x18] sm:$0xff]  ;;  %v17574_v6 = vsel %vm2721_vm3, %v2903_v22, %v2905_v53 }
 0x11e   : > { %13485 = vmatmul.mubr.msk.f32.gmra.mrb[62].mxu0 %vm791_vm2, %v17423_v3  ;;  %12615 = vmatprep.mubr.msk.f32.mxu1 %vm791_vm2, %v17435_v4  ;;  %21214 = vst [vmem:[#allocation232_spill] sm:$0xff] %v17482_v33  ;;  %21223 = vst [vmem:[#allocation241_spill] sm:$0xff] %v17574_v6  ;;  %v21278_v3 = vld [vmem:[#allocation194_spill] sm:$0xff] }
 0x11f   : > { %13487 = vmatprep.mubr.msk.f32.mxu0 %vm791_vm2, %v17427_v61  ;;  %v21277_v61 = vld [vmem:[#allocation66_spill] sm:$0xff]  ;;  %v2984_v54 = vrot.slane %v21278_v3, 2  ;;  %v18033_v3 = vld [vmem:[%s15642_s9 + $0x210] sm:$0xff] }
 0x121   : > { %12616 = vmatmul.mubr.msk.f32.vlgmr.msra.gmra.mrb[0].mxu1 %vm791_vm2, %v17458_v32  ;;  %v21287_v32 = vld [vmem:[#allocation202_spill] sm:$0xff] }
 0x122   : > { %12808 = vmatpush3.msk.msra.mxu1 %vm1048_vm0, %v21210_v9  ;;  %13488 = vmatmul.mubr.msk.f32.gmra.mrb[64].mxu0 %vm791_vm2, %v17442_v39  ;;  %v2889_v9 = vrot.slane %v16513_v51, 2  ;;  %v2891_v51 = vrot.slane %v16536_v27, 2  ;;  %v17920_v39 = vld [vmem:[%s15642_s9 + $0x1a8] sm:$0xff]  ;;  %v2993_v4 = vrot.slane %v21287_v32, 2 }
 0x123   : > { %12618 = vmatprep.mubr.msk.f32.mxu1 %vm791_vm2, %v17467_v18  ;;  %13490 = vmatprep.mubr.msk.f32.mxu0 %vm791_vm2, %v17451_v1  ;;  %v17898_v1 = vld [vmem:[%s15642_s9 + $0x198] sm:$0xff]  ;;  %v21286_v18 = vld [vmem:[#allocation75_spill] sm:$0xff] }
 0x124   : > { %v17497_v20 = vsel %vm2721_vm3, %v2887_v12, %v2889_v9  ;;  %v17510_v27 = vsel %vm2721_vm3, %v2889_v9, %v2891_v51  ;;  %v17522_v12 = vld [vmem:[%s15642_s9 + $0x50] sm:$0xff]  ;;  %v2902_v51 = vrot.slane %v16608_v63, 2 }
 0x125   : > { %12619 = vmatmul.mubr.msk.f32.gmra.mrb[2].mxu1 %vm791_vm2, %v17482_v33  ;;  %21216 = vst [vmem:[#allocation234_spill] sm:$0xff] %v17497_v20  ;;  %21217 = vst [vmem:[#allocation235_spill] sm:$0xff] %v17510_v27 }
 0x126   : > { %13491 = vmatmul.mubr.msk.f32.gmra.mrb[66].mxu0 %vm791_vm2, %v17474_v11  ;;  %12621 = vmatprep.mubr.msk.f32.mxu1 %vm791_vm2, %v15237_v35  ;;  %v15239_v35 = vld [vmem:[%s15642_s9 + $0x38] sm:$0xff]  ;;  %v17556_v63 = vsel %vm2721_vm3, %v2902_v51, %v2903_v22  ;;  %v2912_v51 = vrot.slane %v16676_v17, 2  ;;  %v17590_v22 = vld [vmem:[%s15642_s9 + $0x88] sm:$0xff] }
 0x127   : > { %13493 = vmatprep.mubr.msk.f32.mxu0 %vm791_vm2, %v17478_v21  ;;  %21222 = vst [vmem:[#allocation240_spill] sm:$0xff] %v17556_v63  ;;  %v21269_v21 = vld [vmem:[#allocation186_spill] sm:$0xff] }
 0x128   : > { %v2975_v11 = vrot.slane %v21269_v21, 2  ;;  %v21271_v21 = vld [vmem:[#allocation60_spill] sm:$0xff] }
 0x129   : > { %12622 = vmatmul.mubr.msk.f32.gmra.mrb[4].mxu1 %vm791_vm2, %v15238_v46  ;;  %v2898_v46 = vrot.slane %v16578_v60, 2  ;;  %v2900_v60 = vrot.slane %v16601_v43, 2 }
 0x12a   : > { %13494 = vmatmul.mubr.msk.f32.gmra.mrb[68].mxu0 %vm791_vm2, %v17493_v44  ;;  %12624 = vmatprep.mubr.msk.f32.mxu1 %vm791_vm2, %v15239_v35  ;;  %v17538_v35 = vld [vmem:[%s15642_s9 + $0x58] sm:$0xff]  ;;  %v17875_v44 = vld [vmem:[%s15642_s9 + $0x180] sm:$0xff] }
 0x12b   : > { %13496 = vmatprep.mubr.msk.f32.mxu0 %vm791_vm2, %v17497_v20  ;;  %v17533_v9 = vsel %vm2721_vm3, %v2896_v40, %v2898_v46  ;;  %v17552_v43 = vsel %vm2721_vm3, %v2898_v46, %v2900_v60  ;;  %v2907_v40 = vrot.slane %v16643_v56, 2  ;;  %v2909_v56 = vrot.slane %v16666_v48, 2  ;;  %v17853_v20 = vld [vmem:[%s15642_s9 + $0x170] sm:$0xff] }
 0x12c   : > { %21220 = vst [vmem:[#allocation238_spill] sm:$0xff] %v17533_v9  ;;  %21221 = vst [vmem:[#allocation239_spill] sm:$0xff] %v17552_v43  ;;  %v2911_v60 = vrot.slane %v16673_v41, 2  ;;  %v2914_v41 = vrot.slane %v16700_v49, 2 }
 0x12d   : > { %12625 = vmatmul.mubr.msk.f32.gmra.mrb[6].mxu1 %vm791_vm2, %v15240_v47  ;;  %v17560_v47 = vld [vmem:[%s15642_s9 + $0x68] sm:$0xff]  ;;  %v17578_v46 = vsel %vm2721_vm3, %v2905_v53, %v2907_v40  ;;  %v17597_v48 = vsel %vm2721_vm3, %v2907_v40, %v2909_v56  ;;  %v2916_v53 = vrot.slane %v16708_v24, 2  ;;  %v2918_v24 = vrot.slane %v16731_v8, 2 }
 0x12e   : > { %13497 = vmatmul.mubr.msk.f32.gmra.mrb[70].mxu0 %vm791_vm2, %v17510_v27  ;;  %12627 = vmatprep.mubr.msk.f32.mxu1 %vm791_vm2, %v17522_v12  ;;  %21224 = vst [vmem:[#allocation242_spill] sm:$0xff] %v17578_v46  ;;  %21225 = vst [vmem:[#allocation243_spill] sm:$0xff] %v17597_v48  ;;  %v17601_v17 = vsel %vm2721_vm3, %v2911_v60, %v2912_v51  ;;  %v17619_v49 = vsel %vm2721_vm3, %v2912_v51, %v2914_v41  ;;  %v2920_v56 = vrot.slane %v16738_v37, 2  ;;  %v17635_v51 = vld [vmem:[%s15642_s9 + $0xb0] sm:$0xff] }
 0x12f   : > { %13499 = vmatprep.mubr.msk.f32.mxu0 %vm791_vm2, %v17514_v62  ;;  %21226 = vst [vmem:[#allocation244_spill] sm:$0xff] %v17601_v17  ;;  %21227 = vst [vmem:[#allocation245_spill] sm:$0xff] %v17619_v49  ;;  %v17623_v40 = vsel %vm2721_vm3, %v2914_v41, %v2916_v53  ;;  %v2921_v60 = vrot.slane %v16741_v19, 2  ;;  %v17642_v8 = vsel %vm2721_vm3, %v2916_v53, %v2918_v24  ;;  %v2923_v19 = vrot.slane %v16765_v42, 2  ;;  %v21260_v62 = vld [vmem:[#allocation178_spill] sm:$0xff] }
 0x130   : > { %21228 = vst [vmem:[#allocation246_spill] sm:$0xff] %v17623_v40  ;;  %21229 = vst [vmem:[#allocation247_spill] sm:$0xff] %v17642_v8  ;;  %v2925_v41 = vrot.slane %v16773_v26, 2  ;;  %v2927_v26 = vrot.slane %v16796_v5, 2  ;;  %v2929_v24 = vrot.slane %v16803_v55, 2  ;;  %v2932_v55 = vrot.slane %v16830_v16, 2 }
 0x131   : > { %12628 = vmatmul.mubr.msk.f32.gmra.mrb[8].mxu1 %vm791_vm2, %v17538_v35  ;;  %v17646_v37 = vsel %vm2721_vm3, %v2920_v56, %v2921_v60  ;;  %v17664_v42 = vsel %vm2721_vm3, %v2921_v60, %v2923_v19  ;;  %v2930_v56 = vrot.slane %v16806_v34, 2  ;;  %v17680_v60 = vld [vmem:[%s15642_s9 + $0xd8] sm:$0xff]  ;;  %v2966_v27 = vrot.slane %v21260_v62, 2  ;;  %v21262_v62 = vld [vmem:[#allocation51_spill] sm:$0xff] }
 0x132   : > { %13500 = vmatmul.mubr.msk.f32.gmra.mrb[72].mxu0 %vm791_vm2, %v17529_v28  ;;  %12630 = vmatprep.mubr.msk.f32.mxu1 %vm791_vm2, %v17545_v13  ;;  %21230 = vst [vmem:[#allocation248_spill] sm:$0xff] %v17646_v37  ;;  %21231 = vst [vmem:[#allocation249_spill] sm:$0xff] %v17664_v42  ;;  %v17668_v53 = vsel %vm2721_vm3, %v2923_v19, %v2925_v41  ;;  %v17687_v5 = vsel %vm2721_vm3, %v2925_v41, %v2927_v26  ;;  %v2934_v19 = vrot.slane %v16838_v50, 2  ;;  %v17830_v28 = vld [vmem:[%s15642_s9 + $0x158] sm:$0xff] }
 0x133   : > { %13502 = vmatprep.mubr.msk.f32.mxu0 %vm791_vm2, %v17533_v9  ;;  %21232 = vst [vmem:[#allocation250_spill] sm:$0xff] %v17668_v53  ;;  %21233 = vst [vmem:[#allocation251_spill] sm:$0xff] %v17687_v5  ;;  %v17691_v34 = vsel %vm2721_vm3, %v2929_v24, %v2930_v56  ;;  %v17709_v16 = vsel %vm2721_vm3, %v2930_v56, %v2932_v55  ;;  %v2936_v50 = vrot.slane %v16861_v59, 2  ;;  %v2938_v26 = vrot.slane %v16868_v23, 2  ;;  %v17725_v56 = vld [vmem:[%s15642_s9 + $0x100] sm:$0xff]  ;;  %v17808_v9 = vld [vmem:[%s15642_s9 + $0x148] sm:$0xff] }
 0x134   : > { %21234 = vst [vmem:[#allocation252_spill] sm:$0xff] %v17691_v34  ;;  %21235 = vst [vmem:[#allocation253_spill] sm:$0xff] %v17709_v16  ;;  %v17713_v41 = vsel %vm2721_vm3, %v2932_v55, %v2934_v19  ;;  %v2939_v24 = vrot.slane %v16871_v29, 2  ;;  %v2941_v29 = vrot.slane %v16895_v7, 2  ;;  %v2943_v55 = vrot.slane %v16903_v45, 2 }
 0x135   : > { %12631 = vmatmul.mubr.msk.f32.gmra.mrb[10].mxu1 %vm791_vm2, %v17560_v47  ;;  %21236 = vst [vmem:[#allocation254_spill] sm:$0xff] %v17713_v41  ;;  %v17732_v59 = vsel %vm2721_vm3, %v2934_v19, %v2936_v50  ;;  %v2945_v45 = vrot.slane %v16926_v52, 2  ;;  %v21241_v50 = vld [vmem:[#allocation159_spill] sm:$0xff] }
 0x136   : > { %13503 = vmatmul.mubr.msk.f32.gmra.mrb[74].mxu0 %vm791_vm2, %v17552_v43  ;;  %12633 = vmatprep.mubr.msk.f32.mxu1 %vm791_vm2, %v17567_v31  ;;  %21237 = vst [vmem:[#allocation255_spill] sm:$0xff] %v17732_v59  ;;  %v17736_v23 = vsel %vm2721_vm3, %v2938_v26, %v2939_v24  ;;  %v17754_v7 = vsel %vm2721_vm3, %v2939_v24, %v2941_v29  ;;  %v2947_v26 = vrot.slane %v21241_v50, 2  ;;  %v17770_v24 = vld [vmem:[%s15642_s9 + $0x128] sm:$0xff] }
 0x137   : > { %13505 = vmatprep.mubr.msk.f32.mxu0 %vm791_vm2, %v17556_v63  ;;  %21238 = vst [vmem:[#allocation256_spill] sm:$0xff] %v17736_v23  ;;  %21239 = vst [vmem:[#allocation257_spill] sm:$0xff] %v17754_v7  ;;  %v17758_v19 = vsel %vm2721_vm3, %v2941_v29, %v2943_v55  ;;  %v17777_v52 = vsel %vm2721_vm3, %v2943_v55, %v2945_v45  ;;  %v21251_v63 = vld [vmem:[#allocation170_spill] sm:$0xff] }
 0x138   : > { %21240 = vst [vmem:[#allocation258_spill] sm:$0xff] %v17758_v19  ;;  %21243 = vst [vmem:[#allocation159_spill] sm:$0xff] %v17777_v52  ;;  %v2957_v43 = vrot.slane %v21251_v63, 2  ;;  %v21253_v63 = vld [vmem:[#allocation42_spill] sm:$0xff] }
 0x139   : > { %12634 = vmatmul.mubr.msk.f32.gmra.mrb[12].mxu1 %vm791_vm2, %v17583_v30 }
 0x13a   : > { %13506 = vmatmul.mubr.msk.f32.gmra.mrb[76].mxu0 %vm791_vm2, %v17574_v6  ;;  %12636 = vmatprep.mubr.msk.f32.mxu1 %vm791_vm2, %v17590_v22  ;;  %v17605_v6 = vld [vmem:[%s15642_s9 + $0x90] sm:$0xff] }
 0x13b   : > { %13508 = vmatprep.mubr.msk.f32.mxu0 %vm791_vm2, %v17578_v46  ;;  %v17612_v46 = vld [vmem:[%s15642_s9 + $0xa0] sm:$0xff] }
 0x13d   : > { %12637 = vmatmul.mubr.msk.f32.gmra.mrb[14].mxu1 %vm791_vm2, %v17605_v6 }
 0x13e   : > { %13509 = vmatmul.mubr.msk.f32.gmra.mrb[78].mxu0 %vm791_vm2, %v17597_v48  ;;  %12639 = vmatprep.mubr.msk.f32.mxu1 %vm791_vm2, %v17612_v46  ;;  %v17628_v48 = vld [vmem:[%s15642_s9 + $0xa8] sm:$0xff] }
 0x13f   : > { %13511 = vmatprep.mubr.msk.f32.mxu0 %vm791_vm2, %v17601_v17  ;;  %v17785_v17 = vld [vmem:[%s15642_s9 + $0x130] sm:$0xff] }
 0x141   : > { %12640 = vmatmul.mubr.msk.f32.gmra.mrb[16].mxu1 %vm791_vm2, %v17628_v48 }
 0x142   : > { %13512 = vmatmul.mubr.msk.f32.gmra.mrb[80].mxu0 %vm791_vm2, %v17619_v49  ;;  %12642 = vmatprep.mubr.msk.f32.mxu1 %vm791_vm2, %v17635_v51  ;;  %v17650_v49 = vld [vmem:[%s15642_s9 + $0xb8] sm:$0xff] }
 0x143   : > { %13514 = vmatprep.mubr.msk.f32.mxu0 %vm791_vm2, %v17623_v40  ;;  %v17657_v40 = vld [vmem:[%s15642_s9 + $0xc8] sm:$0xff] }
 0x145   : > { %12643 = vmatmul.mubr.msk.f32.gmra.mrb[18].mxu1 %vm791_vm2, %v17650_v49 }
 0x146   : > { %13515 = vmatmul.mubr.msk.f32.gmra.mrb[82].mxu0 %vm791_vm2, %v17642_v8  ;;  %12645 = vmatprep.mubr.msk.f32.mxu1 %vm791_vm2, %v17657_v40  ;;  %v17673_v8 = vld [vmem:[%s15642_s9 + $0xd0] sm:$0xff] }
 0x147   : > { %13517 = vmatprep.mubr.msk.f32.mxu0 %vm791_vm2, %v17646_v37  ;;  %v17763_v37 = vld [vmem:[%s15642_s9 + $0x120] sm:$0xff] }
 0x149   : > { %12646 = vmatmul.mubr.msk.f32.gmra.mrb[20].mxu1 %vm791_vm2, %v17673_v8 }
 0x14a   : > { %13518 = vmatmul.mubr.msk.f32.gmra.mrb[84].mxu0 %vm791_vm2, %v17664_v42  ;;  %12648 = vmatprep.mubr.msk.f32.mxu1 %vm791_vm2, %v17680_v60  ;;  %v17695_v42 = vld [vmem:[%s15642_s9 + $0xe0] sm:$0xff] }
 0x14b   : > { %13520 = vmatprep.mubr.msk.f32.mxu0 %vm791_vm2, %v17668_v53  ;;  %v17702_v53 = vld [vmem:[%s15642_s9 + $0xf0] sm:$0xff] }
 0x14d   : > { %12649 = vmatmul.mubr.msk.f32.gmra.mrb[22].mxu1 %vm791_vm2, %v17695_v42 }
 0x14e   : > { %13521 = vmatmul.mubr.msk.f32.gmra.mrb[86].mxu0 %vm791_vm2, %v17687_v5  ;;  %12651 = vmatprep.mubr.msk.f32.mxu1 %vm791_vm2, %v17702_v53  ;;  %v17718_v5 = vld [vmem:[%s15642_s9 + $0xf8] sm:$0xff] }
 0x14f   : > { %13523 = vmatprep.mubr.msk.f32.mxu0 %vm791_vm2, %v17691_v34 }
 0x151   : > { %12652 = vmatmul.mubr.msk.f32.gmra.mrb[24].mxu1 %vm791_vm2, %v17718_v5 }
 0x152   : > { %13524 = vmatmul.mubr.msk.f32.gmra.mrb[88].mxu0 %vm791_vm2, %v17709_v16  ;;  %12654 = vmatprep.mubr.msk.f32.mxu1 %vm791_vm2, %v17725_v56  ;;  %v17740_v16 = vld [vmem:[%s15642_s9 + $0x108] sm:$0xff] }
 0x153   : > { %13526 = vmatprep.mubr.msk.f32.mxu0 %vm791_vm2, %v17713_v41  ;;  %v17747_v41 = vld [vmem:[%s15642_s9 + $0x118] sm:$0xff] }
 0x155   : > { %12655 = vmatmul.mubr.msk.f32.gmra.mrb[26].mxu1 %vm791_vm2, %v17740_v16 }
 0x156   : > { %13527 = vmatmul.mubr.msk.f32.gmra.mrb[90].mxu0 %vm791_vm2, %v17732_v59  ;;  %12657 = vmatprep.mubr.msk.f32.mxu1 %vm791_vm2, %v17747_v41  ;;  %v21242_v59 = vld [vmem:[#allocation160_spill] sm:$0xff] }
 0x157   : > { %13529 = vmatprep.mubr.msk.f32.mxu0 %vm791_vm2, %v17736_v23  ;;  %v2948_v34 = vrot.slane %v21242_v59, 2  ;;  %v21244_v59 = vld [vmem:[#allocation164_spill] sm:$0xff]  ;;  %v21246_v23 = vld [vmem:[#allocation35_spill] sm:$0xff] }
 0x158   : > { %v2950_v29 = vrot.slane %v21244_v59, 2  ;;  %v21250_v59 = vld [vmem:[#allocation39_spill] sm:$0xff] }
 0x159   : > { %12658 = vmatmul.mubr.msk.f32.gmra.mrb[28].mxu1 %vm791_vm2, %v17763_v37  ;;  %v17781_v50 = vsel %vm2721_vm3, %v2947_v26, %v2948_v34 }
 0x15a   : > { %13530 = vmatmul.mubr.msk.f32.gmra.mrb[92].mxu0 %vm791_vm2, %v17754_v7  ;;  %12660 = vmatprep.mubr.msk.f32.mxu1 %vm791_vm2, %v17770_v24  ;;  %21245 = vst [vmem:[#allocation160_spill] sm:$0xff] %v17781_v50  ;;  %v2952_v7 = vrot.slane %v21246_v23, 2  ;;  %v17799_v55 = vsel %vm2721_vm3, %v2948_v34, %v2950_v29  ;;  %v21248_v23 = vld [vmem:[#allocation168_spill] sm:$0xff] }
 0x15b   : > { %13532 = vmatprep.mubr.msk.f32.mxu0 %vm791_vm2, %v17758_v19  ;;  %v17792_v19 = vld [vmem:[%s15642_s9 + $0x140] sm:$0xff]  ;;  %21247 = vst [vmem:[#allocation164_spill] sm:$0xff] %v17799_v55  ;;  %v2954_v45 = vrot.slane %v21248_v23, 2  ;;  %v17815_v34 = vld [vmem:[%s15642_s9 + $0x150] sm:$0xff]  ;;  %v2959_v23 = vrot.slane %v21253_v63, 2 }
 0x15c   : > { %v17803_v26 = vsel %vm2721_vm3, %v2950_v29, %v2952_v7  ;;  %v21259_v63 = vld [vmem:[#allocation48_spill] sm:$0xff] }
 0x15d   : > { %12661 = vmatmul.mubr.msk.f32.gmra.mrb[30].mxu1 %vm791_vm2, %v17785_v17  ;;  %21249 = vst [vmem:[#allocation35_spill] sm:$0xff] %v17803_v26  ;;  %v17822_v29 = vsel %vm2721_vm3, %v2952_v7, %v2954_v45  ;;  %v17844_v7 = vsel %vm2721_vm3, %v2957_v43, %v2959_v23 }
 0x15e   : > { %13533 = vmatmul.mubr.msk.f32.gmra.mrb[94].mxu0 %vm791_vm2, %v17777_v52  ;;  %12663 = vmatprep.mubr.msk.f32.mxu1 %vm791_vm2, %v17792_v19  ;;  %v2956_v52 = vrot.slane %v21250_v59, 2  ;;  %21252 = vst [vmem:[#allocation168_spill] sm:$0xff] %v17822_v29  ;;  %21256 = vst [vmem:[#allocation170_spill] sm:$0xff] %v17844_v7 }
 0x15f   : > { %13535 = vmatprep.mubr.msk.f32.mxu0 %vm791_vm2, %v17781_v50  ;;  %v21255_v50 = vld [vmem:[#allocation43_spill] sm:$0xff] }
 0x160   : > { %v17826_v59 = vsel %vm2721_vm3, %v2956_v52, %v2957_v43  ;;  %v21257_v52 = vld [vmem:[#allocation176_spill] sm:$0xff]  ;;  %v17860_v43 = vld [vmem:[%s15642_s9 + $0x178] sm:$0xff] }
 0x161   : > { %12664 = vmatmul.mubr.msk.f32.gmra.mrb[32].mxu1 %vm791_vm2, %v17808_v9  ;;  %21254 = vst [vmem:[#allocation39_spill] sm:$0xff] %v17826_v59 }
 0x162   : > { %13536 = vmatmul.mubr.msk.f32.gmra.mrb[96].mxu0 %vm791_vm2, %v17799_v55  ;;  %12666 = vmatprep.mubr.msk.f32.mxu1 %vm791_vm2, %v17815_v34  ;;  %v2961_v55 = vrot.slane %v21255_v50, 2  ;;  %v2963_v50 = vrot.slane %v21257_v52, 2  ;;  %v2968_v52 = vrot.slane %v21262_v62, 2  ;;  %v21268_v62 = vld [vmem:[#allocation57_spill] sm:$0xff] }
 0x163   : > { %13538 = vmatprep.mubr.msk.f32.mxu0 %vm791_vm2, %v17803_v26  ;;  %v17837_v26 = vld [vmem:[%s15642_s9 + $0x168] sm:$0xff] }
 0x164   : > { %v17848_v45 = vsel %vm2721_vm3, %v2959_v23, %v2961_v55  ;;  %v17867_v23 = vsel %vm2721_vm3, %v2961_v55, %v2963_v50  ;;  %v17889_v55 = vsel %vm2721_vm3, %v2966_v27, %v2968_v52 }
 0x165   : > { %12667 = vmatmul.mubr.msk.f32.gmra.mrb[34].mxu1 %vm791_vm2, %v17830_v28  ;;  %21258 = vst [vmem:[#allocation42_spill] sm:$0xff] %v17848_v45  ;;  %21261 = vst [vmem:[#allocation43_spill] sm:$0xff] %v17867_v23 }
 0x166   : > { %13539 = vmatmul.mubr.msk.f32.gmra.mrb[98].mxu0 %vm791_vm2, %v17822_v29  ;;  %12669 = vmatprep.mubr.msk.f32.mxu1 %vm791_vm2, %v17837_v26  ;;  %v2965_v29 = vrot.slane %v21259_v63, 2  ;;  %21265 = vst [vmem:[#allocation48_spill] sm:$0xff] %v17889_v55 }
 0x167   : > { %13541 = vmatprep.mubr.msk.f32.mxu0 %vm791_vm2, %v17826_v59  ;;  %v21264_v59 = vld [vmem:[#allocation52_spill] sm:$0xff] }
 0x168   : > { %v17871_v63 = vsel %vm2721_vm3, %v2965_v29, %v2966_v27  ;;  %v21266_v29 = vld [vmem:[#allocation184_spill] sm:$0xff]  ;;  %v17905_v27 = vld [vmem:[%s15642_s9 + $0x1a0] sm:$0xff] }
 0x169   : > { %12670 = vmatmul.mubr.msk.f32.gmra.mrb[36].mxu1 %vm791_vm2, %v17853_v20  ;;  %21263 = vst [vmem:[#allocation176_spill] sm:$0xff] %v17871_v63 }
 0x16a   : > { %13542 = vmatmul.mubr.msk.f32.gmra.mrb[100].mxu0 %vm791_vm2, %v17844_v7  ;;  %12672 = vmatprep.mubr.msk.f32.mxu1 %vm791_vm2, %v17860_v43  ;;  %v2970_v7 = vrot.slane %v21264_v59, 2  ;;  %v2972_v59 = vrot.slane %v21266_v29, 2  ;;  %v2977_v29 = vrot.slane %v21271_v21, 2 }
 0x16b   : > { %13544 = vmatprep.mubr.msk.f32.mxu0 %vm791_vm2, %v17848_v45  ;;  %v17882_v45 = vld [vmem:[%s15642_s9 + $0x190] sm:$0xff] }
 0x16c   : > { %v17893_v50 = vsel %vm2721_vm3, %v2968_v52, %v2970_v7  ;;  %v17912_v52 = vsel %vm2721_vm3, %v2970_v7, %v2972_v59  ;;  %v17934_v7 = vsel %vm2721_vm3, %v2975_v11, %v2977_v29 }
 0x16d   : > { %12673 = vmatmul.mubr.msk.f32.gmra.mrb[38].mxu1 %vm791_vm2, %v17875_v44  ;;  %21267 = vst [vmem:[#allocation178_spill] sm:$0xff] %v17893_v50  ;;  %21270 = vst [vmem:[#allocation51_spill] sm:$0xff] %v17912_v52 }
 0x16e   : > { %13545 = vmatmul.mubr.msk.f32.gmra.mrb[102].mxu0 %vm791_vm2, %v17867_v23  ;;  %12675 = vmatprep.mubr.msk.f32.mxu1 %vm791_vm2, %v17882_v45  ;;  %v2974_v23 = vrot.slane %v21268_v62, 2  ;;  %21274 = vst [vmem:[#allocation184_spill] sm:$0xff] %v17934_v7 }
 0x16f   : > { %13547 = vmatprep.mubr.msk.f32.mxu0 %vm791_vm2, %v17871_v63  ;;  %v21273_v63 = vld [vmem:[#allocation61_spill] sm:$0xff] }
 0x170   : > { %v17916_v62 = vsel %vm2721_vm3, %v2974_v23, %v2975_v11  ;;  %v21275_v23 = vld [vmem:[#allocation192_spill] sm:$0xff]  ;;  %v17950_v11 = vld [vmem:[%s15642_s9 + $0x1c8] sm:$0xff] }
 0x171   : > { %12676 = vmatmul.mubr.msk.f32.gmra.mrb[40].mxu1 %vm791_vm2, %v17898_v1  ;;  %21272 = vst [vmem:[#allocation52_spill] sm:$0xff] %v17916_v62  ;;  %v2981_v59 = vrot.slane %v21275_v23, 2  ;;  %v21280_v23 = vld [vmem:[#allocation69_spill] sm:$0xff] }
 0x172   : > { %13548 = vmatmul.mubr.msk.f32.gmra.mrb[104].mxu0 %vm791_vm2, %v17889_v55  ;;  %12678 = vmatprep.mubr.msk.f32.mxu1 %vm791_vm2, %v17905_v27  ;;  %v2979_v55 = vrot.slane %v21273_v63, 2  ;;  %v18087_v63 = vld [vmem:[%s15642_s9 + $0x238] sm:$0xff] }
 0x173   : > { %13550 = vmatprep.mubr.msk.f32.mxu0 %vm791_vm2, %v17893_v50  ;;  %v17927_v50 = vld [vmem:[%s15642_s9 + $0x1b8] sm:$0xff]  ;;  %21301 = vst [vmem:[#allocation268_spill] sm:$0xff] %v18087_v63 }
 0x174   : > { %v17938_v21 = vsel %vm2721_vm3, %v2977_v29, %v2979_v55  ;;  %v17957_v29 = vsel %vm2721_vm3, %v2979_v55, %v2981_v59 }
 0x175   : > { %12679 = vmatmul.mubr.msk.f32.gmra.mrb[42].mxu1 %vm791_vm2, %v17920_v39  ;;  %21276 = vst [vmem:[#allocation57_spill] sm:$0xff] %v17938_v21  ;;  %21279 = vst [vmem:[#allocation186_spill] sm:$0xff] %v17957_v29 }
 0x176   : > { %13551 = vmatmul.mubr.msk.f32.gmra.mrb[106].mxu0 %vm791_vm2, %v17912_v52  ;;  %12681 = vmatprep.mubr.msk.f32.mxu1 %vm791_vm2, %v17927_v50  ;;  %v2983_v52 = vrot.slane %v21277_v61, 2  ;;  %v18084_v61 = vld [vmem:[%s15642_s9 + $0x510] sm:$0xff] }
 0x177   : > { %13553 = vmatprep.mubr.msk.f32.mxu0 %vm791_vm2, %v17916_v62  ;;  %v2986_v62 = vrot.slane %v21280_v23, 2  ;;  %v18010_v23 = vld [vmem:[%s15642_s9 + $0x1f8] sm:$0xff] }
 0x178   : > { %v17961_v36 = vsel %vm2721_vm3, %v2983_v52, %v2984_v54  ;;  %v21284_v52 = vld [vmem:[#allocation200_spill] sm:$0xff] }
 0x179   : > { %12682 = vmatmul.mubr.msk.f32.gmra.mrb[44].mxu1 %vm791_vm2, %v17943_v25  ;;  %21281 = vst [vmem:[#allocation60_spill] sm:$0xff] %v17961_v36  ;;  %v17979_v55 = vsel %vm2721_vm3, %v2984_v54, %v2986_v62  ;;  %v2990_v59 = vrot.slane %v21284_v52, 2  ;;  %v17995_v54 = vld [vmem:[%s15642_s9 + $0x1f0] sm:$0xff]  ;;  %v21289_v52 = vld [vmem:[#allocation78_spill] sm:$0xff] }
 0x17a   : > { %13554 = vmatmul.mubr.msk.f32.gmra.mrb[108].mxu0 %vm791_vm2, %v17934_v7  ;;  %12684 = vmatprep.mubr.msk.f32.mxu1 %vm791_vm2, %v17950_v11  ;;  %v2988_v7 = vrot.slane %v21282_v57, 2  ;;  %21283 = vst [vmem:[#allocation192_spill] sm:$0xff] %v17979_v55  ;;  %v17988_v57 = vld [vmem:[%s15642_s9 + $0x1e8] sm:$0xff] }
 0x17b   : > { %13556 = vmatprep.mubr.msk.f32.mxu0 %vm791_vm2, %v17938_v21  ;;  %v17972_v21 = vld [vmem:[%s15642_s9 + $0x1e0] sm:$0xff] }
 0x17c   : > { %v17983_v33 = vsel %vm2721_vm3, %v2986_v62, %v2988_v7  ;;  %v18002_v62 = vsel %vm2721_vm3, %v2988_v7, %v2990_v59 }
 0x17d   : > { %12685 = vmatmul.mubr.msk.f32.gmra.mrb[46].mxu1 %vm791_vm2, %v17965_v2  ;;  %21285 = vst [vmem:[#allocation200_spill] sm:$0xff] %v17983_v33  ;;  %21288 = vst [vmem:[#allocation259_spill] sm:$0xff] %v18002_v62 }
 0x17e   : > { %13557 = vmatmul.mubr.msk.f32.gmra.mrb[110].mxu0 %vm791_vm2, %v17957_v29  ;;  %12687 = vmatprep.mubr.msk.f32.mxu1 %vm791_vm2, %v17972_v21  ;;  %v2992_v29 = vrot.slane %v21286_v18, 2  ;;  %v21291_v18 = vld [vmem:[#allocation79_spill] sm:$0xff] }
 0x17f   : > { %13559 = vmatprep.mubr.msk.f32.mxu0 %vm791_vm2, %v17961_v36  ;;  %v2995_v36 = vrot.slane %v21289_v52, 2  ;;  %v3002_v52 = vrot.slane %v17326_v58, 2  ;;  %v18055_v58 = vld [vmem:[%s15642_s9 + $0x220] sm:$0xff] }
 0x180   : > { %v18006_v32 = vsel %vm2721_vm3, %v2992_v29, %v2993_v4  ;;  %v21293_v29 = vld [vmem:[#allocation208_spill] sm:$0xff] }
 0x181   : > { %12688 = vmatmul.mubr.msk.f32.gmra.mrb[48].mxu1 %vm791_vm2, %v17988_v57  ;;  %21290 = vst [vmem:[#allocation260_spill] sm:$0xff] %v18006_v32  ;;  %v18024_v7 = vsel %vm2721_vm3, %v2993_v4, %v2995_v36  ;;  %v2999_v59 = vrot.slane %v21293_v29, 2  ;;  %v18040_v4 = vld [vmem:[%s15642_s9 + $0x218] sm:$0xff]  ;;  %v3004_v29 = vrot.slane %v17350_v10, 2 }
 0x182   : > { %13560 = vmatmul.mubr.msk.f32.gmra.mrb[112].mxu0 %vm791_vm2, %v17979_v55  ;;  %12690 = vmatprep.mubr.msk.f32.mxu1 %vm791_vm2, %v17995_v54  ;;  %v2997_v55 = vrot.slane %v21291_v18, 2  ;;  %21292 = vst [vmem:[#allocation261_spill] sm:$0xff] %v18024_v7 }
 0x183   : > { %13562 = vmatprep.mubr.msk.f32.mxu0 %vm791_vm2, %v17983_v33  ;;  %v18017_v33 = vld [vmem:[%s15642_s9 + $0x208] sm:$0xff] }
 0x184   : > { %v18028_v18 = vsel %vm2721_vm3, %v2995_v36, %v2997_v55  ;;  %v18047_v36 = vsel %vm2721_vm3, %v2997_v55, %v2999_v59  ;;  %v18063_v55 = vld [vmem:[%s15642_s9 + $0x508] sm:$0xff]  ;;  %v18068_v59 = vld [vmem:[%s15642_s9 + $0x230] sm:$0xff] }
 0x185   : > { %12691 = vmatmul.mubr.msk.f32.gmra.mrb[50].mxu1 %vm791_vm2, %v18010_v23  ;;  %21294 = vst [vmem:[#allocation208_spill] sm:$0xff] %v18028_v18  ;;  %21295 = vst [vmem:[#allocation262_spill] sm:$0xff] %v18047_v36  ;;  %v5811_v10 = vrot.slane %v18063_v55, 2 }
 0x186   : > { %13563 = vmatmul.mubr.msk.f32.gmra.mrb[114].mxu0 %vm791_vm2, %v18002_v62  ;;  %12693 = vmatprep.mubr.msk.f32.mxu1 %vm791_vm2, %v18017_v33  ;;  %v3001_v62 = vrot.slane %v17323_v14, 2  ;;  %v18060_v14 = vld [vmem:[%s15642_s9 + $0x500] sm:$0xff]  ;;  %21298 = vst [vmem:[#allocation265_spill] sm:$0xff] %v18063_v55 }
 0x187   : > { %13565 = vmatprep.mubr.msk.f32.mxu0 %vm791_vm2, %v18006_v32  ;;  %21297 = vst [vmem:[#allocation264_spill] sm:$0xff] %v18060_v14 }
 0x188   : > { %v18051_v32 = vsel %vm2721_vm3, %v3001_v62, %v3002_v52  ;;  %v18075_v62 = vsel %vm2721_vm3, %v3002_v52, %v3004_v29  ;;  %v18092_v52 = vld [vmem:[%s15642_s9 + $0x518] sm:$0xff] }
 0x189   : > { %12694 = vmatmul.mubr.msk.f32.gmra.mrb[52].mxu1 %vm791_vm2, %v18033_v3  ;;  %21296 = vst [vmem:[#allocation263_spill] sm:$0xff] %v18051_v32  ;;  %21299 = vst [vmem:[#allocation266_spill] sm:$0xff] %v18075_v62 }
 0x18a   : > { %13566 = vmatmul.mubr.msk.f32.gmra.mrb[116].mxu0 %vm791_vm2, %v18024_v7  ;;  %12696 = vmatprep.mubr.msk.f32.mxu1 %vm791_vm2, %v18040_v4  ;;  %v3006_v7 = vrot.slane %v17358_v0, 2  ;;  %21302 = vst [vmem:[#allocation269_spill] sm:$0xff] %v18092_v52 }
 0x18b   : > { %13568 = vmatprep.mubr.msk.f32.mxu0 %vm791_vm2, %v18028_v18  ;;  %v3008_v18 = vrot.slane %v17381_v38, 2  ;;  %v18097_v38 = vld [vmem:[%s15642_s9 + $0x240] sm:$0xff] }
 0x18c   : > { %v18079_v0 = vsel %vm2721_vm3, %v3004_v29, %v3006_v7 }
 0x18d   : > { %12697 = vmatmul.mubr.msk.f32.gmra.mrb[54].mxu1 %vm791_vm2, %v18055_v58  ;;  %21300 = vst [vmem:[#allocation267_spill] sm:$0xff] %v18079_v0  ;;  %v18104_v29 = vsel %vm2721_vm3, %v3006_v7, %v3008_v18  ;;  %v18120_v18 = vld [vmem:[%s15642_s9 + $0x258] sm:$0xff] }
 0x18e   : > { %13569 = vmatmul.mubr.msk.f32.gmra.mrb[118].mxu0 %vm791_vm2, %v18047_v36  ;;  %12699 = vmatprep.mubr.msk.f32.mxu1 %vm791_vm2, %v18068_v59  ;;  %v5810_v36 = vrot.slane %v18060_v14, 2  ;;  %21303 = vst [vmem:[#allocation270_spill] sm:$0xff] %v18104_v29  ;;  %v333_v14 = vld [vmem:[%s15642_s9 + $0x520] sm:$0x3] }
 0x18f   : > { %13571 = vmatprep.mubr.msk.f32.mxu0 %vm791_vm2, %v18051_v32  ;;  %v5813_v32 = vrot.slane %v18084_v61, 2 }
 0x190   : > { %v18108_v55 = vsel %vm2721_vm3, %v5810_v36, %v5811_v10  ;;  %v5817_v36 = vrot.slane %v333_v14, 2 }
 0x191   : > { %12700 = vmatmul.mubr.msk.f32.gmra.mrb[56].mxu1 %vm791_vm2, %v18087_v63  ;;  %21304 = vst [vmem:[#allocation271_spill] sm:$0xff] %v18108_v55  ;;  %v18113_v63 = vld [vmem:[%s15642_s9 + $0x248] sm:$0xff]  ;;  %v18127_v7 = vsel %vm2721_vm3, %v5811_v10, %v5813_v32  ;;  %v18150_v10 = vld [vmem:[%s15642_s9 + $0x270] sm:$0xff] }
 0x192   : > { %13572 = vmatmul.mubr.msk.f32.gmra.mrb[120].mxu0 %vm791_vm2, %v18075_v62  ;;  %12702 = vmatprep.mubr.msk.f32.mxu1 %vm791_vm2, %v18097_v38  ;;  %v5815_v62 = vrot.slane %v18092_v52, 2  ;;  %21305 = vst [vmem:[#allocation272_spill] sm:$0xff] %v18127_v7  ;;  %v18133_v52 = vld [vmem:[%s15642_s9 + $0x260] sm:$0xff] }
 0x193   : > { %13574 = vmatprep.mubr.msk.f32.mxu0 %vm791_vm2, %v18079_v0 }
 0x194   : > { %v18130_v0 = vsel %vm2721_vm3, %v5813_v32, %v5815_v62  ;;  %v18147_v14 = vsel %vm2721_vm3, %v5815_v62, %v5817_v36  ;;  %v18157_v32 = vld [vmem:[%s15642_s9 + $0x280] sm:$0xff]  ;;  %v18164_v62 = vld [vmem:[%s20395_s1 + $0xc] sm:$0x7] }
 0x195   : > { %12703 = vmatmul.mubr.msk.f32.gmra.mrb[58].mxu1 %vm791_vm2, %v18113_v63  ;;  %21306 = vst [vmem:[#allocation273_spill] sm:$0xff] %v18130_v0  ;;  %21307 = vst [vmem:[#allocation274_spill] sm:$0xff] %v18147_v14  ;;  %13001 = vmatprep.subr.msk.mxu1 %vm1048_vm0, %v18164_v62  ;;  %v18171_v36 = vld [vmem:[%s15642_s9 + $0x288] sm:$0xff] }
 0x196   : > { %13575 = vmatmul.mubr.msk.f32.gmra.mrb[122].mxu0 %vm791_vm2, %v18104_v29  ;;  %12705 = vmatprep.mubr.msk.f32.mxu1 %vm791_vm2, %v18120_v18  ;;  %v18140_v29 = vld [vmem:[%s15642_s9 + $0x268] sm:$0xff] }
 0x197   : > { %13577 = vmatprep.mubr.msk.f32.mxu0 %vm791_vm2, %v18108_v55  ;;  %v18854_v55 = vld [vmem:[%s15642_s9 + $0x4f0] sm:$0xff] }
 0x199   : > { %12706 = vmatmul.mubr.msk.f32.gmra.mrb[60].mxu1 %vm791_vm2, %v18133_v52 }
 0x19a   : > { %13578 = vmatmul.mubr.msk.f32.gmra.mrb[124].mxu0 %vm791_vm2, %v18127_v7  ;;  %12708 = vmatprep.mubr.msk.f32.mxu1 %vm791_vm2, %v18140_v29  ;;  %v21312_v7 = vld [vmem:[#allocation69_spill] sm:$0xff] }
 0x19b   : > { %13580 = vmatprep.mubr.msk.f32.mxu0 %vm791_vm2, %v18130_v0  ;;  %v18516_v0 = vld [vmem:[%s15642_s9 + $0x470] sm:$0xff] }
 0x19d   : > { %12709 = vmatmul.mubr.msk.f32.gmra.mrb[62].mxu1 %vm791_vm2, %v18150_v10 }
 0x19e   : > { %13581 = vmatmul.mubr.msk.f32.gmra.mrb[126].mxu0 %vm791_vm2, %v18147_v14  ;;  %12711 = vmatprep.mubr.msk.f32.mxu1 %vm791_vm2, %v18157_v32  ;;  %v18178_v14 = vld [vmem:[%s15642_s9 + $0x290] sm:$0xff] }
 0x19f   : > { %13585 = vmatprep.mubr.msk.f32.mxu0 %vm791_vm2, %v17522_v12  ;;  %v18187_v12 = vld [vmem:[%s15642_s9 + $0x298] sm:$0xff] }
 0x1a1   : > { %12712 = vmatmul.mubr.msk.f32.gmra.mrb[64].mxu1 %vm791_vm2, %v18171_v36 }
 0x1a2   : > { %13586 = vmatmul.mubr.msk.f32.vlgmr.msra.gmra.mrb[0].mxu0 %vm791_vm2, %v17538_v35  ;;  %12714 = vmatprep.mubr.msk.f32.mxu1 %vm791_vm2, %v18178_v14  ;;  %v18194_v35 = vld [vmem:[%s15642_s9 + $0x2a8] sm:$0xff] }
 0x1a3   : > { %13778 = vmatpush3.msk.msra.mxu0 %vm1048_vm0, %v17448_v15  ;;  %13588 = vmatprep.mubr.msk.f32.mxu0 %vm791_vm2, %v17545_v13  ;;  %v18201_v15 = vld [vmem:[%s15642_s9 + $0x2b0] sm:$0xff]  ;;  %v18208_v13 = vld [vmem:[%s15642_s9 + $0x2b8] sm:$0xff] }
 0x1a5   : > { %12715 = vmatmul.mubr.msk.f32.gmra.mrb[66].mxu1 %vm791_vm2, %v18187_v12 }
 0x1a6   : > { %13589 = vmatmul.mubr.msk.f32.gmra.mrb[2].mxu0 %vm791_vm2, %v17560_v47  ;;  %12717 = vmatprep.mubr.msk.f32.mxu1 %vm791_vm2, %v18194_v35  ;;  %v18229_v47 = vld [vmem:[%s15642_s9 + $0x2d8] sm:$0xff] }
 0x1a7   : > { %13591 = vmatprep.mubr.msk.f32.mxu0 %vm791_vm2, %v17567_v31  ;;  %v18215_v31 = vld [vmem:[%s15642_s9 + $0x2c0] sm:$0xff] }
 0x1a9   : > { %12718 = vmatmul.mubr.msk.f32.gmra.mrb[68].mxu1 %vm791_vm2, %v18201_v15 }
 0x1aa   : > { %13592 = vmatmul.mubr.msk.f32.gmra.mrb[4].mxu0 %vm791_vm2, %v17583_v30  ;;  %12720 = vmatprep.mubr.msk.f32.mxu1 %vm791_vm2, %v18208_v13  ;;  %v18222_v30 = vld [vmem:[%s15642_s9 + $0x2d0] sm:$0xff] }
 0x1ab   : > { %13594 = vmatprep.mubr.msk.f32.mxu0 %vm791_vm2, %v17590_v22  ;;  %v18250_v22 = vld [vmem:[%s15642_s9 + $0x2f8] sm:$0xff] }
 0x1ad   : > { %12721 = vmatmul.mubr.msk.f32.gmra.mrb[70].mxu1 %vm791_vm2, %v18215_v31 }
 0x1ae   : > { %13595 = vmatmul.mubr.msk.f32.gmra.mrb[6].mxu0 %vm791_vm2, %v17605_v6  ;;  %12723 = vmatprep.mubr.msk.f32.mxu1 %vm791_vm2, %v18222_v30  ;;  %v18236_v6 = vld [vmem:[%s15642_s9 + $0x2e0] sm:$0xff] }
 0x1af   : > { %13597 = vmatprep.mubr.msk.f32.mxu0 %vm791_vm2, %v17612_v46  ;;  %v18243_v46 = vld [vmem:[%s15642_s9 + $0x2e8] sm:$0xff] }
 0x1b1   : > { %12724 = vmatmul.mubr.msk.f32.gmra.mrb[72].mxu1 %vm791_vm2, %v18229_v47 }
 0x1b2   : > { %13598 = vmatmul.mubr.msk.f32.gmra.mrb[8].mxu0 %vm791_vm2, %v17628_v48  ;;  %12726 = vmatprep.mubr.msk.f32.mxu1 %vm791_vm2, %v18236_v6  ;;  %v18257_v48 = vld [vmem:[%s15642_s9 + $0x300] sm:$0xff] }
 0x1b3   : > { %13600 = vmatprep.mubr.msk.f32.mxu0 %vm791_vm2, %v17635_v51  ;;  %v18278_v51 = vld [vmem:[%s15642_s9 + $0x320] sm:$0xff] }
 0x1b5   : > { %12727 = vmatmul.mubr.msk.f32.gmra.mrb[74].mxu1 %vm791_vm2, %v18243_v46 }
 0x1b6   : > { %13601 = vmatmul.mubr.msk.f32.gmra.mrb[10].mxu0 %vm791_vm2, %v17650_v49  ;;  %12729 = vmatprep.mubr.msk.f32.mxu1 %vm791_vm2, %v18250_v22  ;;  %v18264_v49 = vld [vmem:[%s15642_s9 + $0x308] sm:$0xff] }
 0x1b7   : > { %13603 = vmatprep.mubr.msk.f32.mxu0 %vm791_vm2, %v17657_v40  ;;  %v18271_v40 = vld [vmem:[%s15642_s9 + $0x310] sm:$0xff] }
 0x1b9   : > { %12730 = vmatmul.mubr.msk.f32.gmra.mrb[76].mxu1 %vm791_vm2, %v18257_v48 }
 0x1ba   : > { %13604 = vmatmul.mubr.msk.f32.gmra.mrb[12].mxu0 %vm791_vm2, %v17673_v8  ;;  %12732 = vmatprep.mubr.msk.f32.mxu1 %vm791_vm2, %v18264_v49  ;;  %v18285_v8 = vld [vmem:[%s15642_s9 + $0x328] sm:$0xff] }
 0x1bb   : > { %13606 = vmatprep.mubr.msk.f32.mxu0 %vm791_vm2, %v17680_v60  ;;  %v18306_v60 = vld [vmem:[%s15642_s9 + $0x348] sm:$0xff] }
 0x1bd   : > { %12733 = vmatmul.mubr.msk.f32.gmra.mrb[78].mxu1 %vm791_vm2, %v18271_v40 }
 0x1be   : > { %13607 = vmatmul.mubr.msk.f32.gmra.mrb[14].mxu0 %vm791_vm2, %v17695_v42  ;;  %12735 = vmatprep.mubr.msk.f32.mxu1 %vm791_vm2, %v18278_v51  ;;  %v18292_v42 = vld [vmem:[%s15642_s9 + $0x330] sm:$0xff] }
 0x1bf   : > { %13609 = vmatprep.mubr.msk.f32.mxu0 %vm791_vm2, %v17702_v53  ;;  %v18299_v53 = vld [vmem:[%s15642_s9 + $0x338] sm:$0xff] }
 0x1c1   : > { %12736 = vmatmul.mubr.msk.f32.gmra.mrb[80].mxu1 %vm791_vm2, %v18285_v8 }
 0x1c2   : > { %13610 = vmatmul.mubr.msk.f32.gmra.mrb[16].mxu0 %vm791_vm2, %v17718_v5  ;;  %12738 = vmatprep.mubr.msk.f32.mxu1 %vm791_vm2, %v18292_v42  ;;  %v18313_v5 = vld [vmem:[%s15642_s9 + $0x350] sm:$0xff] }
 0x1c3   : > { %13612 = vmatprep.mubr.msk.f32.mxu0 %vm791_vm2, %v17725_v56  ;;  %v18341_v56 = vld [vmem:[%s15642_s9 + $0x378] sm:$0xff] }
 0x1c5   : > { %12739 = vmatmul.mubr.msk.f32.gmra.mrb[82].mxu1 %vm791_vm2, %v18299_v53 }
 0x1c6   : > { %13613 = vmatmul.mubr.msk.f32.gmra.mrb[18].mxu0 %vm791_vm2, %v17740_v16  ;;  %12741 = vmatprep.mubr.msk.f32.mxu1 %vm791_vm2, %v18306_v60  ;;  %v18320_v16 = vld [vmem:[%s15642_s9 + $0x358] sm:$0xff] }
 0x1c7   : > { %13615 = vmatprep.mubr.msk.f32.mxu0 %vm791_vm2, %v17747_v41  ;;  %v18327_v41 = vld [vmem:[%s15642_s9 + $0x360] sm:$0xff] }
 0x1c9   : > { %12742 = vmatmul.mubr.msk.f32.gmra.mrb[84].mxu1 %vm791_vm2, %v18313_v5 }
 0x1ca   : > { %13616 = vmatmul.mubr.msk.f32.gmra.mrb[20].mxu0 %vm791_vm2, %v17763_v37  ;;  %12744 = vmatprep.mubr.msk.f32.mxu1 %vm791_vm2, %v18320_v16  ;;  %v18334_v37 = vld [vmem:[%s15642_s9 + $0x370] sm:$0xff] }
 0x1cb   : > { %13618 = vmatprep.mubr.msk.f32.mxu0 %vm791_vm2, %v17770_v24  ;;  %v18369_v24 = vld [vmem:[%s15642_s9 + $0x3a0] sm:$0xff] }
 0x1cd   : > { %12745 = vmatmul.mubr.msk.f32.gmra.mrb[86].mxu1 %vm791_vm2, %v18327_v41 }
 0x1ce   : > { %13619 = vmatmul.mubr.msk.f32.gmra.mrb[22].mxu0 %vm791_vm2, %v17785_v17  ;;  %12747 = vmatprep.mubr.msk.f32.mxu1 %vm791_vm2, %v18334_v37  ;;  %v18348_v17 = vld [vmem:[%s15642_s9 + $0x380] sm:$0xff] }
 0x1cf   : > { %13621 = vmatprep.mubr.msk.f32.mxu0 %vm791_vm2, %v17792_v19  ;;  %v18355_v19 = vld [vmem:[%s15642_s9 + $0x388] sm:$0xff] }
 0x1d1   : > { %12748 = vmatmul.mubr.msk.f32.gmra.mrb[88].mxu1 %vm791_vm2, %v18341_v56 }
 0x1d2   : > { %13622 = vmatmul.mubr.msk.f32.gmra.mrb[24].mxu0 %vm791_vm2, %v17808_v9  ;;  %12750 = vmatprep.mubr.msk.f32.mxu1 %vm791_vm2, %v18348_v17  ;;  %v18362_v9 = vld [vmem:[%s15642_s9 + $0x398] sm:$0xff] }
 0x1d3   : > { %13624 = vmatprep.mubr.msk.f32.mxu0 %vm791_vm2, %v17815_v34  ;;  %v18397_v34 = vld [vmem:[%s15642_s9 + $0x3c8] sm:$0xff] }
 0x1d5   : > { %12751 = vmatmul.mubr.msk.f32.gmra.mrb[90].mxu1 %vm791_vm2, %v18355_v19 }
 0x1d6   : > { %13625 = vmatmul.mubr.msk.f32.gmra.mrb[26].mxu0 %vm791_vm2, %v17830_v28  ;;  %12753 = vmatprep.mubr.msk.f32.mxu1 %vm791_vm2, %v18362_v9  ;;  %v18376_v28 = vld [vmem:[%s15642_s9 + $0x3a8] sm:$0xff] }
 0x1d7   : > { %13627 = vmatprep.mubr.msk.f32.mxu0 %vm791_vm2, %v17837_v26  ;;  %v18383_v26 = vld [vmem:[%s15642_s9 + $0x3b0] sm:$0xff] }
 0x1d9   : > { %12754 = vmatmul.mubr.msk.f32.gmra.mrb[92].mxu1 %vm791_vm2, %v18369_v24 }
 0x1da   : > { %13628 = vmatmul.mubr.msk.f32.gmra.mrb[28].mxu0 %vm791_vm2, %v17853_v20  ;;  %12756 = vmatprep.mubr.msk.f32.mxu1 %vm791_vm2, %v18376_v28  ;;  %v18390_v20 = vld [vmem:[%s15642_s9 + $0x3c0] sm:$0xff] }
 0x1db   : > { %13630 = vmatprep.mubr.msk.f32.mxu0 %vm791_vm2, %v17860_v43  ;;  %v18425_v43 = vld [vmem:[%s15642_s9 + $0x3f0] sm:$0xff] }
 0x1dd   : > { %12757 = vmatmul.mubr.msk.f32.gmra.mrb[94].mxu1 %vm791_vm2, %v18383_v26 }
 0x1de   : > { %13631 = vmatmul.mubr.msk.f32.gmra.mrb[30].mxu0 %vm791_vm2, %v17875_v44  ;;  %12759 = vmatprep.mubr.msk.f32.mxu1 %vm791_vm2, %v18390_v20  ;;  %v18404_v44 = vld [vmem:[%s15642_s9 + $0x3d0] sm:$0xff] }
 0x1df   : > { %13633 = vmatprep.mubr.msk.f32.mxu0 %vm791_vm2, %v17882_v45  ;;  %v18411_v45 = vld [vmem:[%s15642_s9 + $0x3d8] sm:$0xff] }
 0x1e1   : > { %12760 = vmatmul.mubr.msk.f32.gmra.mrb[96].mxu1 %vm791_vm2, %v18397_v34 }
 0x1e2   : > { %13634 = vmatmul.mubr.msk.f32.gmra.mrb[32].mxu0 %vm791_vm2, %v17898_v1  ;;  %12762 = vmatprep.mubr.msk.f32.mxu1 %vm791_vm2, %v18404_v44  ;;  %v18418_v1 = vld [vmem:[%s15642_s9 + $0x3e8] sm:$0xff] }
 0x1e3   : > { %13636 = vmatprep.mubr.msk.f32.mxu0 %vm791_vm2, %v17905_v27  ;;  %v18453_v27 = vld [vmem:[%s15642_s9 + $0x418] sm:$0xff] }
 0x1e5   : > { %12763 = vmatmul.mubr.msk.f32.gmra.mrb[98].mxu1 %vm791_vm2, %v18411_v45 }
 0x1e6   : > { %13637 = vmatmul.mubr.msk.f32.gmra.mrb[34].mxu0 %vm791_vm2, %v17920_v39  ;;  %12765 = vmatprep.mubr.msk.f32.mxu1 %vm791_vm2, %v18418_v1  ;;  %v18432_v39 = vld [vmem:[%s15642_s9 + $0x3f8] sm:$0xff] }
 0x1e7   : > { %13639 = vmatprep.mubr.msk.f32.mxu0 %vm791_vm2, %v17927_v50  ;;  %v18439_v50 = vld [vmem:[%s15642_s9 + $0x400] sm:$0xff] }
 0x1e9   : > { %12766 = vmatmul.mubr.msk.f32.gmra.mrb[100].mxu1 %vm791_vm2, %v18425_v43 }
 0x1ea   : > { %13640 = vmatmul.mubr.msk.f32.gmra.mrb[36].mxu0 %vm791_vm2, %v17943_v25  ;;  %12768 = vmatprep.mubr.msk.f32.mxu1 %vm791_vm2, %v18432_v39  ;;  %v18446_v25 = vld [vmem:[%s15642_s9 + $0x410] sm:$0xff] }
 0x1eb   : > { %13642 = vmatprep.mubr.msk.f32.mxu0 %vm791_vm2, %v17950_v11  ;;  %v18481_v11 = vld [vmem:[%s15642_s9 + $0x440] sm:$0xff] }
 0x1ed   : > { %12769 = vmatmul.mubr.msk.f32.gmra.mrb[102].mxu1 %vm791_vm2, %v18439_v50 }
 0x1ee   : > { %13643 = vmatmul.mubr.msk.f32.gmra.mrb[38].mxu0 %vm791_vm2, %v17965_v2  ;;  %12771 = vmatprep.mubr.msk.f32.mxu1 %vm791_vm2, %v18446_v25  ;;  %v18460_v2 = vld [vmem:[%s15642_s9 + $0x420] sm:$0xff] }
 0x1ef   : > { %13645 = vmatprep.mubr.msk.f32.mxu0 %vm791_vm2, %v17972_v21  ;;  %v18467_v21 = vld [vmem:[%s15642_s9 + $0x428] sm:$0xff] }
 0x1f1   : > { %12772 = vmatmul.mubr.msk.f32.gmra.mrb[104].mxu1 %vm791_vm2, %v18453_v27 }
 0x1f2   : > { %13646 = vmatmul.mubr.msk.f32.gmra.mrb[40].mxu0 %vm791_vm2, %v17988_v57  ;;  %12774 = vmatprep.mubr.msk.f32.mxu1 %vm791_vm2, %v18460_v2  ;;  %v18474_v57 = vld [vmem:[%s15642_s9 + $0x438] sm:$0xff] }
 0x1f3   : > { %13648 = vmatprep.mubr.msk.f32.mxu0 %vm791_vm2, %v17995_v54  ;;  %v18488_v54 = vld [vmem:[%s15642_s9 + $0x448] sm:$0xff] }
 0x1f5   : > { %12775 = vmatmul.mubr.msk.f32.gmra.mrb[106].mxu1 %vm791_vm2, %v18467_v21 }
 0x1f6   : > { %13649 = vmatmul.mubr.msk.f32.gmra.mrb[42].mxu0 %vm791_vm2, %v18010_v23  ;;  %12777 = vmatprep.mubr.msk.f32.mxu1 %vm791_vm2, %v18474_v57  ;;  %v18495_v23 = vld [vmem:[%s15642_s9 + $0x450] sm:$0xff] }
 0x1f7   : > { %13651 = vmatprep.mubr.msk.f32.mxu0 %vm791_vm2, %v18017_v33  ;;  %v18502_v33 = vld [vmem:[%s15642_s9 + $0x460] sm:$0xff] }
 0x1f9   : > { %12778 = vmatmul.mubr.msk.f32.gmra.mrb[108].mxu1 %vm791_vm2, %v18481_v11 }
 0x1fa   : > { %13652 = vmatmul.mubr.msk.f32.gmra.mrb[44].mxu0 %vm791_vm2, %v18033_v3  ;;  %12780 = vmatprep.mubr.msk.f32.mxu1 %vm791_vm2, %v18488_v54  ;;  %v18509_v3 = vld [vmem:[%s15642_s9 + $0x468] sm:$0xff] }
 0x1fb   : > { %13654 = vmatprep.mubr.msk.f32.mxu0 %vm791_vm2, %v18040_v4  ;;  %v21308_v4 = vld [vmem:[#allocation268_spill] sm:$0xff] }
 0x1fd   : > { %12781 = vmatmul.mubr.msk.f32.gmra.mrb[110].mxu1 %vm791_vm2, %v18495_v23 }
 0x1fe   : > { %13655 = vmatmul.mubr.msk.f32.gmra.mrb[46].mxu0 %vm791_vm2, %v18055_v58  ;;  %12783 = vmatprep.mubr.msk.f32.mxu1 %vm791_vm2, %v18502_v33  ;;  %v21309_v58 = vld [vmem:[#allocation61_spill] sm:$0xff] }
 0x1ff   : > { %13657 = vmatprep.mubr.msk.f32.mxu0 %vm791_vm2, %v18068_v59  ;;  %v21310_v59 = vld [vmem:[#allocation66_spill] sm:$0xff] }
 0x201   : > { %12784 = vmatmul.mubr.msk.f32.gmra.mrb[112].mxu1 %vm791_vm2, %v18509_v3 }
 0x202   : > { %13658 = vmatmul.mubr.msk.f32.gmra.mrb[48].mxu0 %vm791_vm2, %v21308_v4  ;;  %12786 = vmatprep.mubr.msk.f32.mxu1 %vm791_vm2, %v18516_v0  ;;  %v21311_v4 = vld [vmem:[#allocation194_spill] sm:$0xff] }
 0x203   : > { %13660 = vmatprep.mubr.msk.f32.mxu0 %vm791_vm2, %v18097_v38  ;;  %v21313_v38 = vld [vmem:[#allocation70_spill] sm:$0xff] }
 0x205   : > { %12787 = vmatmul.mubr.msk.f32.gmra.mrb[114].mxu1 %vm791_vm2, %v21309_v58 }
 0x206   : > { %13661 = vmatmul.mubr.msk.f32.gmra.mrb[50].mxu0 %vm791_vm2, %v18113_v63  ;;  %12789 = vmatprep.mubr.msk.f32.mxu1 %vm791_vm2, %v21310_v59  ;;  %v21314_v63 = vld [vmem:[#allocation75_spill] sm:$0xff]  ;;  %v21321_v59 = vld [vmem:[#allocation210_spill] sm:$0xff] }
 0x207   : > { %13663 = vmatprep.mubr.msk.f32.mxu0 %vm791_vm2, %v18120_v18  ;;  %v21315_v18 = vld [vmem:[#allocation202_spill] sm:$0xff] }
 0x209   : > { %12790 = vmatmul.mubr.msk.f32.gmra.mrb[116].mxu1 %vm791_vm2, %v21311_v4 }
 0x20a   : > { %13664 = vmatmul.mubr.msk.f32.gmra.mrb[52].mxu0 %vm791_vm2, %v18133_v52  ;;  %12792 = vmatprep.mubr.msk.f32.mxu1 %vm791_vm2, %v21312_v7  ;;  %v21316_v52 = vld [vmem:[#allocation78_spill] sm:$0xff]  ;;  %v21318_v7 = vld [vmem:[#allocation84_spill] sm:$0xff] }
 0x20b   : > { %13666 = vmatprep.mubr.msk.f32.mxu0 %vm791_vm2, %v18140_v29  ;;  %v21317_v29 = vld [vmem:[#allocation79_spill] sm:$0xff] }
 0x20d   : > { %12793 = vmatmul.mubr.msk.f32.gmra.mrb[118].mxu1 %vm791_vm2, %v21313_v38  ;;  %v21324_v38 = vld [vmem:[#allocation232_spill] sm:$0xff] }
 0x20e   : > { %13667 = vmatmul.mubr.msk.f32.gmra.mrb[54].mxu0 %vm791_vm2, %v18150_v10  ;;  %12795 = vmatprep.mubr.msk.f32.mxu1 %vm791_vm2, %v21314_v63  ;;  %v21319_v10 = vld [vmem:[#allocation226_spill] sm:$0xff]  ;;  %v2727_v63 = vrot.slane %v21324_v38, 2  ;;  %v18812_v38 = vld [vmem:[%s15642_s9 + $0x4b8] sm:$0xff] }
 0x20f   : > { %13669 = vmatprep.mubr.msk.f32.mxu0 %vm791_vm2, %v18157_v32  ;;  %v2722_v32 = vrot.slane %v21319_v10, 2  ;;  %v21329_v10 = vld [vmem:[#allocation100_spill] sm:$0xff]  ;;  %21377 = vst [vmem:[#allocation70_spill] sm:$0xff] %v18812_v38  ;;  %21389 = vst [vmem:[#allocation226_spill] sm:$0xff] %v18854_v55 }
 0x211   : > { %12796 = vmatmul.mubr.msk.f32.gmra.mrb[120].mxu1 %vm791_vm2, %v21315_v18  ;;  %v21325_v18 = vld [vmem:[#allocation87_spill] sm:$0xff] }
 0x212   : > { %13670 = vmatmul.mubr.msk.f32.gmra.mrb[56].mxu0 %vm791_vm2, %v18171_v36  ;;  %12798 = vmatprep.mubr.msk.f32.mxu1 %vm791_vm2, %v21316_v52  ;;  %v21320_v36 = vld [vmem:[#allocation229_spill] sm:$0xff]  ;;  %v15348_v52 = vld [vmem:[%s15642_s9 + $0x20] sm:$0x3] }
 0x213   : > { %13672 = vmatprep.mubr.msk.f32.mxu0 %vm791_vm2, %v18178_v14  ;;  %v2723_v58 = vrot.slane %v21320_v36, 2  ;;  %v21322_v14 = vld [vmem:[#allocation97_spill] sm:$0xff]  ;;  %v21370_v36 = vld [vmem:[#allocation182_spill] sm:$0xff] }
 0x214   : > { %v2725_v4 = vrot.slane %v21322_v14, 2  ;;  %v18798_v14 = vld [vmem:[%s15642_s9 + $0x4a0] sm:$0xff] }
 0x215   : > { %12799 = vmatmul.mubr.msk.f32.gmra.mrb[122].mxu1 %vm791_vm2, %v21317_v29  ;;  %v2729_v29 = vrot.slane %v15348_v52, 2  ;;  %21373 = vst [vmem:[#allocation194_spill] sm:$0xff] %v18798_v14  ;;  %v18826_v52 = vld [vmem:[%s15642_s9 + $0x4c8] sm:$0xff] }
 0x216   : > { %13673 = vmatmul.mubr.msk.f32.gmra.mrb[58].mxu0 %vm791_vm2, %v18187_v12  ;;  %12801 = vmatprep.mubr.msk.f32.mxu1 %vm791_vm2, %v21318_v7  ;;  %v21323_v12 = vld [vmem:[#allocation214_spill] sm:$0xff]  ;;  %v2728_v7 = vsel %vm2721_vm3, %v2725_v4, %v2727_v63  ;;  %21381 = vst [vmem:[#allocation202_spill] sm:$0xff] %v18826_v52 }
 0x217   : > { %13675 = vmatprep.mubr.msk.f32.mxu0 %vm791_vm2, %v18194_v35  ;;  %v2724_v35 = vsel %vm2721_vm3, %v2722_v32, %v2723_v58  ;;  %v21368_v32 = vld [vmem:[#allocation180_spill] sm:$0xff] }
 0x219   : > { %12802 = vmatmul.mubr.msk.f32.gmra.mrb[124].mxu1 %vm791_vm2, %v21321_v59  ;;  %v21372_v59 = vld [vmem:[#allocation56_spill] sm:$0xff] }
 0x21a   : > { %13676 = vmatmul.mubr.msk.f32.gmra.mrb[60].mxu0 %vm791_vm2, %v18201_v15  ;;  %12804 = vmatprep.mubr.msk.f32.mxu1 %vm791_vm2, %v21323_v12  ;;  %v2726_v15 = vsel %vm2721_vm3, %v2723_v58, %v2725_v4  ;;  %v18791_v58 = vld [vmem:[%s15642_s9 + $0x498] sm:$0xff]  ;;  %v18805_v12 = vld [vmem:[%s15642_s9 + $0x4b0] sm:$0xff] }
 0x21b   : > { %13678 = vmatprep.mubr.msk.f32.mxu0 %vm791_vm2, %v18208_v13  ;;  %v18587_v13 = vld [vmem:[%s20395_s1 + $0x20] sm:$0x7]  ;;  %21371 = vst [vmem:[#allocation66_spill] sm:$0xff] %v18791_v58  ;;  %v21374_v4 = vld [vmem:[#allocation185_spill] sm:$0xff]  ;;  %21375 = vst [vmem:[#allocation69_spill] sm:$0xff] %v18805_v12 }
 0x21c   : > { %13971 = vmatprep.subr.msk.mxu0 %vm1048_vm0, %v18587_v13 }
 0x21d   : > { %12805 = vmatmul.mubr.msk.f32.gmra.mrb[126].mxu1 %vm791_vm2, %v21325_v18  ;;  %v18819_v18 = vld [vmem:[%s15642_s9 + $0x4c0] sm:$0xff] }
 0x21e   : > { %13679 = vmatmul.mubr.msk.f32.gmra.mrb[62].mxu0 %vm791_vm2, %v18215_v31  ;;  %12809 = vmatprep.mubr.msk.f32.mxu1 %vm791_vm2, %v2724_v35  ;;  %v2730_v31 = vsel %vm2721_vm3, %v2727_v63, %v2729_v29  ;;  %v21376_v35 = vld [vmem:[#allocation188_spill] sm:$0xff]  ;;  %v21378_v63 = vld [vmem:[#allocation190_spill] sm:$0xff]  ;;  %21379 = vst [vmem:[#allocation75_spill] sm:$0xff] %v18819_v18  ;;  %v21382_v29 = vld [vmem:[#allocation193_spill] sm:$0xff] }
 0x21f   : > { %13681 = vmatprep.mubr.msk.f32.mxu0 %vm791_vm2, %v18222_v30  ;;  %v18604_v30 = vld [vmem:[%s20395_s1 + $0x10] sm:$0x7] }
 0x221   : > { %12810 = vmatmul.mubr.msk.f32.vlgmr.msra.gmra.mrb[0].mxu1 %vm791_vm2, %v2726_v15  ;;  %v21380_v15 = vld [vmem:[#allocation65_spill] sm:$0xff] }
 0x222   : > { %13002 = vmatpush3.msk.msra.mxu1 %vm1048_vm0, %v18164_v62  ;;  %13682 = vmatmul.mubr.msk.f32.gmra.mrb[64].mxu0 %vm791_vm2, %v18229_v47  ;;  %v21326_v62 = vld [vmem:[#allocation96_spill] sm:$0xff]  ;;  %v21327_v47 = vld [vmem:[#allocation98_spill] sm:$0xff] }
 0x223   : > { %12812 = vmatprep.mubr.msk.f32.mxu1 %vm791_vm2, %v2728_v7  ;;  %13684 = vmatprep.mubr.msk.f32.mxu0 %vm791_vm2, %v18236_v6  ;;  %v21328_v6 = vld [vmem:[#allocation99_spill] sm:$0xff]  ;;  %v18833_v7 = vld [vmem:[%s15642_s9 + $0x4d8] sm:$0xff] }
 0x224   : > { %14165 = vmatprep.subr.msk.mxu1 %vm1048_vm0, %v18604_v30  ;;  %21383 = vst [vmem:[#allocation78_spill] sm:$0xff] %v18833_v7 }
 0x225   : > { %12813 = vmatmul.mubr.msk.f32.gmra.mrb[2].mxu1 %vm791_vm2, %v2730_v31  ;;  %v21384_v31 = vld [vmem:[#allocation196_spill] sm:$0xff] }
 0x226   : > { %13685 = vmatmul.mubr.msk.f32.gmra.mrb[66].mxu0 %vm791_vm2, %v18243_v46  ;;  %12815 = vmatprep.mubr.msk.f32.mxu1 %vm791_vm2, %v21326_v62  ;;  %v21330_v46 = vld [vmem:[#allocation102_spill] sm:$0xff] }
 0x227   : > { %13687 = vmatprep.mubr.msk.f32.mxu0 %vm791_vm2, %v18250_v22  ;;  %v21331_v22 = vld [vmem:[#allocation104_spill] sm:$0xff]  ;;  %v18840_v62 = vld [vmem:[%s15642_s9 + $0x4e0] sm:$0xff] }
 0x228   : > { %21385 = vst [vmem:[#allocation79_spill] sm:$0xff] %v18840_v62 }
 0x229   : > { %12816 = vmatmul.mubr.msk.f32.gmra.mrb[4].mxu1 %vm791_vm2, %v21327_v47  ;;  %v21386_v47 = vld [vmem:[#allocation198_spill] sm:$0xff] }
 0x22a   : > { %13688 = vmatmul.mubr.msk.f32.gmra.mrb[68].mxu0 %vm791_vm2, %v18257_v48  ;;  %12818 = vmatprep.mubr.msk.f32.mxu1 %vm791_vm2, %v21328_v6  ;;  %v21332_v48 = vld [vmem:[#allocation106_spill] sm:$0xff]  ;;  %v18847_v6 = vld [vmem:[%s15642_s9 + $0x4e8] sm:$0xff] }
 0x22b   : > { %13690 = vmatprep.mubr.msk.f32.mxu0 %vm791_vm2, %v18264_v49  ;;  %v21333_v49 = vld [vmem:[#allocation108_spill] sm:$0xff]  ;;  %21387 = vst [vmem:[#allocation84_spill] sm:$0xff] %v18847_v6 }
 0x22d   : > { %12819 = vmatmul.mubr.msk.f32.gmra.mrb[6].mxu1 %vm791_vm2, %v21329_v10  ;;  %v21388_v10 = vld [vmem:[#allocation74_spill] sm:$0xff] }
 0x22e   : > { %13691 = vmatmul.mubr.msk.f32.gmra.mrb[70].mxu0 %vm791_vm2, %v18271_v40  ;;  %12821 = vmatprep.mubr.msk.f32.mxu1 %vm791_vm2, %v21330_v46  ;;  %v21334_v40 = vld [vmem:[#allocation110_spill] sm:$0xff] }
 0x22f   : > { %13693 = vmatprep.mubr.msk.f32.mxu0 %vm791_vm2, %v18278_v51  ;;  %v21335_v51 = vld [vmem:[#allocation112_spill] sm:$0xff] }
 0x231   : > { %12822 = vmatmul.mubr.msk.f32.gmra.mrb[8].mxu1 %vm791_vm2, %v21331_v22 }
 0x232   : > { %13694 = vmatmul.mubr.msk.f32.gmra.mrb[72].mxu0 %vm791_vm2, %v18285_v8  ;;  %12824 = vmatprep.mubr.msk.f32.mxu1 %vm791_vm2, %v21332_v48  ;;  %v21336_v8 = vld [vmem:[#allocation114_spill] sm:$0xff] }
 0x233   : > { %13696 = vmatprep.mubr.msk.f32.mxu0 %vm791_vm2, %v18292_v42  ;;  %v21337_v42 = vld [vmem:[#allocation116_spill] sm:$0xff] }
 0x235   : > { %12825 = vmatmul.mubr.msk.f32.gmra.mrb[10].mxu1 %vm791_vm2, %v21333_v49 }
 0x236   : > { %13697 = vmatmul.mubr.msk.f32.gmra.mrb[74].mxu0 %vm791_vm2, %v18299_v53  ;;  %12827 = vmatprep.mubr.msk.f32.mxu1 %vm791_vm2, %v21334_v40  ;;  %v21338_v53 = vld [vmem:[#allocation118_spill] sm:$0xff] }
 0x237   : > { %13699 = vmatprep.mubr.msk.f32.mxu0 %vm791_vm2, %v18306_v60  ;;  %v21339_v60 = vld [vmem:[#allocation120_spill] sm:$0xff] }
 0x239   : > { %12828 = vmatmul.mubr.msk.f32.gmra.mrb[12].mxu1 %vm791_vm2, %v21335_v51 }
 0x23a   : > { %13700 = vmatmul.mubr.msk.f32.gmra.mrb[76].mxu0 %vm791_vm2, %v18313_v5  ;;  %12830 = vmatprep.mubr.msk.f32.mxu1 %vm791_vm2, %v21336_v8  ;;  %v21340_v5 = vld [vmem:[#allocation122_spill] sm:$0xff] }
 0x23b   : > { %13702 = vmatprep.mubr.msk.f32.mxu0 %vm791_vm2, %v18320_v16  ;;  %v21341_v16 = vld [vmem:[#allocation124_spill] sm:$0xff] }
 0x23d   : > { %12831 = vmatmul.mubr.msk.f32.gmra.mrb[14].mxu1 %vm791_vm2, %v21337_v42 }
 0x23e   : > { %13703 = vmatmul.mubr.msk.f32.gmra.mrb[78].mxu0 %vm791_vm2, %v18327_v41  ;;  %12833 = vmatprep.mubr.msk.f32.mxu1 %vm791_vm2, %v21338_v53  ;;  %v21342_v41 = vld [vmem:[#allocation126_spill] sm:$0xff] }
 0x23f   : > { %13705 = vmatprep.mubr.msk.f32.mxu0 %vm791_vm2, %v18334_v37  ;;  %v21343_v37 = vld [vmem:[#allocation128_spill] sm:$0xff] }
 0x241   : > { %12834 = vmatmul.mubr.msk.f32.gmra.mrb[16].mxu1 %vm791_vm2, %v21339_v60 }
 0x242   : > { %13706 = vmatmul.mubr.msk.f32.gmra.mrb[80].mxu0 %vm791_vm2, %v18341_v56  ;;  %12836 = vmatprep.mubr.msk.f32.mxu1 %vm791_vm2, %v21340_v5  ;;  %v21344_v56 = vld [vmem:[#allocation130_spill] sm:$0xff] }
 0x243   : > { %13708 = vmatprep.mubr.msk.f32.mxu0 %vm791_vm2, %v18348_v17  ;;  %v21345_v17 = vld [vmem:[#allocation132_spill] sm:$0xff] }
 0x245   : > { %12837 = vmatmul.mubr.msk.f32.gmra.mrb[18].mxu1 %vm791_vm2, %v21341_v16 }
 0x246   : > { %13709 = vmatmul.mubr.msk.f32.gmra.mrb[82].mxu0 %vm791_vm2, %v18355_v19  ;;  %12839 = vmatprep.mubr.msk.f32.mxu1 %vm791_vm2, %v21342_v41  ;;  %v21346_v19 = vld [vmem:[#allocation134_spill] sm:$0xff] }
 0x247   : > { %13711 = vmatprep.mubr.msk.f32.mxu0 %vm791_vm2, %v18362_v9  ;;  %v21347_v9 = vld [vmem:[#allocation136_spill] sm:$0xff] }
 0x249   : > { %12840 = vmatmul.mubr.msk.f32.gmra.mrb[20].mxu1 %vm791_vm2, %v21343_v37 }
 0x24a   : > { %13712 = vmatmul.mubr.msk.f32.gmra.mrb[84].mxu0 %vm791_vm2, %v18369_v24  ;;  %12842 = vmatprep.mubr.msk.f32.mxu1 %vm791_vm2, %v21344_v56  ;;  %v21348_v24 = vld [vmem:[#allocation138_spill] sm:$0xff] }
 0x24b   : > { %13714 = vmatprep.mubr.msk.f32.mxu0 %vm791_vm2, %v18376_v28  ;;  %v21349_v28 = vld [vmem:[#allocation140_spill] sm:$0xff] }
 0x24d   : > { %12843 = vmatmul.mubr.msk.f32.gmra.mrb[22].mxu1 %vm791_vm2, %v21345_v17 }
 0x24e   : > { %13715 = vmatmul.mubr.msk.f32.gmra.mrb[86].mxu0 %vm791_vm2, %v18383_v26  ;;  %12845 = vmatprep.mubr.msk.f32.mxu1 %vm791_vm2, %v21346_v19  ;;  %v21350_v26 = vld [vmem:[#allocation142_spill] sm:$0xff] }
 0x24f   : > { %13717 = vmatprep.mubr.msk.f32.mxu0 %vm791_vm2, %v18390_v20  ;;  %v21351_v20 = vld [vmem:[#allocation144_spill] sm:$0xff] }
 0x251   : > { %12846 = vmatmul.mubr.msk.f32.gmra.mrb[24].mxu1 %vm791_vm2, %v21347_v9 }
 0x252   : > { %13718 = vmatmul.mubr.msk.f32.gmra.mrb[88].mxu0 %vm791_vm2, %v18397_v34  ;;  %12848 = vmatprep.mubr.msk.f32.mxu1 %vm791_vm2, %v21348_v24  ;;  %v21352_v34 = vld [vmem:[#allocation146_spill] sm:$0xff] }
 0x253   : > { %13720 = vmatprep.mubr.msk.f32.mxu0 %vm791_vm2, %v18404_v44  ;;  %v21353_v44 = vld [vmem:[#allocation148_spill] sm:$0xff] }
 0x255   : > { %12849 = vmatmul.mubr.msk.f32.gmra.mrb[26].mxu1 %vm791_vm2, %v21349_v28 }
 0x256   : > { %13721 = vmatmul.mubr.msk.f32.gmra.mrb[90].mxu0 %vm791_vm2, %v18411_v45  ;;  %12851 = vmatprep.mubr.msk.f32.mxu1 %vm791_vm2, %v21350_v26  ;;  %v21354_v45 = vld [vmem:[#allocation150_spill] sm:$0xff] }
 0x257   : > { %13723 = vmatprep.mubr.msk.f32.mxu0 %vm791_vm2, %v18418_v1  ;;  %v21355_v1 = vld [vmem:[#allocation152_spill] sm:$0xff] }
 0x259   : > { %12852 = vmatmul.mubr.msk.f32.gmra.mrb[28].mxu1 %vm791_vm2, %v21351_v20 }
 0x25a   : > { %13724 = vmatmul.mubr.msk.f32.gmra.mrb[92].mxu0 %vm791_vm2, %v18425_v43  ;;  %12854 = vmatprep.mubr.msk.f32.mxu1 %vm791_vm2, %v21352_v34  ;;  %v21356_v43 = vld [vmem:[#allocation154_spill] sm:$0xff] }
 0x25b   : > { %13726 = vmatprep.mubr.msk.f32.mxu0 %vm791_vm2, %v18432_v39  ;;  %v21357_v39 = vld [vmem:[#allocation156_spill] sm:$0xff] }
 0x25d   : > { %12855 = vmatmul.mubr.msk.f32.gmra.mrb[30].mxu1 %vm791_vm2, %v21353_v44 }
 0x25e   : > { %13727 = vmatmul.mubr.msk.f32.gmra.mrb[94].mxu0 %vm791_vm2, %v18439_v50  ;;  %12857 = vmatprep.mubr.msk.f32.mxu1 %vm791_vm2, %v21354_v45  ;;  %v21358_v50 = vld [vmem:[#allocation158_spill] sm:$0xff] }
 0x25f   : > { %13729 = vmatprep.mubr.msk.f32.mxu0 %vm791_vm2, %v18446_v25  ;;  %v21359_v25 = vld [vmem:[#allocation162_spill] sm:$0xff] }
 0x261   : > { %12858 = vmatmul.mubr.msk.f32.gmra.mrb[32].mxu1 %vm791_vm2, %v21355_v1 }
 0x262   : > { %13730 = vmatmul.mubr.msk.f32.gmra.mrb[96].mxu0 %vm791_vm2, %v18453_v27  ;;  %12860 = vmatprep.mubr.msk.f32.mxu1 %vm791_vm2, %v21356_v43  ;;  %v21360_v27 = vld [vmem:[#allocation165_spill] sm:$0xff] }
 0x263   : > { %13732 = vmatprep.mubr.msk.f32.mxu0 %vm791_vm2, %v18460_v2  ;;  %v21361_v2 = vld [vmem:[#allocation38_spill] sm:$0xff] }
 0x265   : > { %12861 = vmatmul.mubr.msk.f32.gmra.mrb[34].mxu1 %vm791_vm2, %v21357_v39 }
 0x266   : > { %13733 = vmatmul.mubr.msk.f32.gmra.mrb[98].mxu0 %vm791_vm2, %v18467_v21  ;;  %12863 = vmatprep.mubr.msk.f32.mxu1 %vm791_vm2, %v21358_v50  ;;  %v21362_v21 = vld [vmem:[#allocation169_spill] sm:$0xff] }
 0x267   : > { %13735 = vmatprep.mubr.msk.f32.mxu0 %vm791_vm2, %v18474_v57  ;;  %v21363_v57 = vld [vmem:[#allocation172_spill] sm:$0xff] }
 0x269   : > { %12864 = vmatmul.mubr.msk.f32.gmra.mrb[36].mxu1 %vm791_vm2, %v21359_v25 }
 0x26a   : > { %13736 = vmatmul.mubr.msk.f32.gmra.mrb[100].mxu0 %vm791_vm2, %v18481_v11  ;;  %12866 = vmatprep.mubr.msk.f32.mxu1 %vm791_vm2, %v21360_v27  ;;  %v21364_v11 = vld [vmem:[#allocation174_spill] sm:$0xff] }
 0x26b   : > { %13738 = vmatprep.mubr.msk.f32.mxu0 %vm791_vm2, %v18488_v54  ;;  %v21365_v54 = vld [vmem:[#allocation47_spill] sm:$0xff] }
 0x26d   : > { %12867 = vmatmul.mubr.msk.f32.gmra.mrb[38].mxu1 %vm791_vm2, %v21361_v2 }
 0x26e   : > { %13739 = vmatmul.mubr.msk.f32.gmra.mrb[102].mxu0 %vm791_vm2, %v18495_v23  ;;  %12869 = vmatprep.mubr.msk.f32.mxu1 %vm791_vm2, %v21362_v21  ;;  %v18770_v23 = vld [vmem:[%s15642_s9 + $0x478] sm:$0xff] }
 0x26f   : > { %13741 = vmatprep.mubr.msk.f32.mxu0 %vm791_vm2, %v18502_v33  ;;  %v21366_v33 = vld [vmem:[#allocation177_spill] sm:$0xff] }
 0x271   : > { %12870 = vmatmul.mubr.msk.f32.gmra.mrb[40].mxu1 %vm791_vm2, %v21363_v57 }
 0x272   : > { %13742 = vmatmul.mubr.msk.f32.gmra.mrb[104].mxu0 %vm791_vm2, %v18509_v3  ;;  %12872 = vmatprep.mubr.msk.f32.mxu1 %vm791_vm2, %v21364_v11  ;;  %v18777_v3 = vld [vmem:[%s15642_s9 + $0x488] sm:$0xff] }
 0x273   : > { %13744 = vmatprep.mubr.msk.f32.mxu0 %vm791_vm2, %v18516_v0  ;;  %21367 = vst [vmem:[#allocation268_spill] sm:$0xff] %v18777_v3  ;;  %v18784_v0 = vld [vmem:[%s15642_s9 + $0x490] sm:$0xff] }
 0x274   : > { %21369 = vst [vmem:[#allocation61_spill] sm:$0xff] %v18784_v0 }
 0x275   : > { %12873 = vmatmul.mubr.msk.f32.gmra.mrb[42].mxu1 %vm791_vm2, %v21365_v54 }
 0x276   : > { %13745 = vmatmul.mubr.msk.f32.gmra.mrb[106].mxu0 %vm791_vm2, %v18770_v23  ;;  %12875 = vmatprep.mubr.msk.f32.mxu1 %vm791_vm2, %v21366_v33 }
 0x277   : > { %13747 = vmatprep.mubr.msk.f32.mxu0 %vm791_vm2, %v18777_v3 }
 0x279   : > { %12876 = vmatmul.mubr.msk.f32.gmra.mrb[44].mxu1 %vm791_vm2, %v21368_v32 }
 0x27a   : > { %13748 = vmatmul.mubr.msk.f32.gmra.mrb[108].mxu0 %vm791_vm2, %v18784_v0  ;;  %12878 = vmatprep.mubr.msk.f32.mxu1 %vm791_vm2, %v21370_v36  ;;  %v21407_v0 = vld [vmem:[#allocation224_spill] sm:$0xff] }
 0x27b   : > { %13750 = vmatprep.mubr.msk.f32.mxu0 %vm791_vm2, %v18791_v58  ;;  %v21403_v58 = vld [vmem:[#allocation220_spill] sm:$0xff] }
 0x27d   : > { %12879 = vmatmul.mubr.msk.f32.gmra.mrb[46].mxu1 %vm791_vm2, %v21372_v59 }
 0x27e   : > { %13751 = vmatmul.mubr.msk.f32.gmra.mrb[110].mxu0 %vm791_vm2, %v18798_v14  ;;  %12881 = vmatprep.mubr.msk.f32.mxu1 %vm791_vm2, %v21374_v4  ;;  %v18885_v14 = vld [vmem:[%s15642_s9 + $0x538] sm:$0xff] }
 0x27f   : > { %13753 = vmatprep.mubr.msk.f32.mxu0 %vm791_vm2, %v18805_v12  ;;  %v21396_v12 = vld [vmem:[#allocation269_spill] sm:$0xff] }
 0x281   : > { %12882 = vmatmul.mubr.msk.f32.gmra.mrb[48].mxu1 %vm791_vm2, %v21376_v35 }
 0x282   : > { %13754 = vmatmul.mubr.msk.f32.gmra.mrb[112].mxu0 %vm791_vm2, %v18812_v38  ;;  %12884 = vmatprep.mubr.msk.f32.mxu1 %vm791_vm2, %v21378_v63  ;;  %v21395_v38 = vld [vmem:[#allocation83_spill] sm:$0xff] }
 0x283   : > { %13756 = vmatprep.mubr.msk.f32.mxu0 %vm791_vm2, %v18819_v18  ;;  %v21394_v18 = vld [vmem:[#allocation206_spill] sm:$0xff] }
 0x285   : > { %12885 = vmatmul.mubr.msk.f32.gmra.mrb[50].mxu1 %vm791_vm2, %v21380_v15 }
 0x286   : > { %13757 = vmatmul.mubr.msk.f32.gmra.mrb[114].mxu0 %vm791_vm2, %v18826_v52  ;;  %12887 = vmatprep.mubr.msk.f32.mxu1 %vm791_vm2, %v21382_v29  ;;  %v21392_v52 = vld [vmem:[#allocation204_spill] sm:$0xff] }
 0x287   : > { %13759 = vmatprep.mubr.msk.f32.mxu0 %vm791_vm2, %v18833_v7  ;;  %v21390_v7 = vld [vmem:[#allocation201_spill] sm:$0xff] }
 0x289   : > { %12888 = vmatmul.mubr.msk.f32.gmra.mrb[52].mxu1 %vm791_vm2, %v21384_v31 }
 0x28a   : > { %13760 = vmatmul.mubr.msk.f32.gmra.mrb[116].mxu0 %vm791_vm2, %v18840_v62  ;;  %12890 = vmatprep.mubr.msk.f32.mxu1 %vm791_vm2, %v21386_v47  ;;  %v21391_v62 = vld [vmem:[#allocation264_spill] sm:$0xff] }
 0x28b   : > { %13762 = vmatprep.mubr.msk.f32.mxu0 %vm791_vm2, %v18847_v6  ;;  %v21393_v6 = vld [vmem:[#allocation265_spill] sm:$0xff] }
 0x28d   : > { %12891 = vmatmul.mubr.msk.f32.gmra.mrb[54].mxu1 %vm791_vm2, %v21388_v10  ;;  %v15425_v10 = vld [vmem:[%s15642_s9 + $0x260] sm:$0xff] }
 0x28e   : > { %13763 = vmatmul.mubr.msk.f32.gmra.mrb[118].mxu0 %vm791_vm2, %v18854_v55  ;;  %12893 = vmatprep.mubr.msk.f32.mxu1 %vm791_vm2, %v21390_v7  ;;  %v18871_v55 = vld [vmem:[%s15642_s9 + $0x528] sm:$0xff]  ;;  %v19398_v7 = vld [vmem:[%s15642_s9 + $0x518] sm:$0xff] }
 0x28f   : > { %13765 = vmatprep.mubr.msk.f32.mxu0 %vm791_vm2, %v21391_v62  ;;  %v21397_v62 = vld [vmem:[#allocation209_spill] sm:$0xff]  ;;  %21587 = vst [vmem:[#allocation214_spill] sm:$0xff] %v19398_v7  ;;  %v7516_v3 = vrot.slane %v18871_v55, 1 }
 0x291   : > { %12894 = vmatmul.mubr.msk.f32.gmra.mrb[56].mxu1 %vm791_vm2, %v21392_v52  ;;  %v21405_v52 = vld [vmem:[#allocation222_spill] sm:$0xff] }
 0x292   : > { %13766 = vmatmul.mubr.msk.f32.gmra.mrb[120].mxu0 %vm791_vm2, %v21393_v6  ;;  %12896 = vmatprep.mubr.msk.f32.mxu1 %vm791_vm2, %v21394_v18  ;;  %v18882_v6 = vld [vmem:[%s15642_s9 + $0x530] sm:$0xff] }
 0x293   : > { %13768 = vmatprep.mubr.msk.f32.mxu0 %vm791_vm2, %v18084_v61  ;;  %v21398_v18 = vld [vmem:[#allocation212_spill] sm:$0xff]  ;;  %v21399_v61 = vld [vmem:[#allocation215_spill] sm:$0xff] }
 0x295   : > { %12897 = vmatmul.mubr.msk.f32.gmra.mrb[58].mxu1 %vm791_vm2, %v21395_v38  ;;  %v21401_v38 = vld [vmem:[#allocation218_spill] sm:$0xff] }
 0x296   : > { %13769 = vmatmul.mubr.msk.f32.gmra.mrb[122].mxu0 %vm791_vm2, %v21396_v12  ;;  %12899 = vmatprep.mubr.msk.f32.mxu1 %vm791_vm2, %v21397_v62  ;;  %v18896_v12 = vld [vmem:[%s15642_s9 + $0x540] sm:$0xff]  ;;  %v21400_v62 = vld [vmem:[#allocation216_spill] sm:$0xff] }
 0x297   : > { %13771 = vmatprep.mubr.msk.f32.mxu0 %vm791_vm2, %v18871_v55 }
 0x299   : > { %12900 = vmatmul.mubr.msk.f32.gmra.mrb[60].mxu1 %vm791_vm2, %v21398_v18  ;;  %v21402_v18 = vld [vmem:[#allocation6_spill] sm:$0xff] }
 0x29a   : > { %13772 = vmatmul.mubr.msk.f32.gmra.mrb[124].mxu0 %vm791_vm2, %v18882_v6  ;;  %12902 = vmatprep.mubr.msk.f32.mxu1 %vm791_vm2, %v21399_v61  ;;  %v21404_v61 = vld [vmem:[#allocation7_spill] sm:$0xff] }
 0x29b   : > { %13774 = vmatprep.mubr.msk.f32.mxu0 %vm791_vm2, %v18885_v14 }
 0x29d   : > { %12903 = vmatmul.mubr.msk.f32.gmra.mrb[62].mxu1 %vm791_vm2, %v21400_v62  ;;  %v21406_v62 = vld [vmem:[#allocation8_spill] sm:$0xff] }
 0x29e   : > { %13775 = vmatmul.mubr.msk.f32.gmra.mrb[126].mxu0 %vm791_vm2, %v18896_v12  ;;  %12905 = vmatprep.mubr.msk.f32.mxu1 %vm791_vm2, %v21401_v38  ;;  %v21408_v38 = vld [vmem:[#allocation9_spill] sm:$0xff] }
 0x29f   : > { %13779 = vmatprep.mubr.msk.f32.mxu0 %vm791_vm2, %v21402_v18  ;;  %v21409_v18 = vld [vmem:[#allocation225_spill] sm:$0xff] }
 0x2a1   : > { %12906 = vmatmul.mubr.msk.f32.gmra.mrb[64].mxu1 %vm791_vm2, %v21403_v58  ;;  %v21410_v58 = vld [vmem:[#allocation10_spill] sm:$0xff] }
 0x2a2   : > { %13780 = vmatmul.mubr.msk.f32.vlgmr.msra.gmra.mrb[0].mxu0 %vm791_vm2, %v21404_v61  ;;  %12908 = vmatprep.mubr.msk.f32.mxu1 %vm791_vm2, %v21405_v52  ;;  %v21411_v61 = vld [vmem:[#allocation227_spill] sm:$0xff] }
 0x2a3   : > { %13972 = vmatpush3.msk.msra.mxu0 %vm1048_vm0, %v18587_v13  ;;  %13782 = vmatprep.mubr.msk.f32.mxu0 %vm791_vm2, %v21406_v62  ;;  %v21412_v52 = vld [vmem:[#allocation11_spill] sm:$0xff]  ;;  %v21413_v13 = vld [vmem:[#allocation228_spill] sm:$0xff] }
 0x2a4   : > { %v21414_v62 = vld [vmem:[#allocation12_spill] sm:$0xff] }
 0x2a5   : > { %12909 = vmatmul.mubr.msk.f32.gmra.mrb[66].mxu1 %vm791_vm2, %v21407_v0  ;;  %v21415_v0 = vld [vmem:[#allocation230_spill] sm:$0xff] }
 0x2a6   : > { %13783 = vmatmul.mubr.msk.f32.gmra.mrb[2].mxu0 %vm791_vm2, %v21408_v38  ;;  %12911 = vmatprep.mubr.msk.f32.mxu1 %vm791_vm2, %v21409_v18  ;;  %v21416_v38 = vld [vmem:[#allocation13_spill] sm:$0xff]  ;;  %v21417_v18 = vld [vmem:[#allocation231_spill] sm:$0xff] }
 0x2a7   : > { %13785 = vmatprep.mubr.msk.f32.mxu0 %vm791_vm2, %v21410_v58  ;;  %v21418_v58 = vld [vmem:[#allocation14_spill] sm:$0xff] }
 0x2a9   : > { %12912 = vmatmul.mubr.msk.f32.gmra.mrb[68].mxu1 %vm791_vm2, %v21411_v61  ;;  %v21419_v61 = vld [vmem:[#allocation233_spill] sm:$0xff] }
 0x2aa   : > { %13786 = vmatmul.mubr.msk.f32.gmra.mrb[4].mxu0 %vm791_vm2, %v21412_v52  ;;  %12914 = vmatprep.mubr.msk.f32.mxu1 %vm791_vm2, %v21413_v13  ;;  %v21420_v52 = vld [vmem:[#allocation15_spill] sm:$0xff]  ;;  %v21421_v13 = vld [vmem:[#allocation234_spill] sm:$0xff] }
 0x2ab   : > { %13788 = vmatprep.mubr.msk.f32.mxu0 %vm791_vm2, %v21414_v62  ;;  %v21422_v62 = vld [vmem:[#allocation16_spill] sm:$0xff] }
 0x2ad   : > { %12915 = vmatmul.mubr.msk.f32.gmra.mrb[70].mxu1 %vm791_vm2, %v21415_v0  ;;  %v21423_v0 = vld [vmem:[#allocation235_spill] sm:$0xff] }
 0x2ae   : > { %13789 = vmatmul.mubr.msk.f32.gmra.mrb[6].mxu0 %vm791_vm2, %v21416_v38  ;;  %12917 = vmatprep.mubr.msk.f32.mxu1 %vm791_vm2, %v21417_v18  ;;  %v21424_v38 = vld [vmem:[#allocation17_spill] sm:$0xff]  ;;  %v21425_v18 = vld [vmem:[#allocation236_spill] sm:$0xff] }
 0x2af   : > { %13791 = vmatprep.mubr.msk.f32.mxu0 %vm791_vm2, %v21418_v58  ;;  %v21426_v58 = vld [vmem:[#allocation18_spill] sm:$0xff] }
 0x2b1   : > { %12918 = vmatmul.mubr.msk.f32.gmra.mrb[72].mxu1 %vm791_vm2, %v21419_v61  ;;  %v21427_v61 = vld [vmem:[#allocation237_spill] sm:$0xff] }
 0x2b2   : > { %13792 = vmatmul.mubr.msk.f32.gmra.mrb[8].mxu0 %vm791_vm2, %v21420_v52  ;;  %12920 = vmatprep.mubr.msk.f32.mxu1 %vm791_vm2, %v21421_v13  ;;  %v21428_v52 = vld [vmem:[#allocation19_spill] sm:$0xff]  ;;  %v21429_v13 = vld [vmem:[#allocation238_spill] sm:$0xff] }
 0x2b3   : > { %13794 = vmatprep.mubr.msk.f32.mxu0 %vm791_vm2, %v21422_v62  ;;  %v21430_v62 = vld [vmem:[#allocation20_spill] sm:$0xff] }
 0x2b5   : > { %12921 = vmatmul.mubr.msk.f32.gmra.mrb[74].mxu1 %vm791_vm2, %v21423_v0  ;;  %v21431_v0 = vld [vmem:[#allocation239_spill] sm:$0xff] }
 0x2b6   : > { %13795 = vmatmul.mubr.msk.f32.gmra.mrb[10].mxu0 %vm791_vm2, %v21424_v38  ;;  %12923 = vmatprep.mubr.msk.f32.mxu1 %vm791_vm2, %v21425_v18  ;;  %v21432_v38 = vld [vmem:[#allocation21_spill] sm:$0xff]  ;;  %v21433_v18 = vld [vmem:[#allocation240_spill] sm:$0xff] }
 0x2b7   : > { %13797 = vmatprep.mubr.msk.f32.mxu0 %vm791_vm2, %v21426_v58  ;;  %v21434_v58 = vld [vmem:[#allocation22_spill] sm:$0xff] }
 0x2b9   : > { %12924 = vmatmul.mubr.msk.f32.gmra.mrb[76].mxu1 %vm791_vm2, %v21427_v61  ;;  %v21435_v61 = vld [vmem:[#allocation241_spill] sm:$0xff] }
 0x2ba   : > { %13798 = vmatmul.mubr.msk.f32.gmra.mrb[12].mxu0 %vm791_vm2, %v21428_v52  ;;  %12926 = vmatprep.mubr.msk.f32.mxu1 %vm791_vm2, %v21429_v13  ;;  %v21436_v52 = vld [vmem:[#allocation23_spill] sm:$0xff]  ;;  %v21437_v13 = vld [vmem:[#allocation242_spill] sm:$0xff] }
 0x2bb   : > { %13800 = vmatprep.mubr.msk.f32.mxu0 %vm791_vm2, %v21430_v62  ;;  %v21438_v62 = vld [vmem:[#allocation24_spill] sm:$0xff] }
 0x2bd   : > { %12927 = vmatmul.mubr.msk.f32.gmra.mrb[78].mxu1 %vm791_vm2, %v21431_v0  ;;  %v21439_v0 = vld [vmem:[#allocation243_spill] sm:$0xff] }
 0x2be   : > { %13801 = vmatmul.mubr.msk.f32.gmra.mrb[14].mxu0 %vm791_vm2, %v21432_v38  ;;  %12929 = vmatprep.mubr.msk.f32.mxu1 %vm791_vm2, %v21433_v18  ;;  %v21440_v38 = vld [vmem:[#allocation25_spill] sm:$0xff]  ;;  %v21441_v18 = vld [vmem:[#allocation244_spill] sm:$0xff] }
 0x2bf   : > { %13803 = vmatprep.mubr.msk.f32.mxu0 %vm791_vm2, %v21434_v58  ;;  %v21442_v58 = vld [vmem:[#allocation26_spill] sm:$0xff] }
 0x2c1   : > { %12930 = vmatmul.mubr.msk.f32.gmra.mrb[80].mxu1 %vm791_vm2, %v21435_v61  ;;  %v21443_v61 = vld [vmem:[#allocation245_spill] sm:$0xff] }
 0x2c2   : > { %13804 = vmatmul.mubr.msk.f32.gmra.mrb[16].mxu0 %vm791_vm2, %v21436_v52  ;;  %12932 = vmatprep.mubr.msk.f32.mxu1 %vm791_vm2, %v21437_v13  ;;  %v21444_v52 = vld [vmem:[#allocation27_spill] sm:$0xff]  ;;  %v21445_v13 = vld [vmem:[#allocation246_spill] sm:$0xff] }
 0x2c3   : > { %13806 = vmatprep.mubr.msk.f32.mxu0 %vm791_vm2, %v21438_v62  ;;  %v21446_v62 = vld [vmem:[#allocation28_spill] sm:$0xff] }
 0x2c5   : > { %12933 = vmatmul.mubr.msk.f32.gmra.mrb[82].mxu1 %vm791_vm2, %v21439_v0  ;;  %v21447_v0 = vld [vmem:[#allocation247_spill] sm:$0xff] }
 0x2c6   : > { %13807 = vmatmul.mubr.msk.f32.gmra.mrb[18].mxu0 %vm791_vm2, %v21440_v38  ;;  %12935 = vmatprep.mubr.msk.f32.mxu1 %vm791_vm2, %v21441_v18  ;;  %v21448_v38 = vld [vmem:[#allocation29_spill] sm:$0xff]  ;;  %v21449_v18 = vld [vmem:[#allocation248_spill] sm:$0xff] }
 0x2c7   : > { %13809 = vmatprep.mubr.msk.f32.mxu0 %vm791_vm2, %v21442_v58  ;;  %v21450_v58 = vld [vmem:[#allocation30_spill] sm:$0xff] }
 0x2c9   : > { %12936 = vmatmul.mubr.msk.f32.gmra.mrb[84].mxu1 %vm791_vm2, %v21443_v61  ;;  %v21451_v61 = vld [vmem:[#allocation249_spill] sm:$0xff] }
 0x2ca   : > { %13810 = vmatmul.mubr.msk.f32.gmra.mrb[20].mxu0 %vm791_vm2, %v21444_v52  ;;  %12938 = vmatprep.mubr.msk.f32.mxu1 %vm791_vm2, %v21445_v13  ;;  %v21452_v52 = vld [vmem:[#allocation31_spill] sm:$0xff]  ;;  %v21453_v13 = vld [vmem:[#allocation250_spill] sm:$0xff] }
 0x2cb   : > { %13812 = vmatprep.mubr.msk.f32.mxu0 %vm791_vm2, %v21446_v62  ;;  %v21454_v62 = vld [vmem:[#allocation32_spill] sm:$0xff] }
 0x2cd   : > { %12939 = vmatmul.mubr.msk.f32.gmra.mrb[86].mxu1 %vm791_vm2, %v21447_v0  ;;  %v21455_v0 = vld [vmem:[#allocation251_spill] sm:$0xff] }
 0x2ce   : > { %13813 = vmatmul.mubr.msk.f32.gmra.mrb[22].mxu0 %vm791_vm2, %v21448_v38  ;;  %12941 = vmatprep.mubr.msk.f32.mxu1 %vm791_vm2, %v21449_v18  ;;  %v21456_v38 = vld [vmem:[#allocation33_spill] sm:$0xff]  ;;  %v21457_v18 = vld [vmem:[#allocation252_spill] sm:$0xff] }
 0x2cf   : > { %13815 = vmatprep.mubr.msk.f32.mxu0 %vm791_vm2, %v21450_v58  ;;  %v21458_v58 = vld [vmem:[#allocation34_spill] sm:$0xff] }
 0x2d1   : > { %12942 = vmatmul.mubr.msk.f32.gmra.mrb[88].mxu1 %vm791_vm2, %v21451_v61  ;;  %v21459_v61 = vld [vmem:[#allocation253_spill] sm:$0xff] }
 0x2d2   : > { %13816 = vmatmul.mubr.msk.f32.gmra.mrb[24].mxu0 %vm791_vm2, %v21452_v52  ;;  %12944 = vmatprep.mubr.msk.f32.mxu1 %vm791_vm2, %v21453_v13  ;;  %v21460_v52 = vld [vmem:[#allocation36_spill] sm:$0xff]  ;;  %v21461_v13 = vld [vmem:[#allocation254_spill] sm:$0xff] }
 0x2d3   : > { %13818 = vmatprep.mubr.msk.f32.mxu0 %vm791_vm2, %v21454_v62  ;;  %v21462_v62 = vld [vmem:[#allocation37_spill] sm:$0xff] }
 0x2d5   : > { %12945 = vmatmul.mubr.msk.f32.gmra.mrb[90].mxu1 %vm791_vm2, %v21455_v0  ;;  %v21463_v0 = vld [vmem:[#allocation255_spill] sm:$0xff] }
 0x2d6   : > { %13819 = vmatmul.mubr.msk.f32.gmra.mrb[26].mxu0 %vm791_vm2, %v21456_v38  ;;  %12947 = vmatprep.mubr.msk.f32.mxu1 %vm791_vm2, %v21457_v18  ;;  %v21464_v38 = vld [vmem:[#allocation40_spill] sm:$0xff] }
 0x2d7   : > { %13821 = vmatprep.mubr.msk.f32.mxu0 %vm791_vm2, %v21458_v58  ;;  %v21465_v18 = vld [vmem:[#allocation256_spill] sm:$0xff]  ;;  %v21466_v58 = vld [vmem:[#allocation41_spill] sm:$0xff] }
 0x2d9   : > { %12948 = vmatmul.mubr.msk.f32.gmra.mrb[92].mxu1 %vm791_vm2, %v21459_v61  ;;  %v21467_v61 = vld [vmem:[#allocation257_spill] sm:$0xff] }
 0x2da   : > { %13822 = vmatmul.mubr.msk.f32.gmra.mrb[28].mxu0 %vm791_vm2, %v21460_v52  ;;  %12950 = vmatprep.mubr.msk.f32.mxu1 %vm791_vm2, %v21461_v13  ;;  %v21468_v52 = vld [vmem:[#allocation45_spill] sm:$0xff]  ;;  %v21469_v13 = vld [vmem:[#allocation258_spill] sm:$0xff] }
 0x2db   : > { %13824 = vmatprep.mubr.msk.f32.mxu0 %vm791_vm2, %v21462_v62  ;;  %v21470_v62 = vld [vmem:[#allocation46_spill] sm:$0xff] }
 0x2dd   : > { %12951 = vmatmul.mubr.msk.f32.gmra.mrb[94].mxu1 %vm791_vm2, %v21463_v0  ;;  %v21471_v0 = vld [vmem:[#allocation159_spill] sm:$0xff] }
 0x2de   : > { %13825 = vmatmul.mubr.msk.f32.gmra.mrb[30].mxu0 %vm791_vm2, %v21464_v38  ;;  %12953 = vmatprep.mubr.msk.f32.mxu1 %vm791_vm2, %v21465_v18  ;;  %v21472_v38 = vld [vmem:[#allocation49_spill] sm:$0xff]  ;;  %v21473_v18 = vld [vmem:[#allocation160_spill] sm:$0xff] }
 0x2df   : > { %13827 = vmatprep.mubr.msk.f32.mxu0 %vm791_vm2, %v21466_v58  ;;  %v21474_v58 = vld [vmem:[#allocation50_spill] sm:$0xff] }
 0x2e1   : > { %12954 = vmatmul.mubr.msk.f32.gmra.mrb[96].mxu1 %vm791_vm2, %v21467_v61  ;;  %v21475_v61 = vld [vmem:[#allocation164_spill] sm:$0xff] }
 0x2e2   : > { %13828 = vmatmul.mubr.msk.f32.gmra.mrb[32].mxu0 %vm791_vm2, %v21468_v52  ;;  %12956 = vmatprep.mubr.msk.f32.mxu1 %vm791_vm2, %v21469_v13  ;;  %v21476_v52 = vld [vmem:[#allocation54_spill] sm:$0xff]  ;;  %v21477_v13 = vld [vmem:[#allocation35_spill] sm:$0xff] }
 0x2e3   : > { %13830 = vmatprep.mubr.msk.f32.mxu0 %vm791_vm2, %v21470_v62  ;;  %v21478_v62 = vld [vmem:[#allocation55_spill] sm:$0xff] }
 0x2e5   : > { %12957 = vmatmul.mubr.msk.f32.gmra.mrb[98].mxu1 %vm791_vm2, %v21471_v0  ;;  %v21479_v0 = vld [vmem:[#allocation168_spill] sm:$0xff] }
 0x2e6   : > { %13831 = vmatmul.mubr.msk.f32.gmra.mrb[34].mxu0 %vm791_vm2, %v21472_v38  ;;  %12959 = vmatprep.mubr.msk.f32.mxu1 %vm791_vm2, %v21473_v18  ;;  %v21480_v38 = vld [vmem:[#allocation58_spill] sm:$0xff]  ;;  %v21481_v18 = vld [vmem:[#allocation39_spill] sm:$0xff] }
 0x2e7   : > { %13833 = vmatprep.mubr.msk.f32.mxu0 %vm791_vm2, %v21474_v58  ;;  %v21482_v58 = vld [vmem:[#allocation59_spill] sm:$0xff] }
 0x2e9   : > { %12960 = vmatmul.mubr.msk.f32.gmra.mrb[100].mxu1 %vm791_vm2, %v21475_v61  ;;  %v21483_v61 = vld [vmem:[#allocation170_spill] sm:$0xff] }
 0x2ea   : > { %13834 = vmatmul.mubr.msk.f32.gmra.mrb[36].mxu0 %vm791_vm2, %v21476_v52  ;;  %12962 = vmatprep.mubr.msk.f32.mxu1 %vm791_vm2, %v21477_v13  ;;  %v21484_v52 = vld [vmem:[#allocation63_spill] sm:$0xff]  ;;  %v21485_v13 = vld [vmem:[#allocation42_spill] sm:$0xff] }
 0x2eb   : > { %13836 = vmatprep.mubr.msk.f32.mxu0 %vm791_vm2, %v21478_v62  ;;  %v21486_v62 = vld [vmem:[#allocation64_spill] sm:$0xff] }
 0x2ed   : > { %12963 = vmatmul.mubr.msk.f32.gmra.mrb[102].mxu1 %vm791_vm2, %v21479_v0  ;;  %v21487_v0 = vld [vmem:[#allocation43_spill] sm:$0xff] }
 0x2ee   : > { %13837 = vmatmul.mubr.msk.f32.gmra.mrb[38].mxu0 %vm791_vm2, %v21480_v38  ;;  %12965 = vmatprep.mubr.msk.f32.mxu1 %vm791_vm2, %v21481_v18  ;;  %v21488_v38 = vld [vmem:[#allocation67_spill] sm:$0xff]  ;;  %v21489_v18 = vld [vmem:[#allocation176_spill] sm:$0xff] }
 0x2ef   : > { %13839 = vmatprep.mubr.msk.f32.mxu0 %vm791_vm2, %v21482_v58  ;;  %v21490_v58 = vld [vmem:[#allocation68_spill] sm:$0xff] }
 0x2f1   : > { %12966 = vmatmul.mubr.msk.f32.gmra.mrb[104].mxu1 %vm791_vm2, %v21483_v61  ;;  %v21491_v61 = vld [vmem:[#allocation48_spill] sm:$0xff] }
 0x2f2   : > { %13840 = vmatmul.mubr.msk.f32.gmra.mrb[40].mxu0 %vm791_vm2, %v21484_v52  ;;  %12968 = vmatprep.mubr.msk.f32.mxu1 %vm791_vm2, %v21485_v13  ;;  %v21492_v52 = vld [vmem:[#allocation72_spill] sm:$0xff]  ;;  %v21493_v13 = vld [vmem:[#allocation178_spill] sm:$0xff] }
 0x2f3   : > { %13842 = vmatprep.mubr.msk.f32.mxu0 %vm791_vm2, %v21486_v62  ;;  %v21494_v62 = vld [vmem:[#allocation73_spill] sm:$0xff] }
 0x2f5   : > { %12969 = vmatmul.mubr.msk.f32.gmra.mrb[106].mxu1 %vm791_vm2, %v21487_v0  ;;  %v21495_v0 = vld [vmem:[#allocation51_spill] sm:$0xff] }
 0x2f6   : > { %13843 = vmatmul.mubr.msk.f32.gmra.mrb[42].mxu0 %vm791_vm2, %v21488_v38  ;;  %12971 = vmatprep.mubr.msk.f32.mxu1 %vm791_vm2, %v21489_v18  ;;  %v21496_v38 = vld [vmem:[#allocation76_spill] sm:$0xff] }
 0x2f7   : > { %13845 = vmatprep.mubr.msk.f32.mxu0 %vm791_vm2, %v21490_v58  ;;  %v21497_v18 = vld [vmem:[#allocation52_spill] sm:$0xff]  ;;  %v21498_v58 = vld [vmem:[#allocation77_spill] sm:$0xff] }
 0x2f9   : > { %12972 = vmatmul.mubr.msk.f32.gmra.mrb[108].mxu1 %vm791_vm2, %v21491_v61  ;;  %v21499_v61 = vld [vmem:[#allocation184_spill] sm:$0xff] }
 0x2fa   : > { %13846 = vmatmul.mubr.msk.f32.gmra.mrb[44].mxu0 %vm791_vm2, %v21492_v52  ;;  %12974 = vmatprep.mubr.msk.f32.mxu1 %vm791_vm2, %v21493_v13  ;;  %v21500_v52 = vld [vmem:[#allocation81_spill] sm:$0xff] }
 0x2fb   : > { %13848 = vmatprep.mubr.msk.f32.mxu0 %vm791_vm2, %v21494_v62  ;;  %v21501_v13 = vld [vmem:[#allocation57_spill] sm:$0xff]  ;;  %v21502_v62 = vld [vmem:[#allocation82_spill] sm:$0xff] }
 0x2fd   : > { %12975 = vmatmul.mubr.msk.f32.gmra.mrb[110].mxu1 %vm791_vm2, %v21495_v0  ;;  %v21503_v0 = vld [vmem:[#allocation186_spill] sm:$0xff] }
 0x2fe   : > { %13849 = vmatmul.mubr.msk.f32.gmra.mrb[46].mxu0 %vm791_vm2, %v21496_v38  ;;  %12977 = vmatprep.mubr.msk.f32.mxu1 %vm791_vm2, %v21497_v18  ;;  %v21504_v38 = vld [vmem:[#allocation85_spill] sm:$0xff]  ;;  %v21505_v18 = vld [vmem:[#allocation60_spill] sm:$0xff] }
 0x2ff   : > { %13851 = vmatprep.mubr.msk.f32.mxu0 %vm791_vm2, %v21498_v58  ;;  %v21506_v58 = vld [vmem:[#allocation86_spill] sm:$0xff] }
 0x301   : > { %12978 = vmatmul.mubr.msk.f32.gmra.mrb[112].mxu1 %vm791_vm2, %v21499_v61  ;;  %v21507_v61 = vld [vmem:[#allocation192_spill] sm:$0xff] }
 0x302   : > { %13852 = vmatmul.mubr.msk.f32.gmra.mrb[48].mxu0 %vm791_vm2, %v21500_v52  ;;  %12980 = vmatprep.mubr.msk.f32.mxu1 %vm791_vm2, %v21501_v13  ;;  %v21508_v52 = vld [vmem:[#allocation89_spill] sm:$0xff]  ;;  %v21509_v13 = vld [vmem:[#allocation200_spill] sm:$0xff] }
 0x303   : > { %13854 = vmatprep.mubr.msk.f32.mxu0 %vm791_vm2, %v21502_v62  ;;  %v21510_v62 = vld [vmem:[#allocation90_spill] sm:$0xff] }
 0x305   : > { %12981 = vmatmul.mubr.msk.f32.gmra.mrb[114].mxu1 %vm791_vm2, %v21503_v0  ;;  %v21511_v0 = vld [vmem:[#allocation259_spill] sm:$0xff] }
 0x306   : > { %13855 = vmatmul.mubr.msk.f32.gmra.mrb[50].mxu0 %vm791_vm2, %v21504_v38  ;;  %12983 = vmatprep.mubr.msk.f32.mxu1 %vm791_vm2, %v21505_v18  ;;  %v21512_v38 = vld [vmem:[#allocation91_spill] sm:$0xff]  ;;  %v21513_v18 = vld [vmem:[#allocation260_spill] sm:$0xff] }
 0x307   : > { %13857 = vmatprep.mubr.msk.f32.mxu0 %vm791_vm2, %v21506_v58  ;;  %v21514_v58 = vld [vmem:[#allocation92_spill] sm:$0xff] }
 0x309   : > { %12984 = vmatmul.mubr.msk.f32.gmra.mrb[116].mxu1 %vm791_vm2, %v21507_v61  ;;  %v15363_v61 = vld [vmem:[%s15642_s9 + $0x28] sm:$0xff] }
 0x30a   : > { %13858 = vmatmul.mubr.msk.f32.gmra.mrb[52].mxu0 %vm791_vm2, %v21508_v52  ;;  %12986 = vmatprep.mubr.msk.f32.mxu1 %vm791_vm2, %v21509_v13  ;;  %v21515_v52 = vld [vmem:[#allocation261_spill] sm:$0xff] }
 0x30b   : > { %13860 = vmatprep.mubr.msk.f32.mxu0 %vm791_vm2, %v21510_v62  ;;  %v21516_v13 = vld [vmem:[#allocation93_spill] sm:$0xff]  ;;  %v21517_v62 = vld [vmem:[#allocation208_spill] sm:$0xff] }
 0x30d   : > { %12987 = vmatmul.mubr.msk.f32.gmra.mrb[118].mxu1 %vm791_vm2, %v21511_v0  ;;  %v21518_v0 = vld [vmem:[#allocation94_spill] sm:$0xff] }
 0x30e   : > { %13861 = vmatmul.mubr.msk.f32.gmra.mrb[54].mxu0 %vm791_vm2, %v21512_v38  ;;  %12989 = vmatprep.mubr.msk.f32.mxu1 %vm791_vm2, %v21513_v18  ;;  %v21519_v38 = vld [vmem:[#allocation262_spill] sm:$0xff]  ;;  %v21520_v18 = vld [vmem:[#allocation95_spill] sm:$0xff] }
 0x30f   : > { %13863 = vmatprep.mubr.msk.f32.mxu0 %vm791_vm2, %v21514_v58  ;;  %v21521_v58 = vld [vmem:[#allocation263_spill] sm:$0xff] }
 0x311   : > { %12990 = vmatmul.mubr.msk.f32.gmra.mrb[120].mxu1 %vm791_vm2, %v21515_v52  ;;  %v21522_v52 = vld [vmem:[#allocation101_spill] sm:$0xff] }
 0x312   : > { %13864 = vmatmul.mubr.msk.f32.gmra.mrb[56].mxu0 %vm791_vm2, %v21516_v13  ;;  %12992 = vmatprep.mubr.msk.f32.mxu1 %vm791_vm2, %v21517_v62  ;;  %v21523_v13 = vld [vmem:[#allocation266_spill] sm:$0xff]  ;;  %v21524_v62 = vld [vmem:[#allocation103_spill] sm:$0xff] }
 0x313   : > { %13866 = vmatprep.mubr.msk.f32.mxu0 %vm791_vm2, %v21518_v0  ;;  %v21525_v0 = vld [vmem:[#allocation267_spill] sm:$0xff] }
 0x315   : > { %12993 = vmatmul.mubr.msk.f32.gmra.mrb[122].mxu1 %vm791_vm2, %v21519_v38  ;;  %v21526_v38 = vld [vmem:[#allocation105_spill] sm:$0xff] }
 0x316   : > { %13867 = vmatmul.mubr.msk.f32.gmra.mrb[58].mxu0 %vm791_vm2, %v21520_v18  ;;  %12995 = vmatprep.mubr.msk.f32.mxu1 %vm791_vm2, %v21521_v58  ;;  %v21527_v18 = vld [vmem:[#allocation270_spill] sm:$0xff]  ;;  %v21528_v58 = vld [vmem:[#allocation107_spill] sm:$0xff] }
 0x317   : > { %13869 = vmatprep.mubr.msk.f32.mxu0 %vm791_vm2, %v21522_v52  ;;  %v19391_v52 = vld [vmem:[%s15642_s9 + $0x510] sm:$0xff] }
 0x318   : > { %21586 = vst [vmem:[#allocation97_spill] sm:$0xff] %v19391_v52 }
 0x319   : > { %12996 = vmatmul.mubr.msk.f32.gmra.mrb[124].mxu1 %vm791_vm2, %v21523_v13  ;;  %v21529_v13 = vld [vmem:[#allocation109_spill] sm:$0xff] }
 0x31a   : > { %13870 = vmatmul.mubr.msk.f32.gmra.mrb[60].mxu0 %vm791_vm2, %v21524_v62  ;;  %12998 = vmatprep.mubr.msk.f32.mxu1 %vm791_vm2, %v21525_v0  ;;  %v15364_v62 = vld [vmem:[%s15642_s9 + $0x30] sm:$0xff]  ;;  %v21530_v0 = vld [vmem:[#allocation111_spill] sm:$0xff] }
 0x31b   : > { %13872 = vmatprep.mubr.msk.f32.mxu0 %vm791_vm2, %v21526_v38  ;;  %v15418_v38 = vld [vmem:[%s15642_s9 + $0x238] sm:$0xff] }
 0x31d   : > { %12999 = vmatmul.mubr.msk.f32.gmra.mrb[126].mxu1 %vm791_vm2, %v21527_v18  ;;  %v15365_v18 = vld [vmem:[%s15642_s9 + $0x38] sm:$0xff] }
 0x31e   : > { %13873 = vmatmul.mubr.msk.f32.gmra.mrb[62].mxu0 %vm791_vm2, %v21528_v58  ;;  %13003 = vmatprep.mubr.msk.f32.mxu1 %vm791_vm2, %v15363_v61  ;;  %v21531_v58 = vld [vmem:[#allocation113_spill] sm:$0xff]  ;;  %v15366_v61 = vld [vmem:[%s15642_s9 + $0x40] sm:$0xff] }
 0x31f   : > { %13875 = vmatprep.mubr.msk.f32.mxu0 %vm791_vm2, %v21529_v13  ;;  %v21532_v13 = vld [vmem:[#allocation115_spill] sm:$0xff] }
 0x321   : > { %13004 = vmatmul.mubr.msk.f32.vlgmr.msra.gmra.mrb[0].mxu1 %vm791_vm2, %v15364_v62  ;;  %v15367_v62 = vld [vmem:[%s15642_s9 + $0x50] sm:$0xff] }
 0x322   : > { %14166 = vmatpush3.msk.msra.mxu1 %vm1048_vm0, %v18604_v30  ;;  %13876 = vmatmul.mubr.msk.f32.gmra.mrb[64].mxu0 %vm791_vm2, %v21530_v0  ;;  %v21533_v30 = vld [vmem:[#allocation117_spill] sm:$0xff] }
 0x323   : > { %13006 = vmatprep.mubr.msk.f32.mxu1 %vm791_vm2, %v15365_v18  ;;  %13878 = vmatprep.mubr.msk.f32.mxu0 %vm791_vm2, %v21531_v58  ;;  %v15368_v0 = vld [vmem:[%s15642_s9 + $0x58] sm:$0xff]  ;;  %v21534_v18 = vld [vmem:[#allocation119_spill] sm:$0xff]  ;;  %v15369_v58 = vld [vmem:[%s15642_s9 + $0x60] sm:$0xff] }
 0x325   : > { %13007 = vmatmul.mubr.msk.f32.gmra.mrb[2].mxu1 %vm791_vm2, %v15366_v61  ;;  %v21535_v61 = vld [vmem:[#allocation121_spill] sm:$0xff] }
 0x326   : > { %13879 = vmatmul.mubr.msk.f32.gmra.mrb[66].mxu0 %vm791_vm2, %v21532_v13  ;;  %13009 = vmatprep.mubr.msk.f32.mxu1 %vm791_vm2, %v15367_v62  ;;  %v15370_v13 = vld [vmem:[%s15642_s9 + $0x68] sm:$0xff] }
 0x327   : > { %13881 = vmatprep.mubr.msk.f32.mxu0 %vm791_vm2, %v21533_v30  ;;  %v21536_v62 = vld [vmem:[#allocation123_spill] sm:$0xff]  ;;  %v15371_v30 = vld [vmem:[%s15642_s9 + $0x78] sm:$0xff] }
 0x329   : > { %13010 = vmatmul.mubr.msk.f32.gmra.mrb[4].mxu1 %vm791_vm2, %v15368_v0  ;;  %v21537_v0 = vld [vmem:[#allocation125_spill] sm:$0xff] }
 0x32a   : > { %13882 = vmatmul.mubr.msk.f32.gmra.mrb[68].mxu0 %vm791_vm2, %v21534_v18  ;;  %13012 = vmatprep.mubr.msk.f32.mxu1 %vm791_vm2, %v15369_v58  ;;  %v15372_v18 = vld [vmem:[%s15642_s9 + $0x80] sm:$0xff]  ;;  %v21538_v58 = vld [vmem:[#allocation127_spill] sm:$0xff] }
 0x32b   : > { %13884 = vmatprep.mubr.msk.f32.mxu0 %vm791_vm2, %v21535_v61  ;;  %v15373_v61 = vld [vmem:[%s15642_s9 + $0x88] sm:$0xff] }
 0x32d   : > { %13013 = vmatmul.mubr.msk.f32.gmra.mrb[6].mxu1 %vm791_vm2, %v15370_v13  ;;  %v21539_v13 = vld [vmem:[#allocation129_spill] sm:$0xff] }
 0x32e   : > { %13885 = vmatmul.mubr.msk.f32.gmra.mrb[70].mxu0 %vm791_vm2, %v21536_v62  ;;  %13015 = vmatprep.mubr.msk.f32.mxu1 %vm791_vm2, %v15371_v30  ;;  %v15374_v62 = vld [vmem:[%s15642_s9 + $0x90] sm:$0xff]  ;;  %v21540_v30 = vld [vmem:[#allocation131_spill] sm:$0xff] }
 0x32f   : > { %13887 = vmatprep.mubr.msk.f32.mxu0 %vm791_vm2, %v21537_v0  ;;  %v15375_v0 = vld [vmem:[%s15642_s9 + $0xa0] sm:$0xff] }
 0x331   : > { %13016 = vmatmul.mubr.msk.f32.gmra.mrb[8].mxu1 %vm791_vm2, %v15372_v18  ;;  %v21541_v18 = vld [vmem:[#allocation133_spill] sm:$0xff] }
 0x332   : > { %13888 = vmatmul.mubr.msk.f32.gmra.mrb[72].mxu0 %vm791_vm2, %v21538_v58  ;;  %13018 = vmatprep.mubr.msk.f32.mxu1 %vm791_vm2, %v15373_v61  ;;  %v15376_v58 = vld [vmem:[%s15642_s9 + $0xa8] sm:$0xff] }
 0x333   : > { %13890 = vmatprep.mubr.msk.f32.mxu0 %vm791_vm2, %v21539_v13  ;;  %v21542_v61 = vld [vmem:[#allocation135_spill] sm:$0xff]  ;;  %v15377_v13 = vld [vmem:[%s15642_s9 + $0xb0] sm:$0xff] }
 0x335   : > { %13019 = vmatmul.mubr.msk.f32.gmra.mrb[10].mxu1 %vm791_vm2, %v15374_v62  ;;  %v21543_v62 = vld [vmem:[#allocation137_spill] sm:$0xff] }
 0x336   : > { %13891 = vmatmul.mubr.msk.f32.gmra.mrb[74].mxu0 %vm791_vm2, %v21540_v30  ;;  %13021 = vmatprep.mubr.msk.f32.mxu1 %vm791_vm2, %v15375_v0  ;;  %v15378_v30 = vld [vmem:[%s15642_s9 + $0xb8] sm:$0xff]  ;;  %v21544_v0 = vld [vmem:[#allocation139_spill] sm:$0xff] }
 0x337   : > { %13893 = vmatprep.mubr.msk.f32.mxu0 %vm791_vm2, %v21541_v18  ;;  %v15379_v18 = vld [vmem:[%s15642_s9 + $0xc8] sm:$0xff] }
 0x339   : > { %13022 = vmatmul.mubr.msk.f32.gmra.mrb[12].mxu1 %vm791_vm2, %v15376_v58  ;;  %v21545_v58 = vld [vmem:[#allocation141_spill] sm:$0xff] }
 0x33a   : > { %13894 = vmatmul.mubr.msk.f32.gmra.mrb[76].mxu0 %vm791_vm2, %v21542_v61  ;;  %13024 = vmatprep.mubr.msk.f32.mxu1 %vm791_vm2, %v15377_v13  ;;  %v15380_v61 = vld [vmem:[%s15642_s9 + $0xd0] sm:$0xff]  ;;  %v21546_v13 = vld [vmem:[#allocation143_spill] sm:$0xff] }
 0x33b   : > { %13896 = vmatprep.mubr.msk.f32.mxu0 %vm791_vm2, %v21543_v62  ;;  %v15381_v62 = vld [vmem:[%s15642_s9 + $0xd8] sm:$0xff] }
 0x33d   : > { %13025 = vmatmul.mubr.msk.f32.gmra.mrb[14].mxu1 %vm791_vm2, %v15378_v30  ;;  %v21547_v30 = vld [vmem:[#allocation145_spill] sm:$0xff] }
 0x33e   : > { %13897 = vmatmul.mubr.msk.f32.gmra.mrb[78].mxu0 %vm791_vm2, %v21544_v0  ;;  %13027 = vmatprep.mubr.msk.f32.mxu1 %vm791_vm2, %v15379_v18  ;;  %v15382_v0 = vld [vmem:[%s15642_s9 + $0xe0] sm:$0xff]  ;;  %v21548_v18 = vld [vmem:[#allocation147_spill] sm:$0xff] }
 0x33f   : > { %13899 = vmatprep.mubr.msk.f32.mxu0 %vm791_vm2, %v21545_v58  ;;  %v15383_v58 = vld [vmem:[%s15642_s9 + $0xf0] sm:$0xff] }
 0x341   : > { %13028 = vmatmul.mubr.msk.f32.gmra.mrb[16].mxu1 %vm791_vm2, %v15380_v61  ;;  %v21549_v61 = vld [vmem:[#allocation149_spill] sm:$0xff] }
 0x342   : > { %13900 = vmatmul.mubr.msk.f32.gmra.mrb[80].mxu0 %vm791_vm2, %v21546_v13  ;;  %13030 = vmatprep.mubr.msk.f32.mxu1 %vm791_vm2, %v15381_v62  ;;  %v15384_v13 = vld [vmem:[%s15642_s9 + $0xf8] sm:$0xff]  ;;  %v21550_v62 = vld [vmem:[#allocation151_spill] sm:$0xff] }
 0x343   : > { %13902 = vmatprep.mubr.msk.f32.mxu0 %vm791_vm2, %v21547_v30  ;;  %v15385_v30 = vld [vmem:[%s15642_s9 + $0x100] sm:$0xff] }
 0x345   : > { %13031 = vmatmul.mubr.msk.f32.gmra.mrb[18].mxu1 %vm791_vm2, %v15382_v0  ;;  %v21551_v0 = vld [vmem:[#allocation153_spill] sm:$0xff] }
 0x346   : > { %13903 = vmatmul.mubr.msk.f32.gmra.mrb[82].mxu0 %vm791_vm2, %v21548_v18  ;;  %13033 = vmatprep.mubr.msk.f32.mxu1 %vm791_vm2, %v15383_v58  ;;  %v15386_v18 = vld [vmem:[%s15642_s9 + $0x108] sm:$0xff] }
 0x347   : > { %13905 = vmatprep.mubr.msk.f32.mxu0 %vm791_vm2, %v21549_v61  ;;  %v21552_v58 = vld [vmem:[#allocation155_spill] sm:$0xff]  ;;  %v15387_v61 = vld [vmem:[%s15642_s9 + $0x118] sm:$0xff] }
 0x349   : > { %13034 = vmatmul.mubr.msk.f32.gmra.mrb[20].mxu1 %vm791_vm2, %v15384_v13  ;;  %v21553_v13 = vld [vmem:[#allocation157_spill] sm:$0xff] }
 0x34a   : > { %13906 = vmatmul.mubr.msk.f32.gmra.mrb[84].mxu0 %vm791_vm2, %v21550_v62  ;;  %13036 = vmatprep.mubr.msk.f32.mxu1 %vm791_vm2, %v15385_v30  ;;  %v15388_v62 = vld [vmem:[%s15642_s9 + $0x120] sm:$0xff]  ;;  %v21554_v30 = vld [vmem:[#allocation161_spill] sm:$0xff] }
 0x34b   : > { %13908 = vmatprep.mubr.msk.f32.mxu0 %vm791_vm2, %v21551_v0  ;;  %v15389_v0 = vld [vmem:[%s15642_s9 + $0x128] sm:$0xff] }
 0x34d   : > { %13037 = vmatmul.mubr.msk.f32.gmra.mrb[22].mxu1 %vm791_vm2, %v15386_v18  ;;  %v21555_v18 = vld [vmem:[#allocation163_spill] sm:$0xff] }
 0x34e   : > { %13909 = vmatmul.mubr.msk.f32.gmra.mrb[86].mxu0 %vm791_vm2, %v21552_v58  ;;  %13039 = vmatprep.mubr.msk.f32.mxu1 %vm791_vm2, %v15387_v61  ;;  %v15390_v58 = vld [vmem:[%s15642_s9 + $0x130] sm:$0xff]  ;;  %v21556_v61 = vld [vmem:[#allocation166_spill] sm:$0xff] }
 0x34f   : > { %13911 = vmatprep.mubr.msk.f32.mxu0 %vm791_vm2, %v21553_v13  ;;  %v15391_v13 = vld [vmem:[%s15642_s9 + $0x140] sm:$0xff] }
 0x351   : > { %13040 = vmatmul.mubr.msk.f32.gmra.mrb[24].mxu1 %vm791_vm2, %v15388_v62  ;;  %v21557_v62 = vld [vmem:[#allocation167_spill] sm:$0xff] }
 0x352   : > { %13912 = vmatmul.mubr.msk.f32.gmra.mrb[88].mxu0 %vm791_vm2, %v21554_v30  ;;  %13042 = vmatprep.mubr.msk.f32.mxu1 %vm791_vm2, %v15389_v0  ;;  %v15392_v30 = vld [vmem:[%s15642_s9 + $0x148] sm:$0xff] }
 0x353   : > { %13914 = vmatprep.mubr.msk.f32.mxu0 %vm791_vm2, %v21555_v18  ;;  %v21558_v0 = vld [vmem:[#allocation171_spill] sm:$0xff]  ;;  %v15393_v18 = vld [vmem:[%s15642_s9 + $0x150] sm:$0xff] }
 0x355   : > { %13043 = vmatmul.mubr.msk.f32.gmra.mrb[26].mxu1 %vm791_vm2, %v15390_v58  ;;  %v21559_v58 = vld [vmem:[#allocation173_spill] sm:$0xff] }
 0x356   : > { %13915 = vmatmul.mubr.msk.f32.gmra.mrb[90].mxu0 %vm791_vm2, %v21556_v61  ;;  %13045 = vmatprep.mubr.msk.f32.mxu1 %vm791_vm2, %v15391_v13  ;;  %v15394_v61 = vld [vmem:[%s15642_s9 + $0x158] sm:$0xff]  ;;  %v21560_v13 = vld [vmem:[#allocation44_spill] sm:$0xff] }
 0x357   : > { %13917 = vmatprep.mubr.msk.f32.mxu0 %vm791_vm2, %v21557_v62  ;;  %v15395_v62 = vld [vmem:[%s15642_s9 + $0x168] sm:$0xff] }
 0x359   : > { %13046 = vmatmul.mubr.msk.f32.gmra.mrb[28].mxu1 %vm791_vm2, %v15392_v30  ;;  %v21561_v30 = vld [vmem:[#allocation175_spill] sm:$0xff] }
 0x35a   : > { %13918 = vmatmul.mubr.msk.f32.gmra.mrb[92].mxu0 %vm791_vm2, %v21558_v0  ;;  %13048 = vmatprep.mubr.msk.f32.mxu1 %vm791_vm2, %v15393_v18  ;;  %v15396_v0 = vld [vmem:[%s15642_s9 + $0x170] sm:$0xff]  ;;  %v21562_v18 = vld [vmem:[#allocation179_spill] sm:$0xff] }
 0x35b   : > { %13920 = vmatprep.mubr.msk.f32.mxu0 %vm791_vm2, %v21559_v58  ;;  %v15397_v58 = vld [vmem:[%s15642_s9 + $0x178] sm:$0xff] }
 0x35d   : > { %13049 = vmatmul.mubr.msk.f32.gmra.mrb[30].mxu1 %vm791_vm2, %v15394_v61  ;;  %v21563_v61 = vld [vmem:[#allocation181_spill] sm:$0xff] }
 0x35e   : > { %13921 = vmatmul.mubr.msk.f32.gmra.mrb[94].mxu0 %vm791_vm2, %v21560_v13  ;;  %13051 = vmatprep.mubr.msk.f32.mxu1 %vm791_vm2, %v15395_v62  ;;  %v15398_v13 = vld [vmem:[%s15642_s9 + $0x180] sm:$0xff]  ;;  %v21564_v62 = vld [vmem:[#allocation53_spill] sm:$0xff] }
 0x35f   : > { %13923 = vmatprep.mubr.msk.f32.mxu0 %vm791_vm2, %v21561_v30  ;;  %v15399_v30 = vld [vmem:[%s15642_s9 + $0x190] sm:$0xff] }
 0x361   : > { %13052 = vmatmul.mubr.msk.f32.gmra.mrb[32].mxu1 %vm791_vm2, %v15396_v0  ;;  %v21565_v0 = vld [vmem:[#allocation183_spill] sm:$0xff] }
 0x362   : > { %13924 = vmatmul.mubr.msk.f32.gmra.mrb[96].mxu0 %vm791_vm2, %v21562_v18  ;;  %13054 = vmatprep.mubr.msk.f32.mxu1 %vm791_vm2, %v15397_v58  ;;  %v15400_v18 = vld [vmem:[%s15642_s9 + $0x198] sm:$0xff]  ;;  %v21566_v58 = vld [vmem:[#allocation187_spill] sm:$0xff] }
 0x363   : > { %13926 = vmatprep.mubr.msk.f32.mxu0 %vm791_vm2, %v21563_v61  ;;  %v15401_v61 = vld [vmem:[%s15642_s9 + $0x1a0] sm:$0xff] }
 0x365   : > { %13055 = vmatmul.mubr.msk.f32.gmra.mrb[34].mxu1 %vm791_vm2, %v15398_v13  ;;  %v21567_v13 = vld [vmem:[#allocation189_spill] sm:$0xff] }
 0x366   : > { %13927 = vmatmul.mubr.msk.f32.gmra.mrb[98].mxu0 %vm791_vm2, %v21564_v62  ;;  %13057 = vmatprep.mubr.msk.f32.mxu1 %vm791_vm2, %v15399_v30  ;;  %v15402_v62 = vld [vmem:[%s15642_s9 + $0x1a8] sm:$0xff]  ;;  %v21568_v30 = vld [vmem:[#allocation62_spill] sm:$0xff] }
 0x367   : > { %13929 = vmatprep.mubr.msk.f32.mxu0 %vm791_vm2, %v21565_v0  ;;  %v15403_v0 = vld [vmem:[%s15642_s9 + $0x1b8] sm:$0xff] }
 0x369   : > { %13058 = vmatmul.mubr.msk.f32.gmra.mrb[36].mxu1 %vm791_vm2, %v15400_v18  ;;  %v21569_v18 = vld [vmem:[#allocation191_spill] sm:$0xff] }
 0x36a   : > { %13930 = vmatmul.mubr.msk.f32.gmra.mrb[100].mxu0 %vm791_vm2, %v21566_v58  ;;  %13060 = vmatprep.mubr.msk.f32.mxu1 %vm791_vm2, %v15401_v61  ;;  %v15404_v58 = vld [vmem:[%s15642_s9 + $0x1c0] sm:$0xff]  ;;  %v21570_v61 = vld [vmem:[#allocation195_spill] sm:$0xff] }
 0x36b   : > { %13932 = vmatprep.mubr.msk.f32.mxu0 %vm791_vm2, %v21567_v13  ;;  %v15405_v13 = vld [vmem:[%s15642_s9 + $0x1c8] sm:$0xff] }
 0x36d   : > { %13061 = vmatmul.mubr.msk.f32.gmra.mrb[38].mxu1 %vm791_vm2, %v15402_v62  ;;  %v21571_v62 = vld [vmem:[#allocation197_spill] sm:$0xff] }
 0x36e   : > { %13933 = vmatmul.mubr.msk.f32.gmra.mrb[102].mxu0 %vm791_vm2, %v21568_v30  ;;  %13063 = vmatprep.mubr.msk.f32.mxu1 %vm791_vm2, %v15403_v0  ;;  %v15406_v30 = vld [vmem:[%s15642_s9 + $0x1d0] sm:$0xff]  ;;  %v21572_v0 = vld [vmem:[#allocation71_spill] sm:$0xff] }
 0x36f   : > { %13935 = vmatprep.mubr.msk.f32.mxu0 %vm791_vm2, %v21569_v18  ;;  %v15407_v18 = vld [vmem:[%s15642_s9 + $0x1e0] sm:$0xff] }
 0x371   : > { %13064 = vmatmul.mubr.msk.f32.gmra.mrb[40].mxu1 %vm791_vm2, %v15404_v58  ;;  %v21573_v58 = vld [vmem:[#allocation199_spill] sm:$0xff] }
 0x372   : > { %13936 = vmatmul.mubr.msk.f32.gmra.mrb[104].mxu0 %vm791_vm2, %v21570_v61  ;;  %13066 = vmatprep.mubr.msk.f32.mxu1 %vm791_vm2, %v15405_v13  ;;  %v15408_v61 = vld [vmem:[%s15642_s9 + $0x1e8] sm:$0xff] }
 0x373   : > { %13938 = vmatprep.mubr.msk.f32.mxu0 %vm791_vm2, %v21571_v62  ;;  %v21574_v13 = vld [vmem:[#allocation203_spill] sm:$0xff]  ;;  %v15409_v62 = vld [vmem:[%s15642_s9 + $0x1f0] sm:$0xff] }
 0x375   : > { %13067 = vmatmul.mubr.msk.f32.gmra.mrb[42].mxu1 %vm791_vm2, %v15406_v30  ;;  %v21575_v30 = vld [vmem:[#allocation205_spill] sm:$0xff] }
 0x376   : > { %13939 = vmatmul.mubr.msk.f32.gmra.mrb[106].mxu0 %vm791_vm2, %v21572_v0  ;;  %13069 = vmatprep.mubr.msk.f32.mxu1 %vm791_vm2, %v15407_v18  ;;  %v15410_v0 = vld [vmem:[%s15642_s9 + $0x1f8] sm:$0xff]  ;;  %v21576_v18 = vld [vmem:[#allocation80_spill] sm:$0xff] }
 0x377   : > { %13941 = vmatprep.mubr.msk.f32.mxu0 %vm791_vm2, %v21573_v58  ;;  %v15411_v58 = vld [vmem:[%s15642_s9 + $0x208] sm:$0xff] }
 0x379   : > { %13070 = vmatmul.mubr.msk.f32.gmra.mrb[44].mxu1 %vm791_vm2, %v15408_v61  ;;  %v21577_v61 = vld [vmem:[#allocation207_spill] sm:$0xff] }
 0x37a   : > { %13942 = vmatmul.mubr.msk.f32.gmra.mrb[108].mxu0 %vm791_vm2, %v21574_v13  ;;  %13072 = vmatprep.mubr.msk.f32.mxu1 %vm791_vm2, %v15409_v62  ;;  %v15412_v13 = vld [vmem:[%s15642_s9 + $0x210] sm:$0xff]  ;;  %v21578_v62 = vld [vmem:[#allocation211_spill] sm:$0xff] }
 0x37b   : > { %13944 = vmatprep.mubr.msk.f32.mxu0 %vm791_vm2, %v21575_v30  ;;  %v15413_v30 = vld [vmem:[%s15642_s9 + $0x218] sm:$0xff] }
 0x37d   : > { %13073 = vmatmul.mubr.msk.f32.gmra.mrb[46].mxu1 %vm791_vm2, %v15410_v0  ;;  %v21579_v0 = vld [vmem:[#allocation213_spill] sm:$0xff] }
 0x37e   : > { %13945 = vmatmul.mubr.msk.f32.gmra.mrb[110].mxu0 %vm791_vm2, %v21576_v18  ;;  %13075 = vmatprep.mubr.msk.f32.mxu1 %vm791_vm2, %v15411_v58  ;;  %v15414_v18 = vld [vmem:[%s15642_s9 + $0x220] sm:$0xff]  ;;  %v21580_v58 = vld [vmem:[#allocation88_spill] sm:$0xff] }
 0x37f   : > { %13947 = vmatprep.mubr.msk.f32.mxu0 %vm791_vm2, %v21577_v61  ;;  %v15415_v61 = vld [vmem:[%s15642_s9 + $0x230] sm:$0xff] }
 0x381   : > { %13076 = vmatmul.mubr.msk.f32.gmra.mrb[48].mxu1 %vm791_vm2, %v15412_v13  ;;  %v21581_v13 = vld [vmem:[#allocation217_spill] sm:$0xff] }
 0x382   : > { %13948 = vmatmul.mubr.msk.f32.gmra.mrb[112].mxu0 %vm791_vm2, %v21578_v62  ;;  %13078 = vmatprep.mubr.msk.f32.mxu1 %vm791_vm2, %v15413_v30  ;;  %v19375_v62 = vld [vmem:[%s15642_s9 + $0x500] sm:$0xff] }
 0x383   : > { %13950 = vmatprep.mubr.msk.f32.mxu0 %vm791_vm2, %v21579_v0  ;;  %21582 = vst [vmem:[#allocation229_spill] sm:$0xff] %v19375_v62  ;;  %v4955_v30 = vrot.slane %v19375_v62, 1  ;;  %v19379_v0 = vld [vmem:[%s15642_s9 + $0x508] sm:$0xff]  ;;  %v4958_v62 = vrot.slane %v19391_v52, 1  ;;  %v15424_v52 = vld [vmem:[%s15642_s9 + $0x520] sm:$0x3] }
 0x384   : > { %21583 = vst [vmem:[#allocation210_spill] sm:$0xff] %v19379_v0 }
 0x385   : > { %13079 = vmatmul.mubr.msk.f32.gmra.mrb[50].mxu1 %vm791_vm2, %v15414_v18  ;;  %v4956_v18 = vrot.slane %v19379_v0, 1 }
 0x386   : > { %13951 = vmatmul.mubr.msk.f32.gmra.mrb[114].mxu0 %vm791_vm2, %v21580_v58  ;;  %13081 = vmatprep.mubr.msk.f32.mxu1 %vm791_vm2, %v15415_v61  ;;  %v21584_v58 = vld [vmem:[#allocation219_spill] sm:$0xff]  ;;  %v15419_v61 = vld [vmem:[%s15642_s9 + $0x240] sm:$0xff] }
 0x387   : > { %13953 = vmatprep.mubr.msk.f32.mxu0 %vm791_vm2, %v21581_v13  ;;  %v21585_v13 = vld [vmem:[#allocation221_spill] sm:$0xff]  ;;  %v19395_v0 = vsel %vm500_vm1, %v4955_v30, %v4956_v18  ;;  %v19410_v30 = vsel %vm500_vm1, %v4956_v18, %v4958_v62  ;;  %v15427_v18 = vld [vmem:[%s15642_s9 + $0x270] sm:$0xff] }
 0x389   : > { %13082 = vmatmul.mubr.msk.f32.gmra.mrb[52].mxu1 %vm791_vm2, %v15418_v38  ;;  %v4960_v38 = vrot.slane %v19398_v7, 1  ;;  %v4962_v7 = vrot.slane %v15424_v52, 1  ;;  %v7519_v52 = vrot.slane %v18885_v14, 1  ;;  %v15428_v14 = vld [vmem:[%s15642_s9 + $0x280] sm:$0xff] }
 0x38a   : > { %13954 = vmatmul.mubr.msk.f32.gmra.mrb[116].mxu0 %vm791_vm2, %v21584_v58  ;;  %13084 = vmatprep.mubr.msk.f32.mxu1 %vm791_vm2, %v15419_v61  ;;  %v15422_v58 = vld [vmem:[%s15642_s9 + $0x248] sm:$0xff] }
 0x38b   : > { %13956 = vmatprep.mubr.msk.f32.mxu0 %vm791_vm2, %v21585_v13  ;;  %v21588_v61 = vld [vmem:[#allocation223_spill] sm:$0xff]  ;;  %v15423_v13 = vld [vmem:[%s15642_s9 + $0x258] sm:$0xff]  ;;  %v19428_v55 = vsel %vm500_vm1, %v4960_v38, %v4962_v7 }
 0x38d   : > { %13085 = vmatmul.mubr.msk.f32.gmra.mrb[54].mxu1 %vm791_vm2, %v15422_v58  ;;  %v7517_v58 = vrot.slane %v18882_v6, 1  ;;  %v7521_v6 = vrot.slane %v18896_v12, 1 }
 0x38e   : > { %13957 = vmatmul.mubr.msk.f32.gmra.mrb[118].mxu0 %vm791_vm2, %v21588_v61  ;;  %13087 = vmatprep.mubr.msk.f32.mxu1 %vm791_vm2, %v15423_v13  ;;  %v19416_v61 = vsel %vm500_vm1, %v4958_v62, %v4960_v38  ;;  %v15426_v13 = vld [vmem:[%s15642_s9 + $0x268] sm:$0xff] }
 0x38f   : > { %13959 = vmatprep.mubr.msk.f32.mxu0 %vm791_vm2, %v19395_v0  ;;  %v19433_v62 = vld [vmem:[%s15642_s9 + $0x548] sm:$0x3]  ;;  %v7520_v7 = vsel %vm500_vm1, %v7517_v58, %v7519_v52  ;;  %v7522_v12 = vsel %vm500_vm1, %v7519_v52, %v7521_v6 }
 0x390   : > { %v15429_v38 = vld [vmem:[%s15642_s9 + $0x288] sm:$0xff] }
 0x391   : > { %13088 = vmatmul.mubr.msk.f32.gmra.mrb[56].mxu1 %vm791_vm2, %v15425_v10  ;;  %v7518_v10 = vsel %vm500_vm1, %v7516_v3, %v7517_v58  ;;  %v7523_v3 = vrot.slane %v19433_v62, 1  ;;  %v15431_v58 = vld [vmem:[%s15642_s9 + $0x298] sm:$0xff]  ;;  %v15432_v52 = vld [vmem:[%s15642_s9 + $0x2a8] sm:$0xff] }
 0x392   : > { %13960 = vmatmul.mubr.msk.f32.gmra.mrb[120].mxu0 %vm791_vm2, %v19410_v30  ;;  %13090 = vmatprep.mubr.msk.f32.mxu1 %vm791_vm2, %v15426_v13  ;;  %v15430_v13 = vld [vmem:[%s15642_s9 + $0x290] sm:$0xff] }
 0x393   : > { %13962 = vmatprep.mubr.msk.f32.mxu0 %vm791_vm2, %v19416_v61 }
 0x395   : > { %13091 = vmatmul.mubr.msk.f32.gmra.mrb[58].mxu1 %vm791_vm2, %v15427_v18  ;;  %v15433_v18 = vld [vmem:[%s15642_s9 + $0x2b0] sm:$0xff] }
 0x396   : > { %13963 = vmatmul.mubr.msk.f32.gmra.mrb[122].mxu0 %vm791_vm2, %v19428_v55  ;;  %13093 = vmatprep.mubr.msk.f32.mxu1 %vm791_vm2, %v15428_v14  ;;  %v15435_v14 = vld [vmem:[%s15642_s9 + $0x2c0] sm:$0xff] }
 0x397   : > { %13965 = vmatprep.mubr.msk.f32.mxu0 %vm791_vm2, %v7518_v10  ;;  %v7524_v10 = vsel %vm500_vm1, %v7521_v6, %v7523_v3  ;;  %v15434_v6 = vld [vmem:[%s15642_s9 + $0x2b8] sm:$0xff]  ;;  %v15475_v3 = vld [vmem:[%s15642_s9 + $0x450] sm:$0xff] }
 0x399   : > { %13094 = vmatmul.mubr.msk.f32.gmra.mrb[60].mxu1 %vm791_vm2, %v15429_v38  ;;  %v15478_v38 = vld [vmem:[%s15642_s9 + $0x470] sm:$0xff] }
 0x39a   : > { %13966 = vmatmul.mubr.msk.f32.gmra.mrb[124].mxu0 %vm791_vm2, %v7520_v7  ;;  %13096 = vmatprep.mubr.msk.f32.mxu1 %vm791_vm2, %v15430_v13 }
 0x39b   : > { %13968 = vmatprep.mubr.msk.f32.mxu0 %vm791_vm2, %v7522_v12 }
 0x39d   : > { %13097 = vmatmul.mubr.msk.f32.gmra.mrb[62].mxu1 %vm791_vm2, %v15431_v58 }
 0x39e   : > { %13969 = vmatmul.mubr.msk.f32.gmra.mrb[126].mxu0 %vm791_vm2, %v7524_v10  ;;  %13099 = vmatprep.mubr.msk.f32.mxu1 %vm791_vm2, %v15432_v52  ;;  %v21590_v10 = vld [vmem:[#allocation268_spill] sm:$0xff] }
 0x39f   : > { %13973 = vmatprep.mubr.msk.f32.mxu0 %vm791_vm2, %v21330_v46  ;;  %v15436_v46 = vld [vmem:[%s15642_s9 + $0x2d0] sm:$0xff] }
 0x3a1   : > { %13100 = vmatmul.mubr.msk.f32.gmra.mrb[64].mxu1 %vm791_vm2, %v15433_v18  ;;  %v21593_v18 = vld [vmem:[#allocation204_spill] sm:$0xff] }
 0x3a2   : > { %13974 = vmatmul.mubr.msk.f32.vlgmr.msra.gmra.mrb[0].mxu0 %vm791_vm2, %v21331_v22  ;;  %13102 = vmatprep.mubr.msk.f32.mxu1 %vm791_vm2, %v15434_v6  ;;  %v15437_v22 = vld [vmem:[%s15642_s9 + $0x2d8] sm:$0xff]  ;;  %v21595_v6 = vld [vmem:[#allocation206_spill] sm:$0xff] }
 0x3a3   : > { %13976 = vmatprep.mubr.msk.f32.mxu0 %vm791_vm2, %v21332_v48  ;;  %v15438_v48 = vld [vmem:[%s15642_s9 + $0x2e0] sm:$0xff] }
 0x3a5   : > { %13103 = vmatmul.mubr.msk.f32.gmra.mrb[66].mxu1 %vm791_vm2, %v15435_v14 }
 0x3a6   : > { %13977 = vmatmul.mubr.msk.f32.gmra.mrb[2].mxu0 %vm791_vm2, %v21333_v49  ;;  %13105 = vmatprep.mubr.msk.f32.mxu1 %vm791_vm2, %v15436_v46  ;;  %v15439_v49 = vld [vmem:[%s15642_s9 + $0x2e8] sm:$0xff] }
 0x3a7   : > { %13979 = vmatprep.mubr.msk.f32.mxu0 %vm791_vm2, %v21334_v40  ;;  %v15440_v40 = vld [vmem:[%s15642_s9 + $0x2f8] sm:$0xff] }
 0x3a9   : > { %13106 = vmatmul.mubr.msk.f32.gmra.mrb[68].mxu1 %vm791_vm2, %v15437_v22  ;;  %v21596_v22 = vld [vmem:[#allocation194_spill] sm:$0xff] }
 0x3aa   : > { %13980 = vmatmul.mubr.msk.f32.gmra.mrb[4].mxu0 %vm791_vm2, %v21335_v51  ;;  %13108 = vmatprep.mubr.msk.f32.mxu1 %vm791_vm2, %v15438_v48  ;;  %v15441_v51 = vld [vmem:[%s15642_s9 + $0x300] sm:$0xff]  ;;  %v21597_v48 = vld [vmem:[#allocation83_spill] sm:$0xff] }
 0x3ab   : > { %13982 = vmatprep.mubr.msk.f32.mxu0 %vm791_vm2, %v21336_v8  ;;  %v15442_v8 = vld [vmem:[%s15642_s9 + $0x308] sm:$0xff] }
 0x3ad   : > { %13109 = vmatmul.mubr.msk.f32.gmra.mrb[70].mxu1 %vm791_vm2, %v15439_v49  ;;  %v21598_v49 = vld [vmem:[#allocation69_spill] sm:$0xff] }
 0x3ae   : > { %13983 = vmatmul.mubr.msk.f32.gmra.mrb[6].mxu0 %vm791_vm2, %v21337_v42  ;;  %13111 = vmatprep.mubr.msk.f32.mxu1 %vm791_vm2, %v15440_v40  ;;  %v15443_v42 = vld [vmem:[%s15642_s9 + $0x310] sm:$0xff]  ;;  %v21599_v40 = vld [vmem:[#allocation209_spill] sm:$0xff] }
 0x3af   : > { %13985 = vmatprep.mubr.msk.f32.mxu0 %vm791_vm2, %v21338_v53  ;;  %v15444_v53 = vld [vmem:[%s15642_s9 + $0x320] sm:$0xff] }
 0x3b1   : > { %13112 = vmatmul.mubr.msk.f32.gmra.mrb[72].mxu1 %vm791_vm2, %v15441_v51 }
 0x3b2   : > { %13986 = vmatmul.mubr.msk.f32.gmra.mrb[8].mxu0 %vm791_vm2, %v21339_v60  ;;  %13114 = vmatprep.mubr.msk.f32.mxu1 %vm791_vm2, %v15442_v8  ;;  %v15445_v60 = vld [vmem:[%s15642_s9 + $0x328] sm:$0xff] }
 0x3b3   : > { %13988 = vmatprep.mubr.msk.f32.mxu0 %vm791_vm2, %v21340_v5  ;;  %v15446_v5 = vld [vmem:[%s15642_s9 + $0x330] sm:$0xff] }
 0x3b5   : > { %13115 = vmatmul.mubr.msk.f32.gmra.mrb[74].mxu1 %vm791_vm2, %v15443_v42  ;;  %v21600_v42 = vld [vmem:[#allocation70_spill] sm:$0xff] }
 0x3b6   : > { %13989 = vmatmul.mubr.msk.f32.gmra.mrb[10].mxu0 %vm791_vm2, %v21341_v16  ;;  %13117 = vmatprep.mubr.msk.f32.mxu1 %vm791_vm2, %v15444_v53  ;;  %v15447_v16 = vld [vmem:[%s15642_s9 + $0x338] sm:$0xff]  ;;  %v21601_v53 = vld [vmem:[#allocation212_spill] sm:$0xff] }
 0x3b7   : > { %13991 = vmatprep.mubr.msk.f32.mxu0 %vm791_vm2, %v21342_v41  ;;  %v15448_v41 = vld [vmem:[%s15642_s9 + $0x348] sm:$0xff] }
 0x3b9   : > { %13118 = vmatmul.mubr.msk.f32.gmra.mrb[76].mxu1 %vm791_vm2, %v15445_v60  ;;  %v21602_v60 = vld [vmem:[#allocation75_spill] sm:$0xff] }
 0x3ba   : > { %13992 = vmatmul.mubr.msk.f32.gmra.mrb[12].mxu0 %vm791_vm2, %v21343_v37  ;;  %13120 = vmatprep.mubr.msk.f32.mxu1 %vm791_vm2, %v15446_v5  ;;  %v15449_v37 = vld [vmem:[%s15642_s9 + $0x350] sm:$0xff]  ;;  %v21603_v5 = vld [vmem:[#allocation215_spill] sm:$0xff] }
 0x3bb   : > { %13994 = vmatprep.mubr.msk.f32.mxu0 %vm791_vm2, %v21344_v56  ;;  %v15450_v56 = vld [vmem:[%s15642_s9 + $0x358] sm:$0xff] }
 0x3bd   : > { %13121 = vmatmul.mubr.msk.f32.gmra.mrb[78].mxu1 %vm791_vm2, %v15447_v16 }
 0x3be   : > { %13995 = vmatmul.mubr.msk.f32.gmra.mrb[14].mxu0 %vm791_vm2, %v21345_v17  ;;  %13123 = vmatprep.mubr.msk.f32.mxu1 %vm791_vm2, %v15448_v41  ;;  %v15451_v17 = vld [vmem:[%s15642_s9 + $0x360] sm:$0xff] }
 0x3bf   : > { %13997 = vmatprep.mubr.msk.f32.mxu0 %vm791_vm2, %v21346_v19  ;;  %v15452_v19 = vld [vmem:[%s15642_s9 + $0x370] sm:$0xff] }
 0x3c1   : > { %13124 = vmatmul.mubr.msk.f32.gmra.mrb[80].mxu1 %vm791_vm2, %v15449_v37  ;;  %v21604_v37 = vld [vmem:[#allocation202_spill] sm:$0xff] }
 0x3c2   : > { %13998 = vmatmul.mubr.msk.f32.gmra.mrb[16].mxu0 %vm791_vm2, %v21347_v9  ;;  %13126 = vmatprep.mubr.msk.f32.mxu1 %vm791_vm2, %v15450_v56  ;;  %v15453_v9 = vld [vmem:[%s15642_s9 + $0x378] sm:$0xff]  ;;  %v21605_v56 = vld [vmem:[#allocation216_spill] sm:$0xff] }
 0x3c3   : > { %14000 = vmatprep.mubr.msk.f32.mxu0 %vm791_vm2, %v21348_v24  ;;  %v15454_v24 = vld [vmem:[%s15642_s9 + $0x380] sm:$0xff] }
 0x3c5   : > { %13127 = vmatmul.mubr.msk.f32.gmra.mrb[82].mxu1 %vm791_vm2, %v15451_v17  ;;  %v21606_v17 = vld [vmem:[#allocation78_spill] sm:$0xff] }
 0x3c6   : > { %14001 = vmatmul.mubr.msk.f32.gmra.mrb[18].mxu0 %vm791_vm2, %v21349_v28  ;;  %13129 = vmatprep.mubr.msk.f32.mxu1 %vm791_vm2, %v15452_v19  ;;  %v15455_v28 = vld [vmem:[%s15642_s9 + $0x388] sm:$0xff]  ;;  %v21607_v19 = vld [vmem:[#allocation218_spill] sm:$0xff] }
 0x3c7   : > { %14003 = vmatprep.mubr.msk.f32.mxu0 %vm791_vm2, %v21350_v26  ;;  %v15456_v26 = vld [vmem:[%s15642_s9 + $0x398] sm:$0xff] }
 0x3c9   : > { %13130 = vmatmul.mubr.msk.f32.gmra.mrb[84].mxu1 %vm791_vm2, %v15453_v9 }
 0x3ca   : > { %14004 = vmatmul.mubr.msk.f32.gmra.mrb[20].mxu0 %vm791_vm2, %v21351_v20  ;;  %13132 = vmatprep.mubr.msk.f32.mxu1 %vm791_vm2, %v15454_v24  ;;  %v15457_v20 = vld [vmem:[%s15642_s9 + $0x3a0] sm:$0xff] }
 0x3cb   : > { %14006 = vmatprep.mubr.msk.f32.mxu0 %vm791_vm2, %v21352_v34  ;;  %v15458_v34 = vld [vmem:[%s15642_s9 + $0x3a8] sm:$0xff] }
 0x3cd   : > { %13133 = vmatmul.mubr.msk.f32.gmra.mrb[86].mxu1 %vm791_vm2, %v15455_v28  ;;  %v21608_v28 = vld [vmem:[#allocation79_spill] sm:$0xff] }
 0x3ce   : > { %14007 = vmatmul.mubr.msk.f32.gmra.mrb[22].mxu0 %vm791_vm2, %v21353_v44  ;;  %13135 = vmatprep.mubr.msk.f32.mxu1 %vm791_vm2, %v15456_v26  ;;  %v15459_v44 = vld [vmem:[%s15642_s9 + $0x3b0] sm:$0xff] }
 0x3cf   : > { %14009 = vmatprep.mubr.msk.f32.mxu0 %vm791_vm2, %v21354_v45  ;;  %v15460_v45 = vld [vmem:[%s15642_s9 + $0x3c0] sm:$0xff]  ;;  %v21609_v26 = vld [vmem:[#allocation220_spill] sm:$0xff] }
 0x3d1   : > { %13136 = vmatmul.mubr.msk.f32.gmra.mrb[88].mxu1 %vm791_vm2, %v15457_v20  ;;  %v21610_v20 = vld [vmem:[#allocation84_spill] sm:$0xff] }
 0x3d2   : > { %14010 = vmatmul.mubr.msk.f32.gmra.mrb[24].mxu0 %vm791_vm2, %v21355_v1  ;;  %13138 = vmatprep.mubr.msk.f32.mxu1 %vm791_vm2, %v15458_v34  ;;  %v15461_v1 = vld [vmem:[%s15642_s9 + $0x3c8] sm:$0xff]  ;;  %v21611_v34 = vld [vmem:[#allocation222_spill] sm:$0xff] }
 0x3d3   : > { %14012 = vmatprep.mubr.msk.f32.mxu0 %vm791_vm2, %v21356_v43  ;;  %v15462_v43 = vld [vmem:[%s15642_s9 + $0x3d0] sm:$0xff] }
 0x3d5   : > { %13139 = vmatmul.mubr.msk.f32.gmra.mrb[90].mxu1 %vm791_vm2, %v15459_v44 }
 0x3d6   : > { %14013 = vmatmul.mubr.msk.f32.gmra.mrb[26].mxu0 %vm791_vm2, %v21357_v39  ;;  %13141 = vmatprep.mubr.msk.f32.mxu1 %vm791_vm2, %v15460_v45  ;;  %v15463_v39 = vld [vmem:[%s15642_s9 + $0x3d8] sm:$0xff] }
 0x3d7   : > { %14015 = vmatprep.mubr.msk.f32.mxu0 %vm791_vm2, %v21358_v50  ;;  %v15464_v50 = vld [vmem:[%s15642_s9 + $0x3e8] sm:$0xff] }
 0x3d9   : > { %13142 = vmatmul.mubr.msk.f32.gmra.mrb[92].mxu1 %vm791_vm2, %v15461_v1  ;;  %v21612_v1 = vld [vmem:[#allocation226_spill] sm:$0xff] }
 0x3da   : > { %14016 = vmatmul.mubr.msk.f32.gmra.mrb[28].mxu0 %vm791_vm2, %v21359_v25  ;;  %13144 = vmatprep.mubr.msk.f32.mxu1 %vm791_vm2, %v15462_v43  ;;  %v15465_v25 = vld [vmem:[%s15642_s9 + $0x3f0] sm:$0xff] }
 0x3db   : > { %14018 = vmatprep.mubr.msk.f32.mxu0 %vm791_vm2, %v21360_v27  ;;  %v15466_v27 = vld [vmem:[%s15642_s9 + $0x3f8] sm:$0xff]  ;;  %v21613_v43 = vld [vmem:[#allocation224_spill] sm:$0xff] }
 0x3dd   : > { %13145 = vmatmul.mubr.msk.f32.gmra.mrb[94].mxu1 %vm791_vm2, %v15463_v39  ;;  %v21614_v39 = vld [vmem:[#allocation229_spill] sm:$0xff] }
 0x3de   : > { %14019 = vmatmul.mubr.msk.f32.gmra.mrb[30].mxu0 %vm791_vm2, %v21361_v2  ;;  %13147 = vmatprep.mubr.msk.f32.mxu1 %vm791_vm2, %v15464_v50  ;;  %v15467_v2 = vld [vmem:[%s15642_s9 + $0x400] sm:$0xff]  ;;  %v21615_v50 = vld [vmem:[#allocation225_spill] sm:$0xff] }
 0x3df   : > { %14021 = vmatprep.mubr.msk.f32.mxu0 %vm791_vm2, %v21362_v21  ;;  %v15468_v21 = vld [vmem:[%s15642_s9 + $0x410] sm:$0xff] }
 0x3e1   : > { %13148 = vmatmul.mubr.msk.f32.gmra.mrb[96].mxu1 %vm791_vm2, %v15465_v25 }
 0x3e2   : > { %14022 = vmatmul.mubr.msk.f32.gmra.mrb[32].mxu0 %vm791_vm2, %v21363_v57  ;;  %13150 = vmatprep.mubr.msk.f32.mxu1 %vm791_vm2, %v15466_v27  ;;  %v15469_v57 = vld [vmem:[%s15642_s9 + $0x418] sm:$0xff] }
 0x3e3   : > { %14024 = vmatprep.mubr.msk.f32.mxu0 %vm791_vm2, %v21364_v11  ;;  %v15470_v11 = vld [vmem:[%s15642_s9 + $0x420] sm:$0xff] }
 0x3e5   : > { %13151 = vmatmul.mubr.msk.f32.gmra.mrb[98].mxu1 %vm791_vm2, %v15467_v2  ;;  %v21616_v2 = vld [vmem:[#allocation210_spill] sm:$0xff] }
 0x3e6   : > { %14025 = vmatmul.mubr.msk.f32.gmra.mrb[34].mxu0 %vm791_vm2, %v21365_v54  ;;  %13153 = vmatprep.mubr.msk.f32.mxu1 %vm791_vm2, %v15468_v21  ;;  %v15471_v54 = vld [vmem:[%s15642_s9 + $0x428] sm:$0xff] }
 0x3e7   : > { %14027 = vmatprep.mubr.msk.f32.mxu0 %vm791_vm2, %v21366_v33  ;;  %v15472_v33 = vld [vmem:[%s15642_s9 + $0x438] sm:$0xff]  ;;  %v21617_v21 = vld [vmem:[#allocation227_spill] sm:$0xff] }
 0x3e9   : > { %13154 = vmatmul.mubr.msk.f32.gmra.mrb[100].mxu1 %vm791_vm2, %v15469_v57  ;;  %v21618_v57 = vld [vmem:[#allocation97_spill] sm:$0xff] }
 0x3ea   : > { %14028 = vmatmul.mubr.msk.f32.gmra.mrb[36].mxu0 %vm791_vm2, %v21368_v32  ;;  %13156 = vmatprep.mubr.msk.f32.mxu1 %vm791_vm2, %v15470_v11  ;;  %v15473_v32 = vld [vmem:[%s15642_s9 + $0x440] sm:$0xff]  ;;  %v21619_v11 = vld [vmem:[#allocation228_spill] sm:$0xff] }
 0x3eb   : > { %14030 = vmatprep.mubr.msk.f32.mxu0 %vm791_vm2, %v21370_v36  ;;  %v15474_v36 = vld [vmem:[%s15642_s9 + $0x448] sm:$0xff] }
 0x3ed   : > { %13157 = vmatmul.mubr.msk.f32.gmra.mrb[102].mxu1 %vm791_vm2, %v15471_v54 }
 0x3ee   : > { %14031 = vmatmul.mubr.msk.f32.gmra.mrb[38].mxu0 %vm791_vm2, %v21372_v59  ;;  %13159 = vmatprep.mubr.msk.f32.mxu1 %vm791_vm2, %v15472_v33 }
 0x3ef   : > { %14033 = vmatprep.mubr.msk.f32.mxu0 %vm791_vm2, %v21374_v4  ;;  %v15476_v4 = vld [vmem:[%s15642_s9 + $0x460] sm:$0xff] }
 0x3f1   : > { %13160 = vmatmul.mubr.msk.f32.gmra.mrb[104].mxu1 %vm791_vm2, %v15473_v32  ;;  %v21620_v32 = vld [vmem:[#allocation214_spill] sm:$0xff] }
 0x3f2   : > { %14034 = vmatmul.mubr.msk.f32.gmra.mrb[40].mxu0 %vm791_vm2, %v21376_v35  ;;  %13162 = vmatprep.mubr.msk.f32.mxu1 %vm791_vm2, %v15474_v36  ;;  %v21621_v36 = vld [vmem:[#allocation230_spill] sm:$0xff] }
 0x3f3   : > { %14036 = vmatprep.mubr.msk.f32.mxu0 %vm791_vm2, %v21378_v63  ;;  %v15477_v63 = vld [vmem:[%s15642_s9 + $0x468] sm:$0xff] }
 0x3f4   : > { %v19627_v59 = vpop.f32.mrb[0].mxu1 }
 0x3f5   : > { %v19629_v7 = vpop.f32.mrb[1].mxu1  ;;  %13163 = vmatmul.mubr.msk.f32.gmra.mrb[106].mxu1 %vm791_vm2, %v15475_v3  ;;  %v21622_v3 = vld [vmem:[#allocation101_spill] sm:$0xff] }
 0x3f6   : > { %14037 = vmatmul.mubr.msk.f32.gmra.mrb[42].mxu0 %vm791_vm2, %v21380_v15  ;;  %13165 = vmatprep.mubr.msk.f32.mxu1 %vm791_vm2, %v15476_v4  ;;  %v21623_v4 = vld [vmem:[#allocation231_spill] sm:$0xff] }
 0x3f7   : > { %14039 = vmatprep.mubr.msk.f32.mxu0 %vm791_vm2, %v21382_v29  ;;  %v21589_v29 = vld [vmem:[#allocation74_spill] sm:$0xff] }
 0x3f8   : > { %v19639_v35 = vpop.f32.mrb[2].mxu1 }
 0x3f9   : > { %v19641_v12 = vpop.f32.mrb[3].mxu1  ;;  %13166 = vmatmul.mubr.msk.f32.gmra.mrb[108].mxu1 %vm791_vm2, %v15477_v63 }
 0x3fa   : > { %14040 = vmatmul.mubr.msk.f32.gmra.mrb[44].mxu0 %vm791_vm2, %v21384_v31  ;;  %13168 = vmatprep.mubr.msk.f32.mxu1 %vm791_vm2, %v15478_v38  ;;  %v21591_v31 = vld [vmem:[#allocation201_spill] sm:$0xff] }
 0x3fb   : > { %14042 = vmatprep.mubr.msk.f32.mxu0 %vm791_vm2, %v21386_v47  ;;  %v21592_v47 = vld [vmem:[#allocation61_spill] sm:$0xff] }
 0x3fc   : > { %v19651_v15 = vpop.f32.mrb[4].mxu1 }
 0x3fd   : > { %v19653_v13 = vpop.f32.mrb[5].mxu1  ;;  %13169 = vmatmul.mubr.msk.f32.gmra.mrb[110].mxu1 %vm791_vm2, %v18770_v23  ;;  %v21594_v23 = vld [vmem:[#allocation66_spill] sm:$0xff] }
 0x3fe   : > { %14043 = vmatmul.mubr.msk.f32.gmra.mrb[46].mxu0 %vm791_vm2, %v21589_v29  ;;  %13171 = vmatprep.mubr.msk.f32.mxu1 %vm791_vm2, %v21590_v10  ;;  %v21624_v29 = vld [vmem:[#allocation103_spill] sm:$0xff]  ;;  %v21625_v10 = vld [vmem:[#allocation233_spill] sm:$0xff] }
 0x3ff   : > { %14045 = vmatprep.mubr.msk.f32.mxu0 %vm791_vm2, %v21591_v31  ;;  %v21626_v31 = vld [vmem:[#allocation105_spill] sm:$0xff] }
 0x400   : > { %v19663_v58 = vpop.f32.mrb[6].mxu1 }
 0x401   : > { %v19665_v52 = vpop.f32.mrb[7].mxu1  ;;  %13172 = vmatmul.mubr.msk.f32.gmra.mrb[112].mxu1 %vm791_vm2, %v21592_v47  ;;  %v21627_v47 = vld [vmem:[#allocation234_spill] sm:$0xff] }
 0x402   : > { %14046 = vmatmul.mubr.msk.f32.gmra.mrb[48].mxu0 %vm791_vm2, %v21593_v18  ;;  %13174 = vmatprep.mubr.msk.f32.mxu1 %vm791_vm2, %v21594_v23 }
 0x403   : > { %14048 = vmatprep.mubr.msk.f32.mxu0 %vm791_vm2, %v21595_v6  ;;  %v21628_v6 = vld [vmem:[#allocation107_spill] sm:$0xff] }
 0x404   : > { %v19675_v14 = vpop.f32.mrb[8].mxu1 }
 0x405   : > { %v19677_v46 = vpop.f32.mrb[9].mxu1  ;;  %13175 = vmatmul.mubr.msk.f32.gmra.mrb[114].mxu1 %vm791_vm2, %v21596_v22  ;;  %v21629_v22 = vld [vmem:[#allocation235_spill] sm:$0xff] }
 0x406   : > { %14049 = vmatmul.mubr.msk.f32.gmra.mrb[50].mxu0 %vm791_vm2, %v21597_v48  ;;  %13177 = vmatprep.mubr.msk.f32.mxu1 %vm791_vm2, %v21598_v49  ;;  %v21630_v48 = vld [vmem:[#allocation109_spill] sm:$0xff]  ;;  %v21631_v49 = vld [vmem:[#allocation236_spill] sm:$0xff] }
 0x407   : > { %14051 = vmatprep.mubr.msk.f32.mxu0 %vm791_vm2, %v21599_v40 }
 0x408   : > { %v19687_v51 = vpop.f32.mrb[10].mxu1 }
 0x409   : > { %v19689_v8 = vpop.f32.mrb[11].mxu1  ;;  %13178 = vmatmul.mubr.msk.f32.gmra.mrb[116].mxu1 %vm791_vm2, %v21600_v42 }
 0x40a   : > { %14052 = vmatmul.mubr.msk.f32.gmra.mrb[52].mxu0 %vm791_vm2, %v21601_v53  ;;  %13180 = vmatprep.mubr.msk.f32.mxu1 %vm791_vm2, %v21602_v60  ;;  %v21632_v53 = vld [vmem:[#allocation111_spill] sm:$0xff]  ;;  %v21633_v60 = vld [vmem:[#allocation237_spill] sm:$0xff] }
 0x40b   : > { %14054 = vmatprep.mubr.msk.f32.mxu0 %vm791_vm2, %v21603_v5  ;;  %v21634_v5 = vld [vmem:[#allocation113_spill] sm:$0xff] }
 0x40c   : > { %v19699_v16 = vpop.f32.mrb[12].mxu1 }
 0x40d   : > { %v19701_v41 = vpop.f32.mrb[13].mxu1  ;;  %13181 = vmatmul.mubr.msk.f32.gmra.mrb[118].mxu1 %vm791_vm2, %v21604_v37  ;;  %v21635_v37 = vld [vmem:[#allocation238_spill] sm:$0xff] }
 0x40e   : > { %14055 = vmatmul.mubr.msk.f32.gmra.mrb[54].mxu0 %vm791_vm2, %v21605_v56  ;;  %13183 = vmatprep.mubr.msk.f32.mxu1 %vm791_vm2, %v21606_v17 }
 0x40f   : > { %14057 = vmatprep.mubr.msk.f32.mxu0 %vm791_vm2, %v21607_v19  ;;  %v21636_v19 = vld [vmem:[#allocation115_spill] sm:$0xff] }
 0x410   : > { %v19711_v9 = vpop.f32.mrb[14].mxu1 }
 0x411   : > { %v19713_v24 = vpop.f32.mrb[15].mxu1  ;;  %13184 = vmatmul.mubr.msk.f32.gmra.mrb[120].mxu1 %vm791_vm2, %v21608_v28  ;;  %v21637_v28 = vld [vmem:[#allocation239_spill] sm:$0xff] }
 0x412   : > { %14058 = vmatmul.mubr.msk.f32.gmra.mrb[56].mxu0 %vm791_vm2, %v21609_v26  ;;  %13186 = vmatprep.mubr.msk.f32.mxu1 %vm791_vm2, %v21610_v20  ;;  %v21638_v26 = vld [vmem:[#allocation117_spill] sm:$0xff]  ;;  %v21639_v20 = vld [vmem:[#allocation240_spill] sm:$0xff] }
 0x413   : > { %14060 = vmatprep.mubr.msk.f32.mxu0 %vm791_vm2, %v21611_v34 }
 0x414   : > { %v19723_v44 = vpop.f32.mrb[16].mxu1 }
 0x415   : > { %v19725_v45 = vpop.f32.mrb[17].mxu1  ;;  %13187 = vmatmul.mubr.msk.f32.gmra.mrb[122].mxu1 %vm791_vm2, %v21612_v1 }
 0x416   : > { %14061 = vmatmul.mubr.msk.f32.gmra.mrb[58].mxu0 %vm791_vm2, %v21613_v43  ;;  %13189 = vmatprep.mubr.msk.f32.mxu1 %vm791_vm2, %v21614_v39  ;;  %v21640_v43 = vld [vmem:[#allocation119_spill] sm:$0xff]  ;;  %v21641_v39 = vld [vmem:[#allocation241_spill] sm:$0xff] }
 0x417   : > { %14063 = vmatprep.mubr.msk.f32.mxu0 %vm791_vm2, %v21615_v50  ;;  %v21642_v50 = vld [vmem:[#allocation121_spill] sm:$0xff] }
 0x418   : > { %v19735_v25 = vpop.f32.mrb[18].mxu1 }
 0x419   : > { %v19737_v27 = vpop.f32.mrb[19].mxu1  ;;  %13190 = vmatmul.mubr.msk.f32.gmra.mrb[124].mxu1 %vm791_vm2, %v21616_v2  ;;  %v21643_v2 = vld [vmem:[#allocation242_spill] sm:$0xff] }
 0x41a   : > { %14064 = vmatmul.mubr.msk.f32.gmra.mrb[60].mxu0 %vm791_vm2, %v21617_v21  ;;  %13192 = vmatprep.mubr.msk.f32.mxu1 %vm791_vm2, %v21618_v57 }
 0x41b   : > { %14066 = vmatprep.mubr.msk.f32.mxu0 %vm791_vm2, %v21619_v11  ;;  %v21644_v11 = vld [vmem:[#allocation123_spill] sm:$0xff] }
 0x41c   : > { %v19747_v54 = vpop.f32.mrb[20].mxu1 }
 0x41d   : > { %v19749_v33 = vpop.f32.mrb[21].mxu1  ;;  %13193 = vmatmul.mubr.msk.f32.gmra.mrb[126].mxu1 %vm791_vm2, %v21620_v32  ;;  %v21645_v32 = vld [vmem:[#allocation243_spill] sm:$0xff] }
 0x41e   : > { %14067 = vmatmul.mubr.msk.f32.gmra.mrb[62].mxu0 %vm791_vm2, %v21621_v36  ;;  %13293 = vmatprep.mubr.msk.f32.mxu1 %vm791_vm2, %v21622_v3  ;;  %v21646_v36 = vld [vmem:[#allocation125_spill] sm:$0xff]  ;;  %v21647_v3 = vld [vmem:[#allocation244_spill] sm:$0xff] }
 0x41f   : > { %14069 = vmatprep.mubr.msk.f32.mxu0 %vm791_vm2, %v21623_v4 }
 0x420   : > { %v19759_v63 = vpop.f32.mrb[22].mxu1 }
 0x421   : > { %v19761_v38 = vpop.f32.mrb[23].mxu1  ;;  %13294 = vmatmul.mubr.msk.f32.vlgmr.msra.gmra.mrb[64].mxu1 %vm791_vm2, %v21624_v29 }
 0x422   : > { %14070 = vmatmul.mubr.msk.f32.gmra.mrb[64].mxu0 %vm791_vm2, %v21625_v10  ;;  %13296 = vmatprep.mubr.msk.f32.mxu1 %vm791_vm2, %v21626_v31  ;;  %v21648_v10 = vld [vmem:[#allocation127_spill] sm:$0xff]  ;;  %v21649_v31 = vld [vmem:[#allocation245_spill] sm:$0xff] }
 0x423   : > { %14072 = vmatprep.mubr.msk.f32.mxu0 %vm791_vm2, %v21627_v47  ;;  %v21650_v47 = vld [vmem:[#allocation129_spill] sm:$0xff] }
 0x424   : > { %v19771_v18 = vpop.f32.mrb[24].mxu1 }
 0x425   : > { %v19773_v23 = vpop.f32.mrb[25].mxu1  ;;  %13297 = vmatmul.mubr.msk.f32.gmra.mrb[66].mxu1 %vm791_vm2, %v21628_v6  ;;  %v21651_v6 = vld [vmem:[#allocation246_spill] sm:$0xff] }
 0x426   : > { %14073 = vmatmul.mubr.msk.f32.gmra.mrb[66].mxu0 %vm791_vm2, %v21629_v22  ;;  %13299 = vmatprep.mubr.msk.f32.mxu1 %vm791_vm2, %v21630_v48 }
 0x427   : > { %14075 = vmatprep.mubr.msk.f32.mxu0 %vm791_vm2, %v21631_v49  ;;  %v21652_v49 = vld [vmem:[#allocation131_spill] sm:$0xff] }
 0x428   : > { %v19783_v40 = vpop.f32.mrb[26].mxu1 }
 0x429   : > { %v19785_v42 = vpop.f32.mrb[27].mxu1  ;;  %13300 = vmatmul.mubr.msk.f32.gmra.mrb[68].mxu1 %vm791_vm2, %v21632_v53  ;;  %v21653_v53 = vld [vmem:[#allocation247_spill] sm:$0xff] }
 0x42a   : > { %14076 = vmatmul.mubr.msk.f32.gmra.mrb[68].mxu0 %vm791_vm2, %v21633_v60  ;;  %13302 = vmatprep.mubr.msk.f32.mxu1 %vm791_vm2, %v21634_v5  ;;  %v21654_v60 = vld [vmem:[#allocation133_spill] sm:$0xff]  ;;  %v21655_v5 = vld [vmem:[#allocation248_spill] sm:$0xff] }
 0x42b   : > { %14078 = vmatprep.mubr.msk.f32.mxu0 %vm791_vm2, %v21635_v37 }
 0x42c   : > { %v19795_v56 = vpop.f32.mrb[28].mxu1 }
 0x42d   : > { %v19797_v17 = vpop.f32.mrb[29].mxu1  ;;  %13303 = vmatmul.mubr.msk.f32.gmra.mrb[70].mxu1 %vm791_vm2, %v21636_v19 }
 0x42e   : > { %14079 = vmatmul.mubr.msk.f32.gmra.mrb[70].mxu0 %vm791_vm2, %v21637_v28  ;;  %13305 = vmatprep.mubr.msk.f32.mxu1 %vm791_vm2, %v21638_v26  ;;  %v21656_v28 = vld [vmem:[#allocation135_spill] sm:$0xff]  ;;  %v21657_v26 = vld [vmem:[#allocation249_spill] sm:$0xff] }
 0x42f   : > { %14081 = vmatprep.mubr.msk.f32.mxu0 %vm791_vm2, %v21639_v20  ;;  %v21658_v20 = vld [vmem:[#allocation137_spill] sm:$0xff] }
 0x430   : > { %v19807_v34 = vpop.f32.mrb[30].mxu1 }
 0x431   : > { %v19809_v1 = vpop.f32.mrb[31].mxu1  ;;  %13306 = vmatmul.mubr.msk.f32.gmra.mrb[72].mxu1 %vm791_vm2, %v21640_v43  ;;  %v21659_v43 = vld [vmem:[#allocation250_spill] sm:$0xff] }
 0x432   : > { %14082 = vmatmul.mubr.msk.f32.gmra.mrb[72].mxu0 %vm791_vm2, %v21641_v39  ;;  %13308 = vmatprep.mubr.msk.f32.mxu1 %vm791_vm2, %v21642_v50 }
 0x433   : > { %14084 = vmatprep.mubr.msk.f32.mxu0 %vm791_vm2, %v21643_v2  ;;  %v21660_v2 = vld [vmem:[#allocation139_spill] sm:$0xff] }
 0x434   : > { %v19819_v21 = vpop.f32.mrb[32].mxu1 }
 0x435   : > { %v19821_v57 = vpop.f32.mrb[33].mxu1  ;;  %13309 = vmatmul.mubr.msk.f32.gmra.mrb[74].mxu1 %vm791_vm2, %v21644_v11  ;;  %v21661_v11 = vld [vmem:[#allocation251_spill] sm:$0xff] }
 0x436   : > { %14085 = vmatmul.mubr.msk.f32.gmra.mrb[74].mxu0 %vm791_vm2, %v21645_v32  ;;  %13311 = vmatprep.mubr.msk.f32.mxu1 %vm791_vm2, %v21646_v36  ;;  %v21662_v32 = vld [vmem:[#allocation141_spill] sm:$0xff]  ;;  %v21663_v36 = vld [vmem:[#allocation252_spill] sm:$0xff] }
 0x437   : > { %14087 = vmatprep.mubr.msk.f32.mxu0 %vm791_vm2, %v21647_v3 }
 0x438   : > { %v19831_v4 = vpop.f32.mrb[34].mxu1 }
 0x439   : > { %v19833_v29 = vpop.f32.mrb[35].mxu1  ;;  %13312 = vmatmul.mubr.msk.f32.gmra.mrb[76].mxu1 %vm791_vm2, %v21648_v10 }
 0x43a   : > { %14088 = vmatmul.mubr.msk.f32.gmra.mrb[76].mxu0 %vm791_vm2, %v21649_v31  ;;  %13314 = vmatprep.mubr.msk.f32.mxu1 %vm791_vm2, %v21650_v47  ;;  %v21664_v31 = vld [vmem:[#allocation143_spill] sm:$0xff]  ;;  %v21665_v47 = vld [vmem:[#allocation253_spill] sm:$0xff] }
 0x43b   : > { %14090 = vmatprep.mubr.msk.f32.mxu0 %vm791_vm2, %v21651_v6  ;;  %v21666_v6 = vld [vmem:[#allocation145_spill] sm:$0xff] }
 0x43c   : > { %v19843_v22 = vpop.f32.mrb[36].mxu1 }
 0x43d   : > { %v19845_v48 = vpop.f32.mrb[37].mxu1  ;;  %13315 = vmatmul.mubr.msk.f32.gmra.mrb[78].mxu1 %vm791_vm2, %v21652_v49  ;;  %v21667_v49 = vld [vmem:[#allocation254_spill] sm:$0xff] }
 0x43e   : > { %14091 = vmatmul.mubr.msk.f32.gmra.mrb[78].mxu0 %vm791_vm2, %v21653_v53  ;;  %13317 = vmatprep.mubr.msk.f32.mxu1 %vm791_vm2, %v21654_v60 }
 0x43f   : > { %14093 = vmatprep.mubr.msk.f32.mxu0 %vm791_vm2, %v21655_v5  ;;  %v21668_v5 = vld [vmem:[#allocation147_spill] sm:$0xff] }
 0x440   : > { %v19855_v37 = vpop.f32.mrb[38].mxu1 }
 0x441   : > { %v19857_v19 = vpop.f32.mrb[39].mxu1  ;;  %13318 = vmatmul.mubr.msk.f32.gmra.mrb[80].mxu1 %vm791_vm2, %v21656_v28  ;;  %v21669_v28 = vld [vmem:[#allocation255_spill] sm:$0xff] }
 0x442   : > { %14094 = vmatmul.mubr.msk.f32.gmra.mrb[80].mxu0 %vm791_vm2, %v21657_v26  ;;  %13320 = vmatprep.mubr.msk.f32.mxu1 %vm791_vm2, %v21658_v20  ;;  %v21670_v26 = vld [vmem:[#allocation149_spill] sm:$0xff]  ;;  %v21671_v20 = vld [vmem:[#allocation256_spill] sm:$0xff] }
 0x443   : > { %14096 = vmatprep.mubr.msk.f32.mxu0 %vm791_vm2, %v21659_v43 }
 0x444   : > { %v19867_v39 = vpop.f32.mrb[40].mxu1 }
 0x445   : > { %v19869_v50 = vpop.f32.mrb[41].mxu1  ;;  %13321 = vmatmul.mubr.msk.f32.gmra.mrb[82].mxu1 %vm791_vm2, %v21660_v2 }
 0x446   : > { %14097 = vmatmul.mubr.msk.f32.gmra.mrb[82].mxu0 %vm791_vm2, %v21661_v11  ;;  %13323 = vmatprep.mubr.msk.f32.mxu1 %vm791_vm2, %v21662_v32  ;;  %v21674_v11 = vld [vmem:[#allocation151_spill] sm:$0xff]  ;;  %v21675_v32 = vld [vmem:[#allocation257_spill] sm:$0xff] }
 0x447   : > { %14099 = vmatprep.mubr.msk.f32.mxu0 %vm791_vm2, %v21663_v36  ;;  %v21676_v36 = vld [vmem:[#allocation153_spill] sm:$0xff] }
 0x448   : > { %v19879_v3 = vpop.f32.mrb[42].mxu1 }
 0x449   : > { %v19881_v10 = vpop.f32.mrb[43].mxu1  ;;  %13324 = vmatmul.mubr.msk.f32.gmra.mrb[84].mxu1 %vm791_vm2, %v21664_v31  ;;  %v21677_v31 = vld [vmem:[#allocation258_spill] sm:$0xff] }
 0x44a   : > { %14100 = vmatmul.mubr.msk.f32.gmra.mrb[84].mxu0 %vm791_vm2, %v21665_v47  ;;  %13326 = vmatprep.mubr.msk.f32.mxu1 %vm791_vm2, %v21666_v6 }
 0x44b   : > { %14102 = vmatprep.mubr.msk.f32.mxu0 %vm791_vm2, %v21667_v49  ;;  %v21680_v49 = vld [vmem:[#allocation155_spill] sm:$0xff] }
 0x44c   : > { %v19891_v53 = vpop.f32.mrb[44].mxu1 }
 0x44d   : > { %v19893_v60 = vpop.f32.mrb[45].mxu1  ;;  %13327 = vmatmul.mubr.msk.f32.gmra.mrb[86].mxu1 %vm791_vm2, %v21668_v5  ;;  %v21681_v5 = vld [vmem:[#allocation159_spill] sm:$0xff] }
 0x44e   : > { %14103 = vmatmul.mubr.msk.f32.gmra.mrb[86].mxu0 %vm791_vm2, %v21669_v28  ;;  %13329 = vmatprep.mubr.msk.f32.mxu1 %vm791_vm2, %v21670_v26  ;;  %v21682_v28 = vld [vmem:[#allocation157_spill] sm:$0xff]  ;;  %v21683_v26 = vld [vmem:[#allocation160_spill] sm:$0xff] }
 0x44f   : > { %14105 = vmatprep.mubr.msk.f32.mxu0 %vm791_vm2, %v21671_v20 }
 0x450   : > { %v19903_v43 = vpop.f32.mrb[46].mxu1 }
 0x451   : > { %21672 = vst [vmem:[#allocation232_spill] sm:$0xff] %v19903_v43  ;;  %v19905_v2 = vpop.f32.mrb[47].mxu1  ;;  %13330 = vmatmul.mubr.msk.f32.gmra.mrb[88].mxu1 %vm791_vm2, %v21674_v11  ;;  %v21731_v43 = vld [vmem:[#allocation192_spill] sm:$0xff] }
 0x452   : > { %21673 = vst [vmem:[#allocation87_spill] sm:$0xff] %v19905_v2  ;;  %14106 = vmatmul.mubr.msk.f32.gmra.mrb[88].mxu0 %vm791_vm2, %v21675_v32  ;;  %13332 = vmatprep.mubr.msk.f32.mxu1 %vm791_vm2, %v21676_v36  ;;  %v21686_v32 = vld [vmem:[#allocation161_spill] sm:$0xff]  ;;  %v21687_v36 = vld [vmem:[#allocation164_spill] sm:$0xff] }
 0x453   : > { %14108 = vmatprep.mubr.msk.f32.mxu0 %vm791_vm2, %v21677_v31  ;;  %v21688_v31 = vld [vmem:[#allocation163_spill] sm:$0xff] }
 0x454   : > { %v19915_v47 = vpop.f32.mrb[48].mxu1 }
 0x455   : > { %21678 = vst [vmem:[#allocation96_spill] sm:$0xff] %v19915_v47  ;;  %v19917_v6 = vpop.f32.mrb[49].mxu1  ;;  %13333 = vmatmul.mubr.msk.f32.gmra.mrb[90].mxu1 %vm791_vm2, %v21680_v49  ;;  %v21689_v49 = vld [vmem:[#allocation35_spill] sm:$0xff] }
 0x456   : > { %21679 = vst [vmem:[#allocation98_spill] sm:$0xff] %v19917_v6  ;;  %14109 = vmatmul.mubr.msk.f32.gmra.mrb[90].mxu0 %vm791_vm2, %v21681_v5  ;;  %13335 = vmatprep.mubr.msk.f32.mxu1 %vm791_vm2, %v21682_v28 }
 0x457   : > { %14111 = vmatprep.mubr.msk.f32.mxu0 %vm791_vm2, %v21683_v26  ;;  %v21692_v26 = vld [vmem:[#allocation166_spill] sm:$0xff] }
 0x458   : > { %v19927_v20 = vpop.f32.mrb[50].mxu1 }
 0x459   : > { %21684 = vst [vmem:[#allocation99_spill] sm:$0xff] %v19927_v20  ;;  %v19929_v11 = vpop.f32.mrb[51].mxu1  ;;  %13336 = vmatmul.mubr.msk.f32.gmra.mrb[92].mxu1 %vm791_vm2, %v21686_v32  ;;  %v21694_v32 = vld [vmem:[#allocation167_spill] sm:$0xff] }
 0x45a   : > { %21685 = vst [vmem:[#allocation100_spill] sm:$0xff] %v19929_v11  ;;  %14112 = vmatmul.mubr.msk.f32.gmra.mrb[92].mxu0 %vm791_vm2, %v21687_v36  ;;  %13338 = vmatprep.mubr.msk.f32.mxu1 %vm791_vm2, %v21688_v31  ;;  %v21693_v11 = vld [vmem:[#allocation168_spill] sm:$0xff]  ;;  %v21695_v36 = vld [vmem:[#allocation39_spill] sm:$0xff] }
 0x45b   : > { %14114 = vmatprep.mubr.msk.f32.mxu0 %vm791_vm2, %v21689_v49  ;;  %v21698_v49 = vld [vmem:[#allocation171_spill] sm:$0xff] }
 0x45c   : > { %v19939_v5 = vpop.f32.mrb[52].mxu1 }
 0x45d   : > { %21690 = vst [vmem:[#allocation102_spill] sm:$0xff] %v19939_v5  ;;  %v19941_v28 = vpop.f32.mrb[53].mxu1  ;;  %13339 = vmatmul.mubr.msk.f32.gmra.mrb[94].mxu1 %vm791_vm2, %v21692_v26  ;;  %v21700_v26 = vld [vmem:[#allocation173_spill] sm:$0xff] }
 0x45e   : > { %21691 = vst [vmem:[#allocation104_spill] sm:$0xff] %v19941_v28  ;;  %14115 = vmatmul.mubr.msk.f32.gmra.mrb[94].mxu0 %vm791_vm2, %v21693_v11  ;;  %13341 = vmatprep.mubr.msk.f32.mxu1 %vm791_vm2, %v21694_v32  ;;  %v21699_v28 = vld [vmem:[#allocation170_spill] sm:$0xff] }
 0x45f   : > { %14117 = vmatprep.mubr.msk.f32.mxu0 %vm791_vm2, %v21695_v36  ;;  %v21701_v11 = vld [vmem:[#allocation42_spill] sm:$0xff]  ;;  %v21704_v36 = vld [vmem:[#allocation44_spill] sm:$0xff] }
 0x460   : > { %v19951_v31 = vpop.f32.mrb[54].mxu1 }
 0x461   : > { %21696 = vst [vmem:[#allocation106_spill] sm:$0xff] %v19951_v31  ;;  %v19953_v20 = vpop.f32.mrb[55].mxu1  ;;  %13342 = vmatmul.mubr.msk.f32.gmra.mrb[96].mxu1 %vm791_vm2, %v21698_v49  ;;  %v21706_v49 = vld [vmem:[#allocation175_spill] sm:$0xff] }
 0x462   : > { %21697 = vst [vmem:[#allocation108_spill] sm:$0xff] %v19953_v20  ;;  %14118 = vmatmul.mubr.msk.f32.gmra.mrb[96].mxu0 %vm791_vm2, %v21699_v28  ;;  %13344 = vmatprep.mubr.msk.f32.mxu1 %vm791_vm2, %v21700_v26  ;;  %v21705_v20 = vld [vmem:[#allocation43_spill] sm:$0xff]  ;;  %v21707_v28 = vld [vmem:[#allocation176_spill] sm:$0xff] }
 0x463   : > { %14120 = vmatprep.mubr.msk.f32.mxu0 %vm791_vm2, %v21701_v11  ;;  %v21710_v11 = vld [vmem:[#allocation179_spill] sm:$0xff] }
 0x464   : > { %v19963_v32 = vpop.f32.mrb[56].mxu1 }
 0x465   : > { %21702 = vst [vmem:[#allocation110_spill] sm:$0xff] %v19963_v32  ;;  %v19965_v5 = vpop.f32.mrb[57].mxu1  ;;  %13345 = vmatmul.mubr.msk.f32.gmra.mrb[98].mxu1 %vm791_vm2, %v21704_v36  ;;  %v21712_v36 = vld [vmem:[#allocation181_spill] sm:$0xff] }
 0x466   : > { %21703 = vst [vmem:[#allocation112_spill] sm:$0xff] %v19965_v5  ;;  %14121 = vmatmul.mubr.msk.f32.gmra.mrb[98].mxu0 %vm791_vm2, %v21705_v20  ;;  %13347 = vmatprep.mubr.msk.f32.mxu1 %vm791_vm2, %v21706_v49  ;;  %v21711_v5 = vld [vmem:[#allocation48_spill] sm:$0xff]  ;;  %v21713_v20 = vld [vmem:[#allocation178_spill] sm:$0xff] }
 0x467   : > { %14123 = vmatprep.mubr.msk.f32.mxu0 %vm791_vm2, %v21707_v28  ;;  %v21716_v28 = vld [vmem:[#allocation53_spill] sm:$0xff] }
 0x468   : > { %v19975_v26 = vpop.f32.mrb[58].mxu1 }
 0x469   : > { %21708 = vst [vmem:[#allocation114_spill] sm:$0xff] %v19975_v26  ;;  %v19977_v31 = vpop.f32.mrb[59].mxu1  ;;  %13348 = vmatmul.mubr.msk.f32.gmra.mrb[100].mxu1 %vm791_vm2, %v21710_v11  ;;  %v21718_v11 = vld [vmem:[#allocation183_spill] sm:$0xff] }
 0x46a   : > { %21709 = vst [vmem:[#allocation116_spill] sm:$0xff] %v19977_v31  ;;  %14124 = vmatmul.mubr.msk.f32.gmra.mrb[100].mxu0 %vm791_vm2, %v21711_v5  ;;  %13350 = vmatprep.mubr.msk.f32.mxu1 %vm791_vm2, %v21712_v36  ;;  %v21717_v31 = vld [vmem:[#allocation51_spill] sm:$0xff]  ;;  %v21719_v5 = vld [vmem:[#allocation52_spill] sm:$0xff] }
 0x46b   : > { %14126 = vmatprep.mubr.msk.f32.mxu0 %vm791_vm2, %v21713_v20  ;;  %v21722_v20 = vld [vmem:[#allocation187_spill] sm:$0xff] }
 0x46c   : > { %v19987_v49 = vpop.f32.mrb[60].mxu1 }
 0x46d   : > { %21714 = vst [vmem:[#allocation118_spill] sm:$0xff] %v19987_v49  ;;  %v19989_v32 = vpop.f32.mrb[61].mxu1  ;;  %13351 = vmatmul.mubr.msk.f32.gmra.mrb[102].mxu1 %vm791_vm2, %v21716_v28  ;;  %v21724_v28 = vld [vmem:[#allocation189_spill] sm:$0xff]  ;;  %v21727_v49 = vld [vmem:[#allocation186_spill] sm:$0xff] }
 0x46e   : > { %21715 = vst [vmem:[#allocation120_spill] sm:$0xff] %v19989_v32  ;;  %14127 = vmatmul.mubr.msk.f32.gmra.mrb[102].mxu0 %vm791_vm2, %v21717_v31  ;;  %13353 = vmatprep.mubr.msk.f32.mxu1 %vm791_vm2, %v21718_v11  ;;  %v21723_v32 = vld [vmem:[#allocation184_spill] sm:$0xff]  ;;  %v21725_v31 = vld [vmem:[#allocation57_spill] sm:$0xff] }
 0x46f   : > { %14129 = vmatprep.mubr.msk.f32.mxu0 %vm791_vm2, %v21719_v5  ;;  %v20014_v5 = vld [vmem:[%s20396_s2] ss:$0 sm:$0xff] }
 0x470   : > { %v19999_v36 = vpop.f32.mrb[62].mxu1 }
 0x471   : > { %21720 = vst [vmem:[#allocation122_spill] sm:$0xff] %v19999_v36  ;;  %v20001_v26 = vpop.f32.mrb[63].mxu1  ;;  %13354 = vmatmul.mubr.msk.f32.gmra.mrb[104].mxu1 %vm791_vm2, %v21722_v20  ;;  %v21726_v36 = vld [vmem:[#allocation62_spill] sm:$0xff] }
 0x472   : > { %21721 = vst [vmem:[#allocation124_spill] sm:$0xff] %v20001_v26  ;;  %14130 = vmatmul.mubr.msk.f32.gmra.mrb[104].mxu0 %vm791_vm2, %v21723_v32  ;;  %13356 = vmatprep.mubr.msk.f32.mxu1 %vm791_vm2, %v21724_v28  ;;  %v21728_v32 = vld [vmem:[#allocation191_spill] sm:$0xff] }
 0x473   : > { %14132 = vmatprep.mubr.msk.f32.mxu0 %vm791_vm2, %v21725_v31  ;;  %v21729_v31 = vld [vmem:[#allocation60_spill] sm:$0xff] }
 0x475   : > { %v13975_v11 = vpop.f32.mrb[0].mxu0  ;;  %13357 = vmatmul.mubr.msk.f32.gmra.mrb[106].mxu1 %vm791_vm2, %v21726_v36  ;;  %v21730_v36 = vld [vmem:[#allocation195_spill] sm:$0xff] }
 0x476   : > { %v14167_v20 = vadd.f32 %v13975_v11, %v19627_v59  ;;  %v8459_v26 = vpop.f32.mrb[1].mxu0  ;;  %14133 = vmatmul.mubr.msk.f32.gmra.mrb[106].mxu0 %vm791_vm2, %v21727_v49  ;;  %13359 = vmatprep.mubr.msk.f32.mxu1 %vm791_vm2, %v21728_v32  ;;  %v21732_v32 = vld [vmem:[#allocation197_spill] sm:$0xff] }
 0x477   : > { %v14168_v28 = vadd.f32 %v8459_v26, %v19629_v7  ;;  %14135 = vmatprep.mubr.msk.f32.mxu0 %vm791_vm2, %v21729_v31 }
 0x478   : > { %v9234_v6 = vadd.f32 %v14167_v20, %v20014_v5  ;;  %v21733_v20 = vld [vmem:[#allocation200_spill] sm:$0xff] }
 0x479   : > { %v9233_v47 = vadd.f32 %v14168_v28, %v20014_v5  ;;  %v13978_v2 = vpop.f32.mrb[2].mxu0  ;;  %13360 = vmatmul.mubr.msk.f32.gmra.mrb[108].mxu1 %vm791_vm2, %v21730_v36 }
 0x47a   : > { %v9362_v59 = vmax.f32 %v9234_v6, 0.0  ;;  %v14169_v11 = vadd.f32 %v13978_v2, %v19639_v35  ;;  %v8469_v49 = vpop.f32.mrb[3].mxu0  ;;  %14136 = vmatmul.mubr.msk.f32.gmra.mrb[108].mxu0 %vm791_vm2, %v21731_v43  ;;  %13362 = vmatprep.mubr.msk.f32.mxu1 %vm791_vm2, %v21732_v32  ;;  %v21734_v2 = vld [vmem:[#allocation71_spill] sm:$0xff] }
 0x47b   : > { %v9361_v7 = vmax.f32 %v9233_v47, 0.0  ;;  %v14170_v26 = vadd.f32 %v8469_v49, %v19641_v12  ;;  %14138 = vmatprep.mubr.msk.f32.mxu0 %vm791_vm2, %v21733_v20  ;;  %v21735_v47 = vld [vmem:[#allocation259_spill] sm:$0xff]  ;;  %v21737_v49 = vld [vmem:[#allocation260_spill] sm:$0xff] }
 0x47c   : > { %9490 = vst [vmem:[#allocation2 + $0x8] sm:$0xff] %v9362_v59  ;;  %v9236_v28 = vadd.f32 %v14169_v11, %v20014_v5  ;;  %v21736_v12 = vld [vmem:[#allocation199_spill] sm:$0xff] }
 0x47d   : > { %9489 = vst [vmem:[#allocation2] sm:$0xff] %v9361_v7  ;;  %v9235_v6 = vadd.f32 %v14170_v26, %v20014_v5  ;;  %v13981_v35 = vpop.f32.mrb[4].mxu0  ;;  %13363 = vmatmul.mubr.msk.f32.gmra.mrb[110].mxu1 %vm791_vm2, %v21734_v2  ;;  %v21738_v26 = vld [vmem:[#allocation203_spill] sm:$0xff] }
 0x47e   : > { %v9364_v43 = vmax.f32 %v9236_v28, 0.0  ;;  %v14171_v31 = vadd.f32 %v13981_v35, %v19651_v15  ;;  %v8479_v36 = vpop.f32.mrb[5].mxu0  ;;  %14139 = vmatmul.mubr.msk.f32.gmra.mrb[110].mxu0 %vm791_vm2, %v21735_v47  ;;  %13365 = vmatprep.mubr.msk.f32.mxu1 %vm791_vm2, %v21736_v12  ;;  %v21739_v35 = vld [vmem:[#allocation261_spill] sm:$0xff]  ;;  %v21742_v12 = vld [vmem:[#allocation80_spill] sm:$0xff] }
 0x47f   : > { %v9363_v59 = vmax.f32 %v9235_v6, 0.0  ;;  %v14172_v11 = vadd.f32 %v8479_v36, %v19653_v13  ;;  %14141 = vmatprep.mubr.msk.f32.mxu0 %vm791_vm2, %v21737_v49  ;;  %v21740_v13 = vld [vmem:[#allocation205_spill] sm:$0xff] }
 0x480   : > { %9492 = vst [vmem:[#allocation2 + $0x18] sm:$0xff] %v9364_v43  ;;  %v9238_v32 = vadd.f32 %v14171_v31, %v20014_v5  ;;  %v21741_v31 = vld [vmem:[#allocation208_spill] sm:$0xff] }
 0x481   : > { %9491 = vst [vmem:[#allocation2 + $0x10] sm:$0xff] %v9363_v59  ;;  %v9237_v7 = vadd.f32 %v14172_v11, %v20014_v5  ;;  %v13984_v15 = vpop.f32.mrb[6].mxu0  ;;  %13366 = vmatmul.mubr.msk.f32.gmra.mrb[112].mxu1 %vm791_vm2, %v21738_v26  ;;  %v21745_v26 = vld [vmem:[#allocation263_spill] sm:$0xff] }
 0x482   : > { %v9366_v20 = vmax.f32 %v9238_v32, 0.0  ;;  %v14173_v28 = vadd.f32 %v13984_v15, %v19663_v58  ;;  %v8489_v6 = vpop.f32.mrb[7].mxu0  ;;  %14142 = vmatmul.mubr.msk.f32.gmra.mrb[112].mxu0 %vm791_vm2, %v21739_v35  ;;  %13368 = vmatprep.mubr.msk.f32.mxu1 %vm791_vm2, %v21740_v13  ;;  %v21744_v32 = vld [vmem:[#allocation207_spill] sm:$0xff] }
 0x483   : > { %v9365_v2 = vmax.f32 %v9237_v7, 0.0  ;;  %v14174_v43 = vadd.f32 %v8489_v6, %v19665_v52  ;;  %14144 = vmatprep.mubr.msk.f32.mxu0 %vm791_vm2, %v21741_v31  ;;  %v21743_v52 = vld [vmem:[#allocation262_spill] sm:$0xff]  ;;  %v21746_v6 = vld [vmem:[#allocation211_spill] sm:$0xff] }
 0x484   : > { %9494 = vst [vmem:[#allocation2 + $0x28] sm:$0xff] %v9366_v20  ;;  %v9240_v36 = vadd.f32 %v14173_v28, %v20014_v5  ;;  %v9617_v35 = vld [vmem:[#allocation2] ss:$2 sm:$0xff]  ;;  %v9745_v13 = vld [vmem:[#allocation2 + $0x1] ss:$2 sm:$0xff] }
 0x485   : > { %9493 = vst [vmem:[#allocation2 + $0x20] sm:$0xff] %v9365_v2  ;;  %v9239_v58 = vadd.f32 %v14174_v43, %v20014_v5  ;;  %v13987_v47 = vpop.f32.mrb[8].mxu0  ;;  %13369 = vmatmul.mubr.msk.f32.gmra.mrb[114].mxu1 %vm791_vm2, %v21742_v12  ;;  %v21747_v31 = vld [vmem:[#allocation266_spill] sm:$0xff]  ;;  %v21749_v12 = vld [vmem:[#allocation267_spill] sm:$0xff] }
 0x486   : > { %v9368_v59 = vmax.f32 %v9240_v36, 0.0  ;;  %v14175_v11 = vadd.f32 %v13987_v47, %v19675_v14  ;;  %v8499_v49 = vpop.f32.mrb[9].mxu0  ;;  %14145 = vmatmul.mubr.msk.f32.gmra.mrb[114].mxu0 %vm791_vm2, %v21743_v52  ;;  %13371 = vmatprep.mubr.msk.f32.mxu1 %vm791_vm2, %v21744_v32  ;;  %v21748_v36 = vld [vmem:[#allocation213_spill] sm:$0xff]  ;;  %v9872_v52 = vmax.f32 %v9617_v35, %v9745_v13 }
 0x487   : > { %v9367_v7 = vmax.f32 %v9239_v58, 0.0  ;;  %v14176_v15 = vadd.f32 %v8499_v49, %v19677_v46  ;;  %14147 = vmatprep.mubr.msk.f32.mxu0 %vm791_vm2, %v21745_v26  ;;  %v21752_v35 = vld [vmem:[#allocation217_spill] sm:$0xff] }
 0x488   : > { %9496 = vst [vmem:[#allocation2 + $0x38] sm:$0xff] %v9368_v59  ;;  %v9242_v20 = vadd.f32 %v14175_v11, %v20014_v5  ;;  %v9747_v26 = vld [vmem:[#allocation2 + $0x11] ss:$2 sm:$0xff] }
 0x489   : > { %9495 = vst [vmem:[#allocation2 + $0x30] sm:$0xff] %v9367_v7  ;;  %v9241_v14 = vadd.f32 %v14176_v15, %v20014_v5  ;;  %v13990_v28 = vpop.f32.mrb[10].mxu0  ;;  %13372 = vmatmul.mubr.msk.f32.gmra.mrb[116].mxu1 %vm791_vm2, %v21746_v6  ;;  %v21750_v15 = vld [vmem:[#allocation88_spill] sm:$0xff]  ;;  %v21751_v6 = vld [vmem:[#allocation270_spill] sm:$0xff] }
 0x48a   : > { %v9370_v2 = vmax.f32 %v9242_v20, 0.0  ;;  %v14177_v46 = vadd.f32 %v13990_v28, %v19687_v51  ;;  %v8509_v43 = vpop.f32.mrb[11].mxu0  ;;  %14148 = vmatmul.mubr.msk.f32.gmra.mrb[116].mxu0 %vm791_vm2, %v21747_v31  ;;  %13374 = vmatprep.mubr.msk.f32.mxu1 %vm791_vm2, %v21748_v36  ;;  %v15479_v31 = vld [vmem:[%s15642_s9 + $0x528] sm:$0xff] }
 0x48b   : > { %v9369_v58 = vmax.f32 %v9241_v14, 0.0  ;;  %v14178_v47 = vadd.f32 %v8509_v43, %v19689_v8  ;;  %14150 = vmatprep.mubr.msk.f32.mxu0 %vm791_vm2, %v21749_v12  ;;  %v9619_v8 = vld [vmem:[#allocation2 + $0x10] ss:$2 sm:$0xff]  ;;  %v21753_v43 = vld [vmem:[#allocation271_spill] sm:$0xff]  ;;  %v8371_v36 = vrot.slane %v15479_v31, 2 }
 0x48c   : > { %v9621_v59 = vld [vmem:[#allocation2 + $0x20] ss:$2 sm:$0xff]  ;;  %v9749_v11 = vld [vmem:[#allocation2 + $0x21] ss:$2 sm:$0xff]  ;;  %9498 = vst [vmem:[#allocation2 + $0x48] sm:$0xff] %v9370_v2  ;;  %v9244_v49 = vadd.f32 %v14177_v46, %v20014_v5 }
 0x48d   : > { %v9874_v51 = vmax.f32 %v9621_v59, %v9749_v11  ;;  %9497 = vst [vmem:[#allocation2 + $0x40] sm:$0xff] %v9369_v58  ;;  %v9243_v32 = vadd.f32 %v14178_v47, %v20014_v5  ;;  %v13993_v7 = vpop.f32.mrb[12].mxu0  ;;  %13375 = vmatmul.mubr.msk.f32.gmra.mrb[118].mxu1 %vm791_vm2, %v21750_v15  ;;  %v15480_v58 = vld [vmem:[%s15642_s9 + $0x530] sm:$0xff]  ;;  %v9873_v11 = vmax.f32 %v9619_v8, %v9747_v26  ;;  %v21756_v8 = vld [vmem:[#allocation221_spill] sm:$0xff] }
 0x48e   : > { %v9372_v20 = vmax.f32 %v9244_v49, 0.0  ;;  %v14179_v14 = vadd.f32 %v13993_v7, %v19699_v16  ;;  %v8519_v28 = vpop.f32.mrb[13].mxu0  ;;  %14151 = vmatmul.mubr.msk.f32.gmra.mrb[118].mxu0 %vm791_vm2, %v21751_v6  ;;  %13377 = vmatprep.mubr.msk.f32.mxu1 %vm791_vm2, %v21752_v35  ;;  %v8372_v47 = vrot.slane %v15480_v58, 2  ;;  %v15481_v26 = vld [vmem:[%s15642_s9 + $0x538] sm:$0xff] }
 0x48f   : > { %v9936_v13 = vmax.f32 %v9872_v52, %v9874_v51  ;;  %v9371_v2 = vmax.f32 %v9243_v32, 0.0  ;;  %v14180_v46 = vadd.f32 %v8519_v28, %v19701_v41  ;;  %14153 = vmatprep.mubr.msk.f32.mxu0 %vm791_vm2, %v21753_v43  ;;  %v21754_v51 = vld [vmem:[#allocation219_spill] sm:$0xff] }
 0x490   : > { %v9623_v16 = vld [vmem:[#allocation2 + $0x30] ss:$2 sm:$0xff]  ;;  %v9751_v12 = vld [vmem:[#allocation2 + $0x31] ss:$2 sm:$0xff]  ;;  %9500 = vst [vmem:[#allocation2 + $0x58] sm:$0xff] %v9372_v20  ;;  %v9246_v59 = vadd.f32 %v14179_v14, %v20014_v5  ;;  %v8374_v14 = vrot.slane %v15481_v26, 2  ;;  %v8373_v43 = vsel %vm2721_vm3, %v8371_v36, %v8372_v47 }
 0x491   : > { %9968 = vst [vmem:[%s20107_s8] sm:$0xff] %v9936_v13  ;;  %v9875_v49 = vmax.f32 %v9623_v16, %v9751_v12  ;;  %9499 = vst [vmem:[#allocation2 + $0x50] sm:$0xff] %v9371_v2  ;;  %v9245_v41 = vadd.f32 %v14180_v46, %v20014_v5  ;;  %v13996_v52 = vpop.f32.mrb[14].mxu0  ;;  %13378 = vmatmul.mubr.msk.f32.gmra.mrb[120].mxu1 %vm791_vm2, %v21754_v51  ;;  %v21755_v20 = vld [vmem:[#allocation272_spill] sm:$0xff]  ;;  %v21757_v13 = vld [vmem:[#allocation273_spill] sm:$0xff] }
 0x492   : > { %v9374_v32 = vmax.f32 %v9246_v59, 0.0  ;;  %v14181_v7 = vadd.f32 %v13996_v52, %v19711_v9  ;;  %v8529_v15 = vpop.f32.mrb[15].mxu0  ;;  %14154 = vmatmul.mubr.msk.f32.gmra.mrb[120].mxu0 %vm791_vm2, %v21755_v20  ;;  %13380 = vmatprep.mubr.msk.f32.mxu1 %vm791_vm2, %v21756_v8  ;;  %v15482_v2 = vld [vmem:[%s15642_s9 + $0x540] sm:$0xff]  ;;  %v21758_v16 = vld [vmem:[#allocation223_spill] sm:$0xff]  ;;  %v8378_v52 = vrot.slane %v19433_v62, 2 }
 0x493   : > { %v9937_v28 = vmax.f32 %v9873_v11, %v9875_v49  ;;  %v9373_v6 = vmax.f32 %v9245_v41, 0.0  ;;  %v14182_v35 = vadd.f32 %v8529_v15, %v19713_v24  ;;  %14156 = vmatprep.mubr.msk.f32.mxu0 %vm791_vm2, %v21757_v13  ;;  %v8376_v46 = vrot.slane %v15482_v2, 2  ;;  %v21759_v11 = vld [vmem:[#allocation274_spill] sm:$0xff] }
 0x494   : > { %9502 = vst [vmem:[#allocation2 + $0x68] sm:$0xff] %v9374_v32  ;;  %v9248_v9 = vadd.f32 %v14181_v7, %v20014_v5  ;;  %v8375_v41 = vsel %vm2721_vm3, %v8372_v47, %v8374_v14 }
 0x495   : > { %9969 = vst [vmem:[%s20107_s8 + $0x8] sm:$0xff] %v9937_v28  ;;  %9501 = vst [vmem:[#allocation2 + $0x60] sm:$0xff] %v9373_v6  ;;  %v9247_v31 = vadd.f32 %v14182_v35, %v20014_v5  ;;  %v13999_v58 = vpop.f32.mrb[16].mxu0  ;;  %13381 = vmatmul.mubr.msk.f32.gmra.mrb[122].mxu1 %vm791_vm2, %v21758_v16  ;;  %v8379_v26 = vsel %vm2721_vm3, %v8376_v46, %v8378_v52 }
 0x496   : > { %v9376_v12 = vmax.f32 %v9248_v9, 0.0  ;;  %v14183_v24 = vadd.f32 %v13999_v58, %v19723_v44  ;;  %v8539_v59 = vpop.f32.mrb[17].mxu0  ;;  %14157 = vmatmul.mubr.msk.f32.gmra.mrb[122].mxu0 %vm791_vm2, %v21759_v11  ;;  %13383 = vmatprep.mubr.msk.f32.mxu1 %vm791_vm2, %v19395_v0  ;;  %v8377_v44 = vsel %vm2721_vm3, %v8374_v14, %v8376_v46  ;;  %v9625_v0 = vld [vmem:[#allocation2 + $0x40] ss:$2 sm:$0xff] }
 0x497   : > { %v9375_v49 = vmax.f32 %v9247_v31, 0.0  ;;  %v14184_v36 = vadd.f32 %v8539_v59, %v19725_v45  ;;  %14159 = vmatprep.mubr.msk.f32.mxu0 %vm791_vm2, %v8373_v43  ;;  %v9753_v45 = vld [vmem:[#allocation2 + $0x41] ss:$2 sm:$0xff] }
 0x498   : > { %9504 = vst [vmem:[#allocation2 + $0x78] sm:$0xff] %v9376_v12  ;;  %v9250_v51 = vadd.f32 %v14183_v24, %v20014_v5  ;;  %v9876_v6 = vmax.f32 %v9625_v0, %v9753_v45 }
 0x499   : > { %9503 = vst [vmem:[#allocation2 + $0x70] sm:$0xff] %v9375_v49  ;;  %v9249_v32 = vadd.f32 %v14184_v36, %v20014_v5  ;;  %v14002_v7 = vpop.f32.mrb[18].mxu0  ;;  %13384 = vmatmul.mubr.msk.f32.gmra.mrb[124].mxu1 %vm791_vm2, %v19410_v30 }
 0x49a   : > { %v9378_v15 = vmax.f32 %v9250_v51, 0.0  ;;  %v14185_v20 = vadd.f32 %v14002_v7, %v19735_v25  ;;  %v8549_v47 = vpop.f32.mrb[19].mxu0  ;;  %14160 = vmatmul.mubr.msk.f32.gmra.mrb[124].mxu0 %vm791_vm2, %v8375_v41  ;;  %13386 = vmatprep.mubr.msk.f32.mxu1 %vm791_vm2, %v19416_v61  ;;  %v9627_v61 = vld [vmem:[#allocation2 + $0x50] ss:$2 sm:$0xff] }
 0x49b   : > { %v9377_v62 = vmax.f32 %v9249_v32, 0.0  ;;  %v14186_v8 = vadd.f32 %v8549_v47, %v19737_v27  ;;  %14162 = vmatprep.mubr.msk.f32.mxu0 %vm791_vm2, %v8377_v44  ;;  %v9755_v27 = vld [vmem:[#allocation2 + $0x51] ss:$2 sm:$0xff] }
 0x49c   : > { %v9629_v14 = vld [vmem:[#allocation2 + $0x60] ss:$2 sm:$0xff]  ;;  %v9757_v30 = vld [vmem:[#allocation2 + $0x61] ss:$2 sm:$0xff]  ;;  %9506 = vst [vmem:[#allocation2 + $0x88] sm:$0xff] %v9378_v15  ;;  %v9252_v28 = vadd.f32 %v14185_v20, %v20014_v5  ;;  %v9877_v59 = vmax.f32 %v9627_v61, %v9755_v27 }
 0x49d   : > { %v9878_v25 = vmax.f32 %v9629_v14, %v9757_v30  ;;  %9505 = vst [vmem:[#allocation2 + $0x80] sm:$0xff] %v9377_v62  ;;  %v9251_v35 = vadd.f32 %v14186_v8, %v20014_v5  ;;  %v14005_v13 = vpop.f32.mrb[20].mxu0  ;;  %13387 = vmatmul.mubr.msk.f32.gmra.mrb[126].mxu1 %vm791_vm2, %v19428_v55 }
 0x49e   : > { %v9380_v2 = vmax.f32 %v9252_v28, 0.0  ;;  %v14187_v46 = vadd.f32 %v14005_v13, %v19747_v54  ;;  %v8559_v9 = vpop.f32.mrb[21].mxu0  ;;  %14163 = vmatmul.mubr.msk.f32.gmra.mrb[126].mxu0 %vm791_vm2, %v8379_v26 }
 0x49f   : > { %v9938_v43 = vmax.f32 %v9876_v6, %v9878_v25  ;;  %v9379_v31 = vmax.f32 %v9251_v35, 0.0  ;;  %v14188_v58 = vadd.f32 %v8559_v9, %v19749_v33 }
 0x4a0   : > { %v9631_v16 = vld [vmem:[#allocation2 + $0x70] ss:$2 sm:$0xff]  ;;  %v9759_v12 = vld [vmem:[#allocation2 + $0x71] ss:$2 sm:$0xff]  ;;  %9508 = vst [vmem:[#allocation2 + $0x98] sm:$0xff] %v9380_v2  ;;  %v9254_v24 = vadd.f32 %v14187_v46, %v20014_v5 }
 0x4a1   : > { %9970 = vst [vmem:[%s20107_s8 + $0x10] sm:$0xff] %v9938_v43  ;;  %v9879_v55 = vmax.f32 %v9631_v16, %v9759_v12  ;;  %9507 = vst [vmem:[#allocation2 + $0x90] sm:$0xff] %v9379_v31  ;;  %v9253_v11 = vadd.f32 %v14188_v58, %v20014_v5  ;;  %v14008_v54 = vpop.f32.mrb[22].mxu0 }
 0x4a2   : > { %v9382_v49 = vmax.f32 %v9254_v24, 0.0  ;;  %v14189_v36 = vadd.f32 %v14008_v54, %v19759_v63  ;;  %v8569_v41 = vpop.f32.mrb[23].mxu0 }
 0x4a3   : > { %v9939_v52 = vmax.f32 %v9877_v59, %v9879_v55  ;;  %v9381_v51 = vmax.f32 %v9253_v11, 0.0  ;;  %v14190_v33 = vadd.f32 %v8569_v41, %v19761_v38 }
 0x4a4   : > { %9510 = vst [vmem:[#allocation2 + $0xa8] sm:$0xff] %v9382_v49  ;;  %v9256_v44 = vadd.f32 %v14189_v36, %v20014_v5  ;;  %v9633_v8 = vld [vmem:[#allocation2 + $0x80] ss:$2 sm:$0xff]  ;;  %v9761_v26 = vld [vmem:[#allocation2 + $0x81] ss:$2 sm:$0xff] }
 0x4a5   : > { %9971 = vst [vmem:[%s20107_s8 + $0x18] sm:$0xff] %v9939_v52  ;;  %9509 = vst [vmem:[#allocation2 + $0xa0] sm:$0xff] %v9381_v51  ;;  %v9255_v32 = vadd.f32 %v14190_v33, %v20014_v5  ;;  %v14011_v7 = vpop.f32.mrb[24].mxu0  ;;  %v9880_v13 = vmax.f32 %v9633_v8, %v9761_v26 }
 0x4a6   : > { %v9384_v0 = vmax.f32 %v9256_v44, 0.0  ;;  %v14191_v45 = vadd.f32 %v14011_v7, %v19771_v18  ;;  %v8579_v15 = vpop.f32.mrb[25].mxu0 }
 0x4a7   : > { %v9383_v20 = vmax.f32 %v9255_v32, 0.0  ;;  %v14192_v63 = vadd.f32 %v8579_v15, %v19773_v23 }
 0x4a8   : > { %9512 = vst [vmem:[#allocation2 + $0xb8] sm:$0xff] %v9384_v0  ;;  %v9258_v47 = vadd.f32 %v14191_v45, %v20014_v5  ;;  %v9635_v46 = vld [vmem:[#allocation2 + $0x90] ss:$2 sm:$0xff]  ;;  %v9763_v9 = vld [vmem:[#allocation2 + $0x91] ss:$2 sm:$0xff] }
 0x4a9   : > { %9511 = vst [vmem:[#allocation2 + $0xb0] sm:$0xff] %v9383_v20  ;;  %v9257_v38 = vadd.f32 %v14192_v63, %v20014_v5  ;;  %v14014_v62 = vpop.f32.mrb[26].mxu0  ;;  %v9881_v55 = vmax.f32 %v9635_v46, %v9763_v9 }
 0x4aa   : > { %v9386_v14 = vmax.f32 %v9258_v47, 0.0  ;;  %v14193_v30 = vadd.f32 %v14014_v62, %v19783_v40  ;;  %v8589_v28 = vpop.f32.mrb[27].mxu0 }
 0x4ab   : > { %v9385_v6 = vmax.f32 %v9257_v38, 0.0  ;;  %v14194_v18 = vadd.f32 %v8589_v28, %v19785_v42 }
 0x4ac   : > { %v9637_v25 = vld [vmem:[#allocation2 + $0xa0] ss:$2 sm:$0xff]  ;;  %v9765_v35 = vld [vmem:[#allocation2 + $0xa1] ss:$2 sm:$0xff]  ;;  %9514 = vst [vmem:[#allocation2 + $0xc8] sm:$0xff] %v9386_v14  ;;  %v9260_v23 = vadd.f32 %v14193_v30, %v20014_v5 }
 0x4ad   : > { %v9882_v61 = vmax.f32 %v9637_v25, %v9765_v35  ;;  %9513 = vst [vmem:[#allocation2 + $0xc0] sm:$0xff] %v9385_v6  ;;  %v9259_v27 = vadd.f32 %v14194_v18, %v20014_v5  ;;  %v14017_v2 = vpop.f32.mrb[28].mxu0 }
 0x4ae   : > { %v9388_v43 = vmax.f32 %v9260_v23, 0.0  ;;  %v14195_v40 = vadd.f32 %v14017_v2, %v19795_v56  ;;  %v8599_v31 = vpop.f32.mrb[29].mxu0 }
 0x4af   : > { %v9940_v58 = vmax.f32 %v9880_v13, %v9882_v61  ;;  %v9387_v42 = vmax.f32 %v9259_v27, 0.0  ;;  %v14196_v16 = vadd.f32 %v8599_v31, %v19797_v17 }
 0x4b0   : > { %v9639_v12 = vld [vmem:[#allocation2 + $0xb0] ss:$2 sm:$0xff]  ;;  %v9767_v24 = vld [vmem:[#allocation2 + $0xb1] ss:$2 sm:$0xff]  ;;  %9516 = vst [vmem:[#allocation2 + $0xd8] sm:$0xff] %v9388_v43  ;;  %v9262_v59 = vadd.f32 %v14195_v40, %v20014_v5 }
 0x4b1   : > { %9972 = vst [vmem:[%s20107_s8 + $0x20] sm:$0xff] %v9940_v58  ;;  %v9883_v11 = vmax.f32 %v9639_v12, %v9767_v24  ;;  %9515 = vst [vmem:[#allocation2 + $0xd0] sm:$0xff] %v9387_v42  ;;  %v9261_v54 = vadd.f32 %v14196_v16, %v20014_v5  ;;  %v14020_v49 = vpop.f32.mrb[30].mxu0 }
 0x4b2   : > { %v9390_v36 = vmax.f32 %v9262_v59, 0.0  ;;  %v14197_v56 = vadd.f32 %v14020_v49, %v19807_v34  ;;  %v8609_v41 = vpop.f32.mrb[31].mxu0 }
 0x4b3   : > { %v9941_v52 = vmax.f32 %v9881_v55, %v9883_v11  ;;  %v9389_v51 = vmax.f32 %v9261_v54, 0.0  ;;  %v14198_v17 = vadd.f32 %v8609_v41, %v19809_v1 }
 0x4b4   : > { %9518 = vst [vmem:[#allocation2 + $0xe8] sm:$0xff] %v9390_v36  ;;  %v9264_v33 = vadd.f32 %v14197_v56, %v20014_v5  ;;  %v9641_v47 = vld [vmem:[#allocation2 + $0xc0] ss:$2 sm:$0xff]  ;;  %v9769_v38 = vld [vmem:[#allocation2 + $0xc1] ss:$2 sm:$0xff] }
 0x4b5   : > { %9973 = vst [vmem:[%s20107_s8 + $0x28] sm:$0xff] %v9941_v52  ;;  %9517 = vst [vmem:[#allocation2 + $0xe0] sm:$0xff] %v9389_v51  ;;  %v9263_v44 = vadd.f32 %v14198_v17, %v20014_v5  ;;  %v14023_v32 = vpop.f32.mrb[32].mxu0  ;;  %v9884_v6 = vmax.f32 %v9641_v47, %v9769_v38 }
 0x4b6   : > { %v9392_v7 = vmax.f32 %v9264_v33, 0.0  ;;  %v14199_v0 = vadd.f32 %v14023_v32, %v19819_v21  ;;  %v8619_v45 = vpop.f32.mrb[33].mxu0 }
 0x4b7   : > { %v9391_v15 = vmax.f32 %v9263_v44, 0.0  ;;  %v14200_v34 = vadd.f32 %v8619_v45, %v19821_v57 }
 0x4b8   : > { %9520 = vst [vmem:[#allocation2 + $0xf8] sm:$0xff] %v9392_v7  ;;  %v9266_v20 = vadd.f32 %v14199_v0, %v20014_v5  ;;  %v9643_v23 = vld [vmem:[#allocation2 + $0xd0] ss:$2 sm:$0xff]  ;;  %v9771_v13 = vld [vmem:[#allocation2 + $0xd1] ss:$2 sm:$0xff] }
 0x4b9   : > { %9519 = vst [vmem:[#allocation2 + $0xf0] sm:$0xff] %v9391_v15  ;;  %v9265_v1 = vadd.f32 %v14200_v34, %v20014_v5  ;;  %v14026_v63 = vpop.f32.mrb[34].mxu0  ;;  %v9885_v31 = vmax.f32 %v9643_v23, %v9771_v13 }
 0x4ba   : > { %v9394_v62 = vmax.f32 %v9266_v20, 0.0  ;;  %v14201_v8 = vadd.f32 %v14026_v63, %v19831_v4  ;;  %v8629_v26 = vpop.f32.mrb[35].mxu0 }
 0x4bb   : > { %v9393_v14 = vmax.f32 %v9265_v1, 0.0  ;;  %v14202_v21 = vadd.f32 %v8629_v26, %v19833_v29 }
 0x4bc   : > { %v9645_v30 = vld [vmem:[#allocation2 + $0xe0] ss:$2 sm:$0xff]  ;;  %v9773_v28 = vld [vmem:[#allocation2 + $0xe1] ss:$2 sm:$0xff]  ;;  %9522 = vst [vmem:[#allocation2 + $0x108] sm:$0xff] %v9394_v62  ;;  %v9268_v57 = vadd.f32 %v14201_v8, %v20014_v5 }
 0x4bd   : > { %v9886_v18 = vmax.f32 %v9645_v30, %v9773_v28  ;;  %9521 = vst [vmem:[#allocation2 + $0x100] sm:$0xff] %v9393_v14  ;;  %v9267_v25 = vadd.f32 %v14202_v21, %v20014_v5  ;;  %v14029_v35 = vpop.f32.mrb[36].mxu0 }
 0x4be   : > { %v9396_v61 = vmax.f32 %v9268_v57, 0.0  ;;  %v14203_v4 = vadd.f32 %v14029_v35, %v19843_v22  ;;  %v8639_v27 = vpop.f32.mrb[37].mxu0 }
 0x4bf   : > { %v9942_v2 = vmax.f32 %v9884_v6, %v9886_v18  ;;  %v9395_v29 = vmax.f32 %v9267_v25, 0.0  ;;  %v14204_v46 = vadd.f32 %v8639_v27, %v19845_v48 }
 0x4c0   : > { %v9647_v9 = vld [vmem:[#allocation2 + $0xf0] ss:$2 sm:$0xff]  ;;  %v9775_v43 = vld [vmem:[#allocation2 + $0xf1] ss:$2 sm:$0xff]  ;;  %9524 = vst [vmem:[#allocation2 + $0x118] sm:$0xff] %v9396_v61  ;;  %v9270_v40 = vadd.f32 %v14203_v4, %v20014_v5 }
 0x4c1   : > { %9974 = vst [vmem:[%s20107_s8 + $0x30] sm:$0xff] %v9942_v2  ;;  %v9887_v58 = vmax.f32 %v9647_v9, %v9775_v43  ;;  %9523 = vst [vmem:[#allocation2 + $0x110] sm:$0xff] %v9395_v29  ;;  %v9269_v42 = vadd.f32 %v14204_v46, %v20014_v5  ;;  %v14032_v16 = vpop.f32.mrb[38].mxu0 }
 0x4c2   : > { %v9398_v12 = vmax.f32 %v9270_v40, 0.0  ;;  %v14205_v22 = vadd.f32 %v14032_v16, %v19855_v37  ;;  %v8649_v24 = vpop.f32.mrb[39].mxu0  ;;  %v21762_v40 = vld [vmem:[#allocation96_spill] sm:$0xff]  ;;  %v21763_v16 = vld [vmem:[#allocation98_spill] sm:$0xff] }
 0x4c3   : > { %v9943_v59 = vmax.f32 %v9885_v31, %v9887_v58  ;;  %v9397_v55 = vmax.f32 %v9269_v42, 0.0  ;;  %v14206_v48 = vadd.f32 %v8649_v24, %v19857_v19 }
 0x4c4   : > { %9526 = vst [vmem:[#allocation2 + $0x128] sm:$0xff] %v9398_v12  ;;  %v9272_v11 = vadd.f32 %v14205_v22, %v20014_v5  ;;  %v9649_v33 = vld [vmem:[#allocation2 + $0x100] ss:$2 sm:$0xff]  ;;  %v9777_v44 = vld [vmem:[#allocation2 + $0x101] ss:$2 sm:$0xff] }
 0x4c5   : > { %9975 = vst [vmem:[%s20107_s8 + $0x38] sm:$0xff] %v9943_v59  ;;  %9525 = vst [vmem:[#allocation2 + $0x120] sm:$0xff] %v9397_v55  ;;  %v9271_v54 = vadd.f32 %v14206_v48, %v20014_v5  ;;  %v14035_v49 = vpop.f32.mrb[40].mxu0  ;;  %v9888_v20 = vmax.f32 %v9649_v33, %v9777_v44 }
 0x4c6   : > { %v9400_v36 = vmax.f32 %v9272_v11, 0.0  ;;  %v14207_v56 = vadd.f32 %v14035_v49, %v19867_v39  ;;  %v8659_v41 = vpop.f32.mrb[41].mxu0 }
 0x4c7   : > { %v9399_v52 = vmax.f32 %v9271_v54, 0.0  ;;  %v14208_v37 = vadd.f32 %v8659_v41, %v19869_v50  ;;  %v21764_v54 = vld [vmem:[#allocation99_spill] sm:$0xff]  ;;  %v21765_v41 = vld [vmem:[#allocation100_spill] sm:$0xff] }
 0x4c8   : > { %9528 = vst [vmem:[#allocation2 + $0x138] sm:$0xff] %v9400_v36  ;;  %v9274_v51 = vadd.f32 %v14207_v56, %v20014_v5  ;;  %v9651_v38 = vld [vmem:[#allocation2 + $0x110] ss:$2 sm:$0xff]  ;;  %v9779_v62 = vld [vmem:[#allocation2 + $0x111] ss:$2 sm:$0xff] }
 0x4c9   : > { %9527 = vst [vmem:[#allocation2 + $0x130] sm:$0xff] %v9399_v52  ;;  %v9273_v19 = vadd.f32 %v14208_v37, %v20014_v5  ;;  %v14038_v17 = vpop.f32.mrb[42].mxu0  ;;  %v9889_v6 = vmax.f32 %v9651_v38, %v9779_v62 }
 0x4ca   : > { %v9402_v32 = vmax.f32 %v9274_v51, 0.0  ;;  %v14209_v7 = vadd.f32 %v14038_v17, %v19879_v3  ;;  %v8669_v0 = vpop.f32.mrb[43].mxu0 }
 0x4cb   : > { %v9401_v45 = vmax.f32 %v9273_v19, 0.0  ;;  %v14210_v39 = vadd.f32 %v8669_v0, %v19881_v10 }
 0x4cc   : > { %v9653_v15 = vld [vmem:[#allocation2 + $0x120] ss:$2 sm:$0xff]  ;;  %v9781_v34 = vld [vmem:[#allocation2 + $0x121] ss:$2 sm:$0xff]  ;;  %9530 = vst [vmem:[#allocation2 + $0x148] sm:$0xff] %v9402_v32  ;;  %v9276_v50 = vadd.f32 %v14209_v7, %v20014_v5 }
 0x4cd   : > { %v9890_v1 = vmax.f32 %v9653_v15, %v9781_v34  ;;  %9529 = vst [vmem:[#allocation2 + $0x140] sm:$0xff] %v9401_v45  ;;  %v9275_v63 = vadd.f32 %v14210_v39, %v20014_v5  ;;  %v14041_v47 = vpop.f32.mrb[44].mxu0  ;;  %v21766_v39 = vld [vmem:[#allocation102_spill] sm:$0xff] }
 0x4ce   : > { %v9404_v8 = vmax.f32 %v9276_v50, 0.0  ;;  %v14211_v3 = vadd.f32 %v14041_v47, %v19891_v53  ;;  %v8679_v26 = vpop.f32.mrb[45].mxu0  ;;  %v21760_v53 = vld [vmem:[#allocation232_spill] sm:$0xff] }
 0x4cf   : > { %v9944_v14 = vmax.f32 %v9888_v20, %v9890_v1  ;;  %v9403_v10 = vmax.f32 %v9275_v63, 0.0  ;;  %v14212_v21 = vadd.f32 %v8679_v26, %v19893_v60  ;;  %v21761_v60 = vld [vmem:[#allocation87_spill] sm:$0xff]  ;;  %v21767_v1 = vld [vmem:[#allocation104_spill] sm:$0xff] }
 0x4d0   : > { %v9655_v30 = vld [vmem:[#allocation2 + $0x130] ss:$2 sm:$0xff]  ;;  %v9783_v28 = vld [vmem:[#allocation2 + $0x131] ss:$2 sm:$0xff]  ;;  %9532 = vst [vmem:[#allocation2 + $0x158] sm:$0xff] %v9404_v8  ;;  %v9278_v57 = vadd.f32 %v14211_v3, %v20014_v5 }
 0x4d1   : > { %9976 = vst [vmem:[%s20107_s8 + $0x40] sm:$0xff] %v9944_v14  ;;  %v9891_v18 = vmax.f32 %v9655_v30, %v9783_v28  ;;  %9531 = vst [vmem:[#allocation2 + $0x150] sm:$0xff] %v9403_v10  ;;  %v9277_v25 = vadd.f32 %v14212_v21, %v20014_v5  ;;  %v14044_v35 = vpop.f32.mrb[46].mxu0  ;;  %v21768_v21 = vld [vmem:[#allocation106_spill] sm:$0xff] }
 0x4d2   : > { %v9406_v23 = vmax.f32 %v9278_v57, 0.0  ;;  %v14213_v13 = vadd.f32 %v14044_v35, %v21760_v53  ;;  %v8689_v61 = vpop.f32.mrb[47].mxu0 }
 0x4d3   : > { %v9945_v4 = vmax.f32 %v9889_v6, %v9891_v18  ;;  %v9405_v27 = vmax.f32 %v9277_v25, 0.0  ;;  %v14214_v2 = vadd.f32 %v8689_v61, %v21761_v60  ;;  %v21769_v18 = vld [vmem:[#allocation108_spill] sm:$0xff]  ;;  %v21770_v61 = vld [vmem:[#allocation110_spill] sm:$0xff] }
 0x4d4   : > { %9534 = vst [vmem:[#allocation2 + $0x168] sm:$0xff] %v9406_v23  ;;  %v9280_v29 = vadd.f32 %v14213_v13, %v20014_v5  ;;  %v9657_v55 = vld [vmem:[#allocation2 + $0x140] ss:$2 sm:$0xff]  ;;  %v9785_v48 = vld [vmem:[#allocation2 + $0x141] ss:$2 sm:$0xff] }
 0x4d5   : > { %9977 = vst [vmem:[%s20107_s8 + $0x48] sm:$0xff] %v9945_v4  ;;  %9533 = vst [vmem:[#allocation2 + $0x160] sm:$0xff] %v9405_v27  ;;  %v9279_v46 = vadd.f32 %v14214_v2, %v20014_v5  ;;  %v14047_v9 = vpop.f32.mrb[48].mxu0  ;;  %v9892_v17 = vmax.f32 %v9657_v55, %v9785_v48  ;;  %v21771_v2 = vld [vmem:[#allocation112_spill] sm:$0xff] }
 0x4d6   : > { %v9408_v43 = vmax.f32 %v9280_v29, 0.0  ;;  %v14215_v31 = vadd.f32 %v14047_v9, %v21762_v40  ;;  %v8699_v58 = vpop.f32.mrb[49].mxu0 }
 0x4d7   : > { %v9407_v42 = vmax.f32 %v9279_v46, 0.0  ;;  %v14216_v12 = vadd.f32 %v8699_v58, %v21763_v16 }
 0x4d8   : > { %9536 = vst [vmem:[#allocation2 + $0x178] sm:$0xff] %v9408_v43  ;;  %v9282_v22 = vadd.f32 %v14215_v31, %v20014_v5  ;;  %v9659_v7 = vld [vmem:[#allocation2 + $0x150] ss:$2 sm:$0xff]  ;;  %v9787_v0 = vld [vmem:[#allocation2 + $0x151] ss:$2 sm:$0xff] }
 0x4d9   : > { %9535 = vst [vmem:[#allocation2 + $0x170] sm:$0xff] %v9407_v42  ;;  %v9281_v24 = vadd.f32 %v14216_v12, %v20014_v5  ;;  %v14050_v59 = vpop.f32.mrb[50].mxu0  ;;  %v9893_v8 = vmax.f32 %v9659_v7, %v9787_v0  ;;  %v21772_v42 = vld [vmem:[#allocation114_spill] sm:$0xff] }
 0x4da   : > { %v9410_v11 = vmax.f32 %v9282_v22, 0.0  ;;  %v14217_v49 = vadd.f32 %v14050_v59, %v21764_v54  ;;  %v8709_v36 = vpop.f32.mrb[51].mxu0 }
 0x4db   : > { %v9409_v56 = vmax.f32 %v9281_v24, 0.0  ;;  %v14218_v52 = vadd.f32 %v8709_v36, %v21765_v41  ;;  %v21773_v24 = vld [vmem:[#allocation116_spill] sm:$0xff] }
 0x4dc   : > { %v9661_v37 = vld [vmem:[#allocation2 + $0x160] ss:$2 sm:$0xff]  ;;  %v9789_v51 = vld [vmem:[#allocation2 + $0x161] ss:$2 sm:$0xff]  ;;  %9538 = vst [vmem:[#allocation2 + $0x188] sm:$0xff] %v9410_v11  ;;  %v9284_v19 = vadd.f32 %v14217_v49, %v20014_v5 }
 0x4dd   : > { %v9894_v33 = vmax.f32 %v9661_v37, %v9789_v51  ;;  %9537 = vst [vmem:[#allocation2 + $0x180] sm:$0xff] %v9409_v56  ;;  %v9283_v44 = vadd.f32 %v14218_v52, %v20014_v5  ;;  %v14053_v32 = vpop.f32.mrb[52].mxu0  ;;  %v21774_v51 = vld [vmem:[#allocation118_spill] sm:$0xff] }
 0x4de   : > { %v9412_v45 = vmax.f32 %v9284_v19, 0.0  ;;  %v14219_v15 = vadd.f32 %v14053_v32, %v21766_v39  ;;  %v8719_v34 = vpop.f32.mrb[53].mxu0  ;;  %v21775_v32 = vld [vmem:[#allocation120_spill] sm:$0xff] }
 0x4df   : > { %v9946_v50 = vmax.f32 %v9892_v17, %v9894_v33  ;;  %v9411_v20 = vmax.f32 %v9283_v44, 0.0  ;;  %v14220_v63 = vadd.f32 %v8719_v34, %v21767_v1 }
 0x4e0   : > { %v9663_v47 = vld [vmem:[#allocation2 + $0x170] ss:$2 sm:$0xff]  ;;  %v9791_v38 = vld [vmem:[#allocation2 + $0x171] ss:$2 sm:$0xff]  ;;  %9540 = vst [vmem:[#allocation2 + $0x198] sm:$0xff] %v9412_v45  ;;  %v9286_v62 = vadd.f32 %v14219_v15, %v20014_v5 }
 0x4e1   : > { %9978 = vst [vmem:[%s20107_s8 + $0x50] sm:$0xff] %v9946_v50  ;;  %v9895_v3 = vmax.f32 %v9663_v47, %v9791_v38  ;;  %9539 = vst [vmem:[#allocation2 + $0x190] sm:$0xff] %v9411_v20  ;;  %v9285_v26 = vadd.f32 %v14220_v63, %v20014_v5  ;;  %v14056_v14 = vpop.f32.mrb[54].mxu0  ;;  %v21776_v63 = vld [vmem:[#allocation122_spill] sm:$0xff] }
 0x4e2   : > { %v9414_v10 = vmax.f32 %v9286_v62, 0.0  ;;  %v14221_v30 = vadd.f32 %v14056_v14, %v21768_v21  ;;  %v8729_v28 = vpop.f32.mrb[55].mxu0 }
 0x4e3   : > { %v9947_v57 = vmax.f32 %v9893_v8, %v9895_v3  ;;  %v9413_v6 = vmax.f32 %v9285_v26, 0.0  ;;  %v14222_v25 = vadd.f32 %v8729_v28, %v21769_v18  ;;  %v21777_v3 = vld [vmem:[#allocation124_spill] sm:$0xff] }
 0x4e4   : > { %9542 = vst [vmem:[#allocation2 + $0x1a8] sm:$0xff] %v9414_v10  ;;  %v9288_v35 = vadd.f32 %v14221_v30, %v20014_v5  ;;  %v9665_v40 = vld [vmem:[#allocation2 + $0x180] ss:$2 sm:$0xff]  ;;  %v9793_v31 = vld [vmem:[#allocation2 + $0x181] ss:$2 sm:$0xff] }
 0x4e5   : > { %9979 = vst [vmem:[%s20107_s8 + $0x58] sm:$0xff] %v9947_v57  ;;  %9541 = vst [vmem:[#allocation2 + $0x1a0] sm:$0xff] %v9413_v6  ;;  %v9287_v23 = vadd.f32 %v14222_v25, %v20014_v5  ;;  %v14059_v53 = vpop.f32.mrb[56].mxu0  ;;  %v9896_v54 = vmax.f32 %v9665_v40, %v9793_v31 }
 0x4e6   : > { %v9416_v13 = vmax.f32 %v9288_v35, 0.0  ;;  %v14223_v4 = vadd.f32 %v14059_v53, %v21770_v61  ;;  %v8739_v27 = vpop.f32.mrb[57].mxu0 }
 0x4e7   : > { %v9415_v60 = vmax.f32 %v9287_v23, 0.0  ;;  %v14224_v29 = vadd.f32 %v8739_v27, %v21771_v2 }
 0x4e8   : > { %9544 = vst [vmem:[#allocation2 + $0x1b8] sm:$0xff] %v9416_v13  ;;  %v9290_v46 = vadd.f32 %v14223_v4, %v20014_v5  ;;  %v9667_v41 = vld [vmem:[#allocation2 + $0x190] ss:$2 sm:$0xff]  ;;  %v9795_v52 = vld [vmem:[#allocation2 + $0x191] ss:$2 sm:$0xff] }
 0x4e9   : > { %9543 = vst [vmem:[#allocation2 + $0x1b0] sm:$0xff] %v9415_v60  ;;  %v9289_v9 = vadd.f32 %v14224_v29, %v20014_v5  ;;  %v14062_v43 = vpop.f32.mrb[58].mxu0  ;;  %v9897_v15 = vmax.f32 %v9667_v41, %v9795_v52 }
 0x4ea   : > { %v9418_v58 = vmax.f32 %v9290_v46, 0.0  ;;  %v14225_v16 = vadd.f32 %v14062_v43, %v21772_v42  ;;  %v8749_v12 = vpop.f32.mrb[59].mxu0 }
 0x4eb   : > { %v9417_v22 = vmax.f32 %v9289_v9, 0.0  ;;  %v14226_v59 = vadd.f32 %v8749_v12, %v21773_v24 }
 0x4ec   : > { %v9669_v55 = vld [vmem:[#allocation2 + $0x1a0] ss:$2 sm:$0xff]  ;;  %v9797_v48 = vld [vmem:[#allocation2 + $0x1a1] ss:$2 sm:$0xff]  ;;  %9546 = vst [vmem:[#allocation2 + $0x1c8] sm:$0xff] %v9418_v58  ;;  %v9292_v11 = vadd.f32 %v14225_v16, %v20014_v5 }
 0x4ed   : > { %v9898_v49 = vmax.f32 %v9669_v55, %v9797_v48  ;;  %9545 = vst [vmem:[#allocation2 + $0x1c0] sm:$0xff] %v9417_v22  ;;  %v9291_v36 = vadd.f32 %v14226_v59, %v20014_v5  ;;  %v14065_v56 = vpop.f32.mrb[60].mxu0  ;;  %v20261_v22 = vld [vmem:[%s20396_s2] ss:$0 sm:$0xff] }
 0x4ee   : > { %v9420_v37 = vmax.f32 %v9292_v11, 0.0  ;;  %v14227_v19 = vadd.f32 %v14065_v56, %v21774_v51  ;;  %v8759_v17 = vpop.f32.mrb[61].mxu0 }
 0x4ef   : > { %v9948_v33 = vmax.f32 %v9896_v54, %v9898_v49  ;;  %v9419_v44 = vmax.f32 %v9291_v36, 0.0  ;;  %v14228_v7 = vadd.f32 %v8759_v17, %v21775_v32 }
 0x4f0   : > { %v9671_v0 = vld [vmem:[#allocation2 + $0x1b0] ss:$2 sm:$0xff]  ;;  %v9799_v45 = vld [vmem:[#allocation2 + $0x1b1] ss:$2 sm:$0xff]  ;;  %9548 = vst [vmem:[#allocation2 + $0x1d8] sm:$0xff] %v9420_v37  ;;  %v9294_v39 = vadd.f32 %v14227_v19, %v20014_v5 }
 0x4f1   : > { %9980 = vst [vmem:[%s20107_s8 + $0x60] sm:$0xff] %v9948_v33  ;;  %v9899_v34 = vmax.f32 %v9671_v0, %v9799_v45  ;;  %9547 = vst [vmem:[#allocation2 + $0x1d0] sm:$0xff] %v9419_v44  ;;  %v9293_v50 = vadd.f32 %v14228_v7, %v20014_v5  ;;  %v14068_v20 = vpop.f32.mrb[62].mxu0 }
 0x4f2   : > { %v9422_v1 = vmax.f32 %v9294_v39, 0.0  ;;  %v14229_v47 = vadd.f32 %v14068_v20, %v21776_v63  ;;  %v8769_v38 = vpop.f32.mrb[63].mxu0 }
 0x4f3   : > { %v9949_v62 = vmax.f32 %v9897_v15, %v9899_v34  ;;  %v9421_v8 = vmax.f32 %v9293_v50, 0.0  ;;  %v14230_v26 = vadd.f32 %v8769_v38, %v21777_v3 }
 0x4f4   : > { %9550 = vst [vmem:[#allocation2 + $0x1e8] sm:$0xff] %v9422_v1  ;;  %v9296_v14 = vadd.f32 %v14229_v47, %v20014_v5  ;;  %v13295_v10 = vpop.f32.mrb[64].mxu1  ;;  %v9673_v27 = vld [vmem:[#allocation2 + $0x1c0] ss:$2 sm:$0xff]  ;;  %v9801_v60 = vld [vmem:[#allocation2 + $0x1c1] ss:$2 sm:$0xff] }
 0x4f5   : > { %9981 = vst [vmem:[%s20107_s8 + $0x68] sm:$0xff] %v9949_v62  ;;  %9549 = vst [vmem:[#allocation2 + $0x1e0] sm:$0xff] %v9421_v8  ;;  %v9295_v21 = vadd.f32 %v14230_v26, %v20014_v5  ;;  %v14071_v30 = vpop.f32.mrb[64].mxu0  ;;  %v5363_v28 = vpop.f32.mrb[65].mxu1  ;;  %v9900_v16 = vmax.f32 %v9673_v27, %v9801_v60 }
 0x4f6   : > { %v9424_v57 = vmax.f32 %v9296_v14, 0.0  ;;  %v14231_v6 = vadd.f32 %v14071_v30, %v13295_v10  ;;  %v8779_v18 = vpop.f32.mrb[65].mxu0 }
 0x4f7   : > { %v9423_v25 = vmax.f32 %v9295_v21, 0.0  ;;  %v14232_v35 = vadd.f32 %v8779_v18, %v5363_v28 }
 0x4f8   : > { %9552 = vst [vmem:[#allocation2 + $0x1f8] sm:$0xff] %v9424_v57  ;;  %v9298_v23 = vadd.f32 %v14231_v6, %v20014_v5  ;;  %v13298_v53 = vpop.f32.mrb[66].mxu1  ;;  %v9675_v48 = vld [vmem:[#allocation2 + $0x1d0] ss:$2 sm:$0xff]  ;;  %v9803_v11 = vld [vmem:[#allocation2 + $0x1d1] ss:$2 sm:$0xff] }
 0x4f9   : > { %9551 = vst [vmem:[#allocation2 + $0x1f0] sm:$0xff] %v9423_v25  ;;  %v9297_v13 = vadd.f32 %v14232_v35, %v20014_v5  ;;  %v14074_v61 = vpop.f32.mrb[66].mxu0  ;;  %v5373_v4 = vpop.f32.mrb[67].mxu1  ;;  %v9901_v17 = vmax.f32 %v9675_v48, %v9803_v11 }
 0x4fa   : > { %v9426_v2 = vmax.f32 %v9298_v23, 0.0  ;;  %v14233_v29 = vadd.f32 %v14074_v61, %v13298_v53  ;;  %v8789_v46 = vpop.f32.mrb[67].mxu0 }
 0x4fb   : > { %v9425_v9 = vmax.f32 %v9297_v13, 0.0  ;;  %v14234_v43 = vadd.f32 %v8789_v46, %v5373_v4 }
 0x4fc   : > { %v9677_v40 = vld [vmem:[#allocation2 + $0x1e0] ss:$2 sm:$0xff]  ;;  %v9805_v31 = vld [vmem:[#allocation2 + $0x1e1] ss:$2 sm:$0xff]  ;;  %9554 = vst [vmem:[#allocation2 + $0x208] sm:$0xff] %v9426_v2  ;;  %v9300_v58 = vadd.f32 %v14233_v29, %v20014_v5  ;;  %v13301_v42 = vpop.f32.mrb[68].mxu1 }
 0x4fd   : > { %v9902_v12 = vmax.f32 %v9677_v40, %v9805_v31  ;;  %9553 = vst [vmem:[#allocation2 + $0x200] sm:$0xff] %v9425_v9  ;;  %v9299_v24 = vadd.f32 %v20261_v22, %v14234_v43  ;;  %v14077_v59 = vpop.f32.mrb[68].mxu0  ;;  %v5383_v55 = vpop.f32.mrb[69].mxu1 }
 0x4fe   : > { %v9428_v54 = vmax.f32 %v9300_v58, 0.0  ;;  %v14235_v49 = vadd.f32 %v14077_v59, %v13301_v42  ;;  %v8799_v36 = vpop.f32.mrb[69].mxu0 }
 0x4ff   : > { %v9950_v5 = vmax.f32 %v9900_v16, %v9902_v12  ;;  %v9427_v56 = vmax.f32 %v9299_v24, 0.0  ;;  %v14236_v41 = vadd.f32 %v8799_v36, %v5383_v55 }
 0x500   : > { %v9679_v52 = vld [vmem:[#allocation2 + $0x1f0] ss:$2 sm:$0xff]  ;;  %v9807_v37 = vld [vmem:[#allocation2 + $0x1f1] ss:$2 sm:$0xff]  ;;  %9556 = vst [vmem:[#allocation2 + $0x218] sm:$0xff] %v9428_v54  ;;  %v9302_v51 = vadd.f32 %v20261_v22, %v14235_v49  ;;  %v13304_v19 = vpop.f32.mrb[70].mxu1 }
 0x501   : > { %9982 = vst [vmem:[%s20107_s8 + $0x70] sm:$0xff] %v9950_v5  ;;  %v9903_v33 = vmax.f32 %v9679_v52, %v9807_v37  ;;  %9555 = vst [vmem:[#allocation2 + $0x210] sm:$0xff] %v9427_v56  ;;  %v9301_v44 = vadd.f32 %v20261_v22, %v14236_v41  ;;  %v14080_v32 = vpop.f32.mrb[70].mxu0  ;;  %v5393_v7 = vpop.f32.mrb[71].mxu1 }
 0x502   : > { %v9430_v0 = vmax.f32 %v9302_v51, 0.0  ;;  %v14237_v45 = vadd.f32 %v14080_v32, %v13304_v19  ;;  %v8809_v39 = vpop.f32.mrb[71].mxu0 }
 0x503   : > { %v9951_v15 = vmax.f32 %v9901_v17, %v9903_v33  ;;  %v9429_v34 = vmax.f32 %v9301_v44, 0.0  ;;  %v14238_v50 = vadd.f32 %v8809_v39, %v5393_v7 }
 0x504   : > { %9558 = vst [vmem:[#allocation2 + $0x228] sm:$0xff] %v9430_v0  ;;  %v9304_v20 = vadd.f32 %v20261_v22, %v14237_v45  ;;  %v13307_v1 = vpop.f32.mrb[72].mxu1  ;;  %v9681_v6 = vld [vmem:[#allocation2 + $0x200] ss:$2 sm:$0xff]  ;;  %v9809_v18 = vld [vmem:[#allocation2 + $0x201] ss:$2 sm:$0xff] }
 0x505   : > { %9983 = vst [vmem:[%s20107_s8 + $0x78] sm:$0xff] %v9951_v15  ;;  %9557 = vst [vmem:[#allocation2 + $0x220] sm:$0xff] %v9429_v34  ;;  %v9303_v63 = vadd.f32 %v20261_v22, %v14238_v50  ;;  %v14083_v47 = vpop.f32.mrb[72].mxu0  ;;  %v5403_v38 = vpop.f32.mrb[73].mxu1  ;;  %v9904_v2 = vmax.f32 %v9681_v6, %v9809_v18 }
 0x506   : > { %v9432_v62 = vmax.f32 %v9304_v20, 0.0  ;;  %v14239_v8 = vadd.f32 %v14083_v47, %v13307_v1  ;;  %v8819_v3 = vpop.f32.mrb[73].mxu0 }
 0x507   : > { %v9431_v26 = vmax.f32 %v9303_v63, 0.0  ;;  %v14240_v14 = vadd.f32 %v8819_v3, %v5403_v38 }
 0x508   : > { %9560 = vst [vmem:[#allocation2 + $0x238] sm:$0xff] %v9432_v62  ;;  %v9306_v10 = vadd.f32 %v20261_v22, %v14239_v8  ;;  %v13310_v21 = vpop.f32.mrb[74].mxu1  ;;  %v9683_v40 = vld [vmem:[#allocation2 + $0x210] ss:$2 sm:$0xff]  ;;  %v9811_v31 = vld [vmem:[#allocation2 + $0x211] ss:$2 sm:$0xff] }
 0x509   : > { %9559 = vst [vmem:[#allocation2 + $0x230] sm:$0xff] %v9431_v26  ;;  %v9305_v30 = vadd.f32 %v20261_v22, %v14240_v14  ;;  %v14086_v28 = vpop.f32.mrb[74].mxu0  ;;  %v5413_v57 = vpop.f32.mrb[75].mxu1  ;;  %v9905_v49 = vmax.f32 %v9683_v40, %v9811_v31 }
 0x50a   : > { %v9434_v25 = vmax.f32 %v9306_v10, 0.0  ;;  %v14241_v35 = vadd.f32 %v14086_v28, %v13310_v21  ;;  %v8829_v23 = vpop.f32.mrb[75].mxu0 }
 0x50b   : > { %v9433_v53 = vmax.f32 %v9305_v30, 0.0  ;;  %v14242_v13 = vadd.f32 %v8829_v23, %v5413_v57 }
 0x50c   : > { %v9685_v61 = vld [vmem:[#allocation2 + $0x220] ss:$2 sm:$0xff]  ;;  %v9813_v4 = vld [vmem:[#allocation2 + $0x221] ss:$2 sm:$0xff]  ;;  %9562 = vst [vmem:[#allocation2 + $0x248] sm:$0xff] %v9434_v25  ;;  %v9308_v27 = vadd.f32 %v20261_v22, %v14241_v35  ;;  %v13313_v60 = vpop.f32.mrb[76].mxu1 }
 0x50d   : > { %v9906_v29 = vmax.f32 %v9685_v61, %v9813_v4  ;;  %9561 = vst [vmem:[#allocation2 + $0x240] sm:$0xff] %v9433_v53  ;;  %v9307_v46 = vadd.f32 %v20261_v22, %v14242_v13  ;;  %v14089_v9 = vpop.f32.mrb[76].mxu0  ;;  %v5423_v43 = vpop.f32.mrb[77].mxu1 }
 0x50e   : > { %v9436_v58 = vmax.f32 %v9308_v27, 0.0  ;;  %v14243_v42 = vadd.f32 %v14089_v9, %v13313_v60  ;;  %v8839_v16 = vpop.f32.mrb[77].mxu0 }
 0x50f   : > { %v9952_v12 = vmax.f32 %v9904_v2, %v9906_v29  ;;  %v9435_v24 = vmax.f32 %v9307_v46, 0.0  ;;  %v14244_v59 = vadd.f32 %v8839_v16, %v5423_v43 }
 0x510   : > { %v9687_v55 = vld [vmem:[#allocation2 + $0x230] ss:$2 sm:$0xff]  ;;  %v9815_v48 = vld [vmem:[#allocation2 + $0x231] ss:$2 sm:$0xff]  ;;  %9564 = vst [vmem:[#allocation2 + $0x258] sm:$0xff] %v9436_v58  ;;  %v9310_v11 = vadd.f32 %v20261_v22, %v14243_v42  ;;  %v13316_v54 = vpop.f32.mrb[78].mxu1 }
 0x511   : > { %9984 = vst [vmem:[%s20107_s8 + $0x80] sm:$0xff] %v9952_v12  ;;  %v9907_v36 = vmax.f32 %v9687_v55, %v9815_v48  ;;  %9563 = vst [vmem:[#allocation2 + $0x250] sm:$0xff] %v9435_v24  ;;  %v9309_v5 = vadd.f32 %v20261_v22, %v14244_v59  ;;  %v14092_v56 = vpop.f32.mrb[78].mxu0  ;;  %v5433_v41 = vpop.f32.mrb[79].mxu1 }
 0x512   : > { %v9438_v52 = vmax.f32 %v9310_v11, 0.0  ;;  %v14245_v37 = vadd.f32 %v14092_v56, %v13316_v54  ;;  %v8849_v51 = vpop.f32.mrb[79].mxu0 }
 0x513   : > { %v9953_v19 = vmax.f32 %v9905_v49, %v9907_v36  ;;  %v9437_v17 = vmax.f32 %v9309_v5, 0.0  ;;  %v14246_v33 = vadd.f32 %v8849_v51, %v5433_v41 }
 0x514   : > { %9566 = vst [vmem:[#allocation2 + $0x268] sm:$0xff] %v9438_v52  ;;  %v9312_v44 = vadd.f32 %v20261_v22, %v14245_v37  ;;  %v13319_v32 = vpop.f32.mrb[80].mxu1  ;;  %v9689_v8 = vld [vmem:[#allocation2 + $0x240] ss:$2 sm:$0xff]  ;;  %v9817_v3 = vld [vmem:[#allocation2 + $0x241] ss:$2 sm:$0xff] }
 0x515   : > { %9985 = vst [vmem:[%s20107_s8 + $0x88] sm:$0xff] %v9953_v19  ;;  %9565 = vst [vmem:[#allocation2 + $0x260] sm:$0xff] %v9437_v17  ;;  %v9311_v7 = vadd.f32 %v20261_v22, %v14246_v33  ;;  %v14095_v0 = vpop.f32.mrb[80].mxu0  ;;  %v5443_v45 = vpop.f32.mrb[81].mxu1  ;;  %v9908_v25 = vmax.f32 %v9689_v8, %v9817_v3 }
 0x516   : > { %v9440_v39 = vmax.f32 %v9312_v44, 0.0  ;;  %v14247_v15 = vadd.f32 %v14095_v0, %v13319_v32  ;;  %v8859_v34 = vpop.f32.mrb[81].mxu0 }
 0x517   : > { %v9439_v50 = vmax.f32 %v9311_v7, 0.0  ;;  %v14248_v20 = vadd.f32 %v8859_v34, %v5443_v45 }
 0x518   : > { %9568 = vst [vmem:[#allocation2 + $0x278] sm:$0xff] %v9440_v39  ;;  %v9314_v1 = vadd.f32 %v20261_v22, %v14247_v15  ;;  %v13322_v63 = vpop.f32.mrb[82].mxu1  ;;  %v9691_v61 = vld [vmem:[#allocation2 + $0x250] ss:$2 sm:$0xff]  ;;  %v9819_v4 = vld [vmem:[#allocation2 + $0x251] ss:$2 sm:$0xff] }
 0x519   : > { %9567 = vst [vmem:[#allocation2 + $0x270] sm:$0xff] %v9439_v50  ;;  %v9313_v47 = vadd.f32 %v20261_v22, %v14248_v20  ;;  %v14098_v38 = vpop.f32.mrb[82].mxu0  ;;  %v5453_v62 = vpop.f32.mrb[83].mxu1  ;;  %v9909_v42 = vmax.f32 %v9691_v61, %v9819_v4 }
 0x51a   : > { %v9442_v26 = vmax.f32 %v9314_v1, 0.0  ;;  %v14249_v14 = vadd.f32 %v14098_v38, %v13322_v63  ;;  %v8869_v10 = vpop.f32.mrb[83].mxu0 }
 0x51b   : > { %v9441_v21 = vmax.f32 %v9313_v47, 0.0  ;;  %v14250_v30 = vadd.f32 %v8869_v10, %v5453_v62 }
 0x51c   : > { %v9693_v28 = vld [vmem:[#allocation2 + $0x260] ss:$2 sm:$0xff]  ;;  %v9821_v57 = vld [vmem:[#allocation2 + $0x261] ss:$2 sm:$0xff]  ;;  %9570 = vst [vmem:[#allocation2 + $0x288] sm:$0xff] %v9442_v26  ;;  %v9316_v6 = vadd.f32 %v20261_v22, %v14249_v14  ;;  %v13325_v18 = vpop.f32.mrb[84].mxu1 }
 0x51d   : > { %v9910_v35 = vmax.f32 %v9693_v28, %v9821_v57  ;;  %9569 = vst [vmem:[#allocation2 + $0x280] sm:$0xff] %v9441_v21  ;;  %v9315_v23 = vadd.f32 %v20261_v22, %v14250_v30  ;;  %v14101_v53 = vpop.f32.mrb[84].mxu0  ;;  %v5463_v13 = vpop.f32.mrb[85].mxu1 }
 0x51e   : > { %v9444_v27 = vmax.f32 %v9316_v6, 0.0  ;;  %v14251_v60 = vadd.f32 %v14101_v53, %v13325_v18  ;;  %v8879_v2 = vpop.f32.mrb[85].mxu0 }
 0x51f   : > { %v9954_v29 = vmax.f32 %v9908_v25, %v9910_v35  ;;  %v9443_v46 = vmax.f32 %v9315_v23, 0.0  ;;  %v14252_v9 = vadd.f32 %v8879_v2, %v5463_v13 }
 0x520   : > { %v9695_v43 = vld [vmem:[#allocation2 + $0x270] ss:$2 sm:$0xff]  ;;  %v9823_v40 = vld [vmem:[#allocation2 + $0x271] ss:$2 sm:$0xff]  ;;  %9572 = vst [vmem:[#allocation2 + $0x298] sm:$0xff] %v9444_v27  ;;  %v9318_v31 = vadd.f32 %v20261_v22, %v14251_v60  ;;  %v13328_v58 = vpop.f32.mrb[86].mxu1 }
 0x521   : > { %9986 = vst [vmem:[%s20107_s8 + $0x90] sm:$0xff] %v9954_v29  ;;  %v9911_v16 = vmax.f32 %v9695_v43, %v9823_v40  ;;  %9571 = vst [vmem:[#allocation2 + $0x290] sm:$0xff] %v9443_v46  ;;  %v9317_v12 = vadd.f32 %v20261_v22, %v14252_v9  ;;  %v14104_v24 = vpop.f32.mrb[86].mxu0  ;;  %v5473_v59 = vpop.f32.mrb[87].mxu1 }
 0x522   : > { %v9446_v55 = vmax.f32 %v9318_v31, 0.0  ;;  %v14253_v48 = vadd.f32 %v14104_v24, %v13328_v58  ;;  %v8889_v11 = vpop.f32.mrb[87].mxu0 }
 0x523   : > { %v9955_v54 = vmax.f32 %v9909_v42, %v9911_v16  ;;  %v9445_v49 = vmax.f32 %v9317_v12, 0.0  ;;  %v14254_v36 = vadd.f32 %v8889_v11, %v5473_v59 }
 0x524   : > { %9574 = vst [vmem:[#allocation2 + $0x2a8] sm:$0xff] %v9446_v55  ;;  %v9320_v5 = vadd.f32 %v20261_v22, %v14253_v48  ;;  %v13331_v56 = vpop.f32.mrb[88].mxu1  ;;  %v9697_v15 = vld [vmem:[#allocation2 + $0x280] ss:$2 sm:$0xff]  ;;  %v9825_v34 = vld [vmem:[#allocation2 + $0x281] ss:$2 sm:$0xff] }
 0x525   : > { %9987 = vst [vmem:[%s20107_s8 + $0x98] sm:$0xff] %v9955_v54  ;;  %9573 = vst [vmem:[#allocation2 + $0x2a0] sm:$0xff] %v9445_v49  ;;  %v9319_v41 = vadd.f32 %v20261_v22, %v14254_v36  ;;  %v14107_v52 = vpop.f32.mrb[88].mxu0  ;;  %v5483_v37 = vpop.f32.mrb[89].mxu1  ;;  %v9912_v26 = vmax.f32 %v9697_v15, %v9825_v34 }
 0x526   : > { %v9448_v51 = vmax.f32 %v9320_v5, 0.0  ;;  %v14255_v19 = vadd.f32 %v14107_v52, %v13331_v56  ;;  %v8899_v17 = vpop.f32.mrb[89].mxu0 }
 0x527   : > { %v9447_v33 = vmax.f32 %v9319_v41, 0.0  ;;  %v14256_v44 = vadd.f32 %v8899_v17, %v5483_v37 }
 0x528   : > { %9576 = vst [vmem:[#allocation2 + $0x2b8] sm:$0xff] %v9448_v51  ;;  %v9322_v32 = vadd.f32 %v20261_v22, %v14255_v19  ;;  %v13334_v7 = vpop.f32.mrb[90].mxu1  ;;  %v9699_v28 = vld [vmem:[#allocation2 + $0x290] ss:$2 sm:$0xff]  ;;  %v9827_v57 = vld [vmem:[#allocation2 + $0x291] ss:$2 sm:$0xff] }
 0x529   : > { %9575 = vst [vmem:[#allocation2 + $0x2b0] sm:$0xff] %v9447_v33  ;;  %v9321_v0 = vadd.f32 %v20261_v22, %v14256_v44  ;;  %v14110_v45 = vpop.f32.mrb[90].mxu0  ;;  %v5493_v39 = vpop.f32.mrb[91].mxu1  ;;  %v9913_v60 = vmax.f32 %v9699_v28, %v9827_v57 }
 0x52a   : > { %v9450_v50 = vmax.f32 %v9322_v32, 0.0  ;;  %v14257_v20 = vadd.f32 %v14110_v45, %v13334_v7  ;;  %v8909_v1 = vpop.f32.mrb[91].mxu0 }
 0x52b   : > { %v9449_v63 = vmax.f32 %v9321_v0, 0.0  ;;  %v14258_v47 = vadd.f32 %v8909_v1, %v5493_v39 }
 0x52c   : > { %v9701_v38 = vld [vmem:[#allocation2 + $0x2a0] ss:$2 sm:$0xff]  ;;  %v9829_v62 = vld [vmem:[#allocation2 + $0x2a1] ss:$2 sm:$0xff]  ;;  %9578 = vst [vmem:[#allocation2 + $0x2c8] sm:$0xff] %v9450_v50  ;;  %v9324_v8 = vadd.f32 %v20261_v22, %v14257_v20  ;;  %v13337_v3 = vpop.f32.mrb[92].mxu1 }
 0x52d   : > { %v9914_v14 = vmax.f32 %v9701_v38, %v9829_v62  ;;  %9577 = vst [vmem:[#allocation2 + $0x2c0] sm:$0xff] %v9449_v63  ;;  %v9323_v10 = vadd.f32 %v20261_v22, %v14258_v47  ;;  %v14113_v21 = vpop.f32.mrb[92].mxu0  ;;  %v5503_v30 = vpop.f32.mrb[93].mxu1 }
 0x52e   : > { %v9452_v6 = vmax.f32 %v9324_v8, 0.0  ;;  %v14259_v18 = vadd.f32 %v14113_v21, %v13337_v3  ;;  %v8919_v25 = vpop.f32.mrb[93].mxu0 }
 0x52f   : > { %v9956_v35 = vmax.f32 %v9912_v26, %v9914_v14  ;;  %v9451_v23 = vmax.f32 %v9323_v10, 0.0  ;;  %v14260_v53 = vadd.f32 %v8919_v25, %v5503_v30 }
 0x530   : > { %v9703_v13 = vld [vmem:[#allocation2 + $0x2b0] ss:$2 sm:$0xff]  ;;  %v9831_v61 = vld [vmem:[#allocation2 + $0x2b1] ss:$2 sm:$0xff]  ;;  %9580 = vst [vmem:[#allocation2 + $0x2d8] sm:$0xff] %v9452_v6  ;;  %v9326_v4 = vadd.f32 %v20261_v22, %v14259_v18  ;;  %v13340_v27 = vpop.f32.mrb[94].mxu1 }
 0x531   : > { %9988 = vst [vmem:[%s20107_s8 + $0xa0] sm:$0xff] %v9956_v35  ;;  %v9915_v2 = vmax.f32 %v9703_v13, %v9831_v61  ;;  %9579 = vst [vmem:[#allocation2 + $0x2d0] sm:$0xff] %v9451_v23  ;;  %v9325_v29 = vadd.f32 %v20261_v22, %v14260_v53  ;;  %v14116_v46 = vpop.f32.mrb[94].mxu0  ;;  %v5513_v9 = vpop.f32.mrb[95].mxu1 }
 0x532   : > { %v9454_v43 = vmax.f32 %v9326_v4, 0.0  ;;  %v14261_v40 = vadd.f32 %v14116_v46, %v13340_v27  ;;  %v8929_v31 = vpop.f32.mrb[95].mxu0 }
 0x533   : > { %v9957_v58 = vmax.f32 %v9913_v60, %v9915_v2  ;;  %v9453_v42 = vmax.f32 %v9325_v29, 0.0  ;;  %v14262_v16 = vadd.f32 %v8929_v31, %v5513_v9 }
 0x534   : > { %9582 = vst [vmem:[#allocation2 + $0x2e8] sm:$0xff] %v9454_v43  ;;  %v9328_v12 = vadd.f32 %v20261_v22, %v14261_v40  ;;  %v13343_v24 = vpop.f32.mrb[96].mxu1  ;;  %v9705_v19 = vld [vmem:[#allocation2 + $0x2c0] ss:$2 sm:$0xff]  ;;  %v9833_v17 = vld [vmem:[#allocation2 + $0x2c1] ss:$2 sm:$0xff] }
 0x535   : > { %9989 = vst [vmem:[%s20107_s8 + $0xa8] sm:$0xff] %v9957_v58  ;;  %9581 = vst [vmem:[#allocation2 + $0x2e0] sm:$0xff] %v9453_v42  ;;  %v9327_v59 = vadd.f32 %v20261_v22, %v14262_v16  ;;  %v14119_v55 = vpop.f32.mrb[96].mxu0  ;;  %v5523_v48 = vpop.f32.mrb[97].mxu1  ;;  %v9916_v50 = vmax.f32 %v9705_v19, %v9833_v17 }
 0x536   : > { %v9456_v11 = vmax.f32 %v9328_v12, 0.0  ;;  %v14263_v54 = vadd.f32 %v14119_v55, %v13343_v24  ;;  %v8939_v49 = vpop.f32.mrb[97].mxu0 }
 0x537   : > { %v9455_v36 = vmax.f32 %v9327_v59, 0.0  ;;  %v14264_v5 = vadd.f32 %v8939_v49, %v5523_v48 }
 0x538   : > { %9584 = vst [vmem:[#allocation2 + $0x2f8] sm:$0xff] %v9456_v11  ;;  %v9330_v56 = vadd.f32 %v20261_v22, %v14263_v54  ;;  %v13346_v41 = vpop.f32.mrb[98].mxu1  ;;  %v9707_v38 = vld [vmem:[#allocation2 + $0x2d0] ss:$2 sm:$0xff]  ;;  %v9835_v62 = vld [vmem:[#allocation2 + $0x2d1] ss:$2 sm:$0xff] }
 0x539   : > { %9583 = vst [vmem:[#allocation2 + $0x2f0] sm:$0xff] %v9455_v36  ;;  %v9329_v52 = vadd.f32 %v20261_v22, %v14264_v5  ;;  %v14122_v37 = vpop.f32.mrb[98].mxu0  ;;  %v5533_v51 = vpop.f32.mrb[99].mxu1  ;;  %v9917_v18 = vmax.f32 %v9707_v38, %v9835_v62 }
 0x53a   : > { %v9458_v33 = vmax.f32 %v9330_v56, 0.0  ;;  %v14265_v44 = vadd.f32 %v14122_v37, %v13346_v41  ;;  %v8949_v32 = vpop.f32.mrb[99].mxu0 }
 0x53b   : > { %v9457_v7 = vmax.f32 %v9329_v52, 0.0  ;;  %v14266_v0 = vadd.f32 %v8949_v32, %v5533_v51 }
 0x53c   : > { %v9709_v45 = vld [vmem:[#allocation2 + $0x2e0] ss:$2 sm:$0xff]  ;;  %v9837_v39 = vld [vmem:[#allocation2 + $0x2e1] ss:$2 sm:$0xff]  ;;  %9586 = vst [vmem:[#allocation2 + $0x308] sm:$0xff] %v9458_v33  ;;  %v9332_v15 = vadd.f32 %v20261_v22, %v14265_v44  ;;  %v13349_v34 = vpop.f32.mrb[100].mxu1 }
 0x53d   : > { %v9918_v20 = vmax.f32 %v9709_v45, %v9837_v39  ;;  %9585 = vst [vmem:[#allocation2 + $0x300] sm:$0xff] %v9457_v7  ;;  %v9331_v1 = vadd.f32 %v20261_v22, %v14266_v0  ;;  %v14125_v63 = vpop.f32.mrb[100].mxu0  ;;  %v5543_v47 = vpop.f32.mrb[101].mxu1 }
 0x53e   : > { %v9460_v8 = vmax.f32 %v9332_v15, 0.0  ;;  %v14267_v3 = vadd.f32 %v14125_v63, %v13349_v34  ;;  %v8959_v26 = vpop.f32.mrb[101].mxu0 }
 0x53f   : > { %v9958_v14 = vmax.f32 %v9916_v50, %v9918_v20  ;;  %v9459_v10 = vmax.f32 %v9331_v1, 0.0  ;;  %v14268_v21 = vadd.f32 %v8959_v26, %v5543_v47 }
 0x540   : > { %v9711_v30 = vld [vmem:[#allocation2 + $0x2f0] ss:$2 sm:$0xff]  ;;  %v9839_v28 = vld [vmem:[#allocation2 + $0x2f1] ss:$2 sm:$0xff]  ;;  %9588 = vst [vmem:[#allocation2 + $0x318] sm:$0xff] %v9460_v8  ;;  %v9334_v57 = vadd.f32 %v20261_v22, %v14267_v3  ;;  %v13352_v6 = vpop.f32.mrb[102].mxu1 }
 0x541   : > { %9990 = vst [vmem:[%s20107_s8 + $0xb0] sm:$0xff] %v9958_v14  ;;  %v9919_v25 = vmax.f32 %v9711_v30, %v9839_v28  ;;  %9587 = vst [vmem:[#allocation2 + $0x310] sm:$0xff] %v9459_v10  ;;  %v9333_v35 = vadd.f32 %v20261_v22, %v14268_v21  ;;  %v14128_v23 = vpop.f32.mrb[102].mxu0  ;;  %v5553_v53 = vpop.f32.mrb[103].mxu1 }
 0x542   : > { %v9462_v13 = vmax.f32 %v9334_v57, 0.0  ;;  %v14269_v61 = vadd.f32 %v14128_v23, %v13352_v6  ;;  %v8969_v4 = vpop.f32.mrb[103].mxu0 }
 0x543   : > { %v9959_v27 = vmax.f32 %v9917_v18, %v9919_v25  ;;  %v9461_v60 = vmax.f32 %v9333_v35, 0.0  ;;  %v14270_v2 = vadd.f32 %v8969_v4, %v5553_v53 }
 0x544   : > { %9590 = vst [vmem:[#allocation2 + $0x328] sm:$0xff] %v9462_v13  ;;  %v9336_v29 = vadd.f32 %v20261_v22, %v14269_v61  ;;  %v13355_v46 = vpop.f32.mrb[104].mxu1  ;;  %v9713_v54 = vld [vmem:[#allocation2 + $0x300] ss:$2 sm:$0xff]  ;;  %v9841_v49 = vld [vmem:[#allocation2 + $0x301] ss:$2 sm:$0xff] }
 0x545   : > { %9991 = vst [vmem:[%s20107_s8 + $0xb8] sm:$0xff] %v9959_v27  ;;  %9589 = vst [vmem:[#allocation2 + $0x320] sm:$0xff] %v9461_v60  ;;  %v9335_v9 = vadd.f32 %v20261_v22, %v14270_v2  ;;  %v14131_v43 = vpop.f32.mrb[104].mxu0  ;;  %v5563_v40 = vpop.f32.mrb[105].mxu1  ;;  %v9920_v33 = vmax.f32 %v9713_v54, %v9841_v49 }
 0x546   : > { %v9464_v31 = vmax.f32 %v9336_v29, 0.0  ;;  %v14271_v58 = vadd.f32 %v14131_v43, %v13355_v46  ;;  %v8979_v42 = vpop.f32.mrb[105].mxu0 }
 0x547   : > { %v9463_v16 = vmax.f32 %v9335_v9, 0.0  ;;  %v14272_v12 = vadd.f32 %v8979_v42, %v5563_v40 }
 0x548   : > { %9592 = vst [vmem:[#allocation2 + $0x338] sm:$0xff] %v9464_v31  ;;  %v9338_v24 = vadd.f32 %v20261_v22, %v14271_v58  ;;  %v13358_v59 = vpop.f32.mrb[106].mxu1  ;;  %v9715_v45 = vld [vmem:[#allocation2 + $0x310] ss:$2 sm:$0xff]  ;;  %v9843_v39 = vld [vmem:[#allocation2 + $0x311] ss:$2 sm:$0xff] }
 0x549   : > { %9591 = vst [vmem:[#allocation2 + $0x330] sm:$0xff] %v9463_v16  ;;  %v9337_v55 = vadd.f32 %v20261_v22, %v14272_v12  ;;  %v14134_v48 = vpop.f32.mrb[106].mxu0  ;;  %v5573_v11 = vpop.f32.mrb[107].mxu1  ;;  %v9921_v3 = vmax.f32 %v9715_v45, %v9843_v39 }
 0x54a   : > { %v9466_v36 = vmax.f32 %v9338_v24, 0.0  ;;  %v14273_v5 = vadd.f32 %v14134_v48, %v13358_v59  ;;  %v8989_v56 = vpop.f32.mrb[107].mxu0 }
 0x54b   : > { %v9465_v41 = vmax.f32 %v9337_v55, 0.0  ;;  %v14274_v52 = vadd.f32 %v8989_v56, %v5573_v11 }
 0x54c   : > { %v9717_v37 = vld [vmem:[#allocation2 + $0x320] ss:$2 sm:$0xff]  ;;  %v9845_v51 = vld [vmem:[#allocation2 + $0x321] ss:$2 sm:$0xff]  ;;  %9594 = vst [vmem:[#allocation2 + $0x348] sm:$0xff] %v9466_v36  ;;  %v9340_v19 = vadd.f32 %v20261_v22, %v14273_v5  ;;  %v13361_v17 = vpop.f32.mrb[108].mxu1 }
 0x54d   : > { %v9922_v44 = vmax.f32 %v9717_v37, %v9845_v51  ;;  %9593 = vst [vmem:[#allocation2 + $0x340] sm:$0xff] %v9465_v41  ;;  %v9339_v32 = vadd.f32 %v20261_v22, %v14274_v52  ;;  %v14137_v7 = vpop.f32.mrb[108].mxu0  ;;  %v5583_v0 = vpop.f32.mrb[109].mxu1 }
 0x54e   : > { %v9468_v15 = vmax.f32 %v9340_v19, 0.0  ;;  %v14275_v34 = vadd.f32 %v14137_v7, %v13361_v17  ;;  %v8999_v50 = vpop.f32.mrb[109].mxu0 }
 0x54f   : > { %v9960_v20 = vmax.f32 %v9920_v33, %v9922_v44  ;;  %v9467_v1 = vmax.f32 %v9339_v32, 0.0  ;;  %v14276_v63 = vadd.f32 %v8999_v50, %v5583_v0 }
 0x550   : > { %v9719_v47 = vld [vmem:[#allocation2 + $0x330] ss:$2 sm:$0xff]  ;;  %v9847_v38 = vld [vmem:[#allocation2 + $0x331] ss:$2 sm:$0xff]  ;;  %9596 = vst [vmem:[#allocation2 + $0x358] sm:$0xff] %v9468_v15  ;;  %v9342_v62 = vadd.f32 %v20261_v22, %v14275_v34  ;;  %v13364_v8 = vpop.f32.mrb[110].mxu1 }
 0x551   : > { %9992 = vst [vmem:[%s20107_s8 + $0xc0] sm:$0xff] %v9960_v20  ;;  %v9923_v26 = vmax.f32 %v9719_v47, %v9847_v38  ;;  %9595 = vst [vmem:[#allocation2 + $0x350] sm:$0xff] %v9467_v1  ;;  %v9341_v14 = vadd.f32 %v20261_v22, %v14276_v63  ;;  %v14140_v10 = vpop.f32.mrb[110].mxu0  ;;  %v5593_v21 = vpop.f32.mrb[111].mxu1 }
 0x552   : > { %v9470_v30 = vmax.f32 %v9342_v62, 0.0  ;;  %v14277_v28 = vadd.f32 %v14140_v10, %v13364_v8  ;;  %v9009_v57 = vpop.f32.mrb[111].mxu0 }
 0x553   : > { %v9961_v6 = vmax.f32 %v9921_v3, %v9923_v26  ;;  %v9469_v18 = vmax.f32 %v9341_v14, 0.0  ;;  %v14278_v25 = vadd.f32 %v9009_v57, %v5593_v21 }
 0x554   : > { %9598 = vst [vmem:[#allocation2 + $0x368] sm:$0xff] %v9470_v30  ;;  %v9344_v35 = vadd.f32 %v20261_v22, %v14277_v28  ;;  %v13367_v23 = vpop.f32.mrb[112].mxu1  ;;  %v9721_v58 = vld [vmem:[#allocation2 + $0x340] ss:$2 sm:$0xff]  ;;  %v9849_v42 = vld [vmem:[#allocation2 + $0x341] ss:$2 sm:$0xff] }
 0x555   : > { %9993 = vst [vmem:[%s20107_s8 + $0xc8] sm:$0xff] %v9961_v6  ;;  %9597 = vst [vmem:[#allocation2 + $0x360] sm:$0xff] %v9469_v18  ;;  %v9343_v53 = vadd.f32 %v20261_v22, %v14278_v25  ;;  %v14143_v13 = vpop.f32.mrb[112].mxu0  ;;  %v5603_v61 = vpop.f32.mrb[113].mxu1  ;;  %v9924_v36 = vmax.f32 %v9721_v58, %v9849_v42 }
 0x556   : > { %v9472_v4 = vmax.f32 %v9344_v35, 0.0  ;;  %v14279_v27 = vadd.f32 %v14143_v13, %v13367_v23  ;;  %v9019_v60 = vpop.f32.mrb[113].mxu0 }
 0x557   : > { %v9471_v2 = vmax.f32 %v9343_v53, 0.0  ;;  %v14280_v29 = vadd.f32 %v9019_v60, %v5603_v61 }
 0x558   : > { %9600 = vst [vmem:[#allocation2 + $0x378] sm:$0xff] %v9472_v4  ;;  %v9346_v46 = vadd.f32 %v20261_v22, %v14279_v27  ;;  %v13370_v9 = vpop.f32.mrb[114].mxu1  ;;  %v9723_v37 = vld [vmem:[#allocation2 + $0x350] ss:$2 sm:$0xff]  ;;  %v9851_v51 = vld [vmem:[#allocation2 + $0x351] ss:$2 sm:$0xff] }
 0x559   : > { %9599 = vst [vmem:[#allocation2 + $0x370] sm:$0xff] %v9471_v2  ;;  %v9345_v43 = vadd.f32 %v20261_v22, %v14280_v29  ;;  %v14146_v40 = vpop.f32.mrb[114].mxu0  ;;  %v5613_v31 = vpop.f32.mrb[115].mxu1  ;;  %v9925_v34 = vmax.f32 %v9723_v37, %v9851_v51 }
 0x55a   : > { %v9474_v16 = vmax.f32 %v9346_v46, 0.0  ;;  %v14281_v12 = vadd.f32 %v14146_v40, %v13370_v9  ;;  %v9029_v24 = vpop.f32.mrb[115].mxu0 }
 0x55b   : > { %v9473_v59 = vmax.f32 %v9345_v43, 0.0  ;;  %v14282_v55 = vadd.f32 %v9029_v24, %v5613_v31 }
 0x55c   : > { %v9725_v48 = vld [vmem:[#allocation2 + $0x360] ss:$2 sm:$0xff]  ;;  %v9853_v11 = vld [vmem:[#allocation2 + $0x361] ss:$2 sm:$0xff]  ;;  %9602 = vst [vmem:[#allocation2 + $0x388] sm:$0xff] %v9474_v16  ;;  %v9348_v54 = vadd.f32 %v20261_v22, %v14281_v12  ;;  %v13373_v49 = vpop.f32.mrb[116].mxu1 }
 0x55d   : > { %v9926_v5 = vmax.f32 %v9725_v48, %v9853_v11  ;;  %9601 = vst [vmem:[#allocation2 + $0x380] sm:$0xff] %v9473_v59  ;;  %v9347_v56 = vadd.f32 %v20261_v22, %v14282_v55  ;;  %v14149_v41 = vpop.f32.mrb[116].mxu0  ;;  %v5623_v52 = vpop.f32.mrb[117].mxu1 }
 0x55e   : > { %v9476_v19 = vmax.f32 %v9348_v54, 0.0  ;;  %v14283_v17 = vadd.f32 %v14149_v41, %v13373_v49  ;;  %v9039_v33 = vpop.f32.mrb[117].mxu0 }
 0x55f   : > { %v9962_v44 = vmax.f32 %v9924_v36, %v9926_v5  ;;  %v9475_v32 = vmax.f32 %v9347_v56, 0.0  ;;  %v14284_v7 = vadd.f32 %v9039_v33, %v5623_v52 }
 0x560   : > { %v9727_v0 = vld [vmem:[#allocation2 + $0x370] ss:$2 sm:$0xff]  ;;  %v9855_v45 = vld [vmem:[#allocation2 + $0x371] ss:$2 sm:$0xff]  ;;  %9604 = vst [vmem:[#allocation2 + $0x398] sm:$0xff] %v9476_v19  ;;  %v9350_v39 = vadd.f32 %v20261_v22, %v14283_v17  ;;  %v13376_v15 = vpop.f32.mrb[118].mxu1 }
 0x561   : > { %9994 = vst [vmem:[%s20107_s8 + $0xd0] sm:$0xff] %v9962_v44  ;;  %v9927_v50 = vmax.f32 %v9727_v0, %v9855_v45  ;;  %9603 = vst [vmem:[#allocation2 + $0x390] sm:$0xff] %v9475_v32  ;;  %v9349_v20 = vadd.f32 %v20261_v22, %v14284_v7  ;;  %v14152_v1 = vpop.f32.mrb[118].mxu0  ;;  %v5633_v63 = vpop.f32.mrb[119].mxu1 }
 0x562   : > { %v9478_v47 = vmax.f32 %v9350_v39, 0.0  ;;  %v14285_v38 = vadd.f32 %v14152_v1, %v13376_v15  ;;  %v9049_v62 = vpop.f32.mrb[119].mxu0 }
 0x563   : > { %v9963_v8 = vmax.f32 %v9925_v34, %v9927_v50  ;;  %v9477_v3 = vmax.f32 %v9349_v20, 0.0  ;;  %v14286_v26 = vadd.f32 %v9049_v62, %v5633_v63 }
 0x564   : > { %9606 = vst [vmem:[#allocation2 + $0x3a8] sm:$0xff] %v9478_v47  ;;  %v9352_v14 = vadd.f32 %v20261_v22, %v14285_v38  ;;  %v13379_v10 = vpop.f32.mrb[120].mxu1  ;;  %v9729_v27 = vld [vmem:[#allocation2 + $0x380] ss:$2 sm:$0xff]  ;;  %v9857_v60 = vld [vmem:[#allocation2 + $0x381] ss:$2 sm:$0xff] }
 0x565   : > { %9995 = vst [vmem:[%s20107_s8 + $0xd8] sm:$0xff] %v9963_v8  ;;  %9605 = vst [vmem:[#allocation2 + $0x3a0] sm:$0xff] %v9477_v3  ;;  %v9351_v21 = vadd.f32 %v20261_v22, %v14286_v26  ;;  %v14155_v30 = vpop.f32.mrb[120].mxu0  ;;  %v5643_v28 = vpop.f32.mrb[121].mxu1  ;;  %v9928_v16 = vmax.f32 %v9729_v27, %v9857_v60 }
 0x566   : > { %v9480_v57 = vmax.f32 %v9352_v14, 0.0  ;;  %v14287_v6 = vadd.f32 %v14155_v30, %v13379_v10  ;;  %v9059_v18 = vpop.f32.mrb[121].mxu0 }
 0x567   : > { %v9479_v25 = vmax.f32 %v9351_v21, 0.0  ;;  %v14288_v35 = vadd.f32 %v9059_v18, %v5643_v28 }
 0x568   : > { %9608 = vst [vmem:[#allocation2 + $0x3b8] sm:$0xff] %v9480_v57  ;;  %v9354_v23 = vadd.f32 %v20261_v22, %v14287_v6  ;;  %v13382_v53 = vpop.f32.mrb[122].mxu1  ;;  %v9731_v48 = vld [vmem:[#allocation2 + $0x390] ss:$2 sm:$0xff]  ;;  %v9859_v11 = vld [vmem:[#allocation2 + $0x391] ss:$2 sm:$0xff] }
 0x569   : > { %9607 = vst [vmem:[#allocation2 + $0x3b0] sm:$0xff] %v9479_v25  ;;  %v9353_v13 = vadd.f32 %v20261_v22, %v14288_v35  ;;  %v14158_v61 = vpop.f32.mrb[122].mxu0  ;;  %v5653_v4 = vpop.f32.mrb[123].mxu1  ;;  %v9929_v17 = vmax.f32 %v9731_v48, %v9859_v11 }
 0x56a   : > { %v9482_v2 = vmax.f32 %v9354_v23, 0.0  ;;  %v14289_v29 = vadd.f32 %v14158_v61, %v13382_v53  ;;  %v9069_v46 = vpop.f32.mrb[123].mxu0 }
 0x56b   : > { %v9481_v9 = vmax.f32 %v9353_v13, 0.0  ;;  %v14290_v43 = vadd.f32 %v9069_v46, %v5653_v4 }
 0x56c   : > { %v9733_v40 = vld [vmem:[#allocation2 + $0x3a0] ss:$2 sm:$0xff]  ;;  %v9861_v31 = vld [vmem:[#allocation2 + $0x3a1] ss:$2 sm:$0xff]  ;;  %9610 = vst [vmem:[#allocation2 + $0x3c8] sm:$0xff] %v9482_v2  ;;  %v9356_v58 = vadd.f32 %v20261_v22, %v14289_v29  ;;  %v13385_v42 = vpop.f32.mrb[124].mxu1 }
 0x56d   : > { %v9930_v12 = vmax.f32 %v9733_v40, %v9861_v31  ;;  %9609 = vst [vmem:[#allocation2 + $0x3c0] sm:$0xff] %v9481_v9  ;;  %v9355_v24 = vadd.f32 %v20261_v22, %v14290_v43  ;;  %v14161_v59 = vpop.f32.mrb[124].mxu0  ;;  %v5663_v55 = vpop.f32.mrb[125].mxu1 }
 0x56e   : > { %v9484_v54 = vmax.f32 %v9356_v58, 0.0  ;;  %v14291_v49 = vadd.f32 %v14161_v59, %v13385_v42  ;;  %v9079_v36 = vpop.f32.mrb[125].mxu0 }
 0x56f   : > { %v9964_v5 = vmax.f32 %v9928_v16, %v9930_v12  ;;  %v9483_v56 = vmax.f32 %v9355_v24, 0.0  ;;  %v14292_v41 = vadd.f32 %v9079_v36, %v5663_v55 }
 0x570   : > { %v9735_v52 = vld [vmem:[#allocation2 + $0x3b0] ss:$2 sm:$0xff]  ;;  %v9863_v37 = vld [vmem:[#allocation2 + $0x3b1] ss:$2 sm:$0xff]  ;;  %9612 = vst [vmem:[#allocation2 + $0x3d8] sm:$0xff] %v9484_v54  ;;  %v9358_v51 = vadd.f32 %v20261_v22, %v14291_v49  ;;  %v13388_v19 = vpop.f32.mrb[126].mxu1 }
 0x571   : > { %9996 = vst [vmem:[%s20107_s8 + $0xe0] sm:$0xff] %v9964_v5  ;;  %v9931_v33 = vmax.f32 %v9735_v52, %v9863_v37  ;;  %9611 = vst [vmem:[#allocation2 + $0x3d0] sm:$0xff] %v9483_v56  ;;  %v9357_v44 = vadd.f32 %v20261_v22, %v14292_v41  ;;  %v14164_v32 = vpop.f32.mrb[126].mxu0  ;;  %v5673_v7 = vpop.f32.mrb[127].mxu1 }
 0x572   : > { %v9486_v0 = vmax.f32 %v9358_v51, 0.0  ;;  %v14293_v45 = vadd.f32 %v14164_v32, %v13388_v19  ;;  %v9089_v39 = vpop.f32.mrb[127].mxu0 }
 0x573   : > { %v9965_v15 = vmax.f32 %v9929_v17, %v9931_v33  ;;  %v9485_v34 = vmax.f32 %v9357_v44, 0.0  ;;  %v14294_v50 = vadd.f32 %v9089_v39, %v5673_v7 }
 0x574   : > { %9614 = vst [vmem:[#allocation2 + $0x3e8] sm:$0xff] %v9486_v0  ;;  %v9360_v20 = vadd.f32 %v20261_v22, %v14293_v45  ;;  %v9737_v38 = vld [vmem:[#allocation2 + $0x3c0] ss:$2 sm:$0xff]  ;;  %v9865_v62 = vld [vmem:[#allocation2 + $0x3c1] ss:$2 sm:$0xff] }
 0x575   : > { %9997 = vst [vmem:[%s20107_s8 + $0xe8] sm:$0xff] %v9965_v15  ;;  %9613 = vst [vmem:[#allocation2 + $0x3e0] sm:$0xff] %v9485_v34  ;;  %v9359_v1 = vadd.f32 %v20261_v22, %v14294_v50  ;;  %v9932_v26 = vmax.f32 %v9737_v38, %v9865_v62 }
 0x576   : > { %v9488_v63 = vmax.f32 %v9360_v20, 0.0 }
 0x577   : > { %v9487_v47 = vmax.f32 %v9359_v1, 0.0 }
 0x578   : > { %9616 = vst [vmem:[#allocation2 + $0x3f8] sm:$0xff] %v9488_v63  ;;  %v9739_v10 = vld [vmem:[#allocation2 + $0x3d0] ss:$2 sm:$0xff]  ;;  %v9867_v21 = vld [vmem:[#allocation2 + $0x3d1] ss:$2 sm:$0xff] }
 0x579   : > { %9615 = vst [vmem:[#allocation2 + $0x3f0] sm:$0xff] %v9487_v47  ;;  %v9933_v57 = vmax.f32 %v9739_v10, %v9867_v21 }
 0x57c   : > { %v9741_v8 = vld [vmem:[#allocation2 + $0x3e0] ss:$2 sm:$0xff]  ;;  %v9869_v3 = vld [vmem:[#allocation2 + $0x3e1] ss:$2 sm:$0xff] }
 0x57d   : > { %v9934_v14 = vmax.f32 %v9741_v8, %v9869_v3 }
 0x57f   : > { %v9966_v30 = vmax.f32 %v9932_v26, %v9934_v14 }
 0x580   : > { %v9743_v22 = vld [vmem:[#allocation2 + $0x3f0] ss:$2 sm:$0xff]  ;;  %v9871_v28 = vld [vmem:[#allocation2 + $0x3f1] ss:$2 sm:$0xff] }
 0x581   : > { %9998 = vst [vmem:[%s20107_s8 + $0xf0] sm:$0xff] %v9966_v30  ;;  %v9935_v6 = vmax.f32 %v9743_v22, %v9871_v28 }
 0x583   : > { %v9967_v18 = vmax.f32 %v9933_v57, %v9935_v6 }
 0x585   : > { %9999 = vst [vmem:[%s20107_s8 + $0xf8] sm:$0xff] %v9967_v18 }
 0x586   : > { %15497 = shalt.err (!%p15494_p3)
}
 0x587   : > { %s15498_s29 = scalar_lea.hbm %s20346_s24, 4096  ;;  %s15502_s5 = scalar_lea.hbm %s20397_s3, 8192 }
 0x588   : > { %p15499_p4 = scmp.ne.s32.totalorder %s20346_s24, %s15498_s29  ;;  %p15503_p9 = scmp.lt.u32.totalorder %s20346_s24, %s20397_s3 }
 0x589   : > { %p15504_p10 = scmp.lt.u32.totalorder %s15502_s5, %s15498_s29  ;;  %p15506_p12 = scmp.lt.u32.totalorder %s15498_s29, %s20346_s24 }
 0x58a   : > { %p15500_p7 = pnand %p15499_p4, %p15609_p5 }
 0x58b   : > { %p15505_p11 = por %p15504_p10, %p15503_p9 }
 0x58c   : > { %p15501_p8 = pneg %p15500_p7 }
 0x58d   : > { %p15507_p13 = por %p15506_p12, %p15505_p11 }
 0x58f   : > { %p15508_p0 = pnand %p15507_p13, %p15501_p8 }
 0x591   : > { %15511 = shalt.err (!%p15508_p0)
}
 0x592   : > { %s15549_s8 = smov 128   ;;  %s15550_s9 = smov 8  }
 0x593   : > { %15192 = dma.vmem_to_hbm [thread:$0]  (%p15609_p5), %s20348_s17, 4096, %s20346_s24, %s20353_s16, %s15549_s8, %s15549_s8, %s15550_s9  }
 0x594 PF: > { %p15198_p1 = scmp.ge.s32.totalorder %s15546_s15, 2  ;;  %s10029_s10 = sand.u32 1, %s15534_s12  }
 0x595   : > { %s10030_s11 = scalar_lea.sflag [#allocation4], %s10029_s10 }
 0x596   : > { %p15195_p2 = pnand %p15198_p1, %p15613_p6 }
 0x598   : > { %15529 = dma.done.wait (!%p15195_p2), %s10030_s11, 4096  }
 0x599   : > { %15531 = vsyncadd (!%p15195_p2), %s10030_s11, 4294963200  ;;  %p13_p3 = scmp.ge.s32.totalorder %s15596_s18, 4   ;;  %s21778_s12 = smov %s15538_s13 }
 0x59a   : > { %s21779_s13 = smov %s15542_s14  ;;  %s21780_s14 = smov %s15607_s21 }
 0x59b   : > { %s21781_s15 = smov %s15596_s18  ;;  %15 = sbr.rel (!%p13_p3) target bundleno = 3 (0x3), region = 202 }
 0x5a2   :  { %10035 = vsyncpa [#allocation4], 1 }
 0x5a3   :  { %10037 = vsyncpa [#allocation4 + $0x1], 1 }

</bundles_post_ra>
